<compile_context>
chip_gen: v6e
topology: v6e:2x2x1
jax: 0.10.0
libtpu: 0.0.40
codegen_flags: <defaults>
</compile_context>

<pallas_src>
import jax
import jax.numpy as jnp
from jax.experimental import pallas as pl
from jax.experimental.pallas import tpu as pltpu

IN_CHANNELS = 40
C1 = 64
C2 = 128
HIDDEN = 64
NUM_CLASSES = 8


# ----------------------------- kernel helpers ------------------------------

def _lstm_cell(gates, c_prev):
    """One LSTM cell update; gate columns pre-ordered as (i, f, o, g)."""
    h = HIDDEN
    sig = jax.nn.sigmoid(gates[:, :3 * h])            # i | f | o (one contiguous lane block)
    g_g = jnp.tanh(gates[:, 3 * h:])                  # g
    c = sig[:, h:2 * h] * c_prev + sig[:, :h] * g_g
    return sig[:, 2 * h:] * jnp.tanh(c), c


def _conv_bn_relu(x, w_ref, scale_ref, shift_ref):
    """Conv1d(k=3, stride=1, pad=1) + folded BatchNorm(eval) + ReLU, (T, Cin) -> (T, Cout)."""
    t = x.shape[0]
    row = jax.lax.broadcasted_iota(jnp.int32, x.shape, 0)
    # x[t-1] (zero-padded at t=0) and x[t+1] (zero-padded at t=T-1); non-negative shifts only.
    x_m1 = jnp.where(row > 0, pltpu.roll(x, 1, 0), 0.0)
    x_p1 = jnp.where(row < t - 1, pltpu.roll(x, t - 1, 0), 0.0)
    acc = jnp.dot(x_m1, w_ref[0], preferred_element_type=jnp.float32)
    acc = acc + jnp.dot(x, w_ref[1], preferred_element_type=jnp.float32)
    acc = acc + jnp.dot(x_p1, w_ref[2], preferred_element_type=jnp.float32)
    return jnp.maximum(acc * scale_ref[...] + shift_ref[...], 0.0)


# ----------------------------- fused kernel ------------------------------

def fused_audio_emotion_kernel(
    x_ref,                                    # (1, T, 40)
    c1w_ref, c1s_ref, c1t_ref,                # (3, 40, 64), (1, 64), (1, 64)
    c2w_ref, c2s_ref, c2t_ref,                # (3, 64, 128), (1, 128), (1, 128)
    l0f_wih_ref, l0f_whh_ref, l0f_b_ref,      # (128, 256), (64, 256), (1, 256)
    l0r_wih_ref, l0r_whh_ref, l0r_b_ref,
    l1f_wih_ref, l1f_whh_ref, l1f_b_ref,
    l1r_wih_ref, l1r_whh_ref, l1r_b_ref,
    hw_ref, hb_ref,                           # (128, 8), (1, 8)  -- folded fc1@fc2
    o_ref,                                    # (1, 1, 8)
    xgf_ref, xgr_ref,                         # VMEM (T, 256) scratch: input projections
    hf_ref, hr_ref,                           # VMEM (T, 64) scratch: layer-1 outputs
):
    H = HIDDEN
    seq = x_ref.shape[1]
    zero_state = jnp.zeros((1, H), jnp.float32)

    # ---- conv stack, lane-dense (T, C) layout ----
    h = _conv_bn_relu(x_ref[0], c1w_ref, c1s_ref, c1t_ref)     # (T, 64)
    h = _conv_bn_relu(h, c2w_ref, c2s_ref, c2t_ref)            # (T, 128)

    # ---- biLSTM layer 1: fwd + rev fused, input projections hoisted into VMEM scratch ----
    xgf_ref[...] = jnp.dot(h, l0f_wih_ref[...],
                           preferred_element_type=jnp.float32) + l0f_b_ref[...]
    xgr_ref[...] = jnp.dot(h, l0r_wih_ref[...],
                           preferred_element_type=jnp.float32) + l0r_b_ref[...]

    def l1_step(i, carry):
        hf, cf, hr, cr = carry
        tr = seq - 1 - i
        gf = xgf_ref[pl.ds(i, 1), :] + jnp.dot(
            hf, l0f_whh_ref[...], preferred_element_type=jnp.float32)
        hf, cf = _lstm_cell(gf, cf)
        hf_ref[pl.ds(i, 1), :] = hf
        gr = xgr_ref[pl.ds(tr, 1), :] + jnp.dot(
            hr, l0r_whh_ref[...], preferred_element_type=jnp.float32)
        hr, cr = _lstm_cell(gr, cr)
        hr_ref[pl.ds(tr, 1), :] = hr
        return hf, cf, hr, cr

    jax.lax.fori_loop(0, seq, l1_step,
                      (zero_state, zero_state, zero_state, zero_state), unroll=True)

    # ---- biLSTM layer 2: only h[:, -1, :] is consumed downstream ----
    # Forward direction: full recurrence, keep only the final hidden state (no stores).
    hf_all = hf_ref[...]                                       # (T, 64)
    hr_all = hr_ref[...]                                       # (T, 64)
    xgf_ref[...] = (jnp.dot(hf_all, l1f_wih_ref[:H, :], preferred_element_type=jnp.float32)
                    + jnp.dot(hr_all, l1f_wih_ref[H:, :], preferred_element_type=jnp.float32)
                    + l1f_b_ref[...])

    def l2_step(i, carry):
        h2, c2 = carry
        g = xgf_ref[pl.ds(i, 1), :] + jnp.dot(
            h2, l1f_whh_ref[...], preferred_element_type=jnp.float32)
        return _lstm_cell(g, c2)

    h2_fwd, _ = jax.lax.fori_loop(0, seq, l2_step, (zero_state, zero_state), unroll=True)

    # Reverse direction at t = T-1 is its first step from the zero initial state.
    g_rev = (jnp.dot(hf_ref[pl.ds(seq - 1, 1), :], l1r_wih_ref[:H, :],
                     preferred_element_type=jnp.float32)
             + jnp.dot(hr_ref[pl.ds(seq - 1, 1), :], l1r_wih_ref[H:, :],
                       preferred_element_type=jnp.float32)
             + l1r_b_ref[...])
    h2_rev, _ = _lstm_cell(g_rev, zero_state)

    # ---- head: relu(last) @ (fc1 . fc2 folded) + folded bias ----
    out = (jnp.dot(jnp.maximum(h2_fwd, 0.0), hw_ref[:H, :], preferred_element_type=jnp.float32)
           + jnp.dot(jnp.maximum(h2_rev, 0.0), hw_ref[H:, :], preferred_element_type=jnp.float32)
           + hb_ref[...])
    o_ref[0] = out


# ----------------------------- pallas_call wrapper ------------------------------

def forward(x, kp):
    B, c_in, T = x.shape
    xt = jnp.transpose(x, (0, 2, 1))          # (B, T, Cin): one tiny XLA op on the raw input

    lstm_in_specs = []
    for _ in range(4):
        lstm_in_specs += [
            pl.BlockSpec((2 * HIDDEN, 4 * HIDDEN), lambda b: (0, 0)),
            pl.BlockSpec((HIDDEN, 4 * HIDDEN), lambda b: (0, 0)),
            pl.BlockSpec((1, 4 * HIDDEN), lambda b: (0, 0)),
        ]

    out = pl.pallas_call(
        fused_audio_emotion_kernel,
        out_shape=jax.ShapeDtypeStruct((B, 1, NUM_CLASSES), jnp.float32),
        grid=(B,),
        in_specs=[
            pl.BlockSpec((1, T, c_in), lambda b: (b, 0, 0)),
            pl.BlockSpec((3, c_in, C1), lambda b: (0, 0, 0)),
            pl.BlockSpec((1, C1), lambda b: (0, 0)),
            pl.BlockSpec((1, C1), lambda b: (0, 0)),
            pl.BlockSpec((3, C1, C2), lambda b: (0, 0, 0)),
            pl.BlockSpec((1, C2), lambda b: (0, 0)),
            pl.BlockSpec((1, C2), lambda b: (0, 0)),
        ] + lstm_in_specs + [
            pl.BlockSpec((2 * HIDDEN, NUM_CLASSES), lambda b: (0, 0)),
            pl.BlockSpec((1, NUM_CLASSES), lambda b: (0, 0)),
        ],
        out_specs=pl.BlockSpec((1, 1, NUM_CLASSES), lambda b: (b, 0, 0)),
        scratch_shapes=[
            pltpu.VMEM((T, 4 * HIDDEN), jnp.float32),
            pltpu.VMEM((T, 4 * HIDDEN), jnp.float32),
            pltpu.VMEM((T, HIDDEN), jnp.float32),
            pltpu.VMEM((T, HIDDEN), jnp.float32),
        ],
        compiler_params=pltpu.CompilerParams(dimension_semantics=("parallel",)),
    )(
        xt,
        kp["c1w"], kp["c1s"], kp["c1t"],
        kp["c2w"], kp["c2s"], kp["c2t"],
        *[t for d in kp["lstm"] for t in (d["wih_t"], d["whh_t"], d["b"])],
        kp["head_w"], kp["head_b"],
    )
    return out[:, 0, :]


# ----------------------------- params (torch layout) + kernel prep ------------------------------

def init_raw_params(key):
    ks = jax.random.split(key, 20)

    def nrm(k, shape, scale=0.1):
        return (scale * jax.random.normal(k, shape)).astype(jnp.float32)

    p = {
        "conv1_w": nrm(ks[0], (C1, IN_CHANNELS, 3)), "conv1_b": nrm(ks[1], (C1,)),
        "conv2_w": nrm(ks[2], (C2, C1, 3)), "conv2_b": nrm(ks[3], (C2,)),
        "bn1_gamma": 1.0 + nrm(ks[4], (C1,)), "bn1_beta": nrm(ks[5], (C1,)),
        "bn1_mean": nrm(ks[6], (C1,)), "bn1_var": 1.0 + jnp.abs(nrm(ks[7], (C1,))),
        "bn2_gamma": 1.0 + nrm(ks[8], (C2,)), "bn2_beta": nrm(ks[9], (C2,)),
        "bn2_mean": nrm(ks[10], (C2,)), "bn2_var": 1.0 + jnp.abs(nrm(ks[11], (C2,))),
        "fc1_w": nrm(ks[12], (2 * HIDDEN, 2 * HIDDEN)), "fc1_b": nrm(ks[13], (2 * HIDDEN,)),
        "fc2_w": nrm(ks[14], (NUM_CLASSES, 2 * HIDDEN)), "fc2_b": nrm(ks[15], (NUM_CLASSES,)),
    }
    lkeys = jax.random.split(ks[16], 16)
    lstm = []
    for idx in range(4):  # layer0 fwd, layer0 rev, layer1 fwd, layer1 rev
        k0, k1, k2, k3 = lkeys[4 * idx:4 * idx + 4]
        lstm.append({
            "wih": nrm(k0, (4 * HIDDEN, 2 * HIDDEN)),   # input size 128 for both layers
            "whh": nrm(k1, (4 * HIDDEN, HIDDEN)),
            "bih": nrm(k2, (4 * HIDDEN,)),
            "bhh": nrm(k3, (4 * HIDDEN,)),
        })
    p["lstm"] = lstm
    return p


def _reorder_gates(a):
    """(..., 4H) columns from torch gate order (i, f, g, o) to (i, f, o, g)."""
    H = HIDDEN
    return jnp.concatenate([a[..., :2 * H], a[..., 3 * H:], a[..., 2 * H:3 * H]], axis=-1)


def prep_kernel_params(p, eps=1e-5):
    kp = {}

    def fold_bn(gamma, beta, mean, var, conv_b):
        scale = gamma / jnp.sqrt(var + eps)
        shift = beta + scale * (conv_b - mean)
        return scale[None, :], shift[None, :]                  # (1, Cout)

    kp["c1w"] = jnp.transpose(p["conv1_w"], (2, 1, 0))         # (3, Cin, Cout)
    kp["c1s"], kp["c1t"] = fold_bn(p["bn1_gamma"], p["bn1_beta"], p["bn1_mean"],
                                   p["bn1_var"], p["conv1_b"])
    kp["c2w"] = jnp.transpose(p["conv2_w"], (2, 1, 0))
    kp["c2s"], kp["c2t"] = fold_bn(p["bn2_gamma"], p["bn2_beta"], p["bn2_mean"],
                                   p["bn2_var"], p["conv2_b"])

    kp["lstm"] = [{
        "wih_t": _reorder_gates(d["wih"].T),                   # (128, 256)
        "whh_t": _reorder_gates(d["whh"].T),                   # (64, 256)
        "b": _reorder_gates((d["bih"] + d["bhh"])[None, :]),   # (1, 256)
    } for d in p["lstm"]]

    # Fold fc1 and fc2 (eval: dropout identity, no nonlinearity between them).
    w1t = p["fc1_w"].T                                         # (128, 128)
    w2t = p["fc2_w"].T                                         # (128, 8)
    kp["head_w"] = w1t @ w2t                                   # (128, 8)
    kp["head_b"] = (p["fc1_b"] @ w2t + p["fc2_b"])[None, :]    # (1, 8)
    return kp


# ----------------------------- pure-JAX reference (raw torch-layout params) ------------------------------

def reference_forward(x, raw, eps=1e-5):
    def conv_bn_relu(x, w, b, gamma, beta, mean, var):
        y = jax.lax.conv_general_dilated(
            x, w, window_strides=(1,), padding=[(1, 1)],
            dimension_numbers=("NCH", "OIH", "NCH"))
        y = y + b[None, :, None]
        y = ((y - mean[None, :, None]) * (gamma / jnp.sqrt(var + eps))[None, :, None]
             + beta[None, :, None])
        return jnp.maximum(y, 0.0)

    def lstm_dir(x, prm, reverse):
        B, T, _ = x.shape
        H = HIDDEN
        wih_t, whh_t = prm["wih"].T, prm["whh"].T
        bias = prm["bih"] + prm["bhh"]
        h = jnp.zeros((B, H), jnp.float32)
        c = jnp.zeros((B, H), jnp.float32)
        outs = [None] * T
        order = range(T - 1, -1, -1) if reverse else range(T)
        for t in order:
            g = x[:, t, :] @ wih_t + bias + h @ whh_t
            i = jax.nn.sigmoid(g[:, :H]); f = jax.nn.sigmoid(g[:, H:2 * H])
            gg = jnp.tanh(g[:, 2 * H:3 * H]); o = jax.nn.sigmoid(g[:, 3 * H:])
            c = f * c + i * gg
            h = o * jnp.tanh(c)
            outs[t] = h
        return jnp.stack(outs, axis=1)

    h = conv_bn_relu(x, raw["conv1_w"], raw["conv1_b"], raw["bn1_gamma"], raw["bn1_beta"],
                     raw["bn1_mean"], raw["bn1_var"])
    h = conv_bn_relu(h, raw["conv2_w"], raw["conv2_b"], raw["bn2_gamma"], raw["bn2_beta"],
                     raw["bn2_mean"], raw["bn2_var"])
    h = jnp.transpose(h, (0, 2, 1))
    for layer in range(2):
        hf = lstm_dir(h, raw["lstm"][2 * layer], False)
        hr = lstm_dir(h, raw["lstm"][2 * layer + 1], True)
        h = jnp.concatenate([hf, hr], axis=-1)
    last = jnp.maximum(h[:, -1, :], 0.0)
    y = last @ raw["fc1_w"].T + raw["fc1_b"]
    return y @ raw["fc2_w"].T + raw["fc2_b"]


if __name__ == "__main__":
    key = jax.random.PRNGKey(0)
    kp_key, kx = jax.random.split(key)
    raw_params = init_raw_params(kp_key)
    kernel_params = prep_kernel_params(raw_params)

    B, T = 2, 16
    # torch Conv1d input layout (N, C, L): (batch, 40 mel features, time)
    x = jax.random.normal(kx, (B, IN_CHANNELS, T), jnp.float32)

    out = jax.block_until_ready(forward(x, kernel_params))
    ref = reference_forward(x, raw_params)

    assert out.shape == (B, NUM_CLASSES)
    assert bool(jnp.all(jnp.isfinite(out)))
    max_diff = float(jnp.max(jnp.abs(out - ref)))
    assert bool(jnp.allclose(out, ref, rtol=2e-2, atol=2e-2)), f"max abs diff {max_diff}"
    print("KERNEL_OK")
</pallas_src>

<mosaic_0001>
module attributes {stable_mosaic.version = 11 : i64} {
  func.func @fused_audio_emotion_kernel(%arg0: i32, %arg1: memref<1x16x40xf32, #tpu.memory_space<vmem>>, %arg2: memref<3x40x64xf32, #tpu.memory_space<vmem>>, %arg3: memref<1x64xf32, #tpu.memory_space<vmem>>, %arg4: memref<1x64xf32, #tpu.memory_space<vmem>>, %arg5: memref<3x64x128xf32, #tpu.memory_space<vmem>>, %arg6: memref<1x128xf32, #tpu.memory_space<vmem>>, %arg7: memref<1x128xf32, #tpu.memory_space<vmem>>, %arg8: memref<128x256xf32, #tpu.memory_space<vmem>>, %arg9: memref<64x256xf32, #tpu.memory_space<vmem>>, %arg10: memref<1x256xf32, #tpu.memory_space<vmem>>, %arg11: memref<128x256xf32, #tpu.memory_space<vmem>>, %arg12: memref<64x256xf32, #tpu.memory_space<vmem>>, %arg13: memref<1x256xf32, #tpu.memory_space<vmem>>, %arg14: memref<128x256xf32, #tpu.memory_space<vmem>>, %arg15: memref<64x256xf32, #tpu.memory_space<vmem>>, %arg16: memref<1x256xf32, #tpu.memory_space<vmem>>, %arg17: memref<128x256xf32, #tpu.memory_space<vmem>>, %arg18: memref<64x256xf32, #tpu.memory_space<vmem>>, %arg19: memref<1x256xf32, #tpu.memory_space<vmem>>, %arg20: memref<128x8xf32, #tpu.memory_space<vmem>>, %arg21: memref<1x8xf32, #tpu.memory_space<vmem>>, %arg22: memref<1x1x8xf32, #tpu.memory_space<vmem>>, %arg23: memref<16x256xf32, #tpu.memory_space<vmem>>, %arg24: memref<16x256xf32, #tpu.memory_space<vmem>>, %arg25: memref<16x64xf32, #tpu.memory_space<vmem>>, %arg26: memref<16x64xf32, #tpu.memory_space<vmem>>) attributes {dimension_semantics = [#tpu.dimension_semantics<parallel>], iteration_bounds = array<i64: 2>, scalar_prefetch = 0 : i64, scratch_operands = 4 : i64, tpu.core_type = #tpu.core_type<tc>, window_params = [{transform_indices = @transform_0, window_bounds = array<i64: 1, 16, 40>}, {pipeline_mode = #tpu.pipeline_mode<synchronous>, transform_indices = @transform_1, window_bounds = array<i64: 3, 40, 64>}, {pipeline_mode = #tpu.pipeline_mode<synchronous>, transform_indices = @transform_2, window_bounds = array<i64: 1, 64>}, {pipeline_mode = #tpu.pipeline_mode<synchronous>, transform_indices = @transform_3, window_bounds = array<i64: 1, 64>}, {pipeline_mode = #tpu.pipeline_mode<synchronous>, transform_indices = @transform_4, window_bounds = array<i64: 3, 64, 128>}, {pipeline_mode = #tpu.pipeline_mode<synchronous>, transform_indices = @transform_5, window_bounds = array<i64: 1, 128>}, {pipeline_mode = #tpu.pipeline_mode<synchronous>, transform_indices = @transform_6, window_bounds = array<i64: 1, 128>}, {pipeline_mode = #tpu.pipeline_mode<synchronous>, transform_indices = @transform_7, window_bounds = array<i64: 128, 256>}, {pipeline_mode = #tpu.pipeline_mode<synchronous>, transform_indices = @transform_8, window_bounds = array<i64: 64, 256>}, {pipeline_mode = #tpu.pipeline_mode<synchronous>, transform_indices = @transform_9, window_bounds = array<i64: 1, 256>}, {pipeline_mode = #tpu.pipeline_mode<synchronous>, transform_indices = @transform_10, window_bounds = array<i64: 128, 256>}, {pipeline_mode = #tpu.pipeline_mode<synchronous>, transform_indices = @transform_11, window_bounds = array<i64: 64, 256>}, {pipeline_mode = #tpu.pipeline_mode<synchronous>, transform_indices = @transform_12, window_bounds = array<i64: 1, 256>}, {pipeline_mode = #tpu.pipeline_mode<synchronous>, transform_indices = @transform_13, window_bounds = array<i64: 128, 256>}, {pipeline_mode = #tpu.pipeline_mode<synchronous>, transform_indices = @transform_14, window_bounds = array<i64: 64, 256>}, {pipeline_mode = #tpu.pipeline_mode<synchronous>, transform_indices = @transform_15, window_bounds = array<i64: 1, 256>}, {pipeline_mode = #tpu.pipeline_mode<synchronous>, transform_indices = @transform_16, window_bounds = array<i64: 128, 256>}, {pipeline_mode = #tpu.pipeline_mode<synchronous>, transform_indices = @transform_17, window_bounds = array<i64: 64, 256>}, {pipeline_mode = #tpu.pipeline_mode<synchronous>, transform_indices = @transform_18, window_bounds = array<i64: 1, 256>}, {pipeline_mode = #tpu.pipeline_mode<synchronous>, transform_indices = @transform_19, window_bounds = array<i64: 128, 8>}, {pipeline_mode = #tpu.pipeline_mode<synchronous>, transform_indices = @transform_20, window_bounds = array<i64: 1, 8>}, {transform_indices = @transform_21, window_bounds = array<i64: 1, 1, 8>}]} {
    %cst = arith.constant 0.000000e+00 : f32
    %0 = vector.broadcast %cst : f32 to vector<1x64xf32>
    %c0 = arith.constant 0 : index
    %c0_0 = arith.constant 0 : index
    %c0_1 = arith.constant 0 : index
    %1 = vector.load %arg1[%c0, %c0_0, %c0_1] : memref<1x16x40xf32, #tpu.memory_space<vmem>>, vector<1x16x40xf32>
    %2 = vector.shape_cast %1 : vector<1x16x40xf32> to vector<16x40xf32>
    %3 = tpu.iota {dimensions = array<i32: 0>} : vector<16x40xi32>
    %c0_i32 = arith.constant 0 : i32
    %4 = vector.broadcast %c0_i32 : i32 to vector<16x40xi32>
    %5 = arith.cmpi sgt, %3, %4 : vector<16x40xi32>
    %c1_i32 = arith.constant 1 : i32
    %6 = tpu.dynamic_rotate %2 by %c1_i32 dim 0 : vector<16x40xf32>, i32 -> vector<16x40xf32>
    %cst_2 = arith.constant 0.000000e+00 : f32
    %7 = vector.broadcast %cst_2 : f32 to vector<16x40xf32>
    %8 = arith.select %5, %6, %7 : vector<16x40xi1>, vector<16x40xf32>
    %c15_i32 = arith.constant 15 : i32
    %9 = vector.broadcast %c15_i32 : i32 to vector<16x40xi32>
    %10 = arith.cmpi slt, %3, %9 : vector<16x40xi32>
    %c15_i32_3 = arith.constant 15 : i32
    %11 = tpu.dynamic_rotate %2 by %c15_i32_3 dim 0 : vector<16x40xf32>, i32 -> vector<16x40xf32>
    %cst_4 = arith.constant 0.000000e+00 : f32
    %12 = vector.broadcast %cst_4 : f32 to vector<16x40xf32>
    %13 = arith.select %10, %11, %12 : vector<16x40xi1>, vector<16x40xf32>
    %c0_5 = arith.constant 0 : index
    %c0_6 = arith.constant 0 : index
    %c0_7 = arith.constant 0 : index
    %14 = vector.load %arg2[%c0_5, %c0_6, %c0_7] : memref<3x40x64xf32, #tpu.memory_space<vmem>>, vector<1x40x64xf32>
    %15 = vector.shape_cast %14 : vector<1x40x64xf32> to vector<40x64xf32>
    %cst_8 = arith.constant dense<0.000000e+00> : vector<16x64xf32>
    %16 = tpu.matmul %8, %15, %cst_8 {dimension_numbers = #tpu.dot_dimension_numbers<[1], [0], [0], [1], [0, 0, 1, 1], [], []>} : vector<16x40xf32>, vector<40x64xf32>, vector<16x64xf32> -> vector<16x64xf32>
    %c1 = arith.constant 1 : index
    %c0_9 = arith.constant 0 : index
    %c0_10 = arith.constant 0 : index
    %17 = vector.load %arg2[%c1, %c0_9, %c0_10] : memref<3x40x64xf32, #tpu.memory_space<vmem>>, vector<1x40x64xf32>
    %18 = vector.shape_cast %17 : vector<1x40x64xf32> to vector<40x64xf32>
    %cst_11 = arith.constant dense<0.000000e+00> : vector<16x64xf32>
    %19 = tpu.matmul %2, %18, %cst_11 {dimension_numbers = #tpu.dot_dimension_numbers<[1], [0], [0], [1], [0, 0, 1, 1], [], []>} : vector<16x40xf32>, vector<40x64xf32>, vector<16x64xf32> -> vector<16x64xf32>
    %20 = arith.addf %16, %19 : vector<16x64xf32>
    %c2 = arith.constant 2 : index
    %c0_12 = arith.constant 0 : index
    %c0_13 = arith.constant 0 : index
    %21 = vector.load %arg2[%c2, %c0_12, %c0_13] : memref<3x40x64xf32, #tpu.memory_space<vmem>>, vector<1x40x64xf32>
    %22 = vector.shape_cast %21 : vector<1x40x64xf32> to vector<40x64xf32>
    %cst_14 = arith.constant dense<0.000000e+00> : vector<16x64xf32>
    %23 = tpu.matmul %13, %22, %cst_14 {dimension_numbers = #tpu.dot_dimension_numbers<[1], [0], [0], [1], [0, 0, 1, 1], [], []>} : vector<16x40xf32>, vector<40x64xf32>, vector<16x64xf32> -> vector<16x64xf32>
    %24 = arith.addf %20, %23 : vector<16x64xf32>
    %c0_15 = arith.constant 0 : index
    %c0_16 = arith.constant 0 : index
    %25 = vector.load %arg3[%c0_15, %c0_16] : memref<1x64xf32, #tpu.memory_space<vmem>>, vector<1x64xf32>
    %26 = vector.broadcast %25 : vector<1x64xf32> to vector<16x64xf32>
    %27 = arith.mulf %24, %26 : vector<16x64xf32>
    %c0_17 = arith.constant 0 : index
    %c0_18 = arith.constant 0 : index
    %28 = vector.load %arg4[%c0_17, %c0_18] : memref<1x64xf32, #tpu.memory_space<vmem>>, vector<1x64xf32>
    %29 = vector.broadcast %28 : vector<1x64xf32> to vector<16x64xf32>
    %30 = arith.addf %27, %29 : vector<16x64xf32>
    %cst_19 = arith.constant 0.000000e+00 : f32
    %31 = vector.broadcast %cst_19 : f32 to vector<16x64xf32>
    %32 = arith.maximumf %30, %31 : vector<16x64xf32>
    %33 = tpu.iota {dimensions = array<i32: 0>} : vector<16x64xi32>
    %c0_i32_20 = arith.constant 0 : i32
    %34 = vector.broadcast %c0_i32_20 : i32 to vector<16x64xi32>
    %35 = arith.cmpi sgt, %33, %34 : vector<16x64xi32>
    %c1_i32_21 = arith.constant 1 : i32
    %36 = tpu.dynamic_rotate %32 by %c1_i32_21 dim 0 : vector<16x64xf32>, i32 -> vector<16x64xf32>
    %cst_22 = arith.constant 0.000000e+00 : f32
    %37 = vector.broadcast %cst_22 : f32 to vector<16x64xf32>
    %38 = arith.select %35, %36, %37 : vector<16x64xi1>, vector<16x64xf32>
    %c15_i32_23 = arith.constant 15 : i32
    %39 = vector.broadcast %c15_i32_23 : i32 to vector<16x64xi32>
    %40 = arith.cmpi slt, %33, %39 : vector<16x64xi32>
    %c15_i32_24 = arith.constant 15 : i32
    %41 = tpu.dynamic_rotate %32 by %c15_i32_24 dim 0 : vector<16x64xf32>, i32 -> vector<16x64xf32>
    %cst_25 = arith.constant 0.000000e+00 : f32
    %42 = vector.broadcast %cst_25 : f32 to vector<16x64xf32>
    %43 = arith.select %40, %41, %42 : vector<16x64xi1>, vector<16x64xf32>
    %c0_26 = arith.constant 0 : index
    %c0_27 = arith.constant 0 : index
    %c0_28 = arith.constant 0 : index
    %44 = vector.load %arg5[%c0_26, %c0_27, %c0_28] : memref<3x64x128xf32, #tpu.memory_space<vmem>>, vector<1x64x128xf32>
    %45 = vector.shape_cast %44 : vector<1x64x128xf32> to vector<64x128xf32>
    %cst_29 = arith.constant dense<0.000000e+00> : vector<16x128xf32>
    %46 = tpu.matmul %38, %45, %cst_29 {dimension_numbers = #tpu.dot_dimension_numbers<[1], [0], [0], [1], [0, 0, 1, 1], [], []>} : vector<16x64xf32>, vector<64x128xf32>, vector<16x128xf32> -> vector<16x128xf32>
    %c1_30 = arith.constant 1 : index
    %c0_31 = arith.constant 0 : index
    %c0_32 = arith.constant 0 : index
    %47 = vector.load %arg5[%c1_30, %c0_31, %c0_32] : memref<3x64x128xf32, #tpu.memory_space<vmem>>, vector<1x64x128xf32>
    %48 = vector.shape_cast %47 : vector<1x64x128xf32> to vector<64x128xf32>
    %cst_33 = arith.constant dense<0.000000e+00> : vector<16x128xf32>
    %49 = tpu.matmul %32, %48, %cst_33 {dimension_numbers = #tpu.dot_dimension_numbers<[1], [0], [0], [1], [0, 0, 1, 1], [], []>} : vector<16x64xf32>, vector<64x128xf32>, vector<16x128xf32> -> vector<16x128xf32>
    %50 = arith.addf %46, %49 : vector<16x128xf32>
    %c2_34 = arith.constant 2 : index
    %c0_35 = arith.constant 0 : index
    %c0_36 = arith.constant 0 : index
    %51 = vector.load %arg5[%c2_34, %c0_35, %c0_36] : memref<3x64x128xf32, #tpu.memory_space<vmem>>, vector<1x64x128xf32>
    %52 = vector.shape_cast %51 : vector<1x64x128xf32> to vector<64x128xf32>
    %cst_37 = arith.constant dense<0.000000e+00> : vector<16x128xf32>
    %53 = tpu.matmul %43, %52, %cst_37 {dimension_numbers = #tpu.dot_dimension_numbers<[1], [0], [0], [1], [0, 0, 1, 1], [], []>} : vector<16x64xf32>, vector<64x128xf32>, vector<16x128xf32> -> vector<16x128xf32>
    %54 = arith.addf %50, %53 : vector<16x128xf32>
    %c0_38 = arith.constant 0 : index
    %c0_39 = arith.constant 0 : index
    %55 = vector.load %arg6[%c0_38, %c0_39] : memref<1x128xf32, #tpu.memory_space<vmem>>, vector<1x128xf32>
    %56 = vector.broadcast %55 : vector<1x128xf32> to vector<16x128xf32>
    %57 = arith.mulf %54, %56 : vector<16x128xf32>
    %c0_40 = arith.constant 0 : index
    %c0_41 = arith.constant 0 : index
    %58 = vector.load %arg7[%c0_40, %c0_41] : memref<1x128xf32, #tpu.memory_space<vmem>>, vector<1x128xf32>
    %59 = vector.broadcast %58 : vector<1x128xf32> to vector<16x128xf32>
    %60 = arith.addf %57, %59 : vector<16x128xf32>
    %cst_42 = arith.constant 0.000000e+00 : f32
    %61 = vector.broadcast %cst_42 : f32 to vector<16x128xf32>
    %62 = arith.maximumf %60, %61 : vector<16x128xf32>
    %c0_43 = arith.constant 0 : index
    %c0_44 = arith.constant 0 : index
    %63 = vector.load %arg8[%c0_43, %c0_44] : memref<128x256xf32, #tpu.memory_space<vmem>>, vector<128x256xf32>
    %cst_45 = arith.constant dense<0.000000e+00> : vector<16x256xf32>
    %64 = tpu.matmul %62, %63, %cst_45 {dimension_numbers = #tpu.dot_dimension_numbers<[1], [0], [0], [1], [0, 0, 1, 1], [], []>} : vector<16x128xf32>, vector<128x256xf32>, vector<16x256xf32> -> vector<16x256xf32>
    %c0_46 = arith.constant 0 : index
    %c0_47 = arith.constant 0 : index
    %65 = vector.load %arg10[%c0_46, %c0_47] : memref<1x256xf32, #tpu.memory_space<vmem>>, vector<1x256xf32>
    %66 = vector.broadcast %65 : vector<1x256xf32> to vector<16x256xf32>
    %67 = arith.addf %64, %66 : vector<16x256xf32>
    %c0_48 = arith.constant 0 : index
    %c0_49 = arith.constant 0 : index
    %68 = vector.load %arg23[%c0_48, %c0_49] : memref<16x256xf32, #tpu.memory_space<vmem>>, vector<16x256xf32>
    tpu.vector_store %arg23[%c0_48, %c0_49], %67 {strides = array<i32>} : memref<16x256xf32, #tpu.memory_space<vmem>>, vector<16x256xf32>,
    %c0_50 = arith.constant 0 : index
    %c0_51 = arith.constant 0 : index
    %69 = vector.load %arg11[%c0_50, %c0_51] : memref<128x256xf32, #tpu.memory_space<vmem>>, vector<128x256xf32>
    %cst_52 = arith.constant dense<0.000000e+00> : vector<16x256xf32>
    %70 = tpu.matmul %62, %69, %cst_52 {dimension_numbers = #tpu.dot_dimension_numbers<[1], [0], [0], [1], [0, 0, 1, 1], [], []>} : vector<16x128xf32>, vector<128x256xf32>, vector<16x256xf32> -> vector<16x256xf32>
    %c0_53 = arith.constant 0 : index
    %c0_54 = arith.constant 0 : index
    %71 = vector.load %arg13[%c0_53, %c0_54] : memref<1x256xf32, #tpu.memory_space<vmem>>, vector<1x256xf32>
    %72 = vector.broadcast %71 : vector<1x256xf32> to vector<16x256xf32>
    %73 = arith.addf %70, %72 : vector<16x256xf32>
    %c0_55 = arith.constant 0 : index
    %c0_56 = arith.constant 0 : index
    %74 = vector.load %arg24[%c0_55, %c0_56] : memref<16x256xf32, #tpu.memory_space<vmem>>, vector<16x256xf32>
    tpu.vector_store %arg24[%c0_55, %c0_56], %73 {strides = array<i32>} : memref<16x256xf32, #tpu.memory_space<vmem>>, vector<16x256xf32>,
    %c0_i32_57 = arith.constant 0 : i32
    %c15_i32_58 = arith.constant 15 : i32
    %75 = arith.subi %c15_i32_58, %c0_i32_57 : i32
    %76 = arith.index_cast %c0_i32_57 : i32 to index
    %c0_59 = arith.constant 0 : index
    %77 = vector.load %arg23[%76, %c0_59] : memref<16x256xf32, #tpu.memory_space<vmem>>, vector<1x256xf32>
    %c0_60 = arith.constant 0 : index
    %c0_61 = arith.constant 0 : index
    %78 = vector.load %arg9[%c0_60, %c0_61] : memref<64x256xf32, #tpu.memory_space<vmem>>, vector<64x256xf32>
    %cst_62 = arith.constant dense<0.000000e+00> : vector<1x256xf32>
    %79 = tpu.matmul %0, %78, %cst_62 {dimension_numbers = #tpu.dot_dimension_numbers<[1], [0], [0], [1], [0, 0, 1, 1], [], []>} : vector<1x64xf32>, vector<64x256xf32>, vector<1x256xf32> -> vector<1x256xf32>
    %80 = arith.addf %77, %79 : vector<1x256xf32>
    %81 = vector.extract_strided_slice %80 {offsets = [0, 0], sizes = [1, 192], strides = [1, 1]} : vector<1x256xf32> to vector<1x192xf32>
    %82 = arith.negf %81 : vector<1x192xf32>
    %83 = math.exp %82 : vector<1x192xf32>
    %cst_63 = arith.constant 1.000000e+00 : f32
    %84 = vector.broadcast %cst_63 : f32 to vector<1x192xf32>
    %85 = arith.addf %84, %83 : vector<1x192xf32>
    %86 = arith.divf %84, %85 : vector<1x192xf32>
    %87 = vector.extract_strided_slice %80 {offsets = [0, 192], sizes = [1, 64], strides = [1, 1]} : vector<1x256xf32> to vector<1x64xf32>
    %88 = math.tanh %87 : vector<1x64xf32>
    %89 = vector.extract_strided_slice %86 {offsets = [0, 64], sizes = [1, 64], strides = [1, 1]} : vector<1x192xf32> to vector<1x64xf32>
    %90 = arith.mulf %89, %0 : vector<1x64xf32>
    %91 = vector.extract_strided_slice %86 {offsets = [0, 0], sizes = [1, 64], strides = [1, 1]} : vector<1x192xf32> to vector<1x64xf32>
    %92 = arith.mulf %91, %88 : vector<1x64xf32>
    %93 = arith.addf %90, %92 : vector<1x64xf32>
    %94 = vector.extract_strided_slice %86 {offsets = [0, 128], sizes = [1, 64], strides = [1, 1]} : vector<1x192xf32> to vector<1x64xf32>
    %95 = math.tanh %93 : vector<1x64xf32>
    %96 = arith.mulf %94, %95 : vector<1x64xf32>
    %97 = arith.index_cast %c0_i32_57 : i32 to index
    %c0_64 = arith.constant 0 : index
    %98 = vector.load %arg25[%97, %c0_64] : memref<16x64xf32, #tpu.memory_space<vmem>>, vector<1x64xf32>
    tpu.vector_store %arg25[%97, %c0_64], %96 {strides = array<i32>} : memref<16x64xf32, #tpu.memory_space<vmem>>, vector<1x64xf32>,
    %99 = arith.index_cast %75 : i32 to index
    %c0_65 = arith.constant 0 : index
    %100 = vector.load %arg24[%99, %c0_65] : memref<16x256xf32, #tpu.memory_space<vmem>>, vector<1x256xf32>
    %c0_66 = arith.constant 0 : index
    %c0_67 = arith.constant 0 : index
    %101 = vector.load %arg12[%c0_66, %c0_67] : memref<64x256xf32, #tpu.memory_space<vmem>>, vector<64x256xf32>
    %cst_68 = arith.constant dense<0.000000e+00> : vector<1x256xf32>
    %102 = tpu.matmul %0, %101, %cst_68 {dimension_numbers = #tpu.dot_dimension_numbers<[1], [0], [0], [1], [0, 0, 1, 1], [], []>} : vector<1x64xf32>, vector<64x256xf32>, vector<1x256xf32> -> vector<1x256xf32>
    %103 = arith.addf %100, %102 : vector<1x256xf32>
    %104 = vector.extract_strided_slice %103 {offsets = [0, 0], sizes = [1, 192], strides = [1, 1]} : vector<1x256xf32> to vector<1x192xf32>
    %105 = arith.negf %104 : vector<1x192xf32>
    %106 = math.exp %105 : vector<1x192xf32>
    %cst_69 = arith.constant 1.000000e+00 : f32
    %107 = vector.broadcast %cst_69 : f32 to vector<1x192xf32>
    %108 = arith.addf %107, %106 : vector<1x192xf32>
    %109 = arith.divf %107, %108 : vector<1x192xf32>
    %110 = vector.extract_strided_slice %103 {offsets = [0, 192], sizes = [1, 64], strides = [1, 1]} : vector<1x256xf32> to vector<1x64xf32>
    %111 = math.tanh %110 : vector<1x64xf32>
    %112 = vector.extract_strided_slice %109 {offsets = [0, 64], sizes = [1, 64], strides = [1, 1]} : vector<1x192xf32> to vector<1x64xf32>
    %113 = arith.mulf %112, %0 : vector<1x64xf32>
    %114 = vector.extract_strided_slice %109 {offsets = [0, 0], sizes = [1, 64], strides = [1, 1]} : vector<1x192xf32> to vector<1x64xf32>
    %115 = arith.mulf %114, %111 : vector<1x64xf32>
    %116 = arith.addf %113, %115 : vector<1x64xf32>
    %117 = vector.extract_strided_slice %109 {offsets = [0, 128], sizes = [1, 64], strides = [1, 1]} : vector<1x192xf32> to vector<1x64xf32>
    %118 = math.tanh %116 : vector<1x64xf32>
    %119 = arith.mulf %117, %118 : vector<1x64xf32>
    %120 = arith.index_cast %75 : i32 to index
    %c0_70 = arith.constant 0 : index
    %121 = vector.load %arg26[%120, %c0_70] : memref<16x64xf32, #tpu.memory_space<vmem>>, vector<1x64xf32>
    tpu.vector_store %arg26[%120, %c0_70], %119 {strides = array<i32>} : memref<16x64xf32, #tpu.memory_space<vmem>>, vector<1x64xf32>,
    %c1_i32_71 = arith.constant 1 : i32
    %c15_i32_72 = arith.constant 15 : i32
    %122 = arith.subi %c15_i32_72, %c1_i32_71 : i32
    %123 = arith.index_cast %c1_i32_71 : i32 to index
    %c0_73 = arith.constant 0 : index
    %124 = vector.load %arg23[%123, %c0_73] : memref<16x256xf32, #tpu.memory_space<vmem>>, vector<1x256xf32>
    %c0_74 = arith.constant 0 : index
    %c0_75 = arith.constant 0 : index
    %125 = vector.load %arg9[%c0_74, %c0_75] : memref<64x256xf32, #tpu.memory_space<vmem>>, vector<64x256xf32>
    %cst_76 = arith.constant dense<0.000000e+00> : vector<1x256xf32>
    %126 = tpu.matmul %96, %125, %cst_76 {dimension_numbers = #tpu.dot_dimension_numbers<[1], [0], [0], [1], [0, 0, 1, 1], [], []>} : vector<1x64xf32>, vector<64x256xf32>, vector<1x256xf32> -> vector<1x256xf32>
    %127 = arith.addf %124, %126 : vector<1x256xf32>
    %128 = vector.extract_strided_slice %127 {offsets = [0, 0], sizes = [1, 192], strides = [1, 1]} : vector<1x256xf32> to vector<1x192xf32>
    %129 = arith.negf %128 : vector<1x192xf32>
    %130 = math.exp %129 : vector<1x192xf32>
    %cst_77 = arith.constant 1.000000e+00 : f32
    %131 = vector.broadcast %cst_77 : f32 to vector<1x192xf32>
    %132 = arith.addf %131, %130 : vector<1x192xf32>
    %133 = arith.divf %131, %132 : vector<1x192xf32>
    %134 = vector.extract_strided_slice %127 {offsets = [0, 192], sizes = [1, 64], strides = [1, 1]} : vector<1x256xf32> to vector<1x64xf32>
    %135 = math.tanh %134 : vector<1x64xf32>
    %136 = vector.extract_strided_slice %133 {offsets = [0, 64], sizes = [1, 64], strides = [1, 1]} : vector<1x192xf32> to vector<1x64xf32>
    %137 = arith.mulf %136, %93 : vector<1x64xf32>
    %138 = vector.extract_strided_slice %133 {offsets = [0, 0], sizes = [1, 64], strides = [1, 1]} : vector<1x192xf32> to vector<1x64xf32>
    %139 = arith.mulf %138, %135 : vector<1x64xf32>
    %140 = arith.addf %137, %139 : vector<1x64xf32>
    %141 = vector.extract_strided_slice %133 {offsets = [0, 128], sizes = [1, 64], strides = [1, 1]} : vector<1x192xf32> to vector<1x64xf32>
    %142 = math.tanh %140 : vector<1x64xf32>
    %143 = arith.mulf %141, %142 : vector<1x64xf32>
    %144 = arith.index_cast %c1_i32_71 : i32 to index
    %c0_78 = arith.constant 0 : index
    %145 = vector.load %arg25[%144, %c0_78] : memref<16x64xf32, #tpu.memory_space<vmem>>, vector<1x64xf32>
    tpu.vector_store %arg25[%144, %c0_78], %143 {strides = array<i32>} : memref<16x64xf32, #tpu.memory_space<vmem>>, vector<1x64xf32>,
    %146 = arith.index_cast %122 : i32 to index
    %c0_79 = arith.constant 0 : index
    %147 = vector.load %arg24[%146, %c0_79] : memref<16x256xf32, #tpu.memory_space<vmem>>, vector<1x256xf32>
    %c0_80 = arith.constant 0 : index
    %c0_81 = arith.constant 0 : index
    %148 = vector.load %arg12[%c0_80, %c0_81] : memref<64x256xf32, #tpu.memory_space<vmem>>, vector<64x256xf32>
    %cst_82 = arith.constant dense<0.000000e+00> : vector<1x256xf32>
    %149 = tpu.matmul %119, %148, %cst_82 {dimension_numbers = #tpu.dot_dimension_numbers<[1], [0], [0], [1], [0, 0, 1, 1], [], []>} : vector<1x64xf32>, vector<64x256xf32>, vector<1x256xf32> -> vector<1x256xf32>
    %150 = arith.addf %147, %149 : vector<1x256xf32>
    %151 = vector.extract_strided_slice %150 {offsets = [0, 0], sizes = [1, 192], strides = [1, 1]} : vector<1x256xf32> to vector<1x192xf32>
    %152 = arith.negf %151 : vector<1x192xf32>
    %153 = math.exp %152 : vector<1x192xf32>
    %cst_83 = arith.constant 1.000000e+00 : f32
    %154 = vector.broadcast %cst_83 : f32 to vector<1x192xf32>
    %155 = arith.addf %154, %153 : vector<1x192xf32>
    %156 = arith.divf %154, %155 : vector<1x192xf32>
    %157 = vector.extract_strided_slice %150 {offsets = [0, 192], sizes = [1, 64], strides = [1, 1]} : vector<1x256xf32> to vector<1x64xf32>
    %158 = math.tanh %157 : vector<1x64xf32>
    %159 = vector.extract_strided_slice %156 {offsets = [0, 64], sizes = [1, 64], strides = [1, 1]} : vector<1x192xf32> to vector<1x64xf32>
    %160 = arith.mulf %159, %116 : vector<1x64xf32>
    %161 = vector.extract_strided_slice %156 {offsets = [0, 0], sizes = [1, 64], strides = [1, 1]} : vector<1x192xf32> to vector<1x64xf32>
    %162 = arith.mulf %161, %158 : vector<1x64xf32>
    %163 = arith.addf %160, %162 : vector<1x64xf32>
    %164 = vector.extract_strided_slice %156 {offsets = [0, 128], sizes = [1, 64], strides = [1, 1]} : vector<1x192xf32> to vector<1x64xf32>
    %165 = math.tanh %163 : vector<1x64xf32>
    %166 = arith.mulf %164, %165 : vector<1x64xf32>
    %167 = arith.index_cast %122 : i32 to index
    %c0_84 = arith.constant 0 : index
    %168 = vector.load %arg26[%167, %c0_84] : memref<16x64xf32, #tpu.memory_space<vmem>>, vector<1x64xf32>
    tpu.vector_store %arg26[%167, %c0_84], %166 {strides = array<i32>} : memref<16x64xf32, #tpu.memory_space<vmem>>, vector<1x64xf32>,
    %c2_i32 = arith.constant 2 : i32
    %c15_i32_85 = arith.constant 15 : i32
    %169 = arith.subi %c15_i32_85, %c2_i32 : i32
    %170 = arith.index_cast %c2_i32 : i32 to index
    %c0_86 = arith.constant 0 : index
    %171 = vector.load %arg23[%170, %c0_86] : memref<16x256xf32, #tpu.memory_space<vmem>>, vector<1x256xf32>
    %c0_87 = arith.constant 0 : index
    %c0_88 = arith.constant 0 : index
    %172 = vector.load %arg9[%c0_87, %c0_88] : memref<64x256xf32, #tpu.memory_space<vmem>>, vector<64x256xf32>
    %cst_89 = arith.constant dense<0.000000e+00> : vector<1x256xf32>
    %173 = tpu.matmul %143, %172, %cst_89 {dimension_numbers = #tpu.dot_dimension_numbers<[1], [0], [0], [1], [0, 0, 1, 1], [], []>} : vector<1x64xf32>, vector<64x256xf32>, vector<1x256xf32> -> vector<1x256xf32>
    %174 = arith.addf %171, %173 : vector<1x256xf32>
    %175 = vector.extract_strided_slice %174 {offsets = [0, 0], sizes = [1, 192], strides = [1, 1]} : vector<1x256xf32> to vector<1x192xf32>
    %176 = arith.negf %175 : vector<1x192xf32>
    %177 = math.exp %176 : vector<1x192xf32>
    %cst_90 = arith.constant 1.000000e+00 : f32
    %178 = vector.broadcast %cst_90 : f32 to vector<1x192xf32>
    %179 = arith.addf %178, %177 : vector<1x192xf32>
    %180 = arith.divf %178, %179 : vector<1x192xf32>
    %181 = vector.extract_strided_slice %174 {offsets = [0, 192], sizes = [1, 64], strides = [1, 1]} : vector<1x256xf32> to vector<1x64xf32>
    %182 = math.tanh %181 : vector<1x64xf32>
    %183 = vector.extract_strided_slice %180 {offsets = [0, 64], sizes = [1, 64], strides = [1, 1]} : vector<1x192xf32> to vector<1x64xf32>
    %184 = arith.mulf %183, %140 : vector<1x64xf32>
    %185 = vector.extract_strided_slice %180 {offsets = [0, 0], sizes = [1, 64], strides = [1, 1]} : vector<1x192xf32> to vector<1x64xf32>
    %186 = arith.mulf %185, %182 : vector<1x64xf32>
    %187 = arith.addf %184, %186 : vector<1x64xf32>
    %188 = vector.extract_strided_slice %180 {offsets = [0, 128], sizes = [1, 64], strides = [1, 1]} : vector<1x192xf32> to vector<1x64xf32>
    %189 = math.tanh %187 : vector<1x64xf32>
    %190 = arith.mulf %188, %189 : vector<1x64xf32>
    %191 = arith.index_cast %c2_i32 : i32 to index
    %c0_91 = arith.constant 0 : index
    %192 = vector.load %arg25[%191, %c0_91] : memref<16x64xf32, #tpu.memory_space<vmem>>, vector<1x64xf32>
    tpu.vector_store %arg25[%191, %c0_91], %190 {strides = array<i32>} : memref<16x64xf32, #tpu.memory_space<vmem>>, vector<1x64xf32>,
    %193 = arith.index_cast %169 : i32 to index
    %c0_92 = arith.constant 0 : index
    %194 = vector.load %arg24[%193, %c0_92] : memref<16x256xf32, #tpu.memory_space<vmem>>, vector<1x256xf32>
    %c0_93 = arith.constant 0 : index
    %c0_94 = arith.constant 0 : index
    %195 = vector.load %arg12[%c0_93, %c0_94] : memref<64x256xf32, #tpu.memory_space<vmem>>, vector<64x256xf32>
    %cst_95 = arith.constant dense<0.000000e+00> : vector<1x256xf32>
    %196 = tpu.matmul %166, %195, %cst_95 {dimension_numbers = #tpu.dot_dimension_numbers<[1], [0], [0], [1], [0, 0, 1, 1], [], []>} : vector<1x64xf32>, vector<64x256xf32>, vector<1x256xf32> -> vector<1x256xf32>
    %197 = arith.addf %194, %196 : vector<1x256xf32>
    %198 = vector.extract_strided_slice %197 {offsets = [0, 0], sizes = [1, 192], strides = [1, 1]} : vector<1x256xf32> to vector<1x192xf32>
    %199 = arith.negf %198 : vector<1x192xf32>
    %200 = math.exp %199 : vector<1x192xf32>
    %cst_96 = arith.constant 1.000000e+00 : f32
    %201 = vector.broadcast %cst_96 : f32 to vector<1x192xf32>
    %202 = arith.addf %201, %200 : vector<1x192xf32>
    %203 = arith.divf %201, %202 : vector<1x192xf32>
    %204 = vector.extract_strided_slice %197 {offsets = [0, 192], sizes = [1, 64], strides = [1, 1]} : vector<1x256xf32> to vector<1x64xf32>
    %205 = math.tanh %204 : vector<1x64xf32>
    %206 = vector.extract_strided_slice %203 {offsets = [0, 64], sizes = [1, 64], strides = [1, 1]} : vector<1x192xf32> to vector<1x64xf32>
    %207 = arith.mulf %206, %163 : vector<1x64xf32>
    %208 = vector.extract_strided_slice %203 {offsets = [0, 0], sizes = [1, 64], strides = [1, 1]} : vector<1x192xf32> to vector<1x64xf32>
    %209 = arith.mulf %208, %205 : vector<1x64xf32>
    %210 = arith.addf %207, %209 : vector<1x64xf32>
    %211 = vector.extract_strided_slice %203 {offsets = [0, 128], sizes = [1, 64], strides = [1, 1]} : vector<1x192xf32> to vector<1x64xf32>
    %212 = math.tanh %210 : vector<1x64xf32>
    %213 = arith.mulf %211, %212 : vector<1x64xf32>
    %214 = arith.index_cast %169 : i32 to index
    %c0_97 = arith.constant 0 : index
    %215 = vector.load %arg26[%214, %c0_97] : memref<16x64xf32, #tpu.memory_space<vmem>>, vector<1x64xf32>
    tpu.vector_store %arg26[%214, %c0_97], %213 {strides = array<i32>} : memref<16x64xf32, #tpu.memory_space<vmem>>, vector<1x64xf32>,
    %c3_i32 = arith.constant 3 : i32
    %c15_i32_98 = arith.constant 15 : i32
    %216 = arith.subi %c15_i32_98, %c3_i32 : i32
    %217 = arith.index_cast %c3_i32 : i32 to index
    %c0_99 = arith.constant 0 : index
    %218 = vector.load %arg23[%217, %c0_99] : memref<16x256xf32, #tpu.memory_space<vmem>>, vector<1x256xf32>
    %c0_100 = arith.constant 0 : index
    %c0_101 = arith.constant 0 : index
    %219 = vector.load %arg9[%c0_100, %c0_101] : memref<64x256xf32, #tpu.memory_space<vmem>>, vector<64x256xf32>
    %cst_102 = arith.constant dense<0.000000e+00> : vector<1x256xf32>
    %220 = tpu.matmul %190, %219, %cst_102 {dimension_numbers = #tpu.dot_dimension_numbers<[1], [0], [0], [1], [0, 0, 1, 1], [], []>} : vector<1x64xf32>, vector<64x256xf32>, vector<1x256xf32> -> vector<1x256xf32>
    %221 = arith.addf %218, %220 : vector<1x256xf32>
    %222 = vector.extract_strided_slice %221 {offsets = [0, 0], sizes = [1, 192], strides = [1, 1]} : vector<1x256xf32> to vector<1x192xf32>
    %223 = arith.negf %222 : vector<1x192xf32>
    %224 = math.exp %223 : vector<1x192xf32>
    %cst_103 = arith.constant 1.000000e+00 : f32
    %225 = vector.broadcast %cst_103 : f32 to vector<1x192xf32>
    %226 = arith.addf %225, %224 : vector<1x192xf32>
    %227 = arith.divf %225, %226 : vector<1x192xf32>
    %228 = vector.extract_strided_slice %221 {offsets = [0, 192], sizes = [1, 64], strides = [1, 1]} : vector<1x256xf32> to vector<1x64xf32>
    %229 = math.tanh %228 : vector<1x64xf32>
    %230 = vector.extract_strided_slice %227 {offsets = [0, 64], sizes = [1, 64], strides = [1, 1]} : vector<1x192xf32> to vector<1x64xf32>
    %231 = arith.mulf %230, %187 : vector<1x64xf32>
    %232 = vector.extract_strided_slice %227 {offsets = [0, 0], sizes = [1, 64], strides = [1, 1]} : vector<1x192xf32> to vector<1x64xf32>
    %233 = arith.mulf %232, %229 : vector<1x64xf32>
    %234 = arith.addf %231, %233 : vector<1x64xf32>
    %235 = vector.extract_strided_slice %227 {offsets = [0, 128], sizes = [1, 64], strides = [1, 1]} : vector<1x192xf32> to vector<1x64xf32>
    %236 = math.tanh %234 : vector<1x64xf32>
    %237 = arith.mulf %235, %236 : vector<1x64xf32>
    %238 = arith.index_cast %c3_i32 : i32 to index
    %c0_104 = arith.constant 0 : index
    %239 = vector.load %arg25[%238, %c0_104] : memref<16x64xf32, #tpu.memory_space<vmem>>, vector<1x64xf32>
    tpu.vector_store %arg25[%238, %c0_104], %237 {strides = array<i32>} : memref<16x64xf32, #tpu.memory_space<vmem>>, vector<1x64xf32>,
    %240 = arith.index_cast %216 : i32 to index
    %c0_105 = arith.constant 0 : index
    %241 = vector.load %arg24[%240, %c0_105] : memref<16x256xf32, #tpu.memory_space<vmem>>, vector<1x256xf32>
    %c0_106 = arith.constant 0 : index
    %c0_107 = arith.constant 0 : index
    %242 = vector.load %arg12[%c0_106, %c0_107] : memref<64x256xf32, #tpu.memory_space<vmem>>, vector<64x256xf32>
    %cst_108 = arith.constant dense<0.000000e+00> : vector<1x256xf32>
    %243 = tpu.matmul %213, %242, %cst_108 {dimension_numbers = #tpu.dot_dimension_numbers<[1], [0], [0], [1], [0, 0, 1, 1], [], []>} : vector<1x64xf32>, vector<64x256xf32>, vector<1x256xf32> -> vector<1x256xf32>
    %244 = arith.addf %241, %243 : vector<1x256xf32>
    %245 = vector.extract_strided_slice %244 {offsets = [0, 0], sizes = [1, 192], strides = [1, 1]} : vector<1x256xf32> to vector<1x192xf32>
    %246 = arith.negf %245 : vector<1x192xf32>
    %247 = math.exp %246 : vector<1x192xf32>
    %cst_109 = arith.constant 1.000000e+00 : f32
    %248 = vector.broadcast %cst_109 : f32 to vector<1x192xf32>
    %249 = arith.addf %248, %247 : vector<1x192xf32>
    %250 = arith.divf %248, %249 : vector<1x192xf32>
    %251 = vector.extract_strided_slice %244 {offsets = [0, 192], sizes = [1, 64], strides = [1, 1]} : vector<1x256xf32> to vector<1x64xf32>
    %252 = math.tanh %251 : vector<1x64xf32>
    %253 = vector.extract_strided_slice %250 {offsets = [0, 64], sizes = [1, 64], strides = [1, 1]} : vector<1x192xf32> to vector<1x64xf32>
    %254 = arith.mulf %253, %210 : vector<1x64xf32>
    %255 = vector.extract_strided_slice %250 {offsets = [0, 0], sizes = [1, 64], strides = [1, 1]} : vector<1x192xf32> to vector<1x64xf32>
    %256 = arith.mulf %255, %252 : vector<1x64xf32>
    %257 = arith.addf %254, %256 : vector<1x64xf32>
    %258 = vector.extract_strided_slice %250 {offsets = [0, 128], sizes = [1, 64], strides = [1, 1]} : vector<1x192xf32> to vector<1x64xf32>
    %259 = math.tanh %257 : vector<1x64xf32>
    %260 = arith.mulf %258, %259 : vector<1x64xf32>
    %261 = arith.index_cast %216 : i32 to index
    %c0_110 = arith.constant 0 : index
    %262 = vector.load %arg26[%261, %c0_110] : memref<16x64xf32, #tpu.memory_space<vmem>>, vector<1x64xf32>
    tpu.vector_store %arg26[%261, %c0_110], %260 {strides = array<i32>} : memref<16x64xf32, #tpu.memory_space<vmem>>, vector<1x64xf32>,
    %c4_i32 = arith.constant 4 : i32
    %c15_i32_111 = arith.constant 15 : i32
    %263 = arith.subi %c15_i32_111, %c4_i32 : i32
    %264 = arith.index_cast %c4_i32 : i32 to index
    %c0_112 = arith.constant 0 : index
    %265 = vector.load %arg23[%264, %c0_112] : memref<16x256xf32, #tpu.memory_space<vmem>>, vector<1x256xf32>
    %c0_113 = arith.constant 0 : index
    %c0_114 = arith.constant 0 : index
    %266 = vector.load %arg9[%c0_113, %c0_114] : memref<64x256xf32, #tpu.memory_space<vmem>>, vector<64x256xf32>
    %cst_115 = arith.constant dense<0.000000e+00> : vector<1x256xf32>
    %267 = tpu.matmul %237, %266, %cst_115 {dimension_numbers = #tpu.dot_dimension_numbers<[1], [0], [0], [1], [0, 0, 1, 1], [], []>} : vector<1x64xf32>, vector<64x256xf32>, vector<1x256xf32> -> vector<1x256xf32>
    %268 = arith.addf %265, %267 : vector<1x256xf32>
    %269 = vector.extract_strided_slice %268 {offsets = [0, 0], sizes = [1, 192], strides = [1, 1]} : vector<1x256xf32> to vector<1x192xf32>
    %270 = arith.negf %269 : vector<1x192xf32>
    %271 = math.exp %270 : vector<1x192xf32>
    %cst_116 = arith.constant 1.000000e+00 : f32
    %272 = vector.broadcast %cst_116 : f32 to vector<1x192xf32>
    %273 = arith.addf %272, %271 : vector<1x192xf32>
    %274 = arith.divf %272, %273 : vector<1x192xf32>
    %275 = vector.extract_strided_slice %268 {offsets = [0, 192], sizes = [1, 64], strides = [1, 1]} : vector<1x256xf32> to vector<1x64xf32>
    %276 = math.tanh %275 : vector<1x64xf32>
    %277 = vector.extract_strided_slice %274 {offsets = [0, 64], sizes = [1, 64], strides = [1, 1]} : vector<1x192xf32> to vector<1x64xf32>
    %278 = arith.mulf %277, %234 : vector<1x64xf32>
    %279 = vector.extract_strided_slice %274 {offsets = [0, 0], sizes = [1, 64], strides = [1, 1]} : vector<1x192xf32> to vector<1x64xf32>
    %280 = arith.mulf %279, %276 : vector<1x64xf32>
    %281 = arith.addf %278, %280 : vector<1x64xf32>
    %282 = vector.extract_strided_slice %274 {offsets = [0, 128], sizes = [1, 64], strides = [1, 1]} : vector<1x192xf32> to vector<1x64xf32>
    %283 = math.tanh %281 : vector<1x64xf32>
    %284 = arith.mulf %282, %283 : vector<1x64xf32>
    %285 = arith.index_cast %c4_i32 : i32 to index
    %c0_117 = arith.constant 0 : index
    %286 = vector.load %arg25[%285, %c0_117] : memref<16x64xf32, #tpu.memory_space<vmem>>, vector<1x64xf32>
    tpu.vector_store %arg25[%285, %c0_117], %284 {strides = array<i32>} : memref<16x64xf32, #tpu.memory_space<vmem>>, vector<1x64xf32>,
    %287 = arith.index_cast %263 : i32 to index
    %c0_118 = arith.constant 0 : index
    %288 = vector.load %arg24[%287, %c0_118] : memref<16x256xf32, #tpu.memory_space<vmem>>, vector<1x256xf32>
    %c0_119 = arith.constant 0 : index
    %c0_120 = arith.constant 0 : index
    %289 = vector.load %arg12[%c0_119, %c0_120] : memref<64x256xf32, #tpu.memory_space<vmem>>, vector<64x256xf32>
    %cst_121 = arith.constant dense<0.000000e+00> : vector<1x256xf32>
    %290 = tpu.matmul %260, %289, %cst_121 {dimension_numbers = #tpu.dot_dimension_numbers<[1], [0], [0], [1], [0, 0, 1, 1], [], []>} : vector<1x64xf32>, vector<64x256xf32>, vector<1x256xf32> -> vector<1x256xf32>
    %291 = arith.addf %288, %290 : vector<1x256xf32>
    %292 = vector.extract_strided_slice %291 {offsets = [0, 0], sizes = [1, 192], strides = [1, 1]} : vector<1x256xf32> to vector<1x192xf32>
    %293 = arith.negf %292 : vector<1x192xf32>
    %294 = math.exp %293 : vector<1x192xf32>
    %cst_122 = arith.constant 1.000000e+00 : f32
    %295 = vector.broadcast %cst_122 : f32 to vector<1x192xf32>
    %296 = arith.addf %295, %294 : vector<1x192xf32>
    %297 = arith.divf %295, %296 : vector<1x192xf32>
    %298 = vector.extract_strided_slice %291 {offsets = [0, 192], sizes = [1, 64], strides = [1, 1]} : vector<1x256xf32> to vector<1x64xf32>
    %299 = math.tanh %298 : vector<1x64xf32>
    %300 = vector.extract_strided_slice %297 {offsets = [0, 64], sizes = [1, 64], strides = [1, 1]} : vector<1x192xf32> to vector<1x64xf32>
    %301 = arith.mulf %300, %257 : vector<1x64xf32>
    %302 = vector.extract_strided_slice %297 {offsets = [0, 0], sizes = [1, 64], strides = [1, 1]} : vector<1x192xf32> to vector<1x64xf32>
    %303 = arith.mulf %302, %299 : vector<1x64xf32>
    %304 = arith.addf %301, %303 : vector<1x64xf32>
    %305 = vector.extract_strided_slice %297 {offsets = [0, 128], sizes = [1, 64], strides = [1, 1]} : vector<1x192xf32> to vector<1x64xf32>
    %306 = math.tanh %304 : vector<1x64xf32>
    %307 = arith.mulf %305, %306 : vector<1x64xf32>
    %308 = arith.index_cast %263 : i32 to index
    %c0_123 = arith.constant 0 : index
    %309 = vector.load %arg26[%308, %c0_123] : memref<16x64xf32, #tpu.memory_space<vmem>>, vector<1x64xf32>
    tpu.vector_store %arg26[%308, %c0_123], %307 {strides = array<i32>} : memref<16x64xf32, #tpu.memory_space<vmem>>, vector<1x64xf32>,
    %c5_i32 = arith.constant 5 : i32
    %c15_i32_124 = arith.constant 15 : i32
    %310 = arith.subi %c15_i32_124, %c5_i32 : i32
    %311 = arith.index_cast %c5_i32 : i32 to index
    %c0_125 = arith.constant 0 : index
    %312 = vector.load %arg23[%311, %c0_125] : memref<16x256xf32, #tpu.memory_space<vmem>>, vector<1x256xf32>
    %c0_126 = arith.constant 0 : index
    %c0_127 = arith.constant 0 : index
    %313 = vector.load %arg9[%c0_126, %c0_127] : memref<64x256xf32, #tpu.memory_space<vmem>>, vector<64x256xf32>
    %cst_128 = arith.constant dense<0.000000e+00> : vector<1x256xf32>
    %314 = tpu.matmul %284, %313, %cst_128 {dimension_numbers = #tpu.dot_dimension_numbers<[1], [0], [0], [1], [0, 0, 1, 1], [], []>} : vector<1x64xf32>, vector<64x256xf32>, vector<1x256xf32> -> vector<1x256xf32>
    %315 = arith.addf %312, %314 : vector<1x256xf32>
    %316 = vector.extract_strided_slice %315 {offsets = [0, 0], sizes = [1, 192], strides = [1, 1]} : vector<1x256xf32> to vector<1x192xf32>
    %317 = arith.negf %316 : vector<1x192xf32>
    %318 = math.exp %317 : vector<1x192xf32>
    %cst_129 = arith.constant 1.000000e+00 : f32
    %319 = vector.broadcast %cst_129 : f32 to vector<1x192xf32>
    %320 = arith.addf %319, %318 : vector<1x192xf32>
    %321 = arith.divf %319, %320 : vector<1x192xf32>
    %322 = vector.extract_strided_slice %315 {offsets = [0, 192], sizes = [1, 64], strides = [1, 1]} : vector<1x256xf32> to vector<1x64xf32>
    %323 = math.tanh %322 : vector<1x64xf32>
    %324 = vector.extract_strided_slice %321 {offsets = [0, 64], sizes = [1, 64], strides = [1, 1]} : vector<1x192xf32> to vector<1x64xf32>
    %325 = arith.mulf %324, %281 : vector<1x64xf32>
    %326 = vector.extract_strided_slice %321 {offsets = [0, 0], sizes = [1, 64], strides = [1, 1]} : vector<1x192xf32> to vector<1x64xf32>
    %327 = arith.mulf %326, %323 : vector<1x64xf32>
    %328 = arith.addf %325, %327 : vector<1x64xf32>
    %329 = vector.extract_strided_slice %321 {offsets = [0, 128], sizes = [1, 64], strides = [1, 1]} : vector<1x192xf32> to vector<1x64xf32>
    %330 = math.tanh %328 : vector<1x64xf32>
    %331 = arith.mulf %329, %330 : vector<1x64xf32>
    %332 = arith.index_cast %c5_i32 : i32 to index
    %c0_130 = arith.constant 0 : index
    %333 = vector.load %arg25[%332, %c0_130] : memref<16x64xf32, #tpu.memory_space<vmem>>, vector<1x64xf32>
    tpu.vector_store %arg25[%332, %c0_130], %331 {strides = array<i32>} : memref<16x64xf32, #tpu.memory_space<vmem>>, vector<1x64xf32>,
    %334 = arith.index_cast %310 : i32 to index
    %c0_131 = arith.constant 0 : index
    %335 = vector.load %arg24[%334, %c0_131] : memref<16x256xf32, #tpu.memory_space<vmem>>, vector<1x256xf32>
    %c0_132 = arith.constant 0 : index
    %c0_133 = arith.constant 0 : index
    %336 = vector.load %arg12[%c0_132, %c0_133] : memref<64x256xf32, #tpu.memory_space<vmem>>, vector<64x256xf32>
    %cst_134 = arith.constant dense<0.000000e+00> : vector<1x256xf32>
    %337 = tpu.matmul %307, %336, %cst_134 {dimension_numbers = #tpu.dot_dimension_numbers<[1], [0], [0], [1], [0, 0, 1, 1], [], []>} : vector<1x64xf32>, vector<64x256xf32>, vector<1x256xf32> -> vector<1x256xf32>
    %338 = arith.addf %335, %337 : vector<1x256xf32>
    %339 = vector.extract_strided_slice %338 {offsets = [0, 0], sizes = [1, 192], strides = [1, 1]} : vector<1x256xf32> to vector<1x192xf32>
    %340 = arith.negf %339 : vector<1x192xf32>
    %341 = math.exp %340 : vector<1x192xf32>
    %cst_135 = arith.constant 1.000000e+00 : f32
    %342 = vector.broadcast %cst_135 : f32 to vector<1x192xf32>
    %343 = arith.addf %342, %341 : vector<1x192xf32>
    %344 = arith.divf %342, %343 : vector<1x192xf32>
    %345 = vector.extract_strided_slice %338 {offsets = [0, 192], sizes = [1, 64], strides = [1, 1]} : vector<1x256xf32> to vector<1x64xf32>
    %346 = math.tanh %345 : vector<1x64xf32>
    %347 = vector.extract_strided_slice %344 {offsets = [0, 64], sizes = [1, 64], strides = [1, 1]} : vector<1x192xf32> to vector<1x64xf32>
    %348 = arith.mulf %347, %304 : vector<1x64xf32>
    %349 = vector.extract_strided_slice %344 {offsets = [0, 0], sizes = [1, 64], strides = [1, 1]} : vector<1x192xf32> to vector<1x64xf32>
    %350 = arith.mulf %349, %346 : vector<1x64xf32>
    %351 = arith.addf %348, %350 : vector<1x64xf32>
    %352 = vector.extract_strided_slice %344 {offsets = [0, 128], sizes = [1, 64], strides = [1, 1]} : vector<1x192xf32> to vector<1x64xf32>
    %353 = math.tanh %351 : vector<1x64xf32>
    %354 = arith.mulf %352, %353 : vector<1x64xf32>
    %355 = arith.index_cast %310 : i32 to index
    %c0_136 = arith.constant 0 : index
    %356 = vector.load %arg26[%355, %c0_136] : memref<16x64xf32, #tpu.memory_space<vmem>>, vector<1x64xf32>
    tpu.vector_store %arg26[%355, %c0_136], %354 {strides = array<i32>} : memref<16x64xf32, #tpu.memory_space<vmem>>, vector<1x64xf32>,
    %c6_i32 = arith.constant 6 : i32
    %c15_i32_137 = arith.constant 15 : i32
    %357 = arith.subi %c15_i32_137, %c6_i32 : i32
    %358 = arith.index_cast %c6_i32 : i32 to index
    %c0_138 = arith.constant 0 : index
    %359 = vector.load %arg23[%358, %c0_138] : memref<16x256xf32, #tpu.memory_space<vmem>>, vector<1x256xf32>
    %c0_139 = arith.constant 0 : index
    %c0_140 = arith.constant 0 : index
    %360 = vector.load %arg9[%c0_139, %c0_140] : memref<64x256xf32, #tpu.memory_space<vmem>>, vector<64x256xf32>
    %cst_141 = arith.constant dense<0.000000e+00> : vector<1x256xf32>
    %361 = tpu.matmul %331, %360, %cst_141 {dimension_numbers = #tpu.dot_dimension_numbers<[1], [0], [0], [1], [0, 0, 1, 1], [], []>} : vector<1x64xf32>, vector<64x256xf32>, vector<1x256xf32> -> vector<1x256xf32>
    %362 = arith.addf %359, %361 : vector<1x256xf32>
    %363 = vector.extract_strided_slice %362 {offsets = [0, 0], sizes = [1, 192], strides = [1, 1]} : vector<1x256xf32> to vector<1x192xf32>
    %364 = arith.negf %363 : vector<1x192xf32>
    %365 = math.exp %364 : vector<1x192xf32>
    %cst_142 = arith.constant 1.000000e+00 : f32
    %366 = vector.broadcast %cst_142 : f32 to vector<1x192xf32>
    %367 = arith.addf %366, %365 : vector<1x192xf32>
    %368 = arith.divf %366, %367 : vector<1x192xf32>
    %369 = vector.extract_strided_slice %362 {offsets = [0, 192], sizes = [1, 64], strides = [1, 1]} : vector<1x256xf32> to vector<1x64xf32>
    %370 = math.tanh %369 : vector<1x64xf32>
    %371 = vector.extract_strided_slice %368 {offsets = [0, 64], sizes = [1, 64], strides = [1, 1]} : vector<1x192xf32> to vector<1x64xf32>
    %372 = arith.mulf %371, %328 : vector<1x64xf32>
    %373 = vector.extract_strided_slice %368 {offsets = [0, 0], sizes = [1, 64], strides = [1, 1]} : vector<1x192xf32> to vector<1x64xf32>
    %374 = arith.mulf %373, %370 : vector<1x64xf32>
    %375 = arith.addf %372, %374 : vector<1x64xf32>
    %376 = vector.extract_strided_slice %368 {offsets = [0, 128], sizes = [1, 64], strides = [1, 1]} : vector<1x192xf32> to vector<1x64xf32>
    %377 = math.tanh %375 : vector<1x64xf32>
    %378 = arith.mulf %376, %377 : vector<1x64xf32>
    %379 = arith.index_cast %c6_i32 : i32 to index
    %c0_143 = arith.constant 0 : index
    %380 = vector.load %arg25[%379, %c0_143] : memref<16x64xf32, #tpu.memory_space<vmem>>, vector<1x64xf32>
    tpu.vector_store %arg25[%379, %c0_143], %378 {strides = array<i32>} : memref<16x64xf32, #tpu.memory_space<vmem>>, vector<1x64xf32>,
    %381 = arith.index_cast %357 : i32 to index
    %c0_144 = arith.constant 0 : index
    %382 = vector.load %arg24[%381, %c0_144] : memref<16x256xf32, #tpu.memory_space<vmem>>, vector<1x256xf32>
    %c0_145 = arith.constant 0 : index
    %c0_146 = arith.constant 0 : index
    %383 = vector.load %arg12[%c0_145, %c0_146] : memref<64x256xf32, #tpu.memory_space<vmem>>, vector<64x256xf32>
    %cst_147 = arith.constant dense<0.000000e+00> : vector<1x256xf32>
    %384 = tpu.matmul %354, %383, %cst_147 {dimension_numbers = #tpu.dot_dimension_numbers<[1], [0], [0], [1], [0, 0, 1, 1], [], []>} : vector<1x64xf32>, vector<64x256xf32>, vector<1x256xf32> -> vector<1x256xf32>
    %385 = arith.addf %382, %384 : vector<1x256xf32>
    %386 = vector.extract_strided_slice %385 {offsets = [0, 0], sizes = [1, 192], strides = [1, 1]} : vector<1x256xf32> to vector<1x192xf32>
    %387 = arith.negf %386 : vector<1x192xf32>
    %388 = math.exp %387 : vector<1x192xf32>
    %cst_148 = arith.constant 1.000000e+00 : f32
    %389 = vector.broadcast %cst_148 : f32 to vector<1x192xf32>
    %390 = arith.addf %389, %388 : vector<1x192xf32>
    %391 = arith.divf %389, %390 : vector<1x192xf32>
    %392 = vector.extract_strided_slice %385 {offsets = [0, 192], sizes = [1, 64], strides = [1, 1]} : vector<1x256xf32> to vector<1x64xf32>
    %393 = math.tanh %392 : vector<1x64xf32>
    %394 = vector.extract_strided_slice %391 {offsets = [0, 64], sizes = [1, 64], strides = [1, 1]} : vector<1x192xf32> to vector<1x64xf32>
    %395 = arith.mulf %394, %351 : vector<1x64xf32>
    %396 = vector.extract_strided_slice %391 {offsets = [0, 0], sizes = [1, 64], strides = [1, 1]} : vector<1x192xf32> to vector<1x64xf32>
    %397 = arith.mulf %396, %393 : vector<1x64xf32>
    %398 = arith.addf %395, %397 : vector<1x64xf32>
    %399 = vector.extract_strided_slice %391 {offsets = [0, 128], sizes = [1, 64], strides = [1, 1]} : vector<1x192xf32> to vector<1x64xf32>
    %400 = math.tanh %398 : vector<1x64xf32>
    %401 = arith.mulf %399, %400 : vector<1x64xf32>
    %402 = arith.index_cast %357 : i32 to index
    %c0_149 = arith.constant 0 : index
    %403 = vector.load %arg26[%402, %c0_149] : memref<16x64xf32, #tpu.memory_space<vmem>>, vector<1x64xf32>
    tpu.vector_store %arg26[%402, %c0_149], %401 {strides = array<i32>} : memref<16x64xf32, #tpu.memory_space<vmem>>, vector<1x64xf32>,
    %c7_i32 = arith.constant 7 : i32
    %c15_i32_150 = arith.constant 15 : i32
    %404 = arith.subi %c15_i32_150, %c7_i32 : i32
    %405 = arith.index_cast %c7_i32 : i32 to index
    %c0_151 = arith.constant 0 : index
    %406 = vector.load %arg23[%405, %c0_151] : memref<16x256xf32, #tpu.memory_space<vmem>>, vector<1x256xf32>
    %c0_152 = arith.constant 0 : index
    %c0_153 = arith.constant 0 : index
    %407 = vector.load %arg9[%c0_152, %c0_153] : memref<64x256xf32, #tpu.memory_space<vmem>>, vector<64x256xf32>
    %cst_154 = arith.constant dense<0.000000e+00> : vector<1x256xf32>
    %408 = tpu.matmul %378, %407, %cst_154 {dimension_numbers = #tpu.dot_dimension_numbers<[1], [0], [0], [1], [0, 0, 1, 1], [], []>} : vector<1x64xf32>, vector<64x256xf32>, vector<1x256xf32> -> vector<1x256xf32>
    %409 = arith.addf %406, %408 : vector<1x256xf32>
    %410 = vector.extract_strided_slice %409 {offsets = [0, 0], sizes = [1, 192], strides = [1, 1]} : vector<1x256xf32> to vector<1x192xf32>
    %411 = arith.negf %410 : vector<1x192xf32>
    %412 = math.exp %411 : vector<1x192xf32>
    %cst_155 = arith.constant 1.000000e+00 : f32
    %413 = vector.broadcast %cst_155 : f32 to vector<1x192xf32>
    %414 = arith.addf %413, %412 : vector<1x192xf32>
    %415 = arith.divf %413, %414 : vector<1x192xf32>
    %416 = vector.extract_strided_slice %409 {offsets = [0, 192], sizes = [1, 64], strides = [1, 1]} : vector<1x256xf32> to vector<1x64xf32>
    %417 = math.tanh %416 : vector<1x64xf32>
    %418 = vector.extract_strided_slice %415 {offsets = [0, 64], sizes = [1, 64], strides = [1, 1]} : vector<1x192xf32> to vector<1x64xf32>
    %419 = arith.mulf %418, %375 : vector<1x64xf32>
    %420 = vector.extract_strided_slice %415 {offsets = [0, 0], sizes = [1, 64], strides = [1, 1]} : vector<1x192xf32> to vector<1x64xf32>
    %421 = arith.mulf %420, %417 : vector<1x64xf32>
    %422 = arith.addf %419, %421 : vector<1x64xf32>
    %423 = vector.extract_strided_slice %415 {offsets = [0, 128], sizes = [1, 64], strides = [1, 1]} : vector<1x192xf32> to vector<1x64xf32>
    %424 = math.tanh %422 : vector<1x64xf32>
    %425 = arith.mulf %423, %424 : vector<1x64xf32>
    %426 = arith.index_cast %c7_i32 : i32 to index
    %c0_156 = arith.constant 0 : index
    %427 = vector.load %arg25[%426, %c0_156] : memref<16x64xf32, #tpu.memory_space<vmem>>, vector<1x64xf32>
    tpu.vector_store %arg25[%426, %c0_156], %425 {strides = array<i32>} : memref<16x64xf32, #tpu.memory_space<vmem>>, vector<1x64xf32>,
    %428 = arith.index_cast %404 : i32 to index
    %c0_157 = arith.constant 0 : index
    %429 = vector.load %arg24[%428, %c0_157] : memref<16x256xf32, #tpu.memory_space<vmem>>, vector<1x256xf32>
    %c0_158 = arith.constant 0 : index
    %c0_159 = arith.constant 0 : index
    %430 = vector.load %arg12[%c0_158, %c0_159] : memref<64x256xf32, #tpu.memory_space<vmem>>, vector<64x256xf32>
    %cst_160 = arith.constant dense<0.000000e+00> : vector<1x256xf32>
    %431 = tpu.matmul %401, %430, %cst_160 {dimension_numbers = #tpu.dot_dimension_numbers<[1], [0], [0], [1], [0, 0, 1, 1], [], []>} : vector<1x64xf32>, vector<64x256xf32>, vector<1x256xf32> -> vector<1x256xf32>
    %432 = arith.addf %429, %431 : vector<1x256xf32>
    %433 = vector.extract_strided_slice %432 {offsets = [0, 0], sizes = [1, 192], strides = [1, 1]} : vector<1x256xf32> to vector<1x192xf32>
    %434 = arith.negf %433 : vector<1x192xf32>
    %435 = math.exp %434 : vector<1x192xf32>
    %cst_161 = arith.constant 1.000000e+00 : f32
    %436 = vector.broadcast %cst_161 : f32 to vector<1x192xf32>
    %437 = arith.addf %436, %435 : vector<1x192xf32>
    %438 = arith.divf %436, %437 : vector<1x192xf32>
    %439 = vector.extract_strided_slice %432 {offsets = [0, 192], sizes = [1, 64], strides = [1, 1]} : vector<1x256xf32> to vector<1x64xf32>
    %440 = math.tanh %439 : vector<1x64xf32>
    %441 = vector.extract_strided_slice %438 {offsets = [0, 64], sizes = [1, 64], strides = [1, 1]} : vector<1x192xf32> to vector<1x64xf32>
    %442 = arith.mulf %441, %398 : vector<1x64xf32>
    %443 = vector.extract_strided_slice %438 {offsets = [0, 0], sizes = [1, 64], strides = [1, 1]} : vector<1x192xf32> to vector<1x64xf32>
    %444 = arith.mulf %443, %440 : vector<1x64xf32>
    %445 = arith.addf %442, %444 : vector<1x64xf32>
    %446 = vector.extract_strided_slice %438 {offsets = [0, 128], sizes = [1, 64], strides = [1, 1]} : vector<1x192xf32> to vector<1x64xf32>
    %447 = math.tanh %445 : vector<1x64xf32>
    %448 = arith.mulf %446, %447 : vector<1x64xf32>
    %449 = arith.index_cast %404 : i32 to index
    %c0_162 = arith.constant 0 : index
    %450 = vector.load %arg26[%449, %c0_162] : memref<16x64xf32, #tpu.memory_space<vmem>>, vector<1x64xf32>
    tpu.vector_store %arg26[%449, %c0_162], %448 {strides = array<i32>} : memref<16x64xf32, #tpu.memory_space<vmem>>, vector<1x64xf32>,
    %c8_i32 = arith.constant 8 : i32
    %c15_i32_163 = arith.constant 15 : i32
    %451 = arith.subi %c15_i32_163, %c8_i32 : i32
    %452 = arith.index_cast %c8_i32 : i32 to index
    %c0_164 = arith.constant 0 : index
    %453 = vector.load %arg23[%452, %c0_164] : memref<16x256xf32, #tpu.memory_space<vmem>>, vector<1x256xf32>
    %c0_165 = arith.constant 0 : index
    %c0_166 = arith.constant 0 : index
    %454 = vector.load %arg9[%c0_165, %c0_166] : memref<64x256xf32, #tpu.memory_space<vmem>>, vector<64x256xf32>
    %cst_167 = arith.constant dense<0.000000e+00> : vector<1x256xf32>
    %455 = tpu.matmul %425, %454, %cst_167 {dimension_numbers = #tpu.dot_dimension_numbers<[1], [0], [0], [1], [0, 0, 1, 1], [], []>} : vector<1x64xf32>, vector<64x256xf32>, vector<1x256xf32> -> vector<1x256xf32>
    %456 = arith.addf %453, %455 : vector<1x256xf32>
    %457 = vector.extract_strided_slice %456 {offsets = [0, 0], sizes = [1, 192], strides = [1, 1]} : vector<1x256xf32> to vector<1x192xf32>
    %458 = arith.negf %457 : vector<1x192xf32>
    %459 = math.exp %458 : vector<1x192xf32>
    %cst_168 = arith.constant 1.000000e+00 : f32
    %460 = vector.broadcast %cst_168 : f32 to vector<1x192xf32>
    %461 = arith.addf %460, %459 : vector<1x192xf32>
    %462 = arith.divf %460, %461 : vector<1x192xf32>
    %463 = vector.extract_strided_slice %456 {offsets = [0, 192], sizes = [1, 64], strides = [1, 1]} : vector<1x256xf32> to vector<1x64xf32>
    %464 = math.tanh %463 : vector<1x64xf32>
    %465 = vector.extract_strided_slice %462 {offsets = [0, 64], sizes = [1, 64], strides = [1, 1]} : vector<1x192xf32> to vector<1x64xf32>
    %466 = arith.mulf %465, %422 : vector<1x64xf32>
    %467 = vector.extract_strided_slice %462 {offsets = [0, 0], sizes = [1, 64], strides = [1, 1]} : vector<1x192xf32> to vector<1x64xf32>
    %468 = arith.mulf %467, %464 : vector<1x64xf32>
    %469 = arith.addf %466, %468 : vector<1x64xf32>
    %470 = vector.extract_strided_slice %462 {offsets = [0, 128], sizes = [1, 64], strides = [1, 1]} : vector<1x192xf32> to vector<1x64xf32>
    %471 = math.tanh %469 : vector<1x64xf32>
    %472 = arith.mulf %470, %471 : vector<1x64xf32>
    %473 = arith.index_cast %c8_i32 : i32 to index
    %c0_169 = arith.constant 0 : index
    %474 = vector.load %arg25[%473, %c0_169] : memref<16x64xf32, #tpu.memory_space<vmem>>, vector<1x64xf32>
    tpu.vector_store %arg25[%473, %c0_169], %472 {strides = array<i32>} : memref<16x64xf32, #tpu.memory_space<vmem>>, vector<1x64xf32>,
    %475 = arith.index_cast %451 : i32 to index
    %c0_170 = arith.constant 0 : index
    %476 = vector.load %arg24[%475, %c0_170] : memref<16x256xf32, #tpu.memory_space<vmem>>, vector<1x256xf32>
    %c0_171 = arith.constant 0 : index
    %c0_172 = arith.constant 0 : index
    %477 = vector.load %arg12[%c0_171, %c0_172] : memref<64x256xf32, #tpu.memory_space<vmem>>, vector<64x256xf32>
    %cst_173 = arith.constant dense<0.000000e+00> : vector<1x256xf32>
    %478 = tpu.matmul %448, %477, %cst_173 {dimension_numbers = #tpu.dot_dimension_numbers<[1], [0], [0], [1], [0, 0, 1, 1], [], []>} : vector<1x64xf32>, vector<64x256xf32>, vector<1x256xf32> -> vector<1x256xf32>
    %479 = arith.addf %476, %478 : vector<1x256xf32>
    %480 = vector.extract_strided_slice %479 {offsets = [0, 0], sizes = [1, 192], strides = [1, 1]} : vector<1x256xf32> to vector<1x192xf32>
    %481 = arith.negf %480 : vector<1x192xf32>
    %482 = math.exp %481 : vector<1x192xf32>
    %cst_174 = arith.constant 1.000000e+00 : f32
    %483 = vector.broadcast %cst_174 : f32 to vector<1x192xf32>
    %484 = arith.addf %483, %482 : vector<1x192xf32>
    %485 = arith.divf %483, %484 : vector<1x192xf32>
    %486 = vector.extract_strided_slice %479 {offsets = [0, 192], sizes = [1, 64], strides = [1, 1]} : vector<1x256xf32> to vector<1x64xf32>
    %487 = math.tanh %486 : vector<1x64xf32>
    %488 = vector.extract_strided_slice %485 {offsets = [0, 64], sizes = [1, 64], strides = [1, 1]} : vector<1x192xf32> to vector<1x64xf32>
    %489 = arith.mulf %488, %445 : vector<1x64xf32>
    %490 = vector.extract_strided_slice %485 {offsets = [0, 0], sizes = [1, 64], strides = [1, 1]} : vector<1x192xf32> to vector<1x64xf32>
    %491 = arith.mulf %490, %487 : vector<1x64xf32>
    %492 = arith.addf %489, %491 : vector<1x64xf32>
    %493 = vector.extract_strided_slice %485 {offsets = [0, 128], sizes = [1, 64], strides = [1, 1]} : vector<1x192xf32> to vector<1x64xf32>
    %494 = math.tanh %492 : vector<1x64xf32>
    %495 = arith.mulf %493, %494 : vector<1x64xf32>
    %496 = arith.index_cast %451 : i32 to index
    %c0_175 = arith.constant 0 : index
    %497 = vector.load %arg26[%496, %c0_175] : memref<16x64xf32, #tpu.memory_space<vmem>>, vector<1x64xf32>
    tpu.vector_store %arg26[%496, %c0_175], %495 {strides = array<i32>} : memref<16x64xf32, #tpu.memory_space<vmem>>, vector<1x64xf32>,
    %c9_i32 = arith.constant 9 : i32
    %c15_i32_176 = arith.constant 15 : i32
    %498 = arith.subi %c15_i32_176, %c9_i32 : i32
    %499 = arith.index_cast %c9_i32 : i32 to index
    %c0_177 = arith.constant 0 : index
    %500 = vector.load %arg23[%499, %c0_177] : memref<16x256xf32, #tpu.memory_space<vmem>>, vector<1x256xf32>
    %c0_178 = arith.constant 0 : index
    %c0_179 = arith.constant 0 : index
    %501 = vector.load %arg9[%c0_178, %c0_179] : memref<64x256xf32, #tpu.memory_space<vmem>>, vector<64x256xf32>
    %cst_180 = arith.constant dense<0.000000e+00> : vector<1x256xf32>
    %502 = tpu.matmul %472, %501, %cst_180 {dimension_numbers = #tpu.dot_dimension_numbers<[1], [0], [0], [1], [0, 0, 1, 1], [], []>} : vector<1x64xf32>, vector<64x256xf32>, vector<1x256xf32> -> vector<1x256xf32>
    %503 = arith.addf %500, %502 : vector<1x256xf32>
    %504 = vector.extract_strided_slice %503 {offsets = [0, 0], sizes = [1, 192], strides = [1, 1]} : vector<1x256xf32> to vector<1x192xf32>
    %505 = arith.negf %504 : vector<1x192xf32>
    %506 = math.exp %505 : vector<1x192xf32>
    %cst_181 = arith.constant 1.000000e+00 : f32
    %507 = vector.broadcast %cst_181 : f32 to vector<1x192xf32>
    %508 = arith.addf %507, %506 : vector<1x192xf32>
    %509 = arith.divf %507, %508 : vector<1x192xf32>
    %510 = vector.extract_strided_slice %503 {offsets = [0, 192], sizes = [1, 64], strides = [1, 1]} : vector<1x256xf32> to vector<1x64xf32>
    %511 = math.tanh %510 : vector<1x64xf32>
    %512 = vector.extract_strided_slice %509 {offsets = [0, 64], sizes = [1, 64], strides = [1, 1]} : vector<1x192xf32> to vector<1x64xf32>
    %513 = arith.mulf %512, %469 : vector<1x64xf32>
    %514 = vector.extract_strided_slice %509 {offsets = [0, 0], sizes = [1, 64], strides = [1, 1]} : vector<1x192xf32> to vector<1x64xf32>
    %515 = arith.mulf %514, %511 : vector<1x64xf32>
    %516 = arith.addf %513, %515 : vector<1x64xf32>
    %517 = vector.extract_strided_slice %509 {offsets = [0, 128], sizes = [1, 64], strides = [1, 1]} : vector<1x192xf32> to vector<1x64xf32>
    %518 = math.tanh %516 : vector<1x64xf32>
    %519 = arith.mulf %517, %518 : vector<1x64xf32>
    %520 = arith.index_cast %c9_i32 : i32 to index
    %c0_182 = arith.constant 0 : index
    %521 = vector.load %arg25[%520, %c0_182] : memref<16x64xf32, #tpu.memory_space<vmem>>, vector<1x64xf32>
    tpu.vector_store %arg25[%520, %c0_182], %519 {strides = array<i32>} : memref<16x64xf32, #tpu.memory_space<vmem>>, vector<1x64xf32>,
    %522 = arith.index_cast %498 : i32 to index
    %c0_183 = arith.constant 0 : index
    %523 = vector.load %arg24[%522, %c0_183] : memref<16x256xf32, #tpu.memory_space<vmem>>, vector<1x256xf32>
    %c0_184 = arith.constant 0 : index
    %c0_185 = arith.constant 0 : index
    %524 = vector.load %arg12[%c0_184, %c0_185] : memref<64x256xf32, #tpu.memory_space<vmem>>, vector<64x256xf32>
    %cst_186 = arith.constant dense<0.000000e+00> : vector<1x256xf32>
    %525 = tpu.matmul %495, %524, %cst_186 {dimension_numbers = #tpu.dot_dimension_numbers<[1], [0], [0], [1], [0, 0, 1, 1], [], []>} : vector<1x64xf32>, vector<64x256xf32>, vector<1x256xf32> -> vector<1x256xf32>
    %526 = arith.addf %523, %525 : vector<1x256xf32>
    %527 = vector.extract_strided_slice %526 {offsets = [0, 0], sizes = [1, 192], strides = [1, 1]} : vector<1x256xf32> to vector<1x192xf32>
    %528 = arith.negf %527 : vector<1x192xf32>
    %529 = math.exp %528 : vector<1x192xf32>
    %cst_187 = arith.constant 1.000000e+00 : f32
    %530 = vector.broadcast %cst_187 : f32 to vector<1x192xf32>
    %531 = arith.addf %530, %529 : vector<1x192xf32>
    %532 = arith.divf %530, %531 : vector<1x192xf32>
    %533 = vector.extract_strided_slice %526 {offsets = [0, 192], sizes = [1, 64], strides = [1, 1]} : vector<1x256xf32> to vector<1x64xf32>
    %534 = math.tanh %533 : vector<1x64xf32>
    %535 = vector.extract_strided_slice %532 {offsets = [0, 64], sizes = [1, 64], strides = [1, 1]} : vector<1x192xf32> to vector<1x64xf32>
    %536 = arith.mulf %535, %492 : vector<1x64xf32>
    %537 = vector.extract_strided_slice %532 {offsets = [0, 0], sizes = [1, 64], strides = [1, 1]} : vector<1x192xf32> to vector<1x64xf32>
    %538 = arith.mulf %537, %534 : vector<1x64xf32>
    %539 = arith.addf %536, %538 : vector<1x64xf32>
    %540 = vector.extract_strided_slice %532 {offsets = [0, 128], sizes = [1, 64], strides = [1, 1]} : vector<1x192xf32> to vector<1x64xf32>
    %541 = math.tanh %539 : vector<1x64xf32>
    %542 = arith.mulf %540, %541 : vector<1x64xf32>
    %543 = arith.index_cast %498 : i32 to index
    %c0_188 = arith.constant 0 : index
    %544 = vector.load %arg26[%543, %c0_188] : memref<16x64xf32, #tpu.memory_space<vmem>>, vector<1x64xf32>
    tpu.vector_store %arg26[%543, %c0_188], %542 {strides = array<i32>} : memref<16x64xf32, #tpu.memory_space<vmem>>, vector<1x64xf32>,
    %c10_i32 = arith.constant 10 : i32
    %c15_i32_189 = arith.constant 15 : i32
    %545 = arith.subi %c15_i32_189, %c10_i32 : i32
    %546 = arith.index_cast %c10_i32 : i32 to index
    %c0_190 = arith.constant 0 : index
    %547 = vector.load %arg23[%546, %c0_190] : memref<16x256xf32, #tpu.memory_space<vmem>>, vector<1x256xf32>
    %c0_191 = arith.constant 0 : index
    %c0_192 = arith.constant 0 : index
    %548 = vector.load %arg9[%c0_191, %c0_192] : memref<64x256xf32, #tpu.memory_space<vmem>>, vector<64x256xf32>
    %cst_193 = arith.constant dense<0.000000e+00> : vector<1x256xf32>
    %549 = tpu.matmul %519, %548, %cst_193 {dimension_numbers = #tpu.dot_dimension_numbers<[1], [0], [0], [1], [0, 0, 1, 1], [], []>} : vector<1x64xf32>, vector<64x256xf32>, vector<1x256xf32> -> vector<1x256xf32>
    %550 = arith.addf %547, %549 : vector<1x256xf32>
    %551 = vector.extract_strided_slice %550 {offsets = [0, 0], sizes = [1, 192], strides = [1, 1]} : vector<1x256xf32> to vector<1x192xf32>
    %552 = arith.negf %551 : vector<1x192xf32>
    %553 = math.exp %552 : vector<1x192xf32>
    %cst_194 = arith.constant 1.000000e+00 : f32
    %554 = vector.broadcast %cst_194 : f32 to vector<1x192xf32>
    %555 = arith.addf %554, %553 : vector<1x192xf32>
    %556 = arith.divf %554, %555 : vector<1x192xf32>
    %557 = vector.extract_strided_slice %550 {offsets = [0, 192], sizes = [1, 64], strides = [1, 1]} : vector<1x256xf32> to vector<1x64xf32>
    %558 = math.tanh %557 : vector<1x64xf32>
    %559 = vector.extract_strided_slice %556 {offsets = [0, 64], sizes = [1, 64], strides = [1, 1]} : vector<1x192xf32> to vector<1x64xf32>
    %560 = arith.mulf %559, %516 : vector<1x64xf32>
    %561 = vector.extract_strided_slice %556 {offsets = [0, 0], sizes = [1, 64], strides = [1, 1]} : vector<1x192xf32> to vector<1x64xf32>
    %562 = arith.mulf %561, %558 : vector<1x64xf32>
    %563 = arith.addf %560, %562 : vector<1x64xf32>
    %564 = vector.extract_strided_slice %556 {offsets = [0, 128], sizes = [1, 64], strides = [1, 1]} : vector<1x192xf32> to vector<1x64xf32>
    %565 = math.tanh %563 : vector<1x64xf32>
    %566 = arith.mulf %564, %565 : vector<1x64xf32>
    %567 = arith.index_cast %c10_i32 : i32 to index
    %c0_195 = arith.constant 0 : index
    %568 = vector.load %arg25[%567, %c0_195] : memref<16x64xf32, #tpu.memory_space<vmem>>, vector<1x64xf32>
    tpu.vector_store %arg25[%567, %c0_195], %566 {strides = array<i32>} : memref<16x64xf32, #tpu.memory_space<vmem>>, vector<1x64xf32>,
    %569 = arith.index_cast %545 : i32 to index
    %c0_196 = arith.constant 0 : index
    %570 = vector.load %arg24[%569, %c0_196] : memref<16x256xf32, #tpu.memory_space<vmem>>, vector<1x256xf32>
    %c0_197 = arith.constant 0 : index
    %c0_198 = arith.constant 0 : index
    %571 = vector.load %arg12[%c0_197, %c0_198] : memref<64x256xf32, #tpu.memory_space<vmem>>, vector<64x256xf32>
    %cst_199 = arith.constant dense<0.000000e+00> : vector<1x256xf32>
    %572 = tpu.matmul %542, %571, %cst_199 {dimension_numbers = #tpu.dot_dimension_numbers<[1], [0], [0], [1], [0, 0, 1, 1], [], []>} : vector<1x64xf32>, vector<64x256xf32>, vector<1x256xf32> -> vector<1x256xf32>
    %573 = arith.addf %570, %572 : vector<1x256xf32>
    %574 = vector.extract_strided_slice %573 {offsets = [0, 0], sizes = [1, 192], strides = [1, 1]} : vector<1x256xf32> to vector<1x192xf32>
    %575 = arith.negf %574 : vector<1x192xf32>
    %576 = math.exp %575 : vector<1x192xf32>
    %cst_200 = arith.constant 1.000000e+00 : f32
    %577 = vector.broadcast %cst_200 : f32 to vector<1x192xf32>
    %578 = arith.addf %577, %576 : vector<1x192xf32>
    %579 = arith.divf %577, %578 : vector<1x192xf32>
    %580 = vector.extract_strided_slice %573 {offsets = [0, 192], sizes = [1, 64], strides = [1, 1]} : vector<1x256xf32> to vector<1x64xf32>
    %581 = math.tanh %580 : vector<1x64xf32>
    %582 = vector.extract_strided_slice %579 {offsets = [0, 64], sizes = [1, 64], strides = [1, 1]} : vector<1x192xf32> to vector<1x64xf32>
    %583 = arith.mulf %582, %539 : vector<1x64xf32>
    %584 = vector.extract_strided_slice %579 {offsets = [0, 0], sizes = [1, 64], strides = [1, 1]} : vector<1x192xf32> to vector<1x64xf32>
    %585 = arith.mulf %584, %581 : vector<1x64xf32>
    %586 = arith.addf %583, %585 : vector<1x64xf32>
    %587 = vector.extract_strided_slice %579 {offsets = [0, 128], sizes = [1, 64], strides = [1, 1]} : vector<1x192xf32> to vector<1x64xf32>
    %588 = math.tanh %586 : vector<1x64xf32>
    %589 = arith.mulf %587, %588 : vector<1x64xf32>
    %590 = arith.index_cast %545 : i32 to index
    %c0_201 = arith.constant 0 : index
    %591 = vector.load %arg26[%590, %c0_201] : memref<16x64xf32, #tpu.memory_space<vmem>>, vector<1x64xf32>
    tpu.vector_store %arg26[%590, %c0_201], %589 {strides = array<i32>} : memref<16x64xf32, #tpu.memory_space<vmem>>, vector<1x64xf32>,
    %c11_i32 = arith.constant 11 : i32
    %c15_i32_202 = arith.constant 15 : i32
    %592 = arith.subi %c15_i32_202, %c11_i32 : i32
    %593 = arith.index_cast %c11_i32 : i32 to index
    %c0_203 = arith.constant 0 : index
    %594 = vector.load %arg23[%593, %c0_203] : memref<16x256xf32, #tpu.memory_space<vmem>>, vector<1x256xf32>
    %c0_204 = arith.constant 0 : index
    %c0_205 = arith.constant 0 : index
    %595 = vector.load %arg9[%c0_204, %c0_205] : memref<64x256xf32, #tpu.memory_space<vmem>>, vector<64x256xf32>
    %cst_206 = arith.constant dense<0.000000e+00> : vector<1x256xf32>
    %596 = tpu.matmul %566, %595, %cst_206 {dimension_numbers = #tpu.dot_dimension_numbers<[1], [0], [0], [1], [0, 0, 1, 1], [], []>} : vector<1x64xf32>, vector<64x256xf32>, vector<1x256xf32> -> vector<1x256xf32>
    %597 = arith.addf %594, %596 : vector<1x256xf32>
    %598 = vector.extract_strided_slice %597 {offsets = [0, 0], sizes = [1, 192], strides = [1, 1]} : vector<1x256xf32> to vector<1x192xf32>
    %599 = arith.negf %598 : vector<1x192xf32>
    %600 = math.exp %599 : vector<1x192xf32>
    %cst_207 = arith.constant 1.000000e+00 : f32
    %601 = vector.broadcast %cst_207 : f32 to vector<1x192xf32>
    %602 = arith.addf %601, %600 : vector<1x192xf32>
    %603 = arith.divf %601, %602 : vector<1x192xf32>
    %604 = vector.extract_strided_slice %597 {offsets = [0, 192], sizes = [1, 64], strides = [1, 1]} : vector<1x256xf32> to vector<1x64xf32>
    %605 = math.tanh %604 : vector<1x64xf32>
    %606 = vector.extract_strided_slice %603 {offsets = [0, 64], sizes = [1, 64], strides = [1, 1]} : vector<1x192xf32> to vector<1x64xf32>
    %607 = arith.mulf %606, %563 : vector<1x64xf32>
    %608 = vector.extract_strided_slice %603 {offsets = [0, 0], sizes = [1, 64], strides = [1, 1]} : vector<1x192xf32> to vector<1x64xf32>
    %609 = arith.mulf %608, %605 : vector<1x64xf32>
    %610 = arith.addf %607, %609 : vector<1x64xf32>
    %611 = vector.extract_strided_slice %603 {offsets = [0, 128], sizes = [1, 64], strides = [1, 1]} : vector<1x192xf32> to vector<1x64xf32>
    %612 = math.tanh %610 : vector<1x64xf32>
    %613 = arith.mulf %611, %612 : vector<1x64xf32>
    %614 = arith.index_cast %c11_i32 : i32 to index
    %c0_208 = arith.constant 0 : index
    %615 = vector.load %arg25[%614, %c0_208] : memref<16x64xf32, #tpu.memory_space<vmem>>, vector<1x64xf32>
    tpu.vector_store %arg25[%614, %c0_208], %613 {strides = array<i32>} : memref<16x64xf32, #tpu.memory_space<vmem>>, vector<1x64xf32>,
    %616 = arith.index_cast %592 : i32 to index
    %c0_209 = arith.constant 0 : index
    %617 = vector.load %arg24[%616, %c0_209] : memref<16x256xf32, #tpu.memory_space<vmem>>, vector<1x256xf32>
    %c0_210 = arith.constant 0 : index
    %c0_211 = arith.constant 0 : index
    %618 = vector.load %arg12[%c0_210, %c0_211] : memref<64x256xf32, #tpu.memory_space<vmem>>, vector<64x256xf32>
    %cst_212 = arith.constant dense<0.000000e+00> : vector<1x256xf32>
    %619 = tpu.matmul %589, %618, %cst_212 {dimension_numbers = #tpu.dot_dimension_numbers<[1], [0], [0], [1], [0, 0, 1, 1], [], []>} : vector<1x64xf32>, vector<64x256xf32>, vector<1x256xf32> -> vector<1x256xf32>
    %620 = arith.addf %617, %619 : vector<1x256xf32>
    %621 = vector.extract_strided_slice %620 {offsets = [0, 0], sizes = [1, 192], strides = [1, 1]} : vector<1x256xf32> to vector<1x192xf32>
    %622 = arith.negf %621 : vector<1x192xf32>
    %623 = math.exp %622 : vector<1x192xf32>
    %cst_213 = arith.constant 1.000000e+00 : f32
    %624 = vector.broadcast %cst_213 : f32 to vector<1x192xf32>
    %625 = arith.addf %624, %623 : vector<1x192xf32>
    %626 = arith.divf %624, %625 : vector<1x192xf32>
    %627 = vector.extract_strided_slice %620 {offsets = [0, 192], sizes = [1, 64], strides = [1, 1]} : vector<1x256xf32> to vector<1x64xf32>
    %628 = math.tanh %627 : vector<1x64xf32>
    %629 = vector.extract_strided_slice %626 {offsets = [0, 64], sizes = [1, 64], strides = [1, 1]} : vector<1x192xf32> to vector<1x64xf32>
    %630 = arith.mulf %629, %586 : vector<1x64xf32>
    %631 = vector.extract_strided_slice %626 {offsets = [0, 0], sizes = [1, 64], strides = [1, 1]} : vector<1x192xf32> to vector<1x64xf32>
    %632 = arith.mulf %631, %628 : vector<1x64xf32>
    %633 = arith.addf %630, %632 : vector<1x64xf32>
    %634 = vector.extract_strided_slice %626 {offsets = [0, 128], sizes = [1, 64], strides = [1, 1]} : vector<1x192xf32> to vector<1x64xf32>
    %635 = math.tanh %633 : vector<1x64xf32>
    %636 = arith.mulf %634, %635 : vector<1x64xf32>
    %637 = arith.index_cast %592 : i32 to index
    %c0_214 = arith.constant 0 : index
    %638 = vector.load %arg26[%637, %c0_214] : memref<16x64xf32, #tpu.memory_space<vmem>>, vector<1x64xf32>
    tpu.vector_store %arg26[%637, %c0_214], %636 {strides = array<i32>} : memref<16x64xf32, #tpu.memory_space<vmem>>, vector<1x64xf32>,
    %c12_i32 = arith.constant 12 : i32
    %c15_i32_215 = arith.constant 15 : i32
    %639 = arith.subi %c15_i32_215, %c12_i32 : i32
    %640 = arith.index_cast %c12_i32 : i32 to index
    %c0_216 = arith.constant 0 : index
    %641 = vector.load %arg23[%640, %c0_216] : memref<16x256xf32, #tpu.memory_space<vmem>>, vector<1x256xf32>
    %c0_217 = arith.constant 0 : index
    %c0_218 = arith.constant 0 : index
    %642 = vector.load %arg9[%c0_217, %c0_218] : memref<64x256xf32, #tpu.memory_space<vmem>>, vector<64x256xf32>
    %cst_219 = arith.constant dense<0.000000e+00> : vector<1x256xf32>
    %643 = tpu.matmul %613, %642, %cst_219 {dimension_numbers = #tpu.dot_dimension_numbers<[1], [0], [0], [1], [0, 0, 1, 1], [], []>} : vector<1x64xf32>, vector<64x256xf32>, vector<1x256xf32> -> vector<1x256xf32>
    %644 = arith.addf %641, %643 : vector<1x256xf32>
    %645 = vector.extract_strided_slice %644 {offsets = [0, 0], sizes = [1, 192], strides = [1, 1]} : vector<1x256xf32> to vector<1x192xf32>
    %646 = arith.negf %645 : vector<1x192xf32>
    %647 = math.exp %646 : vector<1x192xf32>
    %cst_220 = arith.constant 1.000000e+00 : f32
    %648 = vector.broadcast %cst_220 : f32 to vector<1x192xf32>
    %649 = arith.addf %648, %647 : vector<1x192xf32>
    %650 = arith.divf %648, %649 : vector<1x192xf32>
    %651 = vector.extract_strided_slice %644 {offsets = [0, 192], sizes = [1, 64], strides = [1, 1]} : vector<1x256xf32> to vector<1x64xf32>
    %652 = math.tanh %651 : vector<1x64xf32>
    %653 = vector.extract_strided_slice %650 {offsets = [0, 64], sizes = [1, 64], strides = [1, 1]} : vector<1x192xf32> to vector<1x64xf32>
    %654 = arith.mulf %653, %610 : vector<1x64xf32>
    %655 = vector.extract_strided_slice %650 {offsets = [0, 0], sizes = [1, 64], strides = [1, 1]} : vector<1x192xf32> to vector<1x64xf32>
    %656 = arith.mulf %655, %652 : vector<1x64xf32>
    %657 = arith.addf %654, %656 : vector<1x64xf32>
    %658 = vector.extract_strided_slice %650 {offsets = [0, 128], sizes = [1, 64], strides = [1, 1]} : vector<1x192xf32> to vector<1x64xf32>
    %659 = math.tanh %657 : vector<1x64xf32>
    %660 = arith.mulf %658, %659 : vector<1x64xf32>
    %661 = arith.index_cast %c12_i32 : i32 to index
    %c0_221 = arith.constant 0 : index
    %662 = vector.load %arg25[%661, %c0_221] : memref<16x64xf32, #tpu.memory_space<vmem>>, vector<1x64xf32>
    tpu.vector_store %arg25[%661, %c0_221], %660 {strides = array<i32>} : memref<16x64xf32, #tpu.memory_space<vmem>>, vector<1x64xf32>,
    %663 = arith.index_cast %639 : i32 to index
    %c0_222 = arith.constant 0 : index
    %664 = vector.load %arg24[%663, %c0_222] : memref<16x256xf32, #tpu.memory_space<vmem>>, vector<1x256xf32>
    %c0_223 = arith.constant 0 : index
    %c0_224 = arith.constant 0 : index
    %665 = vector.load %arg12[%c0_223, %c0_224] : memref<64x256xf32, #tpu.memory_space<vmem>>, vector<64x256xf32>
    %cst_225 = arith.constant dense<0.000000e+00> : vector<1x256xf32>
    %666 = tpu.matmul %636, %665, %cst_225 {dimension_numbers = #tpu.dot_dimension_numbers<[1], [0], [0], [1], [0, 0, 1, 1], [], []>} : vector<1x64xf32>, vector<64x256xf32>, vector<1x256xf32> -> vector<1x256xf32>
    %667 = arith.addf %664, %666 : vector<1x256xf32>
    %668 = vector.extract_strided_slice %667 {offsets = [0, 0], sizes = [1, 192], strides = [1, 1]} : vector<1x256xf32> to vector<1x192xf32>
    %669 = arith.negf %668 : vector<1x192xf32>
    %670 = math.exp %669 : vector<1x192xf32>
    %cst_226 = arith.constant 1.000000e+00 : f32
    %671 = vector.broadcast %cst_226 : f32 to vector<1x192xf32>
    %672 = arith.addf %671, %670 : vector<1x192xf32>
    %673 = arith.divf %671, %672 : vector<1x192xf32>
    %674 = vector.extract_strided_slice %667 {offsets = [0, 192], sizes = [1, 64], strides = [1, 1]} : vector<1x256xf32> to vector<1x64xf32>
    %675 = math.tanh %674 : vector<1x64xf32>
    %676 = vector.extract_strided_slice %673 {offsets = [0, 64], sizes = [1, 64], strides = [1, 1]} : vector<1x192xf32> to vector<1x64xf32>
    %677 = arith.mulf %676, %633 : vector<1x64xf32>
    %678 = vector.extract_strided_slice %673 {offsets = [0, 0], sizes = [1, 64], strides = [1, 1]} : vector<1x192xf32> to vector<1x64xf32>
    %679 = arith.mulf %678, %675 : vector<1x64xf32>
    %680 = arith.addf %677, %679 : vector<1x64xf32>
    %681 = vector.extract_strided_slice %673 {offsets = [0, 128], sizes = [1, 64], strides = [1, 1]} : vector<1x192xf32> to vector<1x64xf32>
    %682 = math.tanh %680 : vector<1x64xf32>
    %683 = arith.mulf %681, %682 : vector<1x64xf32>
    %684 = arith.index_cast %639 : i32 to index
    %c0_227 = arith.constant 0 : index
    %685 = vector.load %arg26[%684, %c0_227] : memref<16x64xf32, #tpu.memory_space<vmem>>, vector<1x64xf32>
    tpu.vector_store %arg26[%684, %c0_227], %683 {strides = array<i32>} : memref<16x64xf32, #tpu.memory_space<vmem>>, vector<1x64xf32>,
    %c13_i32 = arith.constant 13 : i32
    %c15_i32_228 = arith.constant 15 : i32
    %686 = arith.subi %c15_i32_228, %c13_i32 : i32
    %687 = arith.index_cast %c13_i32 : i32 to index
    %c0_229 = arith.constant 0 : index
    %688 = vector.load %arg23[%687, %c0_229] : memref<16x256xf32, #tpu.memory_space<vmem>>, vector<1x256xf32>
    %c0_230 = arith.constant 0 : index
    %c0_231 = arith.constant 0 : index
    %689 = vector.load %arg9[%c0_230, %c0_231] : memref<64x256xf32, #tpu.memory_space<vmem>>, vector<64x256xf32>
    %cst_232 = arith.constant dense<0.000000e+00> : vector<1x256xf32>
    %690 = tpu.matmul %660, %689, %cst_232 {dimension_numbers = #tpu.dot_dimension_numbers<[1], [0], [0], [1], [0, 0, 1, 1], [], []>} : vector<1x64xf32>, vector<64x256xf32>, vector<1x256xf32> -> vector<1x256xf32>
    %691 = arith.addf %688, %690 : vector<1x256xf32>
    %692 = vector.extract_strided_slice %691 {offsets = [0, 0], sizes = [1, 192], strides = [1, 1]} : vector<1x256xf32> to vector<1x192xf32>
    %693 = arith.negf %692 : vector<1x192xf32>
    %694 = math.exp %693 : vector<1x192xf32>
    %cst_233 = arith.constant 1.000000e+00 : f32
    %695 = vector.broadcast %cst_233 : f32 to vector<1x192xf32>
    %696 = arith.addf %695, %694 : vector<1x192xf32>
    %697 = arith.divf %695, %696 : vector<1x192xf32>
    %698 = vector.extract_strided_slice %691 {offsets = [0, 192], sizes = [1, 64], strides = [1, 1]} : vector<1x256xf32> to vector<1x64xf32>
    %699 = math.tanh %698 : vector<1x64xf32>
    %700 = vector.extract_strided_slice %697 {offsets = [0, 64], sizes = [1, 64], strides = [1, 1]} : vector<1x192xf32> to vector<1x64xf32>
    %701 = arith.mulf %700, %657 : vector<1x64xf32>
    %702 = vector.extract_strided_slice %697 {offsets = [0, 0], sizes = [1, 64], strides = [1, 1]} : vector<1x192xf32> to vector<1x64xf32>
    %703 = arith.mulf %702, %699 : vector<1x64xf32>
    %704 = arith.addf %701, %703 : vector<1x64xf32>
    %705 = vector.extract_strided_slice %697 {offsets = [0, 128], sizes = [1, 64], strides = [1, 1]} : vector<1x192xf32> to vector<1x64xf32>
    %706 = math.tanh %704 : vector<1x64xf32>
    %707 = arith.mulf %705, %706 : vector<1x64xf32>
    %708 = arith.index_cast %c13_i32 : i32 to index
    %c0_234 = arith.constant 0 : index
    %709 = vector.load %arg25[%708, %c0_234] : memref<16x64xf32, #tpu.memory_space<vmem>>, vector<1x64xf32>
    tpu.vector_store %arg25[%708, %c0_234], %707 {strides = array<i32>} : memref<16x64xf32, #tpu.memory_space<vmem>>, vector<1x64xf32>,
    %710 = arith.index_cast %686 : i32 to index
    %c0_235 = arith.constant 0 : index
    %711 = vector.load %arg24[%710, %c0_235] : memref<16x256xf32, #tpu.memory_space<vmem>>, vector<1x256xf32>
    %c0_236 = arith.constant 0 : index
    %c0_237 = arith.constant 0 : index
    %712 = vector.load %arg12[%c0_236, %c0_237] : memref<64x256xf32, #tpu.memory_space<vmem>>, vector<64x256xf32>
    %cst_238 = arith.constant dense<0.000000e+00> : vector<1x256xf32>
    %713 = tpu.matmul %683, %712, %cst_238 {dimension_numbers = #tpu.dot_dimension_numbers<[1], [0], [0], [1], [0, 0, 1, 1], [], []>} : vector<1x64xf32>, vector<64x256xf32>, vector<1x256xf32> -> vector<1x256xf32>
    %714 = arith.addf %711, %713 : vector<1x256xf32>
    %715 = vector.extract_strided_slice %714 {offsets = [0, 0], sizes = [1, 192], strides = [1, 1]} : vector<1x256xf32> to vector<1x192xf32>
    %716 = arith.negf %715 : vector<1x192xf32>
    %717 = math.exp %716 : vector<1x192xf32>
    %cst_239 = arith.constant 1.000000e+00 : f32
    %718 = vector.broadcast %cst_239 : f32 to vector<1x192xf32>
    %719 = arith.addf %718, %717 : vector<1x192xf32>
    %720 = arith.divf %718, %719 : vector<1x192xf32>
    %721 = vector.extract_strided_slice %714 {offsets = [0, 192], sizes = [1, 64], strides = [1, 1]} : vector<1x256xf32> to vector<1x64xf32>
    %722 = math.tanh %721 : vector<1x64xf32>
    %723 = vector.extract_strided_slice %720 {offsets = [0, 64], sizes = [1, 64], strides = [1, 1]} : vector<1x192xf32> to vector<1x64xf32>
    %724 = arith.mulf %723, %680 : vector<1x64xf32>
    %725 = vector.extract_strided_slice %720 {offsets = [0, 0], sizes = [1, 64], strides = [1, 1]} : vector<1x192xf32> to vector<1x64xf32>
    %726 = arith.mulf %725, %722 : vector<1x64xf32>
    %727 = arith.addf %724, %726 : vector<1x64xf32>
    %728 = vector.extract_strided_slice %720 {offsets = [0, 128], sizes = [1, 64], strides = [1, 1]} : vector<1x192xf32> to vector<1x64xf32>
    %729 = math.tanh %727 : vector<1x64xf32>
    %730 = arith.mulf %728, %729 : vector<1x64xf32>
    %731 = arith.index_cast %686 : i32 to index
    %c0_240 = arith.constant 0 : index
    %732 = vector.load %arg26[%731, %c0_240] : memref<16x64xf32, #tpu.memory_space<vmem>>, vector<1x64xf32>
    tpu.vector_store %arg26[%731, %c0_240], %730 {strides = array<i32>} : memref<16x64xf32, #tpu.memory_space<vmem>>, vector<1x64xf32>,
    %c14_i32 = arith.constant 14 : i32
    %c15_i32_241 = arith.constant 15 : i32
    %733 = arith.subi %c15_i32_241, %c14_i32 : i32
    %734 = arith.index_cast %c14_i32 : i32 to index
    %c0_242 = arith.constant 0 : index
    %735 = vector.load %arg23[%734, %c0_242] : memref<16x256xf32, #tpu.memory_space<vmem>>, vector<1x256xf32>
    %c0_243 = arith.constant 0 : index
    %c0_244 = arith.constant 0 : index
    %736 = vector.load %arg9[%c0_243, %c0_244] : memref<64x256xf32, #tpu.memory_space<vmem>>, vector<64x256xf32>
    %cst_245 = arith.constant dense<0.000000e+00> : vector<1x256xf32>
    %737 = tpu.matmul %707, %736, %cst_245 {dimension_numbers = #tpu.dot_dimension_numbers<[1], [0], [0], [1], [0, 0, 1, 1], [], []>} : vector<1x64xf32>, vector<64x256xf32>, vector<1x256xf32> -> vector<1x256xf32>
    %738 = arith.addf %735, %737 : vector<1x256xf32>
    %739 = vector.extract_strided_slice %738 {offsets = [0, 0], sizes = [1, 192], strides = [1, 1]} : vector<1x256xf32> to vector<1x192xf32>
    %740 = arith.negf %739 : vector<1x192xf32>
    %741 = math.exp %740 : vector<1x192xf32>
    %cst_246 = arith.constant 1.000000e+00 : f32
    %742 = vector.broadcast %cst_246 : f32 to vector<1x192xf32>
    %743 = arith.addf %742, %741 : vector<1x192xf32>
    %744 = arith.divf %742, %743 : vector<1x192xf32>
    %745 = vector.extract_strided_slice %738 {offsets = [0, 192], sizes = [1, 64], strides = [1, 1]} : vector<1x256xf32> to vector<1x64xf32>
    %746 = math.tanh %745 : vector<1x64xf32>
    %747 = vector.extract_strided_slice %744 {offsets = [0, 64], sizes = [1, 64], strides = [1, 1]} : vector<1x192xf32> to vector<1x64xf32>
    %748 = arith.mulf %747, %704 : vector<1x64xf32>
    %749 = vector.extract_strided_slice %744 {offsets = [0, 0], sizes = [1, 64], strides = [1, 1]} : vector<1x192xf32> to vector<1x64xf32>
    %750 = arith.mulf %749, %746 : vector<1x64xf32>
    %751 = arith.addf %748, %750 : vector<1x64xf32>
    %752 = vector.extract_strided_slice %744 {offsets = [0, 128], sizes = [1, 64], strides = [1, 1]} : vector<1x192xf32> to vector<1x64xf32>
    %753 = math.tanh %751 : vector<1x64xf32>
    %754 = arith.mulf %752, %753 : vector<1x64xf32>
    %755 = arith.index_cast %c14_i32 : i32 to index
    %c0_247 = arith.constant 0 : index
    %756 = vector.load %arg25[%755, %c0_247] : memref<16x64xf32, #tpu.memory_space<vmem>>, vector<1x64xf32>
    tpu.vector_store %arg25[%755, %c0_247], %754 {strides = array<i32>} : memref<16x64xf32, #tpu.memory_space<vmem>>, vector<1x64xf32>,
    %757 = arith.index_cast %733 : i32 to index
    %c0_248 = arith.constant 0 : index
    %758 = vector.load %arg24[%757, %c0_248] : memref<16x256xf32, #tpu.memory_space<vmem>>, vector<1x256xf32>
    %c0_249 = arith.constant 0 : index
    %c0_250 = arith.constant 0 : index
    %759 = vector.load %arg12[%c0_249, %c0_250] : memref<64x256xf32, #tpu.memory_space<vmem>>, vector<64x256xf32>
    %cst_251 = arith.constant dense<0.000000e+00> : vector<1x256xf32>
    %760 = tpu.matmul %730, %759, %cst_251 {dimension_numbers = #tpu.dot_dimension_numbers<[1], [0], [0], [1], [0, 0, 1, 1], [], []>} : vector<1x64xf32>, vector<64x256xf32>, vector<1x256xf32> -> vector<1x256xf32>
    %761 = arith.addf %758, %760 : vector<1x256xf32>
    %762 = vector.extract_strided_slice %761 {offsets = [0, 0], sizes = [1, 192], strides = [1, 1]} : vector<1x256xf32> to vector<1x192xf32>
    %763 = arith.negf %762 : vector<1x192xf32>
    %764 = math.exp %763 : vector<1x192xf32>
    %cst_252 = arith.constant 1.000000e+00 : f32
    %765 = vector.broadcast %cst_252 : f32 to vector<1x192xf32>
    %766 = arith.addf %765, %764 : vector<1x192xf32>
    %767 = arith.divf %765, %766 : vector<1x192xf32>
    %768 = vector.extract_strided_slice %761 {offsets = [0, 192], sizes = [1, 64], strides = [1, 1]} : vector<1x256xf32> to vector<1x64xf32>
    %769 = math.tanh %768 : vector<1x64xf32>
    %770 = vector.extract_strided_slice %767 {offsets = [0, 64], sizes = [1, 64], strides = [1, 1]} : vector<1x192xf32> to vector<1x64xf32>
    %771 = arith.mulf %770, %727 : vector<1x64xf32>
    %772 = vector.extract_strided_slice %767 {offsets = [0, 0], sizes = [1, 64], strides = [1, 1]} : vector<1x192xf32> to vector<1x64xf32>
    %773 = arith.mulf %772, %769 : vector<1x64xf32>
    %774 = arith.addf %771, %773 : vector<1x64xf32>
    %775 = vector.extract_strided_slice %767 {offsets = [0, 128], sizes = [1, 64], strides = [1, 1]} : vector<1x192xf32> to vector<1x64xf32>
    %776 = math.tanh %774 : vector<1x64xf32>
    %777 = arith.mulf %775, %776 : vector<1x64xf32>
    %778 = arith.index_cast %733 : i32 to index
    %c0_253 = arith.constant 0 : index
    %779 = vector.load %arg26[%778, %c0_253] : memref<16x64xf32, #tpu.memory_space<vmem>>, vector<1x64xf32>
    tpu.vector_store %arg26[%778, %c0_253], %777 {strides = array<i32>} : memref<16x64xf32, #tpu.memory_space<vmem>>, vector<1x64xf32>,
    %c15_i32_254 = arith.constant 15 : i32
    %c15_i32_255 = arith.constant 15 : i32
    %780 = arith.subi %c15_i32_255, %c15_i32_254 : i32
    %781 = arith.index_cast %c15_i32_254 : i32 to index
    %c0_256 = arith.constant 0 : index
    %782 = vector.load %arg23[%781, %c0_256] : memref<16x256xf32, #tpu.memory_space<vmem>>, vector<1x256xf32>
    %c0_257 = arith.constant 0 : index
    %c0_258 = arith.constant 0 : index
    %783 = vector.load %arg9[%c0_257, %c0_258] : memref<64x256xf32, #tpu.memory_space<vmem>>, vector<64x256xf32>
    %cst_259 = arith.constant dense<0.000000e+00> : vector<1x256xf32>
    %784 = tpu.matmul %754, %783, %cst_259 {dimension_numbers = #tpu.dot_dimension_numbers<[1], [0], [0], [1], [0, 0, 1, 1], [], []>} : vector<1x64xf32>, vector<64x256xf32>, vector<1x256xf32> -> vector<1x256xf32>
    %785 = arith.addf %782, %784 : vector<1x256xf32>
    %786 = vector.extract_strided_slice %785 {offsets = [0, 0], sizes = [1, 192], strides = [1, 1]} : vector<1x256xf32> to vector<1x192xf32>
    %787 = arith.negf %786 : vector<1x192xf32>
    %788 = math.exp %787 : vector<1x192xf32>
    %cst_260 = arith.constant 1.000000e+00 : f32
    %789 = vector.broadcast %cst_260 : f32 to vector<1x192xf32>
    %790 = arith.addf %789, %788 : vector<1x192xf32>
    %791 = arith.divf %789, %790 : vector<1x192xf32>
    %792 = vector.extract_strided_slice %785 {offsets = [0, 192], sizes = [1, 64], strides = [1, 1]} : vector<1x256xf32> to vector<1x64xf32>
    %793 = math.tanh %792 : vector<1x64xf32>
    %794 = vector.extract_strided_slice %791 {offsets = [0, 64], sizes = [1, 64], strides = [1, 1]} : vector<1x192xf32> to vector<1x64xf32>
    %795 = arith.mulf %794, %751 : vector<1x64xf32>
    %796 = vector.extract_strided_slice %791 {offsets = [0, 0], sizes = [1, 64], strides = [1, 1]} : vector<1x192xf32> to vector<1x64xf32>
    %797 = arith.mulf %796, %793 : vector<1x64xf32>
    %798 = arith.addf %795, %797 : vector<1x64xf32>
    %799 = vector.extract_strided_slice %791 {offsets = [0, 128], sizes = [1, 64], strides = [1, 1]} : vector<1x192xf32> to vector<1x64xf32>
    %800 = math.tanh %798 : vector<1x64xf32>
    %801 = arith.mulf %799, %800 : vector<1x64xf32>
    %802 = arith.index_cast %c15_i32_254 : i32 to index
    %c0_261 = arith.constant 0 : index
    %803 = vector.load %arg25[%802, %c0_261] : memref<16x64xf32, #tpu.memory_space<vmem>>, vector<1x64xf32>
    tpu.vector_store %arg25[%802, %c0_261], %801 {strides = array<i32>} : memref<16x64xf32, #tpu.memory_space<vmem>>, vector<1x64xf32>,
    %804 = arith.index_cast %780 : i32 to index
    %c0_262 = arith.constant 0 : index
    %805 = vector.load %arg24[%804, %c0_262] : memref<16x256xf32, #tpu.memory_space<vmem>>, vector<1x256xf32>
    %c0_263 = arith.constant 0 : index
    %c0_264 = arith.constant 0 : index
    %806 = vector.load %arg12[%c0_263, %c0_264] : memref<64x256xf32, #tpu.memory_space<vmem>>, vector<64x256xf32>
    %cst_265 = arith.constant dense<0.000000e+00> : vector<1x256xf32>
    %807 = tpu.matmul %777, %806, %cst_265 {dimension_numbers = #tpu.dot_dimension_numbers<[1], [0], [0], [1], [0, 0, 1, 1], [], []>} : vector<1x64xf32>, vector<64x256xf32>, vector<1x256xf32> -> vector<1x256xf32>
    %808 = arith.addf %805, %807 : vector<1x256xf32>
    %809 = vector.extract_strided_slice %808 {offsets = [0, 0], sizes = [1, 192], strides = [1, 1]} : vector<1x256xf32> to vector<1x192xf32>
    %810 = arith.negf %809 : vector<1x192xf32>
    %811 = math.exp %810 : vector<1x192xf32>
    %cst_266 = arith.constant 1.000000e+00 : f32
    %812 = vector.broadcast %cst_266 : f32 to vector<1x192xf32>
    %813 = arith.addf %812, %811 : vector<1x192xf32>
    %814 = arith.divf %812, %813 : vector<1x192xf32>
    %815 = vector.extract_strided_slice %808 {offsets = [0, 192], sizes = [1, 64], strides = [1, 1]} : vector<1x256xf32> to vector<1x64xf32>
    %816 = math.tanh %815 : vector<1x64xf32>
    %817 = vector.extract_strided_slice %814 {offsets = [0, 64], sizes = [1, 64], strides = [1, 1]} : vector<1x192xf32> to vector<1x64xf32>
    %818 = arith.mulf %817, %774 : vector<1x64xf32>
    %819 = vector.extract_strided_slice %814 {offsets = [0, 0], sizes = [1, 64], strides = [1, 1]} : vector<1x192xf32> to vector<1x64xf32>
    %820 = arith.mulf %819, %816 : vector<1x64xf32>
    %821 = arith.addf %818, %820 : vector<1x64xf32>
    %822 = vector.extract_strided_slice %814 {offsets = [0, 128], sizes = [1, 64], strides = [1, 1]} : vector<1x192xf32> to vector<1x64xf32>
    %823 = math.tanh %821 : vector<1x64xf32>
    %824 = arith.mulf %822, %823 : vector<1x64xf32>
    %825 = arith.index_cast %780 : i32 to index
    %c0_267 = arith.constant 0 : index
    %826 = vector.load %arg26[%825, %c0_267] : memref<16x64xf32, #tpu.memory_space<vmem>>, vector<1x64xf32>
    tpu.vector_store %arg26[%825, %c0_267], %824 {strides = array<i32>} : memref<16x64xf32, #tpu.memory_space<vmem>>, vector<1x64xf32>,
    %c16_i32 = arith.constant 16 : i32
    %c0_268 = arith.constant 0 : index
    %c0_269 = arith.constant 0 : index
    %827 = vector.load %arg25[%c0_268, %c0_269] : memref<16x64xf32, #tpu.memory_space<vmem>>, vector<16x64xf32>
    %c0_270 = arith.constant 0 : index
    %c0_271 = arith.constant 0 : index
    %828 = vector.load %arg26[%c0_270, %c0_271] : memref<16x64xf32, #tpu.memory_space<vmem>>, vector<16x64xf32>
    %c0_272 = arith.constant 0 : index
    %c0_273 = arith.constant 0 : index
    %829 = vector.load %arg14[%c0_272, %c0_273] : memref<128x256xf32, #tpu.memory_space<vmem>>, vector<64x256xf32>
    %cst_274 = arith.constant dense<0.000000e+00> : vector<16x256xf32>
    %830 = tpu.matmul %827, %829, %cst_274 {dimension_numbers = #tpu.dot_dimension_numbers<[1], [0], [0], [1], [0, 0, 1, 1], [], []>} : vector<16x64xf32>, vector<64x256xf32>, vector<16x256xf32> -> vector<16x256xf32>
    %c64 = arith.constant 64 : index
    %c0_275 = arith.constant 0 : index
    %831 = vector.load %arg14[%c64, %c0_275] : memref<128x256xf32, #tpu.memory_space<vmem>>, vector<64x256xf32>
    %cst_276 = arith.constant dense<0.000000e+00> : vector<16x256xf32>
    %832 = tpu.matmul %828, %831, %cst_276 {dimension_numbers = #tpu.dot_dimension_numbers<[1], [0], [0], [1], [0, 0, 1, 1], [], []>} : vector<16x64xf32>, vector<64x256xf32>, vector<16x256xf32> -> vector<16x256xf32>
    %833 = arith.addf %830, %832 : vector<16x256xf32>
    %c0_277 = arith.constant 0 : index
    %c0_278 = arith.constant 0 : index
    %834 = vector.load %arg16[%c0_277, %c0_278] : memref<1x256xf32, #tpu.memory_space<vmem>>, vector<1x256xf32>
    %835 = vector.broadcast %834 : vector<1x256xf32> to vector<16x256xf32>
    %836 = arith.addf %833, %835 : vector<16x256xf32>
    %c0_279 = arith.constant 0 : index
    %c0_280 = arith.constant 0 : index
    %837 = vector.load %arg23[%c0_279, %c0_280] : memref<16x256xf32, #tpu.memory_space<vmem>>, vector<16x256xf32>
    tpu.vector_store %arg23[%c0_279, %c0_280], %836 {strides = array<i32>} : memref<16x256xf32, #tpu.memory_space<vmem>>, vector<16x256xf32>,
    %c0_i32_281 = arith.constant 0 : i32
    %838 = arith.index_cast %c0_i32_281 : i32 to index
    %c0_282 = arith.constant 0 : index
    %839 = vector.load %arg23[%838, %c0_282] : memref<16x256xf32, #tpu.memory_space<vmem>>, vector<1x256xf32>
    %c0_283 = arith.constant 0 : index
    %c0_284 = arith.constant 0 : index
    %840 = vector.load %arg15[%c0_283, %c0_284] : memref<64x256xf32, #tpu.memory_space<vmem>>, vector<64x256xf32>
    %cst_285 = arith.constant dense<0.000000e+00> : vector<1x256xf32>
    %841 = tpu.matmul %0, %840, %cst_285 {dimension_numbers = #tpu.dot_dimension_numbers<[1], [0], [0], [1], [0, 0, 1, 1], [], []>} : vector<1x64xf32>, vector<64x256xf32>, vector<1x256xf32> -> vector<1x256xf32>
    %842 = arith.addf %839, %841 : vector<1x256xf32>
    %843 = vector.extract_strided_slice %842 {offsets = [0, 0], sizes = [1, 192], strides = [1, 1]} : vector<1x256xf32> to vector<1x192xf32>
    %844 = arith.negf %843 : vector<1x192xf32>
    %845 = math.exp %844 : vector<1x192xf32>
    %cst_286 = arith.constant 1.000000e+00 : f32
    %846 = vector.broadcast %cst_286 : f32 to vector<1x192xf32>
    %847 = arith.addf %846, %845 : vector<1x192xf32>
    %848 = arith.divf %846, %847 : vector<1x192xf32>
    %849 = vector.extract_strided_slice %842 {offsets = [0, 192], sizes = [1, 64], strides = [1, 1]} : vector<1x256xf32> to vector<1x64xf32>
    %850 = math.tanh %849 : vector<1x64xf32>
    %851 = vector.extract_strided_slice %848 {offsets = [0, 64], sizes = [1, 64], strides = [1, 1]} : vector<1x192xf32> to vector<1x64xf32>
    %852 = arith.mulf %851, %0 : vector<1x64xf32>
    %853 = vector.extract_strided_slice %848 {offsets = [0, 0], sizes = [1, 64], strides = [1, 1]} : vector<1x192xf32> to vector<1x64xf32>
    %854 = arith.mulf %853, %850 : vector<1x64xf32>
    %855 = arith.addf %852, %854 : vector<1x64xf32>
    %856 = vector.extract_strided_slice %848 {offsets = [0, 128], sizes = [1, 64], strides = [1, 1]} : vector<1x192xf32> to vector<1x64xf32>
    %857 = math.tanh %855 : vector<1x64xf32>
    %858 = arith.mulf %856, %857 : vector<1x64xf32>
    %c1_i32_287 = arith.constant 1 : i32
    %859 = arith.index_cast %c1_i32_287 : i32 to index
    %c0_288 = arith.constant 0 : index
    %860 = vector.load %arg23[%859, %c0_288] : memref<16x256xf32, #tpu.memory_space<vmem>>, vector<1x256xf32>
    %c0_289 = arith.constant 0 : index
    %c0_290 = arith.constant 0 : index
    %861 = vector.load %arg15[%c0_289, %c0_290] : memref<64x256xf32, #tpu.memory_space<vmem>>, vector<64x256xf32>
    %cst_291 = arith.constant dense<0.000000e+00> : vector<1x256xf32>
    %862 = tpu.matmul %858, %861, %cst_291 {dimension_numbers = #tpu.dot_dimension_numbers<[1], [0], [0], [1], [0, 0, 1, 1], [], []>} : vector<1x64xf32>, vector<64x256xf32>, vector<1x256xf32> -> vector<1x256xf32>
    %863 = arith.addf %860, %862 : vector<1x256xf32>
    %864 = vector.extract_strided_slice %863 {offsets = [0, 0], sizes = [1, 192], strides = [1, 1]} : vector<1x256xf32> to vector<1x192xf32>
    %865 = arith.negf %864 : vector<1x192xf32>
    %866 = math.exp %865 : vector<1x192xf32>
    %cst_292 = arith.constant 1.000000e+00 : f32
    %867 = vector.broadcast %cst_292 : f32 to vector<1x192xf32>
    %868 = arith.addf %867, %866 : vector<1x192xf32>
    %869 = arith.divf %867, %868 : vector<1x192xf32>
    %870 = vector.extract_strided_slice %863 {offsets = [0, 192], sizes = [1, 64], strides = [1, 1]} : vector<1x256xf32> to vector<1x64xf32>
    %871 = math.tanh %870 : vector<1x64xf32>
    %872 = vector.extract_strided_slice %869 {offsets = [0, 64], sizes = [1, 64], strides = [1, 1]} : vector<1x192xf32> to vector<1x64xf32>
    %873 = arith.mulf %872, %855 : vector<1x64xf32>
    %874 = vector.extract_strided_slice %869 {offsets = [0, 0], sizes = [1, 64], strides = [1, 1]} : vector<1x192xf32> to vector<1x64xf32>
    %875 = arith.mulf %874, %871 : vector<1x64xf32>
    %876 = arith.addf %873, %875 : vector<1x64xf32>
    %877 = vector.extract_strided_slice %869 {offsets = [0, 128], sizes = [1, 64], strides = [1, 1]} : vector<1x192xf32> to vector<1x64xf32>
    %878 = math.tanh %876 : vector<1x64xf32>
    %879 = arith.mulf %877, %878 : vector<1x64xf32>
    %c2_i32_293 = arith.constant 2 : i32
    %880 = arith.index_cast %c2_i32_293 : i32 to index
    %c0_294 = arith.constant 0 : index
    %881 = vector.load %arg23[%880, %c0_294] : memref<16x256xf32, #tpu.memory_space<vmem>>, vector<1x256xf32>
    %c0_295 = arith.constant 0 : index
    %c0_296 = arith.constant 0 : index
    %882 = vector.load %arg15[%c0_295, %c0_296] : memref<64x256xf32, #tpu.memory_space<vmem>>, vector<64x256xf32>
    %cst_297 = arith.constant dense<0.000000e+00> : vector<1x256xf32>
    %883 = tpu.matmul %879, %882, %cst_297 {dimension_numbers = #tpu.dot_dimension_numbers<[1], [0], [0], [1], [0, 0, 1, 1], [], []>} : vector<1x64xf32>, vector<64x256xf32>, vector<1x256xf32> -> vector<1x256xf32>
    %884 = arith.addf %881, %883 : vector<1x256xf32>
    %885 = vector.extract_strided_slice %884 {offsets = [0, 0], sizes = [1, 192], strides = [1, 1]} : vector<1x256xf32> to vector<1x192xf32>
    %886 = arith.negf %885 : vector<1x192xf32>
    %887 = math.exp %886 : vector<1x192xf32>
    %cst_298 = arith.constant 1.000000e+00 : f32
    %888 = vector.broadcast %cst_298 : f32 to vector<1x192xf32>
    %889 = arith.addf %888, %887 : vector<1x192xf32>
    %890 = arith.divf %888, %889 : vector<1x192xf32>
    %891 = vector.extract_strided_slice %884 {offsets = [0, 192], sizes = [1, 64], strides = [1, 1]} : vector<1x256xf32> to vector<1x64xf32>
    %892 = math.tanh %891 : vector<1x64xf32>
    %893 = vector.extract_strided_slice %890 {offsets = [0, 64], sizes = [1, 64], strides = [1, 1]} : vector<1x192xf32> to vector<1x64xf32>
    %894 = arith.mulf %893, %876 : vector<1x64xf32>
    %895 = vector.extract_strided_slice %890 {offsets = [0, 0], sizes = [1, 64], strides = [1, 1]} : vector<1x192xf32> to vector<1x64xf32>
    %896 = arith.mulf %895, %892 : vector<1x64xf32>
    %897 = arith.addf %894, %896 : vector<1x64xf32>
    %898 = vector.extract_strided_slice %890 {offsets = [0, 128], sizes = [1, 64], strides = [1, 1]} : vector<1x192xf32> to vector<1x64xf32>
    %899 = math.tanh %897 : vector<1x64xf32>
    %900 = arith.mulf %898, %899 : vector<1x64xf32>
    %c3_i32_299 = arith.constant 3 : i32
    %901 = arith.index_cast %c3_i32_299 : i32 to index
    %c0_300 = arith.constant 0 : index
    %902 = vector.load %arg23[%901, %c0_300] : memref<16x256xf32, #tpu.memory_space<vmem>>, vector<1x256xf32>
    %c0_301 = arith.constant 0 : index
    %c0_302 = arith.constant 0 : index
    %903 = vector.load %arg15[%c0_301, %c0_302] : memref<64x256xf32, #tpu.memory_space<vmem>>, vector<64x256xf32>
    %cst_303 = arith.constant dense<0.000000e+00> : vector<1x256xf32>
    %904 = tpu.matmul %900, %903, %cst_303 {dimension_numbers = #tpu.dot_dimension_numbers<[1], [0], [0], [1], [0, 0, 1, 1], [], []>} : vector<1x64xf32>, vector<64x256xf32>, vector<1x256xf32> -> vector<1x256xf32>
    %905 = arith.addf %902, %904 : vector<1x256xf32>
    %906 = vector.extract_strided_slice %905 {offsets = [0, 0], sizes = [1, 192], strides = [1, 1]} : vector<1x256xf32> to vector<1x192xf32>
    %907 = arith.negf %906 : vector<1x192xf32>
    %908 = math.exp %907 : vector<1x192xf32>
    %cst_304 = arith.constant 1.000000e+00 : f32
    %909 = vector.broadcast %cst_304 : f32 to vector<1x192xf32>
    %910 = arith.addf %909, %908 : vector<1x192xf32>
    %911 = arith.divf %909, %910 : vector<1x192xf32>
    %912 = vector.extract_strided_slice %905 {offsets = [0, 192], sizes = [1, 64], strides = [1, 1]} : vector<1x256xf32> to vector<1x64xf32>
    %913 = math.tanh %912 : vector<1x64xf32>
    %914 = vector.extract_strided_slice %911 {offsets = [0, 64], sizes = [1, 64], strides = [1, 1]} : vector<1x192xf32> to vector<1x64xf32>
    %915 = arith.mulf %914, %897 : vector<1x64xf32>
    %916 = vector.extract_strided_slice %911 {offsets = [0, 0], sizes = [1, 64], strides = [1, 1]} : vector<1x192xf32> to vector<1x64xf32>
    %917 = arith.mulf %916, %913 : vector<1x64xf32>
    %918 = arith.addf %915, %917 : vector<1x64xf32>
    %919 = vector.extract_strided_slice %911 {offsets = [0, 128], sizes = [1, 64], strides = [1, 1]} : vector<1x192xf32> to vector<1x64xf32>
    %920 = math.tanh %918 : vector<1x64xf32>
    %921 = arith.mulf %919, %920 : vector<1x64xf32>
    %c4_i32_305 = arith.constant 4 : i32
    %922 = arith.index_cast %c4_i32_305 : i32 to index
    %c0_306 = arith.constant 0 : index
    %923 = vector.load %arg23[%922, %c0_306] : memref<16x256xf32, #tpu.memory_space<vmem>>, vector<1x256xf32>
    %c0_307 = arith.constant 0 : index
    %c0_308 = arith.constant 0 : index
    %924 = vector.load %arg15[%c0_307, %c0_308] : memref<64x256xf32, #tpu.memory_space<vmem>>, vector<64x256xf32>
    %cst_309 = arith.constant dense<0.000000e+00> : vector<1x256xf32>
    %925 = tpu.matmul %921, %924, %cst_309 {dimension_numbers = #tpu.dot_dimension_numbers<[1], [0], [0], [1], [0, 0, 1, 1], [], []>} : vector<1x64xf32>, vector<64x256xf32>, vector<1x256xf32> -> vector<1x256xf32>
    %926 = arith.addf %923, %925 : vector<1x256xf32>
    %927 = vector.extract_strided_slice %926 {offsets = [0, 0], sizes = [1, 192], strides = [1, 1]} : vector<1x256xf32> to vector<1x192xf32>
    %928 = arith.negf %927 : vector<1x192xf32>
    %929 = math.exp %928 : vector<1x192xf32>
    %cst_310 = arith.constant 1.000000e+00 : f32
    %930 = vector.broadcast %cst_310 : f32 to vector<1x192xf32>
    %931 = arith.addf %930, %929 : vector<1x192xf32>
    %932 = arith.divf %930, %931 : vector<1x192xf32>
    %933 = vector.extract_strided_slice %926 {offsets = [0, 192], sizes = [1, 64], strides = [1, 1]} : vector<1x256xf32> to vector<1x64xf32>
    %934 = math.tanh %933 : vector<1x64xf32>
    %935 = vector.extract_strided_slice %932 {offsets = [0, 64], sizes = [1, 64], strides = [1, 1]} : vector<1x192xf32> to vector<1x64xf32>
    %936 = arith.mulf %935, %918 : vector<1x64xf32>
    %937 = vector.extract_strided_slice %932 {offsets = [0, 0], sizes = [1, 64], strides = [1, 1]} : vector<1x192xf32> to vector<1x64xf32>
    %938 = arith.mulf %937, %934 : vector<1x64xf32>
    %939 = arith.addf %936, %938 : vector<1x64xf32>
    %940 = vector.extract_strided_slice %932 {offsets = [0, 128], sizes = [1, 64], strides = [1, 1]} : vector<1x192xf32> to vector<1x64xf32>
    %941 = math.tanh %939 : vector<1x64xf32>
    %942 = arith.mulf %940, %941 : vector<1x64xf32>
    %c5_i32_311 = arith.constant 5 : i32
    %943 = arith.index_cast %c5_i32_311 : i32 to index
    %c0_312 = arith.constant 0 : index
    %944 = vector.load %arg23[%943, %c0_312] : memref<16x256xf32, #tpu.memory_space<vmem>>, vector<1x256xf32>
    %c0_313 = arith.constant 0 : index
    %c0_314 = arith.constant 0 : index
    %945 = vector.load %arg15[%c0_313, %c0_314] : memref<64x256xf32, #tpu.memory_space<vmem>>, vector<64x256xf32>
    %cst_315 = arith.constant dense<0.000000e+00> : vector<1x256xf32>
    %946 = tpu.matmul %942, %945, %cst_315 {dimension_numbers = #tpu.dot_dimension_numbers<[1], [0], [0], [1], [0, 0, 1, 1], [], []>} : vector<1x64xf32>, vector<64x256xf32>, vector<1x256xf32> -> vector<1x256xf32>
    %947 = arith.addf %944, %946 : vector<1x256xf32>
    %948 = vector.extract_strided_slice %947 {offsets = [0, 0], sizes = [1, 192], strides = [1, 1]} : vector<1x256xf32> to vector<1x192xf32>
    %949 = arith.negf %948 : vector<1x192xf32>
    %950 = math.exp %949 : vector<1x192xf32>
    %cst_316 = arith.constant 1.000000e+00 : f32
    %951 = vector.broadcast %cst_316 : f32 to vector<1x192xf32>
    %952 = arith.addf %951, %950 : vector<1x192xf32>
    %953 = arith.divf %951, %952 : vector<1x192xf32>
    %954 = vector.extract_strided_slice %947 {offsets = [0, 192], sizes = [1, 64], strides = [1, 1]} : vector<1x256xf32> to vector<1x64xf32>
    %955 = math.tanh %954 : vector<1x64xf32>
    %956 = vector.extract_strided_slice %953 {offsets = [0, 64], sizes = [1, 64], strides = [1, 1]} : vector<1x192xf32> to vector<1x64xf32>
    %957 = arith.mulf %956, %939 : vector<1x64xf32>
    %958 = vector.extract_strided_slice %953 {offsets = [0, 0], sizes = [1, 64], strides = [1, 1]} : vector<1x192xf32> to vector<1x64xf32>
    %959 = arith.mulf %958, %955 : vector<1x64xf32>
    %960 = arith.addf %957, %959 : vector<1x64xf32>
    %961 = vector.extract_strided_slice %953 {offsets = [0, 128], sizes = [1, 64], strides = [1, 1]} : vector<1x192xf32> to vector<1x64xf32>
    %962 = math.tanh %960 : vector<1x64xf32>
    %963 = arith.mulf %961, %962 : vector<1x64xf32>
    %c6_i32_317 = arith.constant 6 : i32
    %964 = arith.index_cast %c6_i32_317 : i32 to index
    %c0_318 = arith.constant 0 : index
    %965 = vector.load %arg23[%964, %c0_318] : memref<16x256xf32, #tpu.memory_space<vmem>>, vector<1x256xf32>
    %c0_319 = arith.constant 0 : index
    %c0_320 = arith.constant 0 : index
    %966 = vector.load %arg15[%c0_319, %c0_320] : memref<64x256xf32, #tpu.memory_space<vmem>>, vector<64x256xf32>
    %cst_321 = arith.constant dense<0.000000e+00> : vector<1x256xf32>
    %967 = tpu.matmul %963, %966, %cst_321 {dimension_numbers = #tpu.dot_dimension_numbers<[1], [0], [0], [1], [0, 0, 1, 1], [], []>} : vector<1x64xf32>, vector<64x256xf32>, vector<1x256xf32> -> vector<1x256xf32>
    %968 = arith.addf %965, %967 : vector<1x256xf32>
    %969 = vector.extract_strided_slice %968 {offsets = [0, 0], sizes = [1, 192], strides = [1, 1]} : vector<1x256xf32> to vector<1x192xf32>
    %970 = arith.negf %969 : vector<1x192xf32>
    %971 = math.exp %970 : vector<1x192xf32>
    %cst_322 = arith.constant 1.000000e+00 : f32
    %972 = vector.broadcast %cst_322 : f32 to vector<1x192xf32>
    %973 = arith.addf %972, %971 : vector<1x192xf32>
    %974 = arith.divf %972, %973 : vector<1x192xf32>
    %975 = vector.extract_strided_slice %968 {offsets = [0, 192], sizes = [1, 64], strides = [1, 1]} : vector<1x256xf32> to vector<1x64xf32>
    %976 = math.tanh %975 : vector<1x64xf32>
    %977 = vector.extract_strided_slice %974 {offsets = [0, 64], sizes = [1, 64], strides = [1, 1]} : vector<1x192xf32> to vector<1x64xf32>
    %978 = arith.mulf %977, %960 : vector<1x64xf32>
    %979 = vector.extract_strided_slice %974 {offsets = [0, 0], sizes = [1, 64], strides = [1, 1]} : vector<1x192xf32> to vector<1x64xf32>
    %980 = arith.mulf %979, %976 : vector<1x64xf32>
    %981 = arith.addf %978, %980 : vector<1x64xf32>
    %982 = vector.extract_strided_slice %974 {offsets = [0, 128], sizes = [1, 64], strides = [1, 1]} : vector<1x192xf32> to vector<1x64xf32>
    %983 = math.tanh %981 : vector<1x64xf32>
    %984 = arith.mulf %982, %983 : vector<1x64xf32>
    %c7_i32_323 = arith.constant 7 : i32
    %985 = arith.index_cast %c7_i32_323 : i32 to index
    %c0_324 = arith.constant 0 : index
    %986 = vector.load %arg23[%985, %c0_324] : memref<16x256xf32, #tpu.memory_space<vmem>>, vector<1x256xf32>
    %c0_325 = arith.constant 0 : index
    %c0_326 = arith.constant 0 : index
    %987 = vector.load %arg15[%c0_325, %c0_326] : memref<64x256xf32, #tpu.memory_space<vmem>>, vector<64x256xf32>
    %cst_327 = arith.constant dense<0.000000e+00> : vector<1x256xf32>
    %988 = tpu.matmul %984, %987, %cst_327 {dimension_numbers = #tpu.dot_dimension_numbers<[1], [0], [0], [1], [0, 0, 1, 1], [], []>} : vector<1x64xf32>, vector<64x256xf32>, vector<1x256xf32> -> vector<1x256xf32>
    %989 = arith.addf %986, %988 : vector<1x256xf32>
    %990 = vector.extract_strided_slice %989 {offsets = [0, 0], sizes = [1, 192], strides = [1, 1]} : vector<1x256xf32> to vector<1x192xf32>
    %991 = arith.negf %990 : vector<1x192xf32>
    %992 = math.exp %991 : vector<1x192xf32>
    %cst_328 = arith.constant 1.000000e+00 : f32
    %993 = vector.broadcast %cst_328 : f32 to vector<1x192xf32>
    %994 = arith.addf %993, %992 : vector<1x192xf32>
    %995 = arith.divf %993, %994 : vector<1x192xf32>
    %996 = vector.extract_strided_slice %989 {offsets = [0, 192], sizes = [1, 64], strides = [1, 1]} : vector<1x256xf32> to vector<1x64xf32>
    %997 = math.tanh %996 : vector<1x64xf32>
    %998 = vector.extract_strided_slice %995 {offsets = [0, 64], sizes = [1, 64], strides = [1, 1]} : vector<1x192xf32> to vector<1x64xf32>
    %999 = arith.mulf %998, %981 : vector<1x64xf32>
    %1000 = vector.extract_strided_slice %995 {offsets = [0, 0], sizes = [1, 64], strides = [1, 1]} : vector<1x192xf32> to vector<1x64xf32>
    %1001 = arith.mulf %1000, %997 : vector<1x64xf32>
    %1002 = arith.addf %999, %1001 : vector<1x64xf32>
    %1003 = vector.extract_strided_slice %995 {offsets = [0, 128], sizes = [1, 64], strides = [1, 1]} : vector<1x192xf32> to vector<1x64xf32>
    %1004 = math.tanh %1002 : vector<1x64xf32>
    %1005 = arith.mulf %1003, %1004 : vector<1x64xf32>
    %c8_i32_329 = arith.constant 8 : i32
    %1006 = arith.index_cast %c8_i32_329 : i32 to index
    %c0_330 = arith.constant 0 : index
    %1007 = vector.load %arg23[%1006, %c0_330] : memref<16x256xf32, #tpu.memory_space<vmem>>, vector<1x256xf32>
    %c0_331 = arith.constant 0 : index
    %c0_332 = arith.constant 0 : index
    %1008 = vector.load %arg15[%c0_331, %c0_332] : memref<64x256xf32, #tpu.memory_space<vmem>>, vector<64x256xf32>
    %cst_333 = arith.constant dense<0.000000e+00> : vector<1x256xf32>
    %1009 = tpu.matmul %1005, %1008, %cst_333 {dimension_numbers = #tpu.dot_dimension_numbers<[1], [0], [0], [1], [0, 0, 1, 1], [], []>} : vector<1x64xf32>, vector<64x256xf32>, vector<1x256xf32> -> vector<1x256xf32>
    %1010 = arith.addf %1007, %1009 : vector<1x256xf32>
    %1011 = vector.extract_strided_slice %1010 {offsets = [0, 0], sizes = [1, 192], strides = [1, 1]} : vector<1x256xf32> to vector<1x192xf32>
    %1012 = arith.negf %1011 : vector<1x192xf32>
    %1013 = math.exp %1012 : vector<1x192xf32>
    %cst_334 = arith.constant 1.000000e+00 : f32
    %1014 = vector.broadcast %cst_334 : f32 to vector<1x192xf32>
    %1015 = arith.addf %1014, %1013 : vector<1x192xf32>
    %1016 = arith.divf %1014, %1015 : vector<1x192xf32>
    %1017 = vector.extract_strided_slice %1010 {offsets = [0, 192], sizes = [1, 64], strides = [1, 1]} : vector<1x256xf32> to vector<1x64xf32>
    %1018 = math.tanh %1017 : vector<1x64xf32>
    %1019 = vector.extract_strided_slice %1016 {offsets = [0, 64], sizes = [1, 64], strides = [1, 1]} : vector<1x192xf32> to vector<1x64xf32>
    %1020 = arith.mulf %1019, %1002 : vector<1x64xf32>
    %1021 = vector.extract_strided_slice %1016 {offsets = [0, 0], sizes = [1, 64], strides = [1, 1]} : vector<1x192xf32> to vector<1x64xf32>
    %1022 = arith.mulf %1021, %1018 : vector<1x64xf32>
    %1023 = arith.addf %1020, %1022 : vector<1x64xf32>
    %1024 = vector.extract_strided_slice %1016 {offsets = [0, 128], sizes = [1, 64], strides = [1, 1]} : vector<1x192xf32> to vector<1x64xf32>
    %1025 = math.tanh %1023 : vector<1x64xf32>
    %1026 = arith.mulf %1024, %1025 : vector<1x64xf32>
    %c9_i32_335 = arith.constant 9 : i32
    %1027 = arith.index_cast %c9_i32_335 : i32 to index
    %c0_336 = arith.constant 0 : index
    %1028 = vector.load %arg23[%1027, %c0_336] : memref<16x256xf32, #tpu.memory_space<vmem>>, vector<1x256xf32>
    %c0_337 = arith.constant 0 : index
    %c0_338 = arith.constant 0 : index
    %1029 = vector.load %arg15[%c0_337, %c0_338] : memref<64x256xf32, #tpu.memory_space<vmem>>, vector<64x256xf32>
    %cst_339 = arith.constant dense<0.000000e+00> : vector<1x256xf32>
    %1030 = tpu.matmul %1026, %1029, %cst_339 {dimension_numbers = #tpu.dot_dimension_numbers<[1], [0], [0], [1], [0, 0, 1, 1], [], []>} : vector<1x64xf32>, vector<64x256xf32>, vector<1x256xf32> -> vector<1x256xf32>
    %1031 = arith.addf %1028, %1030 : vector<1x256xf32>
    %1032 = vector.extract_strided_slice %1031 {offsets = [0, 0], sizes = [1, 192], strides = [1, 1]} : vector<1x256xf32> to vector<1x192xf32>
    %1033 = arith.negf %1032 : vector<1x192xf32>
    %1034 = math.exp %1033 : vector<1x192xf32>
    %cst_340 = arith.constant 1.000000e+00 : f32
    %1035 = vector.broadcast %cst_340 : f32 to vector<1x192xf32>
    %1036 = arith.addf %1035, %1034 : vector<1x192xf32>
    %1037 = arith.divf %1035, %1036 : vector<1x192xf32>
    %1038 = vector.extract_strided_slice %1031 {offsets = [0, 192], sizes = [1, 64], strides = [1, 1]} : vector<1x256xf32> to vector<1x64xf32>
    %1039 = math.tanh %1038 : vector<1x64xf32>
    %1040 = vector.extract_strided_slice %1037 {offsets = [0, 64], sizes = [1, 64], strides = [1, 1]} : vector<1x192xf32> to vector<1x64xf32>
    %1041 = arith.mulf %1040, %1023 : vector<1x64xf32>
    %1042 = vector.extract_strided_slice %1037 {offsets = [0, 0], sizes = [1, 64], strides = [1, 1]} : vector<1x192xf32> to vector<1x64xf32>
    %1043 = arith.mulf %1042, %1039 : vector<1x64xf32>
    %1044 = arith.addf %1041, %1043 : vector<1x64xf32>
    %1045 = vector.extract_strided_slice %1037 {offsets = [0, 128], sizes = [1, 64], strides = [1, 1]} : vector<1x192xf32> to vector<1x64xf32>
    %1046 = math.tanh %1044 : vector<1x64xf32>
    %1047 = arith.mulf %1045, %1046 : vector<1x64xf32>
    %c10_i32_341 = arith.constant 10 : i32
    %1048 = arith.index_cast %c10_i32_341 : i32 to index
    %c0_342 = arith.constant 0 : index
    %1049 = vector.load %arg23[%1048, %c0_342] : memref<16x256xf32, #tpu.memory_space<vmem>>, vector<1x256xf32>
    %c0_343 = arith.constant 0 : index
    %c0_344 = arith.constant 0 : index
    %1050 = vector.load %arg15[%c0_343, %c0_344] : memref<64x256xf32, #tpu.memory_space<vmem>>, vector<64x256xf32>
    %cst_345 = arith.constant dense<0.000000e+00> : vector<1x256xf32>
    %1051 = tpu.matmul %1047, %1050, %cst_345 {dimension_numbers = #tpu.dot_dimension_numbers<[1], [0], [0], [1], [0, 0, 1, 1], [], []>} : vector<1x64xf32>, vector<64x256xf32>, vector<1x256xf32> -> vector<1x256xf32>
    %1052 = arith.addf %1049, %1051 : vector<1x256xf32>
    %1053 = vector.extract_strided_slice %1052 {offsets = [0, 0], sizes = [1, 192], strides = [1, 1]} : vector<1x256xf32> to vector<1x192xf32>
    %1054 = arith.negf %1053 : vector<1x192xf32>
    %1055 = math.exp %1054 : vector<1x192xf32>
    %cst_346 = arith.constant 1.000000e+00 : f32
    %1056 = vector.broadcast %cst_346 : f32 to vector<1x192xf32>
    %1057 = arith.addf %1056, %1055 : vector<1x192xf32>
    %1058 = arith.divf %1056, %1057 : vector<1x192xf32>
    %1059 = vector.extract_strided_slice %1052 {offsets = [0, 192], sizes = [1, 64], strides = [1, 1]} : vector<1x256xf32> to vector<1x64xf32>
    %1060 = math.tanh %1059 : vector<1x64xf32>
    %1061 = vector.extract_strided_slice %1058 {offsets = [0, 64], sizes = [1, 64], strides = [1, 1]} : vector<1x192xf32> to vector<1x64xf32>
    %1062 = arith.mulf %1061, %1044 : vector<1x64xf32>
    %1063 = vector.extract_strided_slice %1058 {offsets = [0, 0], sizes = [1, 64], strides = [1, 1]} : vector<1x192xf32> to vector<1x64xf32>
    %1064 = arith.mulf %1063, %1060 : vector<1x64xf32>
    %1065 = arith.addf %1062, %1064 : vector<1x64xf32>
    %1066 = vector.extract_strided_slice %1058 {offsets = [0, 128], sizes = [1, 64], strides = [1, 1]} : vector<1x192xf32> to vector<1x64xf32>
    %1067 = math.tanh %1065 : vector<1x64xf32>
    %1068 = arith.mulf %1066, %1067 : vector<1x64xf32>
    %c11_i32_347 = arith.constant 11 : i32
    %1069 = arith.index_cast %c11_i32_347 : i32 to index
    %c0_348 = arith.constant 0 : index
    %1070 = vector.load %arg23[%1069, %c0_348] : memref<16x256xf32, #tpu.memory_space<vmem>>, vector<1x256xf32>
    %c0_349 = arith.constant 0 : index
    %c0_350 = arith.constant 0 : index
    %1071 = vector.load %arg15[%c0_349, %c0_350] : memref<64x256xf32, #tpu.memory_space<vmem>>, vector<64x256xf32>
    %cst_351 = arith.constant dense<0.000000e+00> : vector<1x256xf32>
    %1072 = tpu.matmul %1068, %1071, %cst_351 {dimension_numbers = #tpu.dot_dimension_numbers<[1], [0], [0], [1], [0, 0, 1, 1], [], []>} : vector<1x64xf32>, vector<64x256xf32>, vector<1x256xf32> -> vector<1x256xf32>
    %1073 = arith.addf %1070, %1072 : vector<1x256xf32>
    %1074 = vector.extract_strided_slice %1073 {offsets = [0, 0], sizes = [1, 192], strides = [1, 1]} : vector<1x256xf32> to vector<1x192xf32>
    %1075 = arith.negf %1074 : vector<1x192xf32>
    %1076 = math.exp %1075 : vector<1x192xf32>
    %cst_352 = arith.constant 1.000000e+00 : f32
    %1077 = vector.broadcast %cst_352 : f32 to vector<1x192xf32>
    %1078 = arith.addf %1077, %1076 : vector<1x192xf32>
    %1079 = arith.divf %1077, %1078 : vector<1x192xf32>
    %1080 = vector.extract_strided_slice %1073 {offsets = [0, 192], sizes = [1, 64], strides = [1, 1]} : vector<1x256xf32> to vector<1x64xf32>
    %1081 = math.tanh %1080 : vector<1x64xf32>
    %1082 = vector.extract_strided_slice %1079 {offsets = [0, 64], sizes = [1, 64], strides = [1, 1]} : vector<1x192xf32> to vector<1x64xf32>
    %1083 = arith.mulf %1082, %1065 : vector<1x64xf32>
    %1084 = vector.extract_strided_slice %1079 {offsets = [0, 0], sizes = [1, 64], strides = [1, 1]} : vector<1x192xf32> to vector<1x64xf32>
    %1085 = arith.mulf %1084, %1081 : vector<1x64xf32>
    %1086 = arith.addf %1083, %1085 : vector<1x64xf32>
    %1087 = vector.extract_strided_slice %1079 {offsets = [0, 128], sizes = [1, 64], strides = [1, 1]} : vector<1x192xf32> to vector<1x64xf32>
    %1088 = math.tanh %1086 : vector<1x64xf32>
    %1089 = arith.mulf %1087, %1088 : vector<1x64xf32>
    %c12_i32_353 = arith.constant 12 : i32
    %1090 = arith.index_cast %c12_i32_353 : i32 to index
    %c0_354 = arith.constant 0 : index
    %1091 = vector.load %arg23[%1090, %c0_354] : memref<16x256xf32, #tpu.memory_space<vmem>>, vector<1x256xf32>
    %c0_355 = arith.constant 0 : index
    %c0_356 = arith.constant 0 : index
    %1092 = vector.load %arg15[%c0_355, %c0_356] : memref<64x256xf32, #tpu.memory_space<vmem>>, vector<64x256xf32>
    %cst_357 = arith.constant dense<0.000000e+00> : vector<1x256xf32>
    %1093 = tpu.matmul %1089, %1092, %cst_357 {dimension_numbers = #tpu.dot_dimension_numbers<[1], [0], [0], [1], [0, 0, 1, 1], [], []>} : vector<1x64xf32>, vector<64x256xf32>, vector<1x256xf32> -> vector<1x256xf32>
    %1094 = arith.addf %1091, %1093 : vector<1x256xf32>
    %1095 = vector.extract_strided_slice %1094 {offsets = [0, 0], sizes = [1, 192], strides = [1, 1]} : vector<1x256xf32> to vector<1x192xf32>
    %1096 = arith.negf %1095 : vector<1x192xf32>
    %1097 = math.exp %1096 : vector<1x192xf32>
    %cst_358 = arith.constant 1.000000e+00 : f32
    %1098 = vector.broadcast %cst_358 : f32 to vector<1x192xf32>
    %1099 = arith.addf %1098, %1097 : vector<1x192xf32>
    %1100 = arith.divf %1098, %1099 : vector<1x192xf32>
    %1101 = vector.extract_strided_slice %1094 {offsets = [0, 192], sizes = [1, 64], strides = [1, 1]} : vector<1x256xf32> to vector<1x64xf32>
    %1102 = math.tanh %1101 : vector<1x64xf32>
    %1103 = vector.extract_strided_slice %1100 {offsets = [0, 64], sizes = [1, 64], strides = [1, 1]} : vector<1x192xf32> to vector<1x64xf32>
    %1104 = arith.mulf %1103, %1086 : vector<1x64xf32>
    %1105 = vector.extract_strided_slice %1100 {offsets = [0, 0], sizes = [1, 64], strides = [1, 1]} : vector<1x192xf32> to vector<1x64xf32>
    %1106 = arith.mulf %1105, %1102 : vector<1x64xf32>
    %1107 = arith.addf %1104, %1106 : vector<1x64xf32>
    %1108 = vector.extract_strided_slice %1100 {offsets = [0, 128], sizes = [1, 64], strides = [1, 1]} : vector<1x192xf32> to vector<1x64xf32>
    %1109 = math.tanh %1107 : vector<1x64xf32>
    %1110 = arith.mulf %1108, %1109 : vector<1x64xf32>
    %c13_i32_359 = arith.constant 13 : i32
    %1111 = arith.index_cast %c13_i32_359 : i32 to index
    %c0_360 = arith.constant 0 : index
    %1112 = vector.load %arg23[%1111, %c0_360] : memref<16x256xf32, #tpu.memory_space<vmem>>, vector<1x256xf32>
    %c0_361 = arith.constant 0 : index
    %c0_362 = arith.constant 0 : index
    %1113 = vector.load %arg15[%c0_361, %c0_362] : memref<64x256xf32, #tpu.memory_space<vmem>>, vector<64x256xf32>
    %cst_363 = arith.constant dense<0.000000e+00> : vector<1x256xf32>
    %1114 = tpu.matmul %1110, %1113, %cst_363 {dimension_numbers = #tpu.dot_dimension_numbers<[1], [0], [0], [1], [0, 0, 1, 1], [], []>} : vector<1x64xf32>, vector<64x256xf32>, vector<1x256xf32> -> vector<1x256xf32>
    %1115 = arith.addf %1112, %1114 : vector<1x256xf32>
    %1116 = vector.extract_strided_slice %1115 {offsets = [0, 0], sizes = [1, 192], strides = [1, 1]} : vector<1x256xf32> to vector<1x192xf32>
    %1117 = arith.negf %1116 : vector<1x192xf32>
    %1118 = math.exp %1117 : vector<1x192xf32>
    %cst_364 = arith.constant 1.000000e+00 : f32
    %1119 = vector.broadcast %cst_364 : f32 to vector<1x192xf32>
    %1120 = arith.addf %1119, %1118 : vector<1x192xf32>
    %1121 = arith.divf %1119, %1120 : vector<1x192xf32>
    %1122 = vector.extract_strided_slice %1115 {offsets = [0, 192], sizes = [1, 64], strides = [1, 1]} : vector<1x256xf32> to vector<1x64xf32>
    %1123 = math.tanh %1122 : vector<1x64xf32>
    %1124 = vector.extract_strided_slice %1121 {offsets = [0, 64], sizes = [1, 64], strides = [1, 1]} : vector<1x192xf32> to vector<1x64xf32>
    %1125 = arith.mulf %1124, %1107 : vector<1x64xf32>
    %1126 = vector.extract_strided_slice %1121 {offsets = [0, 0], sizes = [1, 64], strides = [1, 1]} : vector<1x192xf32> to vector<1x64xf32>
    %1127 = arith.mulf %1126, %1123 : vector<1x64xf32>
    %1128 = arith.addf %1125, %1127 : vector<1x64xf32>
    %1129 = vector.extract_strided_slice %1121 {offsets = [0, 128], sizes = [1, 64], strides = [1, 1]} : vector<1x192xf32> to vector<1x64xf32>
    %1130 = math.tanh %1128 : vector<1x64xf32>
    %1131 = arith.mulf %1129, %1130 : vector<1x64xf32>
    %c14_i32_365 = arith.constant 14 : i32
    %1132 = arith.index_cast %c14_i32_365 : i32 to index
    %c0_366 = arith.constant 0 : index
    %1133 = vector.load %arg23[%1132, %c0_366] : memref<16x256xf32, #tpu.memory_space<vmem>>, vector<1x256xf32>
    %c0_367 = arith.constant 0 : index
    %c0_368 = arith.constant 0 : index
    %1134 = vector.load %arg15[%c0_367, %c0_368] : memref<64x256xf32, #tpu.memory_space<vmem>>, vector<64x256xf32>
    %cst_369 = arith.constant dense<0.000000e+00> : vector<1x256xf32>
    %1135 = tpu.matmul %1131, %1134, %cst_369 {dimension_numbers = #tpu.dot_dimension_numbers<[1], [0], [0], [1], [0, 0, 1, 1], [], []>} : vector<1x64xf32>, vector<64x256xf32>, vector<1x256xf32> -> vector<1x256xf32>
    %1136 = arith.addf %1133, %1135 : vector<1x256xf32>
    %1137 = vector.extract_strided_slice %1136 {offsets = [0, 0], sizes = [1, 192], strides = [1, 1]} : vector<1x256xf32> to vector<1x192xf32>
    %1138 = arith.negf %1137 : vector<1x192xf32>
    %1139 = math.exp %1138 : vector<1x192xf32>
    %cst_370 = arith.constant 1.000000e+00 : f32
    %1140 = vector.broadcast %cst_370 : f32 to vector<1x192xf32>
    %1141 = arith.addf %1140, %1139 : vector<1x192xf32>
    %1142 = arith.divf %1140, %1141 : vector<1x192xf32>
    %1143 = vector.extract_strided_slice %1136 {offsets = [0, 192], sizes = [1, 64], strides = [1, 1]} : vector<1x256xf32> to vector<1x64xf32>
    %1144 = math.tanh %1143 : vector<1x64xf32>
    %1145 = vector.extract_strided_slice %1142 {offsets = [0, 64], sizes = [1, 64], strides = [1, 1]} : vector<1x192xf32> to vector<1x64xf32>
    %1146 = arith.mulf %1145, %1128 : vector<1x64xf32>
    %1147 = vector.extract_strided_slice %1142 {offsets = [0, 0], sizes = [1, 64], strides = [1, 1]} : vector<1x192xf32> to vector<1x64xf32>
    %1148 = arith.mulf %1147, %1144 : vector<1x64xf32>
    %1149 = arith.addf %1146, %1148 : vector<1x64xf32>
    %1150 = vector.extract_strided_slice %1142 {offsets = [0, 128], sizes = [1, 64], strides = [1, 1]} : vector<1x192xf32> to vector<1x64xf32>
    %1151 = math.tanh %1149 : vector<1x64xf32>
    %1152 = arith.mulf %1150, %1151 : vector<1x64xf32>
    %c15_i32_371 = arith.constant 15 : i32
    %1153 = arith.index_cast %c15_i32_371 : i32 to index
    %c0_372 = arith.constant 0 : index
    %1154 = vector.load %arg23[%1153, %c0_372] : memref<16x256xf32, #tpu.memory_space<vmem>>, vector<1x256xf32>
    %c0_373 = arith.constant 0 : index
    %c0_374 = arith.constant 0 : index
    %1155 = vector.load %arg15[%c0_373, %c0_374] : memref<64x256xf32, #tpu.memory_space<vmem>>, vector<64x256xf32>
    %cst_375 = arith.constant dense<0.000000e+00> : vector<1x256xf32>
    %1156 = tpu.matmul %1152, %1155, %cst_375 {dimension_numbers = #tpu.dot_dimension_numbers<[1], [0], [0], [1], [0, 0, 1, 1], [], []>} : vector<1x64xf32>, vector<64x256xf32>, vector<1x256xf32> -> vector<1x256xf32>
    %1157 = arith.addf %1154, %1156 : vector<1x256xf32>
    %1158 = vector.extract_strided_slice %1157 {offsets = [0, 0], sizes = [1, 192], strides = [1, 1]} : vector<1x256xf32> to vector<1x192xf32>
    %1159 = arith.negf %1158 : vector<1x192xf32>
    %1160 = math.exp %1159 : vector<1x192xf32>
    %cst_376 = arith.constant 1.000000e+00 : f32
    %1161 = vector.broadcast %cst_376 : f32 to vector<1x192xf32>
    %1162 = arith.addf %1161, %1160 : vector<1x192xf32>
    %1163 = arith.divf %1161, %1162 : vector<1x192xf32>
    %1164 = vector.extract_strided_slice %1157 {offsets = [0, 192], sizes = [1, 64], strides = [1, 1]} : vector<1x256xf32> to vector<1x64xf32>
    %1165 = math.tanh %1164 : vector<1x64xf32>
    %1166 = vector.extract_strided_slice %1163 {offsets = [0, 64], sizes = [1, 64], strides = [1, 1]} : vector<1x192xf32> to vector<1x64xf32>
    %1167 = arith.mulf %1166, %1149 : vector<1x64xf32>
    %1168 = vector.extract_strided_slice %1163 {offsets = [0, 0], sizes = [1, 64], strides = [1, 1]} : vector<1x192xf32> to vector<1x64xf32>
    %1169 = arith.mulf %1168, %1165 : vector<1x64xf32>
    %1170 = arith.addf %1167, %1169 : vector<1x64xf32>
    %1171 = vector.extract_strided_slice %1163 {offsets = [0, 128], sizes = [1, 64], strides = [1, 1]} : vector<1x192xf32> to vector<1x64xf32>
    %1172 = math.tanh %1170 : vector<1x64xf32>
    %1173 = arith.mulf %1171, %1172 : vector<1x64xf32>
    %c16_i32_377 = arith.constant 16 : i32
    %c15 = arith.constant 15 : index
    %c0_378 = arith.constant 0 : index
    %1174 = vector.load %arg25[%c15, %c0_378] : memref<16x64xf32, #tpu.memory_space<vmem>>, vector<1x64xf32>
    %c0_379 = arith.constant 0 : index
    %c0_380 = arith.constant 0 : index
    %1175 = vector.load %arg17[%c0_379, %c0_380] : memref<128x256xf32, #tpu.memory_space<vmem>>, vector<64x256xf32>
    %cst_381 = arith.constant dense<0.000000e+00> : vector<1x256xf32>
    %1176 = tpu.matmul %1174, %1175, %cst_381 {dimension_numbers = #tpu.dot_dimension_numbers<[1], [0], [0], [1], [0, 0, 1, 1], [], []>} : vector<1x64xf32>, vector<64x256xf32>, vector<1x256xf32> -> vector<1x256xf32>
    %c15_382 = arith.constant 15 : index
    %c0_383 = arith.constant 0 : index
    %1177 = vector.load %arg26[%c15_382, %c0_383] : memref<16x64xf32, #tpu.memory_space<vmem>>, vector<1x64xf32>
    %c64_384 = arith.constant 64 : index
    %c0_385 = arith.constant 0 : index
    %1178 = vector.load %arg17[%c64_384, %c0_385] : memref<128x256xf32, #tpu.memory_space<vmem>>, vector<64x256xf32>
    %cst_386 = arith.constant dense<0.000000e+00> : vector<1x256xf32>
    %1179 = tpu.matmul %1177, %1178, %cst_386 {dimension_numbers = #tpu.dot_dimension_numbers<[1], [0], [0], [1], [0, 0, 1, 1], [], []>} : vector<1x64xf32>, vector<64x256xf32>, vector<1x256xf32> -> vector<1x256xf32>
    %1180 = arith.addf %1176, %1179 : vector<1x256xf32>
    %c0_387 = arith.constant 0 : index
    %c0_388 = arith.constant 0 : index
    %1181 = vector.load %arg19[%c0_387, %c0_388] : memref<1x256xf32, #tpu.memory_space<vmem>>, vector<1x256xf32>
    %1182 = arith.addf %1180, %1181 : vector<1x256xf32>
    %1183 = vector.extract_strided_slice %1182 {offsets = [0, 0], sizes = [1, 192], strides = [1, 1]} : vector<1x256xf32> to vector<1x192xf32>
    %1184 = arith.negf %1183 : vector<1x192xf32>
    %1185 = math.exp %1184 : vector<1x192xf32>
    %cst_389 = arith.constant 1.000000e+00 : f32
    %1186 = vector.broadcast %cst_389 : f32 to vector<1x192xf32>
    %1187 = arith.addf %1186, %1185 : vector<1x192xf32>
    %1188 = arith.divf %1186, %1187 : vector<1x192xf32>
    %1189 = vector.extract_strided_slice %1182 {offsets = [0, 192], sizes = [1, 64], strides = [1, 1]} : vector<1x256xf32> to vector<1x64xf32>
    %1190 = math.tanh %1189 : vector<1x64xf32>
    %1191 = vector.extract_strided_slice %1188 {offsets = [0, 64], sizes = [1, 64], strides = [1, 1]} : vector<1x192xf32> to vector<1x64xf32>
    %1192 = arith.mulf %1191, %0 : vector<1x64xf32>
    %1193 = vector.extract_strided_slice %1188 {offsets = [0, 0], sizes = [1, 64], strides = [1, 1]} : vector<1x192xf32> to vector<1x64xf32>
    %1194 = arith.mulf %1193, %1190 : vector<1x64xf32>
    %1195 = arith.addf %1192, %1194 : vector<1x64xf32>
    %1196 = vector.extract_strided_slice %1188 {offsets = [0, 128], sizes = [1, 64], strides = [1, 1]} : vector<1x192xf32> to vector<1x64xf32>
    %1197 = math.tanh %1195 : vector<1x64xf32>
    %1198 = arith.mulf %1196, %1197 : vector<1x64xf32>
    %cst_390 = arith.constant 0.000000e+00 : f32
    %1199 = vector.broadcast %cst_390 : f32 to vector<1x64xf32>
    %1200 = arith.maximumf %1173, %1199 : vector<1x64xf32>
    %c0_391 = arith.constant 0 : index
    %c0_392 = arith.constant 0 : index
    %1201 = vector.load %arg20[%c0_391, %c0_392] : memref<128x8xf32, #tpu.memory_space<vmem>>, vector<64x8xf32>
    %cst_393 = arith.constant dense<0.000000e+00> : vector<1x8xf32>
    %1202 = tpu.matmul %1200, %1201, %cst_393 {dimension_numbers = #tpu.dot_dimension_numbers<[1], [0], [0], [1], [0, 0, 1, 1], [], []>} : vector<1x64xf32>, vector<64x8xf32>, vector<1x8xf32> -> vector<1x8xf32>
    %cst_394 = arith.constant 0.000000e+00 : f32
    %1203 = vector.broadcast %cst_394 : f32 to vector<1x64xf32>
    %1204 = arith.maximumf %1198, %1203 : vector<1x64xf32>
    %c64_395 = arith.constant 64 : index
    %c0_396 = arith.constant 0 : index
    %1205 = vector.load %arg20[%c64_395, %c0_396] : memref<128x8xf32, #tpu.memory_space<vmem>>, vector<64x8xf32>
    %cst_397 = arith.constant dense<0.000000e+00> : vector<1x8xf32>
    %1206 = tpu.matmul %1204, %1205, %cst_397 {dimension_numbers = #tpu.dot_dimension_numbers<[1], [0], [0], [1], [0, 0, 1, 1], [], []>} : vector<1x64xf32>, vector<64x8xf32>, vector<1x8xf32> -> vector<1x8xf32>
    %1207 = arith.addf %1202, %1206 : vector<1x8xf32>
    %c0_398 = arith.constant 0 : index
    %c0_399 = arith.constant 0 : index
    %1208 = vector.load %arg21[%c0_398, %c0_399] : memref<1x8xf32, #tpu.memory_space<vmem>>, vector<1x8xf32>
    %1209 = arith.addf %1207, %1208 : vector<1x8xf32>
    %c0_400 = arith.constant 0 : index
    %c0_401 = arith.constant 0 : index
    %c0_402 = arith.constant 0 : index
    %1210 = vector.load %arg22[%c0_400, %c0_401, %c0_402] : memref<1x1x8xf32, #tpu.memory_space<vmem>>, vector<1x1x8xf32>
    %1211 = vector.shape_cast %1210 : vector<1x1x8xf32> to vector<1x8xf32>
    %1212 = vector.shape_cast %1209 : vector<1x8xf32> to vector<1x1x8xf32>
    tpu.vector_store %arg22[%c0_400, %c0_401, %c0_402], %1212 {strides = array<i32>} : memref<1x1x8xf32, #tpu.memory_space<vmem>>, vector<1x1x8xf32>,
    return
  }
  func.func @transform_0(%arg0: i32) -> (i32, i32, i32) {
    %c0_i32 = arith.constant 0 : i32
    %c0_i32_0 = arith.constant 0 : i32
    %c0_i32_1 = arith.constant 0 : i32
    return %arg0, %c0_i32, %c0_i32_0 : i32, i32, i32
  }
  func.func @transform_1(%arg0: i32) -> (i32, i32, i32) {
    %c0_i32 = arith.constant 0 : i32
    %c0_i32_0 = arith.constant 0 : i32
    %c0_i32_1 = arith.constant 0 : i32
    %c0_i32_2 = arith.constant 0 : i32
    return %c0_i32, %c0_i32_0, %c0_i32_1 : i32, i32, i32
  }
  func.func @transform_2(%arg0: i32) -> (i32, i32) {
    %c0_i32 = arith.constant 0 : i32
    %c0_i32_0 = arith.constant 0 : i32
    %c0_i32_1 = arith.constant 0 : i32
    return %c0_i32, %c0_i32_0 : i32, i32
  }
  func.func @transform_3(%arg0: i32) -> (i32, i32) {
    %c0_i32 = arith.constant 0 : i32
    %c0_i32_0 = arith.constant 0 : i32
    %c0_i32_1 = arith.constant 0 : i32
    return %c0_i32, %c0_i32_0 : i32, i32
  }
  func.func @transform_4(%arg0: i32) -> (i32, i32, i32) {
    %c0_i32 = arith.constant 0 : i32
    %c0_i32_0 = arith.constant 0 : i32
    %c0_i32_1 = arith.constant 0 : i32
    %c0_i32_2 = arith.constant 0 : i32
    return %c0_i32, %c0_i32_0, %c0_i32_1 : i32, i32, i32
  }
  func.func @transform_5(%arg0: i32) -> (i32, i32) {
    %c0_i32 = arith.constant 0 : i32
    %c0_i32_0 = arith.constant 0 : i32
    %c0_i32_1 = arith.constant 0 : i32
    return %c0_i32, %c0_i32_0 : i32, i32
  }
  func.func @transform_6(%arg0: i32) -> (i32, i32) {
    %c0_i32 = arith.constant 0 : i32
    %c0_i32_0 = arith.constant 0 : i32
    %c0_i32_1 = arith.constant 0 : i32
    return %c0_i32, %c0_i32_0 : i32, i32
  }
  func.func @transform_7(%arg0: i32) -> (i32, i32) {
    %c0_i32 = arith.constant 0 : i32
    %c0_i32_0 = arith.constant 0 : i32
    %c0_i32_1 = arith.constant 0 : i32
    return %c0_i32, %c0_i32_0 : i32, i32
  }
  func.func @transform_8(%arg0: i32) -> (i32, i32) {
    %c0_i32 = arith.constant 0 : i32
    %c0_i32_0 = arith.constant 0 : i32
    %c0_i32_1 = arith.constant 0 : i32
    return %c0_i32, %c0_i32_0 : i32, i32
  }
  func.func @transform_9(%arg0: i32) -> (i32, i32) {
    %c0_i32 = arith.constant 0 : i32
    %c0_i32_0 = arith.constant 0 : i32
    %c0_i32_1 = arith.constant 0 : i32
    return %c0_i32, %c0_i32_0 : i32, i32
  }
  func.func @transform_10(%arg0: i32) -> (i32, i32) {
    %c0_i32 = arith.constant 0 : i32
    %c0_i32_0 = arith.constant 0 : i32
    %c0_i32_1 = arith.constant 0 : i32
    return %c0_i32, %c0_i32_0 : i32, i32
  }
  func.func @transform_11(%arg0: i32) -> (i32, i32) {
    %c0_i32 = arith.constant 0 : i32
    %c0_i32_0 = arith.constant 0 : i32
    %c0_i32_1 = arith.constant 0 : i32
    return %c0_i32, %c0_i32_0 : i32, i32
  }
  func.func @transform_12(%arg0: i32) -> (i32, i32) {
    %c0_i32 = arith.constant 0 : i32
    %c0_i32_0 = arith.constant 0 : i32
    %c0_i32_1 = arith.constant 0 : i32
    return %c0_i32, %c0_i32_0 : i32, i32
  }
  func.func @transform_13(%arg0: i32) -> (i32, i32) {
    %c0_i32 = arith.constant 0 : i32
    %c0_i32_0 = arith.constant 0 : i32
    %c0_i32_1 = arith.constant 0 : i32
    return %c0_i32, %c0_i32_0 : i32, i32
  }
  func.func @transform_14(%arg0: i32) -> (i32, i32) {
    %c0_i32 = arith.constant 0 : i32
    %c0_i32_0 = arith.constant 0 : i32
    %c0_i32_1 = arith.constant 0 : i32
    return %c0_i32, %c0_i32_0 : i32, i32
  }
  func.func @transform_15(%arg0: i32) -> (i32, i32) {
    %c0_i32 = arith.constant 0 : i32
    %c0_i32_0 = arith.constant 0 : i32
    %c0_i32_1 = arith.constant 0 : i32
    return %c0_i32, %c0_i32_0 : i32, i32
  }
  func.func @transform_16(%arg0: i32) -> (i32, i32) {
    %c0_i32 = arith.constant 0 : i32
    %c0_i32_0 = arith.constant 0 : i32
    %c0_i32_1 = arith.constant 0 : i32
    return %c0_i32, %c0_i32_0 : i32, i32
  }
  func.func @transform_17(%arg0: i32) -> (i32, i32) {
    %c0_i32 = arith.constant 0 : i32
    %c0_i32_0 = arith.constant 0 : i32
    %c0_i32_1 = arith.constant 0 : i32
    return %c0_i32, %c0_i32_0 : i32, i32
  }
  func.func @transform_18(%arg0: i32) -> (i32, i32) {
    %c0_i32 = arith.constant 0 : i32
    %c0_i32_0 = arith.constant 0 : i32
    %c0_i32_1 = arith.constant 0 : i32
    return %c0_i32, %c0_i32_0 : i32, i32
  }
  func.func @transform_19(%arg0: i32) -> (i32, i32) {
    %c0_i32 = arith.constant 0 : i32
    %c0_i32_0 = arith.constant 0 : i32
    %c0_i32_1 = arith.constant 0 : i32
    return %c0_i32, %c0_i32_0 : i32, i32
  }
  func.func @transform_20(%arg0: i32) -> (i32, i32) {
    %c0_i32 = arith.constant 0 : i32
    %c0_i32_0 = arith.constant 0 : i32
    %c0_i32_1 = arith.constant 0 : i32
    return %c0_i32, %c0_i32_0 : i32, i32
  }
  func.func @transform_21(%arg0: i32) -> (i32, i32, i32) {
    %c0_i32 = arith.constant 0 : i32
    %c0_i32_0 = arith.constant 0 : i32
    %c0_i32_1 = arith.constant 0 : i32
    return %arg0, %c0_i32, %c0_i32_0 : i32, i32, i32
  }
}

</mosaic_0001>

<bundles_post_ra>
// kernel: tpu_custom_call.1
= control target key start
LH: loop header
LB: loop body
LE: loop exit
PB: predicated region body
PF: predicated region fallthrough
CT: control target
= control target key end

     0   :  { %s12412_s0 = inlined_call_operand.hbm [shape: f32[2,16,40], index: 0, kind: input, shape index: {}]   ;;  %s12413_s1 = inlined_call_operand.hbm [shape: f32[3,40,64], index: 1, kind: input, shape index: {}]   ;;  %s12414_s2 = inlined_call_operand.vmem [shape: f32[1,64], index: 2, kind: input, shape index: {}]   ;;  %s12415_s3 = inlined_call_operand.vmem [shape: f32[1,64], index: 3, kind: input, shape index: {}]   ;;  %s12416_s4 = inlined_call_operand.hbm [shape: f32[3,64,128], index: 4, kind: input, shape index: {}]   ;;  %s12417_s5 = inlined_call_operand.vmem [shape: f32[1,128], index: 5, kind: input, shape index: {}]   ;;  %s12418_s6 = inlined_call_operand.vmem [shape: f32[1,128], index: 6, kind: input, shape index: {}]   ;;  %s12419_s7 = inlined_call_operand.hbm [shape: f32[128,256], index: 7, kind: input, shape index: {}]   ;;  %s12420_s8 = inlined_call_operand.vmem [shape: f32[64,256], index: 8, kind: input, shape index: {}]   ;;  %s12421_s9 = inlined_call_operand.vmem [shape: f32[1,256], index: 9, kind: input, shape index: {}]   ;;  %s12422_s10 = inlined_call_operand.hbm [shape: f32[128,256], index: 10, kind: input, shape index: {}]   ;;  %s12423_s11 = inlined_call_operand.hbm [shape: f32[64,256], index: 11, kind: input, shape index: {}]   ;;  %s12424_s12 = inlined_call_operand.vmem [shape: f32[1,256], index: 12, kind: input, shape index: {}]   ;;  %s12425_s13 = inlined_call_operand.hbm [shape: f32[128,256], index: 13, kind: input, shape index: {}]   ;;  %s12426_s14 = inlined_call_operand.hbm [shape: f32[64,256], index: 14, kind: input, shape index: {}]   ;;  %s12427_s15 = inlined_call_operand.vmem [shape: f32[1,256], index: 15, kind: input, shape index: {}]   ;;  %s12428_s16 = inlined_call_operand.hbm [shape: f32[128,256], index: 16, kind: input, shape index: {}]   ;;  %s12429_s17 = inlined_call_operand.hbm [shape: f32[64,256], index: 17, kind: input, shape index: {}]   ;;  %s12430_s18 = inlined_call_operand.vmem [shape: f32[1,256], index: 18, kind: input, shape index: {}]   ;;  %s12431_s19 = inlined_call_operand.vmem [shape: f32[128,8], index: 19, kind: input, shape index: {}]   ;;  %s12432_s20 = inlined_call_operand.vmem [shape: f32[1,8], index: 20, kind: input, shape index: {}]   ;;  %s12433_s21 = inlined_call_operand.hbm [shape: f32[2,1,8], index: 21, kind: output, shape index: {}]  }
   0x1   :  { %12449 = sst [smem:[#allocation32_spill]] %s12412_s0 }
   0x2   :  { %12450 = sst [smem:[#allocation33_spill]] %s12413_s1 }
   0x3   :  { %12451 = sst [smem:[#allocation34_spill]] %s12414_s2 }
   0x4   :  { %12452 = sst [smem:[#allocation35_spill]] %s12415_s3 }
   0x5   :  { %12453 = sst [smem:[#allocation36_spill]] %s12416_s4 }
   0x6   :  { %12454 = sst [smem:[#allocation37_spill]] %s12417_s5 }
   0x7   :  { %12455 = sst [smem:[#allocation38_spill]] %s12419_s7 }
   0x8   :  { %12456 = sst [smem:[#allocation39_spill]] %s12422_s10 }
   0x9   :  { %12457 = sst [smem:[#allocation40_spill]] %s12423_s11 }
   0xa   :  { %12458 = sst [smem:[#allocation41_spill]] %s12425_s13 }
   0xb   :  { %12459 = sst [smem:[#allocation42_spill]] %s12426_s14 }
   0xc   :  { %12460 = sst [smem:[#allocation43_spill]] %s12428_s16 }
   0xd   :  { %12461 = sst [smem:[#allocation44_spill]] %s12429_s17 }
   0xe   :  { %12462 = sst [smem:[#allocation45_spill]] %s12430_s18 }
   0xf   :  { %12463 = sst [smem:[#allocation46_spill]] %s12431_s19 }
  0x10   :  { %12464 = sst [smem:[#allocation47_spill]] %s12432_s20 }
  0x11   :  { %12465 = sst [smem:[#allocation48_spill]] %s12433_s21 }
  0x12   :  { %26 = vsyncpa [#allocation7], 0 }
  0x13   :  { %28 = vsyncpa [#allocation7 + $0x1], 0 }
  0x14   :  { %29 = vsyncpa [#allocation10], 0 }
  0x15   :  { %30 = vsyncpa [#allocation13], 0 }
  0x16   :  { %31 = vsyncpa [#allocation16], 0 }
  0x17   :  { %32 = vsyncpa [#allocation19], 0 }
  0x18   :  { %33 = vsyncpa [#allocation22], 0 }
  0x19   :  { %34 = vsyncpa [#allocation8], 0 }
  0x1a   :  { %36 = vsyncpa [#allocation8 + $0x1], 0  ;;  %s10273_s2 = smov 0   ;;  %s10275_s25 = smov 0  }
  0x1b   :  { %s10277_s26 = smov 0   ;;  %s10279_s27 = smov 0  }
  0x1c LB: > { %s10144_s3 = smov [#allocation9]   ;;  %s10294_s29 = sadd.s32 4294967295, %s10142_s27   ;;  %s10142_s27 = sphi %s10279_s27, %s12514_s27   ;;  %s10138_s26 = sphi %s10277_s26, %s12513_s26   ;;  %s10134_s25 = sphi %s10275_s25, %s12512_s25   ;;  %s10130_s2 = sphi %s10273_s2, %s12511_s2  }
  0x1d   : > { %s531_s28 = sshll.u32 %s10144_s3, 4  ;;  %p8888_p0 = scmp.ge.s32.totalorder %s10142_s27, 1  ;;  %s532_s28 = int_to_ptr.vmem [resolvable:$true] %s531_s28 }
  0x1e   : > { %p12445_p1 = scmp.eq.s32.totalorder %s10294_s29, 0  ;;  %p519_p2 = scmp.lt.s32.totalorder %s10142_s27, 3 }
  0x1f   : > { %s10145_s4 = smov [#allocation12]   ;;  %s10146_s22 = smov [#allocation15]  }
  0x20   : > { %p10299_p3 = pnand %p8888_p0, %p519_p2  ;;  %s569_s30 = sshll.u32 %s10145_s4, 4  ;;  %s10312_s30 = int_to_ptr.vmem [resolvable:$true] %s569_s30 }
  0x21   : > { %s10314_s23 = sshll.u32 %s10146_s22, 4  ;;  %s9807_s24 = scalar_lea.vmem %s532_s28, 1920  ;;  %s602_s23 = int_to_ptr.vmem [resolvable:$true] %s10314_s23 }
  0x22   : > { %s12466_s0 = scalar_select %p10299_p3, 1, 0 }
  0x23   : > { %p9279_p5 = pneg %p10299_p3  ;;  %p9808_p8 = scmp.ne.s32.totalorder %s532_s28, %s9807_s24 }
  0x24   : > { %p9815_p11 = scmp.lt.s32.totalorder %s532_s28, %s532_s28  ;;  %p9816_p12 = scmp.lt.s32.totalorder %s9807_s24, %s9807_s24 }
  0x25   : > { %p10308_p6 = pnand %p9279_p5, %p12445_p1 }
  0x26   : > { %p9817_p13 = por %p9816_p12, %p9815_p11 }
  0x27   : > { %p10318_p7 = pneg %p10308_p6 }
  0x29   : > { %p9810_p9 = pnand %p9808_p8, %p10318_p7 }
  0x2b   : > { %p9811_p10 = pneg %p9810_p9 }
  0x2d   : > { %p9818_p0 = pnand %p9817_p13, %p9811_p10 }
  0x2f   : > { %9821 = shalt.err (!%p9818_p0)
}
  0x30   : > { %s12437_s3 = smov 128   ;;  %s12439_s4 = smov 8  }
  0x31   : > { %s12469_s20 = sld [smem:[#allocation33_spill]]  ;;  %s9833_s19 = scalar_lea.vmem %s10312_s30, 4096 }
  0x32   : > { %p9834_p2 = scmp.ne.s32.totalorder %s10312_s30, %s9833_s19  ;;  %p9841_p9 = scmp.lt.s32.totalorder %s10312_s30, %s10312_s30 }
  0x33   : > { %p9842_p10 = scmp.lt.s32.totalorder %s9833_s19, %s9833_s19 }
  0x34   : > { %p9836_p5 = pnand %p9834_p2, %p10318_p7 }
  0x35   : > { %p9843_p11 = por %p9842_p10, %p9841_p9 }
  0x36   : > { %p9837_p8 = pneg %p9836_p5 }
  0x37   : > { %9282 = dma.hbm_to_vmem [thread:$0]  (!%p10308_p6), %s12469_s20, 1920, %s532_s28, [#allocation10], %s12437_s3, %s12437_s3, %s12439_s4  }
  0x38   : > { %p9844_p12 = pnand %p9843_p11, %p9837_p8 }
  0x3a   : > { %9847 = shalt.err (!%p9844_p12)
}
  0x3b   : > { %s12441_s24 = smov 256   ;;  %s12443_s18 = smov 16  }
  0x3c   : > { %s12470_s7 = sld [smem:[#allocation38_spill]]  ;;  %s9859_s28 = scalar_lea.vmem %s602_s23, 2048 }
  0x3d   : > { %p9860_p13 = scmp.ne.s32.totalorder %s602_s23, %s9859_s28  ;;  %p9867_p5 = scmp.lt.s32.totalorder %s602_s23, %s602_s23 }
  0x3e   : > { %p9868_p8 = scmp.lt.s32.totalorder %s9859_s28, %s9859_s28 }
  0x3f   : > { %p9862_p0 = pnand %p9860_p13, %p10318_p7 }
  0x40   : > { %p9869_p9 = por %p9868_p8, %p9867_p5 }
  0x41   : > { %p9863_p2 = pneg %p9862_p0 }
  0x42   : > { %9288 = dma.hbm_to_vmem [thread:$0]  (!%p10308_p6), %s12470_s7, 4096, %s10312_s30, [#allocation13], %s12441_s24, %s12441_s24, %s12443_s18  }
  0x43   : > { %p9870_p10 = pnand %p9869_p9, %p9863_p2 }
  0x45   : > { %9873 = shalt.err (!%p9870_p10)
}
  0x46   : > { %s12471_s11 = sld [smem:[#allocation40_spill]]  ;;  %s10151_s30 = smov [#allocation18]  }
  0x47   : > { %s630_s20 = sshll.u32 %s10151_s30, 4  ;;  %s10152_s21 = smov [#allocation11]   ;;  %s631_s20 = int_to_ptr.vmem [resolvable:$true] %s630_s20 }
  0x48   : > { %s550_s3 = sshll.u32 %s10152_s21, 4  ;;  %s9885_s4 = scalar_lea.vmem %s631_s20, 2048  ;;  %s551_s3 = int_to_ptr.vmem [resolvable:$true] %s550_s3 }
  0x49   : > { %p9886_p11 = scmp.ne.s32.totalorder %s631_s20, %s9885_s4  ;;  %p9893_p0 = scmp.lt.s32.totalorder %s631_s20, %s631_s20 }
  0x4a   : > { %p9894_p2 = scmp.lt.s32.totalorder %s9885_s4, %s9885_s4 }
  0x4b   : > { %p9888_p12 = pnand %p9886_p11, %p10318_p7 }
  0x4c   : > { %9294 = dma.hbm_to_vmem [thread:$0]  (!%p10308_p6), %s12471_s11, 2048, %s602_s23, [#allocation16], %s12441_s24, %s12441_s24, %s12443_s18  }
  0x4d   : > { %p9889_p13 = pneg %p9888_p12  ;;  %p9895_p5 = por %p9894_p2, %p9893_p0 }
  0x4f   : > { %p9896_p8 = pnand %p9895_p5, %p9889_p13 }
  0x51   : > { %9899 = shalt.err (!%p9896_p8)
}
  0x52   : > { %s12472_s14 = sld [smem:[#allocation42_spill]]  ;;  %s9911_s19 = scalar_lea.vmem %s551_s3, 3072 }
  0x53   : > { %p9912_p9 = scmp.ne.s32.totalorder %s551_s3, %s9911_s19  ;;  %p9919_p12 = scmp.lt.s32.totalorder %s551_s3, %s551_s3 }
  0x54   : > { %p9920_p0 = scmp.lt.s32.totalorder %s9911_s19, %s9911_s19 }
  0x55   : > { %p9914_p10 = pnand %p9912_p9, %p10318_p7 }
  0x56   : > { %p9921_p13 = por %p9920_p0, %p9919_p12 }
  0x57   : > { %p9915_p11 = pneg %p9914_p10 }
  0x58   : > { %9300 = dma.hbm_to_vmem [thread:$0]  (!%p10308_p6), %s12472_s14, 2048, %s631_s20, [#allocation19], %s12441_s24, %s12441_s24, %s12443_s18  }
  0x59   : > { %p9922_p2 = pnand %p9921_p13, %p9915_p11 }
  0x5b   : > { %9925 = shalt.err (!%p9922_p2)
}
  0x5c   : > { %s12473_s4 = smov 8   ;;  %s12474_s22 = smov 128  }
  0x5d   : > { %s12475_s23 = sld [smem:[#allocation36_spill]]  ;;  %s10153_s20 = smov [#allocation14]  }
  0x5e   : > { %s588_s28 = sshll.u32 %s10153_s20, 4  ;;  %s10154_s24 = smov [#allocation17]   ;;  %s589_s28 = int_to_ptr.vmem [resolvable:$true] %s588_s28 }
  0x5f   : > { %s617_s18 = sshll.u32 %s10154_s24, 4  ;;  %s9937_s7 = scalar_lea.vmem %s589_s28, 4096  ;;  %s618_s18 = int_to_ptr.vmem [resolvable:$true] %s617_s18 }
  0x60   : > { %p9938_p5 = scmp.ne.s32.totalorder %s589_s28, %s9937_s7  ;;  %p9945_p10 = scmp.lt.s32.totalorder %s589_s28, %s589_s28 }
  0x61   : > { %p9946_p11 = scmp.lt.s32.totalorder %s9937_s7, %s9937_s7 }
  0x62   : > { %p9940_p8 = pnand %p9938_p5, %p10318_p7 }
  0x63   : > { %9285 = dma.hbm_to_vmem [thread:$0]  (!%p10308_p6), %s12475_s23, 3072, %s551_s3, [#allocation10], %s12474_s22, %s12474_s22, %s12473_s4  }
  0x64   : > { %p9941_p9 = pneg %p9940_p8  ;;  %p9947_p12 = por %p9946_p11, %p9945_p10 }
  0x66   : > { %p9948_p0 = pnand %p9947_p12, %p9941_p9 }
  0x68   : > { %9951 = shalt.err (!%p9948_p0)
}
  0x69   : > { %s12476_s19 = smov 16   ;;  %s12477_s30 = smov 256  }
  0x6a   : > { %s12478_s10 = sld [smem:[#allocation39_spill]]  ;;  %s9963_s24 = scalar_lea.vmem %s618_s18, 4096 }
  0x6b   : > { %p9964_p13 = scmp.ne.s32.totalorder %s618_s18, %s9963_s24  ;;  %p9971_p8 = scmp.lt.s32.totalorder %s618_s18, %s618_s18 }
  0x6c   : > { %p9972_p10 = scmp.lt.s32.totalorder %s9963_s24, %s9963_s24 }
  0x6d   : > { %p9966_p2 = pnand %p9964_p13, %p10318_p7 }
  0x6e   : > { %p9973_p9 = por %p9972_p10, %p9971_p8 }
  0x6f   : > { %p9967_p5 = pneg %p9966_p2 }
  0x70   : > { %9291 = dma.hbm_to_vmem [thread:$0]  (!%p10308_p6), %s12478_s10, 4096, %s589_s28, [#allocation13], %s12477_s30, %s12477_s30, %s12476_s19  }
  0x71   : > { %p9974_p11 = pnand %p9973_p9, %p9967_p5 }
  0x73   : > { %9977 = shalt.err (!%p9974_p11)
}
  0x74   : > { %s12479_s13 = sld [smem:[#allocation41_spill]]  ;;  %s10155_s20 = smov [#allocation20]  }
  0x75   : > { %s646_s28 = sshll.u32 %s10155_s20, 4  ;;  %s10156_s3 = smov [#allocation21]   ;;  %s647_s28 = int_to_ptr.vmem [resolvable:$true] %s646_s28 }
  0x76   : > { %s659_s21 = sshll.u32 %s10156_s3, 4  ;;  %s9989_s10 = scalar_lea.vmem %s647_s28, 4096  ;;  %s660_s21 = int_to_ptr.vmem [resolvable:$true] %s659_s21 }
  0x77   : > { %p9990_p12 = scmp.ne.s32.totalorder %s647_s28, %s9989_s10  ;;  %p9997_p2 = scmp.lt.s32.totalorder %s647_s28, %s647_s28 }
  0x78   : > { %p9998_p5 = scmp.lt.s32.totalorder %s9989_s10, %s9989_s10 }
  0x79   : > { %p9992_p0 = pnand %p9990_p12, %p10318_p7 }
  0x7a   : > { %9297 = dma.hbm_to_vmem [thread:$0]  (!%p10308_p6), %s12479_s13, 4096, %s618_s18, [#allocation16], %s12477_s30, %s12477_s30, %s12476_s19  }
  0x7b   : > { %p9993_p13 = pneg %p9992_p0  ;;  %p9999_p8 = por %p9998_p5, %p9997_p2 }
  0x7d   : > { %p10000_p10 = pnand %p9999_p8, %p9993_p13 }
  0x7f   : > { %10003 = shalt.err (!%p10000_p10)
}
  0x80   : > { %s12480_s16 = sld [smem:[#allocation43_spill]]  ;;  %s10015_s7 = scalar_lea.vmem %s660_s21, 2048 }
  0x81   : > { %p10016_p9 = scmp.ne.s32.totalorder %s660_s21, %s10015_s7  ;;  %p10023_p0 = scmp.lt.s32.totalorder %s660_s21, %s660_s21 }
  0x82   : > { %p10024_p2 = scmp.lt.s32.totalorder %s10015_s7, %s10015_s7 }
  0x83   : > { %p10018_p11 = pnand %p10016_p9, %p10318_p7 }
  0x84   : > { %p10025_p13 = por %p10024_p2, %p10023_p0 }
  0x85   : > { %p10019_p12 = pneg %p10018_p11 }
  0x86   : > { %9303 = dma.hbm_to_vmem [thread:$0]  (!%p10308_p6), %s12480_s16, 4096, %s647_s28, [#allocation19], %s12477_s30, %s12477_s30, %s12476_s19  }
  0x87   : > { %p10026_p5 = pnand %p10025_p13, %p10019_p12 }
  0x89   : > { %10029 = shalt.err (!%p10026_p5)
}
  0x8a   : > { %s12481_s17 = sld [smem:[#allocation44_spill]]  ;;  %s8887_s5 = sadd.s32 4294967294, %s10142_s27  }
  0x8b   : > { %s10420_s1 = sadd.s32 1, %s10142_s27   ;;  %s49_s20 = sadd.s32 1, %s10138_s26 }
  0x8c   : > { %s46_s28 = ssub.s32 %s10142_s27, %s10420_s1  ;;  %p56_p7 = scmp.ne.s32.totalorder %s10138_s26, %s10134_s25 }
  0x8d   : > { %p47_p8 = scmp.eq.s32.totalorder %s46_s28, 0  ;;  %p57_p10 = scmp.eq.s32.totalorder %s10142_s27, 0 }
  0x8e   : > { %p62_p9 = scmp.ne.s32.totalorder %s10134_s25, %s10130_s2  ;;  %p506_p11 = scmp.eq.s32.totalorder %s10294_s29, 1 }
  0x8f   : > { %s10432_s3 = scalar_select %p47_p8, %s10138_s26, %s49_s20  }
  0x90   : > { %9306 = dma.hbm_to_vmem [thread:$0]  (!%p10308_p6), %s12481_s17, 2048, %s660_s21, [#allocation22], %s12477_s30, %s12477_s30, %s12476_s19  }
  0x91   : > { %12482 = sst [smem:[#allocation31_spill]] %s10432_s3  ;;  %p58_p12 = por %p57_p10, %p56_p7 }
  0x92   : > { %p10436_p0 = por %p12445_p1, %p62_p9  ;;  %p10440_p6 = por %p506_p11, %p56_p7 }
  0x93   : > { %p512_p2 = scmp.eq.s32.totalorder %s8887_s5, 1  ;;  %p9324_p13 = scmp.lt.s32.totalorder %s10142_s27, 2 }
  0x94   : > { %s12483_s18 = scalar_select %p10436_p0, 1, 0 }
  0x95   : > { %s12484_s19 = scalar_select %p10440_p6, 1, 0 }
  0x96   : > { %s682_s30 = sand.u32 1, %s10138_s26   ;;  %p10446_p5 = por %p512_p2, %p62_p9 }
  0x97   : > { %s8899_s24 = sshll.u32 %s682_s30, 4  ;;  %s9035_s7 = sshll.u32 %s10142_s27, 8 }
  0x98   : > { %s12485_s21 = scalar_select %p10446_p5, 1, 0 }
  0x99   : > { %s12486_s20 = sld [smem:[#allocation32_spill]]  ;;  %s686_s11 = scalar_lea.vmem [#allocation6], %s8899_s24 }
  0x9a   : > { %s693_s13 = sshll.u32 %s686_s11, 4  ;;  %p10456_p7 = pnand %p9324_p13, %p58_p12  ;;  %s10460_s13 = int_to_ptr.vmem [resolvable:$true] %s693_s13 }
  0x9b   : > { %s10462_s14 = scalar_lea.sflag [#allocation7], %s682_s30 }
  0x9c   : > { %p10032_p10 = pneg %p10456_p7 }
  0x9f   : > { %s10454_s28 = scalar_lea.hbm %s12486_s20, %s9035_s7  ;;  %s10035_s24 = scalar_lea.hbm %s12486_s20, 512 }
  0xa0   : > { %s10030_s16 = scalar_lea.hbm %s10454_s28, 256  ;;  %p10036_p12 = scmp.lt.s32.totalorder %s10454_s28, %s12486_s20 }
  0xa1   : > { %p10031_p8 = scmp.ne.s32.totalorder %s10454_s28, %s10030_s16  ;;  %p10037_p2 = scmp.lt.s32.totalorder %s10035_s24, %s10030_s16 }
  0xa3   : > { %p10033_p9 = pnand %p10032_p10, %p10031_p8  ;;  %p10038_p13 = por %p10037_p2, %p10036_p12 }
  0xa5   : > { %p10034_p11 = pneg %p10033_p9 }
  0xa7   : > { %p10039_p4 = pnand %p10038_p13, %p10034_p11 }
  0xa9   : > { %10042 = shalt.err (!%p10039_p4)
}
  0xaa   : > { %s10043_s30 = scalar_lea.vmem %s10460_s13, 256  ;;  %s10157_s17 = smov [#allocation6]  }
  0xab   : > { %p10044_p1 = scmp.ne.s32.totalorder %s10460_s13, %s10043_s30  ;;  %s10048_s3 = sshll.u32 %s10157_s17, 4  ;;  %s10049_s3 = int_to_ptr.vmem [resolvable:$false] %s10048_s3 }
  0xac   : > { %s10050_s7 = scalar_lea.vmem %s10049_s3, 512  ;;  %p10051_p9 = scmp.lt.s32.totalorder %s10460_s13, %s10049_s3 }
  0xad   : > { %p10046_p5 = pnand %p10044_p1, %p10032_p10  ;;  %p10052_p6 = scmp.lt.s32.totalorder %s10050_s7, %s10043_s30 }
  0xaf   : > { %p10047_p8 = pneg %p10046_p5  ;;  %p10053_p0 = por %p10052_p6, %p10051_p9 }
  0xb1   : > { %p10054_p3 = pnand %p10053_p0, %p10047_p8 }
  0xb3   : > { %10057 = shalt.err (!%p10054_p3)
}
  0xb4   : > { %9310 = dma.hbm_to_vmem [thread:$0]  (!%p10456_p7), %s10454_s28, 256, %s10460_s13, %s10462_s14, %s12474_s22, %s12474_s22, %s12473_s4  }
  0xb5   : > { %p12488_p1 = scmp.ne.s32.totalorder %s12466_s0, 0 }
  0xb6   : > { %s10489_s16 = sand.u32 (!%p12488_p1), 1, %s10134_s25   ;;  %p12489_p3 = scmp.ne.s32.totalorder (!%p12488_p1), %s12483_s18, 0 }
  0xb7   : > { %705 = sbr.rel (%p12488_p1) target bundleno = 19604 (0x4c94), region = 104  ;;  %s8903_s17 = sshll.u32 (!%p12488_p1), %s10489_s16, 4 }
  0xb8   : > { %s708_s3 = scalar_lea.sflag (!%p12488_p1), [#allocation7], %s10489_s16  ;;  %s711_s10 = scalar_lea.vmem (!%p12488_p1), [#allocation6], %s8903_s17 }
  0xbc   : > { %10101 = dma.done.wait (%p12489_p3), %s708_s3, 256  }
  0xbd   : > { %10103 = vsyncadd (%p12489_p3), %s708_s3, 4294967040  ;;  %p12490_p4 = scmp.eq.s32.totalorder %s10294_s29, 0 }
  0xbf   : > { %10105 = dma.done.wait (%p12490_p4), [#allocation10], 4992   ;;  %p12491_p0 = pmov %p12490_p4 }
  0xc1   : > { %10107 = vsyncadd (%p12491_p0), [#allocation10], 4294962304  ;;  %p12492_p6 = pmov %p12491_p0 }
  0xc2   : > { %p12493_p5 = pmov %p12491_p0 }
  0xc3   : > { %10109 = dma.done.wait (%p12492_p6), [#allocation13], 8192  }
  0xc4   : > { %10111 = vsyncadd (%p12493_p5), [#allocation13], 4294959104  ;;  %p12494_p7 = pmov %p12491_p0 }
  0xc5   : > { %p12495_p10 = pmov %p12491_p0 }
  0xc6   : > { %10113 = dma.done.wait (%p12494_p7), [#allocation16], 6144  }
  0xc7   : > { %10115 = vsyncadd (%p12495_p10), [#allocation16], 4294961152  ;;  %p12496_p11 = pmov %p12491_p0 }
  0xc8   : > { %p12497_p12 = pmov %p12491_p0 }
  0xc9   : > { %10117 = dma.done.wait (%p12496_p11), [#allocation19], 6144  }
  0xca   : > { %10119 = vsyncadd (%p12497_p12), [#allocation19], 4294961152  ;;  %p12498_p2 = pmov %p12491_p0 }
  0xcb   : > { %p12499_p13 = pmov %p12491_p0 }
  0xcc   : > { %10121 = dma.done.wait (%p12498_p2), [#allocation22], 2048  }
  0xcd   : > { %10123 = vsyncadd (%p12499_p13), [#allocation22], 4294965248  ;;  %v807_v0 = vlaneseq  ;;  %v838_v2 = vld [vmem:[#allocation9 + $0x48] sm:$0xff]  ;;  %v832_v3 = vld [vmem:[#allocation9 + $0x20] sm:$0xff]  ;;  %vm839_vm2 = vcmask 326656   ;;  %s12500_s0 = sld [smem:[#allocation34_spill]] }
  0xce   : > { %v837_v4 = vld [vmem:[#allocation9 + $0x40] sm:$0xff]  ;;  %9105 = vmatprep.subr.mxu0 %v838_v2  ;;  %9118 = vmatprep.subr.mxu1 %v832_v3  ;;  %v831_v5 = vld [vmem:[#allocation9 + $0x18] sm:$0xff]  ;;  %v830_v7 = vld [vmem:[#allocation9 + $0x10] sm:$0xff]  ;;  %s12501_s18 = sld [smem:[#allocation35_spill]]  ;;  %vm1140_vm5 = vcmask 523264   ;;  %vm1803_vm6 = vcmask 516096  }
  0xcf   : > { %v10517_v1 = vshrl.u32 %v807_v0, 7  ;;  %9106 = vmatpush3.msra.mxu0 %v838_v2  ;;  %9119 = vmatpush3.msra.mxu1 %v832_v3  ;;  %v836_v6 = vld [vmem:[#allocation9 + $0x38] sm:$0xff]  ;;  %v805_v8 = vld [vmem:[%s711_s10] sm:$0xff]  ;;  %v829_v11 = vld [vmem:[#allocation9 + $0x8] sm:$0xff]  ;;  %s12502_s23 = sld [smem:[#allocation37_spill]]  ;;  %vm10161_vm7 = vmmov 0  }
  0xd0   : > { %9107 = vmatprep.subr.mxu0 %v837_v4  ;;  %9120 = vmatprep.subr.mxu1 %v831_v5  ;;  %v806_v9 = vld [vmem:[%s711_s10 + $0x8] sm:$0xff]  ;;  %v835_v10 = vld [vmem:[#allocation9 + $0x30] sm:$0xff]  ;;  %v812_v12 = vrot.slane %v805_v8, 7  ;;  %v828_v15 = vld [vmem:[#allocation9] sm:$0xff]  ;;  %v821_v16 = vrot.slane %v805_v8, 1  ;;  %s10160_s10 = smov 64  }
  0xd1   : > { %vm814_vm0 = vcmp.lt.s32.totalorder %v10517_v1, 1  ;;  %9108 = vmatpush3.msra.mxu0 %v837_v4  ;;  %9121 = vmatpush3.msra.mxu1 %v831_v5  ;;  %v813_v13 = vrot.slane %v806_v9, 7  ;;  %vm810_vm1 = vcmp.gt.s32.totalorder %v10517_v1, 0  ;;  %v834_v14 = vld [vmem:[#allocation9 + $0x28] sm:$0xff]  ;;  %v822_v18 = vrot.slane %v806_v9, 1  ;;  %v1007_v21 = vld [vmem:[#allocation9 + $0x70] sm:$0xff] }
  0xd2   : > { %9109 = vmatprep.subr.mxu0 %v836_v6  ;;  %9122 = vmatprep.subr.mxu1 %v830_v7  ;;  %vm823_vm3 = vcmp.lt.s32.totalorder %v10517_v1, 7  ;;  %v1006_v23 = vld [vmem:[#allocation9 + $0x68] sm:$0xff]  ;;  %v10536_v24 = vadd.s32 8, %v10517_v1  ;;  %v1005_v25 = vld [vmem:[#allocation9 + $0x60] sm:$0xff]  ;;  %v1004_v26 = vld [vmem:[#allocation9 + $0x58] sm:$0xff]  ;;  %s12504_s17 = sld [smem:[#allocation46_spill]] }
  0xd3   : > { %9110 = vmatpush3.msra.mxu0 %v836_v6  ;;  %9123 = vmatpush3.msra.mxu1 %v830_v7  ;;  %v816_v17 = vsel %vm814_vm0, %v813_v13, %v812_v12  ;;  %v815_v20 = vsel %vm814_vm0, %v812_v12, %v813_v13  ;;  %v824_v22 = vsel %vm823_vm3, %v821_v16, %v822_v18  ;;  %v1003_v28 = vld [vmem:[#allocation9 + $0x50] sm:$0xff]  ;;  %v1138_v31 = vld [vmem:[#allocation11 + $0x70] sm:$0xff]  ;;  %v1137_v32 = vld [vmem:[#allocation11 + $0x68] sm:$0xff]  ;;  %s9032_s4 = sshll.u32 %s10294_s29, 4  ;;  %s804_s22 = scalar_lea.vmem [#allocation23], %s10489_s16  ;;  %vm8720_vm8 = vcmask 57344  }
  0xd4   : > { %9111 = vmatprep.subr.mxu0 %v835_v10  ;;  %9124 = vmatprep.subr.mxu1 %v829_v11  ;;  %v817_v19 = vsel %vm810_vm1, %v816_v17, 0.0  ;;  %vm820_vm4 = vcmp.lt.s32.totalorder %v10536_v24, 15  ;;  %v825_v27 = vsel %vm823_vm3, %v822_v18, %v821_v16  ;;  %v1139_v30 = vld [vmem:[#allocation11 + $0x78] sm:$0xff]  ;;  %v1136_v34 = vld [vmem:[#allocation11 + $0x60] sm:$0xff]  ;;  %v1129_v35 = vld [vmem:[#allocation11 + $0x30] sm:$0xff]  ;;  %s12506_s24 = sld [smem:[#allocation48_spill]] }
  0xd5   : > { %9112 = vmatpush3.msra.mxu0 %v835_v10  ;;  %9125 = vmatpush3.msra.mxu1 %v829_v11  ;;  %v827_v29 = vsel %vm820_vm4, %v825_v27, 0.0  ;;  %v1130_v33 = vld [vmem:[#allocation11 + $0x38] sm:$0xff]  ;;  %v1128_v37 = vld [vmem:[#allocation11 + $0x28] sm:$0xff]  ;;  %v1134_v38 = vld [vmem:[#allocation11 + $0x50] sm:$0xff]  ;;  %p12507_p9 = scmp.ne.s32.totalorder %s12484_s19, 0  ;;  %s10162_s7 = smov [#allocation23]  }
  0xd6   : > { %9113 = vmatprep.subr.mxu0 %v834_v14  ;;  %9126 = vmatprep.subr.mxu1 %v828_v15  ;;  %v1135_v36 = vld [vmem:[#allocation11 + $0x58] sm:$0xff]  ;;  %v1127_v39 = vld [vmem:[#allocation11 + $0x20] sm:$0xff]  ;;  %v1133_v40 = vld [vmem:[#allocation11 + $0x48] sm:$0xff]  ;;  %s10062_s29 = sshll.u32 %s10162_s7, 4  ;;  %s10063_s29 = int_to_ptr.vmem [resolvable:$false] %s10062_s29 }
  0xd7   : > { %9114 = vmatpush3.msra.mxu0 %v834_v14  ;;  %9115 = vmatprep.mubr.msk.f32.mxu0 %vm839_vm2, %v805_v8  ;;  %v1126_v41 = vld [vmem:[#allocation11 + $0x18] sm:$0xff]  ;;  %v1132_v42 = vld [vmem:[#allocation11 + $0x40] sm:$0xff]  ;;  %v1125_v43 = vld [vmem:[#allocation11 + $0x10] sm:$0xff]  ;;  %s10064_s3 = scalar_lea.vmem %s10063_s29, 32 }
  0xd8   : > { %9127 = vmatpush3.msra.mxu1 %v828_v15  ;;  %9128 = vmatprep.mubr.msk.f32.mxu1 %vm839_vm2, %v817_v19  ;;  %v1311_v44 = vld [vmem:[#allocation11 + $0xb8] sm:$0xff]  ;;  %v1124_v45 = vld [vmem:[#allocation11 + $0x8] sm:$0xff]  ;;  %v1123_v46 = vld [vmem:[#allocation11] sm:$0xff] }
  0xd9   : > { %9116 = vmatmul.mubr.msk.f32.vlgmr.msra.gmra.mxu0 %vm839_vm2, %v806_v9  ;;  %9129 = vmatmul.mubr.msk.f32.vlgmr.msra.gmra.mxu1 %vm839_vm2, %v815_v20  ;;  %v1446_v47 = vld [vmem:[#allocation12 + $0xf8] sm:$0xff]  ;;  %v8919_v54 = vld [vmem:[%s12500_s0] ss:$0 sm:$0xff]  ;;  %v1310_v3 = vld [vmem:[#allocation11 + $0xb0] sm:$0xff]  ;;  %s12505_s0 = sld [smem:[#allocation47_spill]] }
  0xda   : > { %9131 = vmatprep.subr.mxu0 %v1007_v21  ;;  %9141 = vmatprep.mubr.msk.f32.mxu0 %vm839_vm2, %v824_v22  ;;  %v8920_v57 = vld [vmem:[%s12501_s18] ss:$0 sm:$0xff]  ;;  %v1445_v12 = vld [vmem:[#allocation12 + $0xf0] sm:$0xff]  ;;  %v1308_v14 = vld [vmem:[#allocation11 + $0xa0] sm:$0xff]  ;;  %s8735_s18 = sshll.u32 %s804_s22, 4  ;;  %s8733_s11 = scalar_lea.hbm %s12506_s24, %s9032_s4  ;;  %s8736_s18 = int_to_ptr.vmem [resolvable:$true] %s8735_s18 }
  0xdb   : > { %9132 = vmatpush3.msra.mxu0 %v1007_v21  ;;  %9144 = vmatprep.subr.mxu1 %v1139_v30  ;;  %v1309_v10 = vld [vmem:[#allocation11 + $0xa8] sm:$0xff]  ;;  %v1443_v16 = vld [vmem:[#allocation12 + $0xe0] sm:$0xff]  ;;  %v1307_v17 = vld [vmem:[#allocation11 + $0x98] sm:$0xff]  ;;  %s10058_s30 = scalar_lea.vmem %s8736_s18, 16  ;;  %p10065_p4 = scmp.lt.s32.totalorder %s8736_s18, %s10063_s29 }
  0xdc   : > { %9133 = vmatprep.subr.mxu0 %v1006_v23  ;;  %9145 = vmatpush3.msra.mxu1 %v1139_v30  ;;  %v1444_v15 = vld [vmem:[#allocation12 + $0xe8] sm:$0xff]  ;;  %v1442_v18 = vld [vmem:[#allocation12 + $0xd8] sm:$0xff]  ;;  %v1441_v19 = vld [vmem:[#allocation12 + $0xd0] sm:$0xff]  ;;  %p10059_p8 = scmp.ne.s32.totalorder %s8736_s18, %s10058_s30  ;;  %p10066_p0 = scmp.lt.s32.totalorder %s10064_s3, %s10058_s30 }
  0xdd   : > { %9134 = vmatpush3.msra.mxu0 %v1006_v23  ;;  %9146 = vmatprep.subr.mxu1 %v1138_v31  ;;  %v1306_v20 = vld [vmem:[#allocation11 + $0x90] sm:$0xff]  ;;  %v1440_v21 = vld [vmem:[#allocation12 + $0xc8] sm:$0xff]  ;;  %v1304_v23 = vld [vmem:[#allocation11 + $0x80] sm:$0xff] }
  0xde   : > { %9135 = vmatprep.subr.mxu0 %v1005_v25  ;;  %9147 = vmatpush3.msra.mxu1 %v1138_v31  ;;  %v1305_v22 = vld [vmem:[#allocation11 + $0x88] sm:$0xff]  ;;  %v1570_v27 = vld [vmem:[#allocation14 + $0xf0] sm:$0xff]  ;;  %v1568_v30 = vld [vmem:[#allocation14 + $0xe0] sm:$0xff]  ;;  %p10060_p1 = pnand %p10059_p8, %p12507_p9  ;;  %p10067_p6 = por %p10066_p0, %p10065_p4 }
  0xdf   : > { %9136 = vmatpush3.msra.mxu0 %v1005_v25  ;;  %9148 = vmatprep.subr.mxu1 %v1137_v32  ;;  %v1567_v31 = vld [vmem:[#allocation14 + $0xd8] sm:$0xff] }
  0xe0   : > { %9137 = vmatprep.subr.mxu0 %v1004_v26  ;;  %9149 = vmatpush3.msra.mxu1 %v1137_v32  ;;  %v1566_v32 = vld [vmem:[#allocation14 + $0xd0] sm:$0xff]  ;;  %v1563_v24 = vld [vmem:[#allocation14 + $0xb8] sm:$0xff]  ;;  %p10061_p3 = pneg %p10060_p1 }
  0xe1   : > { %9138 = vmatpush3.msra.mxu0 %v1004_v26  ;;  %9150 = vmatprep.subr.mxu1 %v1136_v34  ;;  %v1571_v26 = vld [vmem:[#allocation14 + $0xf8] sm:$0xff] }
  0xe2   : > { %9139 = vmatprep.subr.mxu0 %v1003_v28  ;;  %9151 = vmatpush3.msra.mxu1 %v1136_v34  ;;  %v1439_v34 = vld [vmem:[#allocation12 + $0xc0] sm:$0xff]  ;;  %p10068_p5 = pnand %p10067_p6, %p10061_p3 }
  0xe3   : > { %9140 = vmatpush3.msra.mxu0 %v1003_v28  ;;  %9152 = vmatprep.subr.mxu1 %v1135_v36 }
  0xe4   : > { %9142 = vmatmul.mubr.msk.f32.vlgmr.msra.gmra.mxu0 %vm839_vm2, %v827_v29  ;;  %9163 = vmatprep.subr.mxu0 %v1130_v33  ;;  %v1569_v29 = vld [vmem:[#allocation14 + $0xe8] sm:$0xff] }
  0xe5   : > { %9164 = vmatpush3.msra.mxu0 %v1130_v33  ;;  %9153 = vmatpush3.msra.mxu1 %v1135_v36  ;;  %v1565_v33 = vld [vmem:[#allocation14 + $0xc8] sm:$0xff]  ;;  %v1438_v36 = vld [vmem:[#allocation12 + $0xb8] sm:$0xff] }
  0xe6   : > { %9165 = vmatprep.subr.mxu0 %v1129_v35  ;;  %9154 = vmatprep.subr.mxu1 %v1134_v38 }
  0xe7   : > { %9166 = vmatpush3.msra.mxu0 %v1129_v35  ;;  %9155 = vmatpush3.msra.mxu1 %v1134_v38  ;;  %v1564_v35 = vld [vmem:[#allocation14 + $0xc0] sm:$0xff]  ;;  %v1562_v38 = vld [vmem:[#allocation14 + $0xb0] sm:$0xff] }
  0xe8   : > { %9167 = vmatprep.subr.mxu0 %v1128_v37  ;;  %9156 = vmatprep.subr.mxu1 %v1133_v40 }
  0xe9   : > { %9168 = vmatpush3.msra.mxu0 %v1128_v37  ;;  %9157 = vmatpush3.msra.mxu1 %v1133_v40  ;;  %v1437_v37 = vld [vmem:[#allocation12 + $0xb0] sm:$0xff]  ;;  %v1561_v40 = vld [vmem:[#allocation14 + $0xa8] sm:$0xff] }
  0xea   : > { %9169 = vmatprep.subr.mxu0 %v1127_v39  ;;  %9158 = vmatprep.subr.mxu1 %v1132_v42 }
  0xeb   : > { %9170 = vmatpush3.msra.mxu0 %v1127_v39  ;;  %9159 = vmatpush3.msra.mxu1 %v1132_v42  ;;  %v1436_v39 = vld [vmem:[#allocation12 + $0xa8] sm:$0xff]  ;;  %v1560_v42 = vld [vmem:[#allocation14 + $0xa0] sm:$0xff] }
  0xec   : > { %9171 = vmatprep.subr.mxu0 %v1126_v41  ;;  %9182 = vmatprep.subr.mxu1 %v1311_v44 }
  0xed   : > { %9172 = vmatpush3.msra.mxu0 %v1126_v41  ;;  %v1435_v41 = vld [vmem:[#allocation12 + $0xa0] sm:$0xff] }
  0xee   : > { %9173 = vmatprep.subr.mxu0 %v1125_v43 }
  0xef   : > { %9174 = vmatpush3.msra.mxu0 %v1125_v43  ;;  %v1434_v43 = vld [vmem:[#allocation12 + $0x98] sm:$0xff] }
  0xf0   : > { %9175 = vmatprep.subr.mxu0 %v1124_v45 }
  0xf1   : > { %9176 = vmatpush3.msra.mxu0 %v1124_v45  ;;  %v1433_v45 = vld [vmem:[#allocation12 + $0x90] sm:$0xff] }
  0xf2   : > { %9177 = vmatprep.subr.mxu0 %v1123_v46 }
  0xf3   : > { %9178 = vmatpush3.msra.mxu0 %v1123_v46  ;;  %v1558_v46 = vld [vmem:[#allocation14 + $0x90] sm:$0xff] }
  0xf4   : > { %1459 = vmatprep.subr.mxu0 %v1446_v47  ;;  %v1432_v47 = vld [vmem:[#allocation12 + $0x88] sm:$0xff] }
 0x199   : > { %v9117_v48 = vpop.f32.mrf.mxu0  ;;  %v9130_v49 = vpop.f32.mrf.mxu1 }
 0x19a   : > { %v999_v52 = vadd.f32 %v9130_v49, %v9117_v48  ;;  %v1557_v48 = vld [vmem:[#allocation14 + $0x88] sm:$0xff]  ;;  %v1431_v49 = vld [vmem:[#allocation12 + $0x80] sm:$0xff] }
 0x19b   : > { %v912_v50 = vpop.f32.mrf.mxu0  ;;  %v993_v51 = vpop.f32.mrf.mxu1 }
 0x19c   : > { %v994_v55 = vadd.f32 %v993_v51, %v912_v50  ;;  %v1556_v50 = vld [vmem:[#allocation14 + $0x80] sm:$0xff]  ;;  %v1430_v51 = vld [vmem:[#allocation12 + $0x78] sm:$0xff] }
 0x1a4   : > { %v9143_v53 = vpop.f32.mrf.mxu0 }
 0x1a5   : > { %v1090_v56 = vadd.f32 %v9143_v53, %v999_v52  ;;  %v1555_v52 = vld [vmem:[#allocation14 + $0x78] sm:$0xff]  ;;  %v1429_v53 = vld [vmem:[#allocation12 + $0x70] sm:$0xff] }
 0x1a6   : > { %v1080_v58 = vpop.f32.mrf.mxu0 }
 0x1a7   : > { %v1099_v59 = vmul.f32 %v8919_v54, %v1090_v56  ;;  %v1089_v60 = vadd.f32 %v1080_v58, %v994_v55  ;;  %v1428_v55 = vld [vmem:[#allocation12 + $0x68] sm:$0xff]  ;;  %v1552_v58 = vld [vmem:[#allocation14 + $0x60] sm:$0xff] }
 0x1a8   : > { %v1553_v56 = vld [vmem:[#allocation14 + $0x68] sm:$0xff] }
 0x1a9   : > { %v1108_v61 = vadd.f32 %v8920_v57, %v1099_v59  ;;  %v1098_v62 = vmul.f32 %v8919_v54, %v1089_v60  ;;  %v1554_v54 = vld [vmem:[#allocation14 + $0x70] sm:$0xff]  ;;  %v1426_v59 = vld [vmem:[#allocation12 + $0x58] sm:$0xff] }
 0x1aa   : > { %v1551_v60 = vld [vmem:[#allocation14 + $0x58] sm:$0xff] }
 0x1ab   : > { %v1110_v63 = vmax.f32 %v1108_v61, 0.0  ;;  %v1107_v0 = vadd.f32 %v8920_v57, %v1098_v62  ;;  %v1427_v57 = vld [vmem:[#allocation12 + $0x60] sm:$0xff]  ;;  %v1425_v61 = vld [vmem:[#allocation12 + $0x50] sm:$0xff] }
 0x1ac   : > { %v1550_v62 = vld [vmem:[#allocation14 + $0x50] sm:$0xff] }
 0x1ad   : > { %v1109_v2 = vmax.f32 %v1107_v0, 0.0  ;;  %v1118_v5 = vrot.slane %v1110_v63, 1  ;;  %v1112_v7 = vrot.slane %v1110_v63, 7  ;;  %v1549_v0 = vld [vmem:[#allocation14 + $0x48] sm:$0xff] }
 0x1af   : > { %9160 = vmatprep.mubr.msk.f32.mxu1 %vm1140_vm5, %v1109_v2  ;;  %v1117_v4 = vrot.slane %v1109_v2, 1  ;;  %v1111_v6 = vrot.slane %v1109_v2, 7  ;;  %v1423_v2 = vld [vmem:[#allocation12 + $0x40] sm:$0xff] }
 0x1b0   : > { %9161 = vmatmul.mubr.msk.f32.vlgmr.msra.gmra.mxu1 %vm1140_vm5, %v1110_v63  ;;  %v1424_v63 = vld [vmem:[#allocation12 + $0x48] sm:$0xff] }
 0x1b1   : > { %9183 = vmatpush3.msra.mxu1 %v1311_v44  ;;  %v1119_v8 = vsel %vm823_vm3, %v1117_v4, %v1118_v5  ;;  %v1114_v9 = vsel %vm814_vm0, %v1112_v7, %v1111_v6  ;;  %v1113_v13 = vsel %vm814_vm0, %v1111_v6, %v1112_v7  ;;  %v1120_v25 = vsel %vm823_vm3, %v1118_v5, %v1117_v4  ;;  %v1559_v44 = vld [vmem:[#allocation14 + $0x98] sm:$0xff]  ;;  %v1421_v6 = vld [vmem:[#allocation12 + $0x30] sm:$0xff] }
 0x1b2   : > { %9184 = vmatprep.subr.mxu1 %v1310_v3  ;;  %9198 = vmatprep.mubr.msk.f32.mxu1 %vm1140_vm5, %v1119_v8  ;;  %v1115_v11 = vsel %vm810_vm1, %v1114_v9, 0.0  ;;  %v1122_v28 = vsel %vm820_vm4, %v1120_v25, 0.0  ;;  %v1422_v4 = vld [vmem:[#allocation12 + $0x38] sm:$0xff]  ;;  %v1546_v7 = vld [vmem:[#allocation14 + $0x30] sm:$0xff]  ;;  %v1420_v8 = vld [vmem:[#allocation12 + $0x28] sm:$0xff] }
 0x1b3   : > { %9185 = vmatpush3.msra.mxu1 %v1310_v3  ;;  %9179 = vmatprep.mubr.msk.f32.mxu0 %vm1140_vm5, %v1115_v11  ;;  %v1548_v3 = vld [vmem:[#allocation14 + $0x40] sm:$0xff]  ;;  %v1547_v5 = vld [vmem:[#allocation14 + $0x38] sm:$0xff]  ;;  %v1545_v9 = vld [vmem:[#allocation14 + $0x28] sm:$0xff] }
 0x1b4   : > { %9186 = vmatprep.subr.mxu1 %v1309_v10  ;;  %9180 = vmatmul.mubr.msk.f32.vlgmr.msra.gmra.mxu0 %vm1140_vm5, %v1113_v13  ;;  %v1544_v11 = vld [vmem:[#allocation14 + $0x20] sm:$0xff]  ;;  %v1543_v13 = vld [vmem:[#allocation14 + $0x18] sm:$0xff] }
 0x1b5   : > { %9187 = vmatpush3.msra.mxu1 %v1309_v10  ;;  %1460 = vmatpush1.msra.mxu0 %v1445_v12  ;;  %v1419_v10 = vld [vmem:[#allocation12 + $0x20] sm:$0xff]  ;;  %v1418_v12 = vld [vmem:[#allocation12 + $0x18] sm:$0xff] }
 0x1b6   : > { %9188 = vmatprep.subr.mxu1 %v1308_v14  ;;  %1461 = vmatprep.subr.mxu0 %v1444_v15  ;;  %v1542_v15 = vld [vmem:[#allocation14 + $0x10] sm:$0xff] }
 0x1b7   : > { %9189 = vmatpush3.msra.mxu1 %v1308_v14  ;;  %1462 = vmatpush1.msra.mxu0 %v1443_v16  ;;  %v1417_v14 = vld [vmem:[#allocation12 + $0x10] sm:$0xff]  ;;  %v1416_v16 = vld [vmem:[#allocation12 + $0x8] sm:$0xff] }
 0x1b8   : > { %9190 = vmatprep.subr.mxu1 %v1307_v17  ;;  %1463 = vmatprep.subr.mxu0 %v1442_v18  ;;  %v1415_v18 = vld [vmem:[#allocation12] sm:$0xff] }
 0x1b9   : > { %9191 = vmatpush3.msra.mxu1 %v1307_v17  ;;  %1464 = vmatpush1.msra.mxu0 %v1441_v19  ;;  %v1541_v17 = vld [vmem:[#allocation14 + $0x8] sm:$0xff]  ;;  %v1540_v19 = vld [vmem:[#allocation14] sm:$0xff] }
 0x1ba   : > { %9192 = vmatprep.subr.mxu1 %v1306_v20  ;;  %1465 = vmatprep.subr.mxu0 %v1440_v21  ;;  %v10573_v21 = vld [vmem:[#allocation15 + $0x78] sm:$0xff] }
 0x1bb   : > { %9193 = vmatpush3.msra.mxu1 %v1306_v20  ;;  %1466 = vmatpush1.msra.mxu0 %v1439_v34  ;;  %v10571_v20 = vld [vmem:[%s12420_s8 + $0x78] sm:$0xff]  ;;  %v8927_v34 = vld [vmem:[%s12502_s23] ss:$0 sm:$0xff]  ;;  %s12503_s23 = sld [smem:[#allocation45_spill]] }
 0x1bc   : > { %9194 = vmatprep.subr.mxu1 %v1305_v22  ;;  %1467 = vmatprep.subr.mxu0 %v1438_v36  ;;  %v8928_v36 = vld [vmem:[%s12418_s6] ss:$0 sm:$0xff] }
 0x1bd   : > { %9195 = vmatpush3.msra.mxu1 %v1305_v22  ;;  %1468 = vmatpush1.msra.mxu0 %v1437_v37  ;;  %v10158_v22 = vmov 0.0  }
 0x1be   : > { %9196 = vmatprep.subr.mxu1 %v1304_v23  ;;  %1469 = vmatprep.subr.mxu0 %v1436_v39  ;;  %v10588_v39 = vld [vmem:[%s12420_s8 + $0x70] sm:$0xff] }
 0x1bf   : > { %9197 = vmatpush3.msra.mxu1 %v1304_v23  ;;  %1470 = vmatpush1.msra.mxu0 %v1435_v41  ;;  %v10595_v41 = vld [vmem:[%s12420_s8 + $0x68] sm:$0xff] }
 0x1c0   : > { %9199 = vmatmul.mubr.msk.f32.vlgmr.msra.gmra.mxu1 %vm1140_vm5, %v1122_v28  ;;  %1584 = vmatprep.subr.mxu1 %v1571_v26 }
 0x1c1   : > { %1585 = vmatpush1.msra.mxu1 %v1570_v27  ;;  %1471 = vmatprep.subr.mxu0 %v1434_v43  ;;  %v10602_v43 = vld [vmem:[%s12420_s8 + $0x60] sm:$0xff] }
 0x1c2   : > { %1586 = vmatprep.subr.mxu1 %v1569_v29  ;;  %1472 = vmatpush1.msra.mxu0 %v1433_v45 }
 0x1c3   : > { %1587 = vmatpush1.msra.mxu1 %v1568_v30  ;;  %1473 = vmatprep.subr.mxu0 %v1432_v47  ;;  %v10615_v47 = vld [vmem:[#allocation15 + $0x58] sm:$0xff] }
 0x1c4   : > { %1588 = vmatprep.subr.mxu1 %v1567_v31  ;;  %1474 = vmatpush1.msra.mxu0 %v1431_v49  ;;  %v10624_v49 = vld [vmem:[%s12420_s8 + $0x50] sm:$0xff] }
 0x1c5   : > { %1589 = vmatpush1.msra.mxu1 %v1566_v32  ;;  %1475 = vmatprep.subr.mxu0 %v1430_v51  ;;  %v10633_v51 = vld [vmem:[%s12420_s8 + $0x48] sm:$0xff] }
 0x1c6   : > { %1590 = vmatprep.subr.mxu1 %v1565_v33  ;;  %1476 = vmatpush1.msra.mxu0 %v1429_v53  ;;  %v10640_v53 = vld [vmem:[%s12420_s8 + $0x40] sm:$0xff] }
 0x1c7   : > { %1591 = vmatpush1.msra.mxu1 %v1564_v35  ;;  %1477 = vmatprep.subr.mxu0 %v1428_v55  ;;  %v10649_v55 = vld [vmem:[%s12420_s8 + $0x38] sm:$0xff] }
 0x1c8   : > { %1592 = vmatprep.subr.mxu1 %v1563_v24  ;;  %1478 = vmatpush1.msra.mxu0 %v1427_v57  ;;  %v10658_v57 = vld [vmem:[%s12420_s8 + $0x30] sm:$0xff] }
 0x1c9   : > { %1593 = vmatpush1.msra.mxu1 %v1562_v38  ;;  %1479 = vmatprep.subr.mxu0 %v1426_v59  ;;  %v10667_v59 = vld [vmem:[%s12420_s8 + $0x28] sm:$0xff] }
 0x1ca   : > { %1594 = vmatprep.subr.mxu1 %v1561_v40  ;;  %1480 = vmatpush1.msra.mxu0 %v1425_v61  ;;  %v10590_v40 = vld [vmem:[#allocation15 + $0x70] sm:$0xff]  ;;  %v10676_v61 = vld [vmem:[%s12420_s8 + $0x20] sm:$0xff] }
 0x1cb   : > { %1595 = vmatpush1.msra.mxu1 %v1560_v42  ;;  %1481 = vmatprep.subr.mxu0 %v1424_v63  ;;  %v10597_v42 = vld [vmem:[#allocation15 + $0x68] sm:$0xff]  ;;  %v10685_v63 = vld [vmem:[%s12420_s8 + $0x18] sm:$0xff] }
 0x1cc   : > { %1596 = vmatprep.subr.mxu1 %v1559_v44  ;;  %1482 = vmatpush1.msra.mxu0 %v1423_v2  ;;  %v10604_v44 = vld [vmem:[#allocation15 + $0x60] sm:$0xff]  ;;  %v10694_v2 = vld [vmem:[%s12420_s8 + $0x10] sm:$0xff] }
 0x1cd   : > { %1597 = vmatpush1.msra.mxu1 %v1558_v46  ;;  %1483 = vmatprep.subr.mxu0 %v1422_v4  ;;  %v10613_v46 = vld [vmem:[%s12420_s8 + $0x58] sm:$0xff]  ;;  %v10703_v4 = vld [vmem:[%s12420_s8 + $0x8] sm:$0xff] }
 0x1ce   : > { %1598 = vmatprep.subr.mxu1 %v1557_v48  ;;  %1484 = vmatpush1.msra.mxu0 %v1421_v6  ;;  %v10712_v6 = vld [vmem:[%s12420_s8] sm:$0xff] }
 0x1cf   : > { %1599 = vmatpush1.msra.mxu1 %v1556_v50  ;;  %1485 = vmatprep.subr.mxu0 %v1420_v8  ;;  %v10626_v50 = vld [vmem:[#allocation15 + $0x50] sm:$0xff]  ;;  %v10763_v8 = vsub.s32 0, %v10517_v1 }
 0x1d0   : > { %1600 = vmatprep.subr.mxu1 %v1555_v52  ;;  %1486 = vmatpush1.msra.mxu0 %v1419_v10  ;;  %v10635_v52 = vld [vmem:[#allocation15 + $0x48] sm:$0xff] }
 0x1d1   : > { %1601 = vmatpush1.msra.mxu1 %v1554_v54  ;;  %1487 = vmatprep.subr.mxu0 %v1418_v12  ;;  %v10642_v54 = vld [vmem:[#allocation15 + $0x40] sm:$0xff]  ;;  %v1572_v10 = vld [vmem:[%s12424_s12] sm:$0x3] }
 0x1d2   : > { %1602 = vmatprep.subr.mxu1 %v1553_v56  ;;  %1488 = vmatpush1.msra.mxu0 %v1417_v14  ;;  %v10651_v56 = vld [vmem:[#allocation15 + $0x38] sm:$0xff] }
 0x1d3   : > { %1603 = vmatpush1.msra.mxu1 %v1552_v58  ;;  %1489 = vmatprep.subr.mxu0 %v1416_v16  ;;  %v10660_v58 = vld [vmem:[#allocation15 + $0x30] sm:$0xff] }
 0x1d4   : > { %1604 = vmatprep.subr.mxu1 %v1551_v60  ;;  %1490 = vmatpush1.msra.mxu0 %v1415_v18  ;;  %v10669_v60 = vld [vmem:[#allocation15 + $0x28] sm:$0xff] }
 0x1d5   : > { %1605 = vmatpush1.msra.mxu1 %v1550_v62  ;;  %1523 = vmatprep.mubr.f32.mxu0 %v10158_v22  ;;  %v10678_v62 = vld [vmem:[#allocation15 + $0x20] sm:$0xff] }
 0x1d6   : > { %1606 = vmatprep.subr.mxu1 %v1549_v0  ;;  %1648 = vmatprep.mubr.f32.mxu1 %v10158_v22  ;;  %v10687_v0 = vld [vmem:[#allocation15 + $0x18] sm:$0xff] }
 0x1d7   : > { %1607 = vmatpush1.msra.mxu1 %v1548_v3  ;;  %1701 = vmatprep.subr.mxu0 %v10571_v20  ;;  %v10696_v3 = vld [vmem:[#allocation15 + $0x10] sm:$0xff] }
 0x1d8   : > { %1608 = vmatprep.subr.mxu1 %v1547_v5  ;;  %v10705_v5 = vld [vmem:[#allocation15 + $0x8] sm:$0xff] }
 0x1d9   : > { %1609 = vmatpush1.msra.mxu1 %v1546_v7  ;;  %v10716_v7 = vld [vmem:[#allocation15] sm:$0xff] }
 0x1da   : > { %1610 = vmatprep.subr.mxu1 %v1545_v9  ;;  %v1447_v9 = vld [vmem:[%s12421_s9] sm:$0x3] }
 0x1db   : > { %1611 = vmatpush1.msra.mxu1 %v1544_v11  ;;  %v10772_v11 = vsub.s32 1, %v10517_v1  ;;  %v1452_v12 = vrot.slane %v1447_v9, %v10763_v8 }
 0x1dc   : > { %1612 = vmatprep.subr.mxu1 %v1543_v13  ;;  %v1577_v13 = vrot.slane %v1572_v10, %v10763_v8 }
 0x1dd   : > { %1613 = vmatpush1.msra.mxu1 %v1542_v15  ;;  %v1456_v14 = vrot.slane %v1447_v9, %v10772_v11  ;;  %v1581_v15 = vrot.slane %v1572_v10, %v10772_v11 }
 0x1de   : > { %1614 = vmatprep.subr.mxu1 %v1541_v17 }
 0x1df   : > { %1615 = vmatpush1.msra.mxu1 %v1540_v19 }
 0x1e0   : > { %1839 = vmatprep.subr.mxu1 %v10573_v21 }
 0x270   : > { %v9162_v23 = vpop.f32.mrf.mxu1 }
 0x272   : > { %v1213_v26 = vpop.f32.mrf.mxu1 }
 0x274   : > { %v9181_v25 = vpop.f32.mrf.mxu0 }
 0x275   : > { %v1300_v29 = vadd.f32 %v9181_v25, %v9162_v23 }
 0x276   : > { %v1294_v27 = vpop.f32.mrf.mxu0 }
 0x277   : > { %v1295_v30 = vadd.f32 %v1294_v27, %v1213_v26 }
 0x280   : > { %v9200_v28 = vpop.f32.mrf.mxu1 }
 0x281   : > { %v1394_v32 = vadd.f32 %v9200_v28, %v1300_v29 }
 0x282   : > { %v1384_v31 = vpop.f32.mrf.mxu1 }
 0x283   : > { %v1393_v33 = vadd.f32 %v1384_v31, %v1295_v30  ;;  %v1403_v24 = vmul.f32 %v8927_v34, %v1394_v32 }
 0x285   : > { %v1402_v35 = vmul.f32 %v8927_v34, %v1393_v33  ;;  %v1412_v45 = vadd.f32 %v8928_v36, %v1403_v24 }
 0x287   : > { %v1411_v37 = vadd.f32 %v8928_v36, %v1402_v35  ;;  %v1414_v48 = vmax.f32 %v1412_v45, 0.0  ;;  %v10159_v36 = vmov 1966171168  }
 0x288   : > { %v1760_v24 = vunpack.c.l.s4 %v10159_v36 }
 0x289   : > { %v1413_v38 = vmax.f32 %v1411_v37, 0.0 }
 0x28a   : > { %v1761_v37 = vunpack.c.0.s8 %v1760_v24 }
 0x28b   : > { %1524 = vmatmul.mubr.f32.vlgmr.msra.gmra.mxu0 %v1413_v38  ;;  %1649 = vmatmul.mubr.f32.vlgmr.msra.gmra.mxu1 %v1413_v38 }
 0x28c   : > { %1702 = vmatpush1.msra.mxu0 %v10588_v39  ;;  %1840 = vmatpush1.msra.mxu1 %v10590_v40  ;;  %v10779_v45 = vsub.s32 %v1761_v37, %v10517_v1 }
 0x28d   : > { %1703 = vmatprep.subr.mxu0 %v10595_v41  ;;  %1841 = vmatprep.subr.mxu1 %v10597_v42 }
 0x28e   : > { %1704 = vmatpush1.msra.mxu0 %v10602_v43  ;;  %1842 = vmatpush1.msra.mxu1 %v10604_v44 }
 0x28f   : > { %1529 = vmatprep.mubr.f32.mxu0 %v10158_v22  ;;  %1654 = vmatprep.mubr.f32.mxu1 %v10158_v22 }
 0x290   : > { %1705 = vmatprep.subr.mxu0 %v10613_v46  ;;  %1843 = vmatprep.subr.mxu1 %v10615_v47 }
 0x291   : > { %1530 = vmatmul.mubr.f32.gmra.mxu0 %v1414_v48  ;;  %1655 = vmatmul.mubr.f32.gmra.mxu1 %v1414_v48 }
 0x292   : > { %1706 = vmatpush1.msra.mxu0 %v10624_v49  ;;  %1844 = vmatpush1.msra.mxu1 %v10626_v50 }
 0x293   : > { %1707 = vmatprep.subr.mxu0 %v10633_v51  ;;  %1845 = vmatprep.subr.mxu1 %v10635_v52 }
 0x294   : > { %1708 = vmatpush1.msra.mxu0 %v10640_v53  ;;  %1846 = vmatpush1.msra.mxu1 %v10642_v54 }
 0x295   : > { %1709 = vmatprep.subr.mxu0 %v10649_v55  ;;  %1847 = vmatprep.subr.mxu1 %v10651_v56 }
 0x296   : > { %1710 = vmatpush1.msra.mxu0 %v10658_v57  ;;  %1848 = vmatpush1.msra.mxu1 %v10660_v58 }
 0x297   : > { %1711 = vmatprep.subr.mxu0 %v10667_v59  ;;  %1849 = vmatprep.subr.mxu1 %v10669_v60 }
 0x298   : > { %1712 = vmatpush1.msra.mxu0 %v10676_v61  ;;  %1850 = vmatpush1.msra.mxu1 %v10678_v62 }
 0x299   : > { %1713 = vmatprep.subr.mxu0 %v10685_v63  ;;  %1851 = vmatprep.subr.mxu1 %v10687_v0 }
 0x29a   : > { %1714 = vmatpush1.msra.mxu0 %v10694_v2  ;;  %1852 = vmatpush1.msra.mxu1 %v10696_v3 }
 0x29b   : > { %1715 = vmatprep.subr.mxu0 %v10703_v4  ;;  %1853 = vmatprep.subr.mxu1 %v10705_v5 }
 0x29c   : > { %1716 = vmatpush1.msra.mxu0 %v10712_v6  ;;  %1749 = vmatprep.mubr.f32.mxu0 %v10158_v22 }
 0x29d   : > { %1854 = vmatpush1.msra.mxu1 %v10716_v7  ;;  %1887 = vmatprep.mubr.f32.mxu1 %v10158_v22 }
 0x29e   : > { %1750 = vmatmul.mubr.f32.vlgmr.msra.gmra.mxu0 %v10158_v22  ;;  %1888 = vmatmul.mubr.f32.vlgmr.msra.gmra.mxu1 %v10158_v22 }
 0x29f   : > { %2119 = vmatprep.subr.mxu1 %v10573_v21  ;;  %2167 = vmatprep.mubr.f32.mxu1 %v10158_v22 }
 0x2a0   : > { %2120 = vmatpush1.msra.mxu1 %v10590_v40  ;;  %1979 = vmatprep.subr.mxu0 %v10571_v20 }
 0x2a1   : > { %2121 = vmatprep.subr.mxu1 %v10597_v42  ;;  %1980 = vmatpush1.msra.mxu0 %v10588_v39 }
 0x2a2   : > { %2122 = vmatpush1.msra.mxu1 %v10604_v44  ;;  %1981 = vmatprep.subr.mxu0 %v10595_v41 }
 0x2a3   : > { %2123 = vmatprep.subr.mxu1 %v10615_v47  ;;  %1982 = vmatpush1.msra.mxu0 %v10602_v43 }
 0x2a4   : > { %2124 = vmatpush1.msra.mxu1 %v10626_v50  ;;  %1983 = vmatprep.subr.mxu0 %v10613_v46 }
 0x2a5   : > { %2125 = vmatprep.subr.mxu1 %v10635_v52  ;;  %1984 = vmatpush1.msra.mxu0 %v10624_v49 }
 0x2a6   : > { %2126 = vmatpush1.msra.mxu1 %v10642_v54  ;;  %1985 = vmatprep.subr.mxu0 %v10633_v51 }
 0x2a7   : > { %2127 = vmatprep.subr.mxu1 %v10651_v56  ;;  %1986 = vmatpush1.msra.mxu0 %v10640_v53 }
 0x2a8   : > { %2128 = vmatpush1.msra.mxu1 %v10660_v58  ;;  %1987 = vmatprep.subr.mxu0 %v10649_v55 }
 0x2a9   : > { %2129 = vmatprep.subr.mxu1 %v10669_v60  ;;  %1988 = vmatpush1.msra.mxu0 %v10658_v57 }
 0x2aa   : > { %2130 = vmatpush1.msra.mxu1 %v10678_v62  ;;  %1989 = vmatprep.subr.mxu0 %v10667_v59 }
 0x2ab   : > { %2131 = vmatprep.subr.mxu1 %v10687_v0  ;;  %1990 = vmatpush1.msra.mxu0 %v10676_v61 }
 0x2ac   : > { %2132 = vmatpush1.msra.mxu1 %v10696_v3  ;;  %1991 = vmatprep.subr.mxu0 %v10685_v63 }
 0x2ad   : > { %2133 = vmatprep.subr.mxu1 %v10705_v5  ;;  %1992 = vmatpush1.msra.mxu0 %v10694_v2 }
 0x2ae   : > { %2134 = vmatpush1.msra.mxu1 %v10716_v7  ;;  %1993 = vmatprep.subr.mxu0 %v10703_v4 }
 0x2af   : > { %1994 = vmatpush1.msra.mxu0 %v10712_v6  ;;  %2027 = vmatprep.mubr.f32.mxu0 %v10158_v22 }
 0x2b0   : > { %2399 = vmatprep.subr.mxu1 %v10573_v21  ;;  %2259 = vmatprep.subr.mxu0 %v10571_v20 }
 0x34b   : > { %v1525_v16 = vpop.f32.mrf.mxu0  ;;  %v1650_v17 = vpop.f32.mrf.mxu1 }
 0x34c   : > { %v1526_v18 = vadd.f32 %v1525_v16, %v1452_v12  ;;  %v1651_v19 = vadd.f32 %v1650_v17, %v1577_v13 }
 0x34d   : > { %v1527_v23 = vpop.f32.mrf.mxu0  ;;  %v1652_v25 = vpop.f32.mrf.mxu1 }
 0x34e   : > { %1536 = vst [vmem:[#allocation2] sm:$0xff] %v1526_v18  ;;  %1661 = vst [vmem:[#allocation3] sm:$0xff] %v1651_v19  ;;  %v1528_v26 = vadd.f32 %v1527_v23, %v1456_v14  ;;  %v1653_v27 = vadd.f32 %v1652_v25, %v1581_v15 }
 0x350   : > { %1537 = vst [vmem:[#allocation2 + $0x8] sm:$0xff] %v1528_v26  ;;  %1662 = vst [vmem:[#allocation3 + $0x8] sm:$0xff] %v1653_v27 }
 0x351   : > { %v1531_v28 = vpop.f32.mrf.mxu0  ;;  %v1656_v29 = vpop.f32.mrf.mxu1 }
 0x352   : > { %v1532_v30 = vadd.f32 %v1531_v28, %v1452_v12  ;;  %v1657_v31 = vadd.f32 %v1656_v29, %v1577_v13 }
 0x353   : > { %v1533_v32 = vpop.f32.mrf.mxu0  ;;  %v1658_v33 = vpop.f32.mrf.mxu1 }
 0x354   : > { %1538 = vst [vmem:[#allocation2 + $0x10] sm:$0xff] %v1532_v30  ;;  %1663 = vst [vmem:[#allocation3 + $0x10] sm:$0xff] %v1657_v31  ;;  %v1534_v34 = vadd.f32 %v1533_v32, %v1456_v14  ;;  %v1659_v35 = vadd.f32 %v1658_v33, %v1581_v15 }
 0x356   : > { %1539 = vst [vmem:[#allocation2 + $0x18] sm:$0xff] %v1534_v34  ;;  %1664 = vst [vmem:[#allocation3 + $0x18] sm:$0xff] %v1659_v35 }
 0x357   : > { %v1665_v35 = vld [vmem:[#allocation2] ss:$8 sm:$0x3] }
 0x35d   : > { %v1806_v13 = vld [vmem:[#allocation3 + $0x17] ss:$8 sm:$0x3] }
 0x35e   : > { %v1889_v38 = vpop.f32.mrf.mxu1  ;;  %v1751_v27 = vpop.f32.mrf.mxu0 }
 0x360   : > { %v1891_v48 = vpop.f32.mrf.mxu1  ;;  %v1753_v30 = vpop.f32.mrf.mxu0 }
 0x361   : > { %v1896_v9 = vcombine.low %v1889_v38, %v1891_v48  ;;  %v1758_v31 = vcombine.low %v1751_v27, %v1753_v30  ;;  %v2083_v30 = vld [vmem:[#allocation3 + $0x16] ss:$8 sm:$0x3] }
 0x363   : > { %v1903_v10 = vrot.slane %v1896_v9, %v10779_v45  ;;  %v1765_v32 = vrot.slane %v1758_v31, %v10779_v45 }
 0x365   : > { %v1910_v12 = vrot.slane %v1903_v10, %v10779_v45  ;;  %v1772_v33 = vrot.slane %v1765_v32, %v10779_v45 }
 0x367   : > { %v1912_v16 = vadd.f32 %v1910_v12, %v1806_v13  ;;  %v1774_v36 = vadd.f32 %v1772_v33, %v1665_v35 }
 0x369   : > { %1920 = vrot.lane.b32.xlu0 %v1912_v16, %s10160_s10  ;;  %v8930_v14 = vmul.f32 -1.442695, %v1912_v16  ;;  %v8929_v24 = vmul.f32 -1.442695, %v1774_v36 }
 0x36b   : > { %9384 = vpow2.f32 %v8930_v14 }
 0x378   : > { %v9385_v15 = vpop.eup %9384 }
 0x379   : > { %v1916_v17 = vadd.f32 1.0, %v9385_v15 }
 0x37b   : > { %9386 = vrcp.f32 %v1916_v17 }
 0x388   : > { %v9387_v1 = vpop.eup %9386 }
 0x389   : > { %v1925_v26 = vmul.f32 0.0, %v9387_v1  ;;  %v1934_v38 = vrot.slane %v9387_v1, 1 }
 0x3db   : > { %v1921_v18 = vpop.permute.xlu0 %1920 }
 0x3dc   : > { %v1922_v19 = vrot.slane %v1921_v18, 1 }
 0x3de   : > { %9388 = vtanh.f32 %v1922_v19 }
 0x3eb   : > { %v9389_v23 = vpop.eup %9388 }
 0x3ec   : > { %v1926_v25 = vmul.f32 %v9389_v23, %v9387_v1 }
 0x3ee   : > { %1928 = vrot.lane.b32.xlu0 %v1926_v25, %s10160_s10 }
 0x460   : > { %v1929_v28 = vpop.permute.xlu0 %1928 }
 0x461   : > { %v10785_v29 = vadd.f32 %v1929_v28, %v1925_v26 }
 0x463   : > { %9390 = vtanh.f32 %v10785_v29 }
 0x464   : > { %9392 = vpow2.f32 %v8929_v24 }
 0x470   : > { %v9391_v34 = vpop.eup %9390 }
 0x471   : > { %1937 = vrot.lane.b32.xlu1 %v9391_v34, %s10160_s10  ;;  %v9393_v37 = vpop.eup %9392 }
 0x472   : > { %v1778_v10 = vadd.f32 1.0, %v9393_v37 }
 0x474   : > { %9394 = vrcp.f32 %v1778_v10 }
 0x475   : > { %1782 = vrot.lane.b32.xlu1 %v1774_v36, %s10160_s10 }
 0x481   : > { %v9395_v16 = vpop.eup %9394 }
 0x482   : > { %v1787_v17 = vmul.f32 0.0, %v9395_v16  ;;  %v1796_v32 = vrot.slane %v9395_v16, 1 }
 0x4e3   : > { %v1938_v48 = vpop.permute.xlu1 %1937 }
 0x4e4   : > { %v1940_v9 = vmul.f32 %v1938_v48, %v1934_v38 }
 0x4e6   : > { %1941 = vst.msk [vmem:[#allocation5 + $0xf] sm:$0x1] %vm1803_vm6, %v1940_v9  ;;  %8933 = vmatmul.mubr.msk.f32.vlgmr.msra.gmra.mxu1 %vm1140_vm5, %v1940_v9 }
 0x4e7   : > { %v1783_v12 = vpop.permute.xlu1 %1782  ;;  %2400 = vmatpush1.msra.mxu1 %v10590_v40  ;;  %2447 = vmatprep.mubr.f32.mxu1 %v10158_v22 }
 0x4e8   : > { %v1784_v13 = vrot.slane %v1783_v12, 1  ;;  %2401 = vmatprep.subr.mxu1 %v10597_v42 }
 0x4e9   : > { %2402 = vmatpush1.msra.mxu1 %v10604_v44 }
 0x4ea   : > { %9396 = vtanh.f32 %v1784_v13  ;;  %2403 = vmatprep.subr.mxu1 %v10615_v47 }
 0x4eb   : > { %2404 = vmatpush1.msra.mxu1 %v10626_v50 }
 0x4ec   : > { %2405 = vmatprep.subr.mxu1 %v10635_v52 }
 0x4ed   : > { %2406 = vmatpush1.msra.mxu1 %v10642_v54 }
 0x4ee   : > { %2407 = vmatprep.subr.mxu1 %v10651_v56 }
 0x4ef   : > { %2408 = vmatpush1.msra.mxu1 %v10660_v58 }
 0x4f0   : > { %2409 = vmatprep.subr.mxu1 %v10669_v60 }
 0x4f1   : > { %2410 = vmatpush1.msra.mxu1 %v10678_v62 }
 0x4f2   : > { %2411 = vmatprep.subr.mxu1 %v10687_v0 }
 0x4f3   : > { %2412 = vmatpush1.msra.mxu1 %v10696_v3 }
 0x4f4   : > { %2413 = vmatprep.subr.mxu1 %v10705_v5 }
 0x4f5   : > { %2414 = vmatpush1.msra.mxu1 %v10716_v7 }
 0x4f6   : > { %2679 = vmatprep.subr.mxu1 %v10573_v21 }
 0x4f7   : > { %v9397_v14 = vpop.eup %9396 }
 0x4f8   : > { %v1788_v15 = vmul.f32 %v9397_v14, %v9395_v16 }
 0x4fa   : > { %1790 = vrot.lane.b32.xlu1 %v1788_v15, %s10160_s10 }
 0x56c   : > { %v1791_v18 = vpop.permute.xlu1 %1790 }
 0x56d   : > { %v10812_v19 = vadd.f32 %v1791_v18, %v1787_v17 }
 0x56f   : > { %9398 = vtanh.f32 %v10812_v19 }
 0x57c   : > { %v9399_v1 = vpop.eup %9398 }
 0x57d   : > { %1799 = vrot.lane.b32.xlu1 %v9399_v1, %s10160_s10 }
 0x5a6   : > { %v2169_v23 = vpop.f32.mrf.mxu1 }
 0x5a8   : > { %v2171_v25 = vpop.f32.mrf.mxu1 }
 0x5a9   : > { %v2176_v26 = vcombine.low %v2169_v23, %v2171_v25  ;;  %v1943_v23 = vld [vmem:[#allocation2 + $0x1] ss:$8 sm:$0x3] }
 0x5ab   : > { %v2183_v27 = vrot.slane %v2176_v26, %v10779_v45 }
 0x5ad   : > { %v2190_v28 = vrot.slane %v2183_v27, %v10779_v45 }
 0x5af   : > { %v2192_v31 = vadd.f32 %v2190_v28, %v2083_v30 }
 0x5b1   : > { %2200 = vrot.lane.b32.xlu0 %v2192_v31, %s10160_s10  ;;  %v8934_v35 = vmul.f32 -1.442695, %v2192_v31 }
 0x5b3   : > { %9400 = vpow2.f32 %v8934_v35 }
 0x5c0   : > { %v9401_v36 = vpop.eup %9400 }
 0x5c1   : > { %v2196_v24 = vadd.f32 1.0, %v9401_v36 }
 0x5c3   : > { %9402 = vrcp.f32 %v2196_v24 }
 0x5d0   : > { %v9403_v48 = vpop.eup %9402 }
 0x5d1   : > { %v2205_v12 = vmul.f32 %v9403_v48, %v10785_v29  ;;  %v2214_v27 = vrot.slane %v9403_v48, 1 }
 0x5ef   : > { %v1800_v33 = vpop.permute.xlu1 %1799 }
 0x5f0   : > { %v1802_v34 = vmul.f32 %v1800_v33, %v1796_v32 }
 0x5f2   : > { %1804 = vst.msk [vmem:[#allocation4] sm:$0x1] %vm1803_vm6, %v1802_v34  ;;  %8931 = vmatmul.mubr.msk.f32.vlgmr.msra.gmra.mxu0 %vm1140_vm5, %v1802_v34 }
 0x5f3   : > { %2260 = vmatpush1.msra.mxu0 %v10588_v39  ;;  %2307 = vmatprep.mubr.f32.mxu0 %v10158_v22 }
 0x5f4   : > { %2261 = vmatprep.subr.mxu0 %v10595_v41 }
 0x5f5   : > { %2262 = vmatpush1.msra.mxu0 %v10602_v43 }
 0x5f6   : > { %2263 = vmatprep.subr.mxu0 %v10613_v46 }
 0x5f7   : > { %2264 = vmatpush1.msra.mxu0 %v10624_v49 }
 0x5f8   : > { %2265 = vmatprep.subr.mxu0 %v10633_v51 }
 0x5f9   : > { %2266 = vmatpush1.msra.mxu0 %v10640_v53 }
 0x5fa   : > { %2267 = vmatprep.subr.mxu0 %v10649_v55 }
 0x5fb   : > { %2268 = vmatpush1.msra.mxu0 %v10658_v57 }
 0x5fc   : > { %2269 = vmatprep.subr.mxu0 %v10667_v59 }
 0x5fd   : > { %2270 = vmatpush1.msra.mxu0 %v10676_v61 }
 0x5fe   : > { %2271 = vmatprep.subr.mxu0 %v10685_v63 }
 0x5ff   : > { %2272 = vmatpush1.msra.mxu0 %v10694_v2 }
 0x600   : > { %2273 = vmatprep.subr.mxu0 %v10703_v4 }
 0x601   : > { %2274 = vmatpush1.msra.mxu0 %v10712_v6 }
 0x602   : > { %2539 = vmatprep.subr.mxu0 %v10571_v20 }
 0x623   : > { %v2201_v37 = vpop.permute.xlu0 %2200 }
 0x624   : > { %v2202_v38 = vrot.slane %v2201_v37, 1 }
 0x626   : > { %9404 = vtanh.f32 %v2202_v38 }
 0x633   : > { %v9405_v9 = vpop.eup %9404 }
 0x634   : > { %v2206_v10 = vmul.f32 %v9405_v9, %v9403_v48 }
 0x636   : > { %2208 = vrot.lane.b32.xlu0 %v2206_v10, %s10160_s10 }
 0x6a8   : > { %v2209_v13 = vpop.permute.xlu0 %2208 }
 0x6a9   : > { %v10840_v16 = vadd.f32 %v2209_v13, %v2205_v12 }
 0x6ab   : > { %9406 = vtanh.f32 %v10840_v16 }
 0x6b2   : > { %v2029_v20 = vpop.f32.mrf.mxu0 }
 0x6b4   : > { %v2031_v14 = vpop.f32.mrf.mxu0 }
 0x6b5   : > { %v2036_v15 = vcombine.low %v2029_v20, %v2031_v14  ;;  %v2363_v20 = vld [vmem:[#allocation3 + $0x15] ss:$8 sm:$0x3] }
 0x6b7   : > { %v2043_v17 = vrot.slane %v2036_v15, %v10779_v45 }
 0x6b8   : > { %v9407_v18 = vpop.eup %9406 }
 0x6b9   : > { %v2050_v1 = vrot.slane %v2043_v17, %v10779_v45  ;;  %2217 = vrot.lane.b32.xlu0 %v9407_v18, %s10160_s10 }
 0x6bb   : > { %v2052_v25 = vadd.f32 %v2050_v1, %v1943_v23  ;;  %v2223_v23 = vld [vmem:[#allocation2 + $0x2] ss:$8 sm:$0x3] }
 0x6bd   : > { %2060 = vrot.lane.b32.xlu1 %v2052_v25, %s10160_s10  ;;  %v8932_v29 = vmul.f32 -1.442695, %v2052_v25 }
 0x6bf   : > { %9408 = vpow2.f32 %v8932_v29 }
 0x6cc   : > { %v9409_v26 = vpop.eup %9408 }
 0x6cd   : > { %v2056_v31 = vadd.f32 1.0, %v9409_v26 }
 0x6cf   : > { %9410 = vrcp.f32 %v2056_v31 }
 0x6dc   : > { %v9411_v34 = vpop.eup %9410 }
 0x6dd   : > { %v2065_v24 = vmul.f32 %v9411_v34, %v10812_v19  ;;  %v2074_v19 = vrot.slane %v9411_v34, 1 }
 0x72b   : > { %v2218_v28 = vpop.permute.xlu0 %2217 }
 0x72c   : > { %v2220_v30 = vmul.f32 %v2218_v28, %v2214_v27 }
 0x72e   : > { %2221 = vst.msk [vmem:[#allocation5 + $0xe] sm:$0x1] %vm1803_vm6, %v2220_v30  ;;  %8937 = vmatmul.mubr.msk.f32.vlgmr.msra.gmra.mxu1 %vm1140_vm5, %v2220_v30 }
 0x72f   : > { %v2061_v32 = vpop.permute.xlu1 %2060  ;;  %2680 = vmatpush1.msra.mxu1 %v10590_v40  ;;  %2727 = vmatprep.mubr.f32.mxu1 %v10158_v22 }
 0x730   : > { %v2062_v33 = vrot.slane %v2061_v32, 1  ;;  %2681 = vmatprep.subr.mxu1 %v10597_v42 }
 0x731   : > { %2682 = vmatpush1.msra.mxu1 %v10604_v44 }
 0x732   : > { %9412 = vtanh.f32 %v2062_v33  ;;  %2683 = vmatprep.subr.mxu1 %v10615_v47 }
 0x733   : > { %2684 = vmatpush1.msra.mxu1 %v10626_v50 }
 0x734   : > { %2685 = vmatprep.subr.mxu1 %v10635_v52 }
 0x735   : > { %2686 = vmatpush1.msra.mxu1 %v10642_v54 }
 0x736   : > { %2687 = vmatprep.subr.mxu1 %v10651_v56 }
 0x737   : > { %2688 = vmatpush1.msra.mxu1 %v10660_v58 }
 0x738   : > { %2689 = vmatprep.subr.mxu1 %v10669_v60 }
 0x739   : > { %2690 = vmatpush1.msra.mxu1 %v10678_v62 }
 0x73a   : > { %2691 = vmatprep.subr.mxu1 %v10687_v0 }
 0x73b   : > { %2692 = vmatpush1.msra.mxu1 %v10696_v3 }
 0x73c   : > { %2693 = vmatprep.subr.mxu1 %v10705_v5 }
 0x73d   : > { %2694 = vmatpush1.msra.mxu1 %v10716_v7 }
 0x73e   : > { %2959 = vmatprep.subr.mxu1 %v10573_v21 }
 0x73f   : > { %v9413_v35 = vpop.eup %9412 }
 0x740   : > { %v2066_v36 = vmul.f32 %v9413_v35, %v9411_v34 }
 0x742   : > { %2068 = vrot.lane.b32.xlu1 %v2066_v36, %s10160_s10 }
 0x7b4   : > { %v2069_v37 = vpop.permute.xlu1 %2068 }
 0x7b5   : > { %v10868_v38 = vadd.f32 %v2069_v37, %v2065_v24 }
 0x7b7   : > { %9414 = vtanh.f32 %v10868_v38 }
 0x7c4   : > { %v9415_v48 = vpop.eup %9414 }
 0x7c5   : > { %2077 = vrot.lane.b32.xlu1 %v9415_v48, %s10160_s10 }
 0x7ee   : > { %v2449_v9 = vpop.f32.mrf.mxu1 }
 0x7f0   : > { %v2451_v10 = vpop.f32.mrf.mxu1 }
 0x7f1   : > { %v2456_v12 = vcombine.low %v2449_v9, %v2451_v10 }
 0x7f3   : > { %v2463_v13 = vrot.slane %v2456_v12, %v10779_v45 }
 0x7f5   : > { %v2470_v21 = vrot.slane %v2463_v13, %v10779_v45 }
 0x7f7   : > { %v2472_v14 = vadd.f32 %v2470_v21, %v2363_v20 }
 0x7f9   : > { %2480 = vrot.lane.b32.xlu0 %v2472_v14, %s10160_s10 }
 0x837   : > { %v2078_v15 = vpop.permute.xlu1 %2077 }
 0x838   : > { %v2080_v17 = vmul.f32 %v2078_v15, %v2074_v19 }
 0x83a   : > { %2081 = vst.msk [vmem:[#allocation4 + $0x1] sm:$0x1] %vm1803_vm6, %v2080_v17  ;;  %8935 = vmatmul.mubr.msk.f32.vlgmr.msra.gmra.mxu0 %vm1140_vm5, %v2080_v17 }
 0x83b   : > { %2540 = vmatpush1.msra.mxu0 %v10588_v39  ;;  %2587 = vmatprep.mubr.f32.mxu0 %v10158_v22  ;;  %v8938_v39 = vmul.f32 -1.442695, %v2472_v14 }
 0x83c   : > { %2541 = vmatprep.subr.mxu0 %v10595_v41 }
 0x83d   : > { %2542 = vmatpush1.msra.mxu0 %v10602_v43  ;;  %9416 = vpow2.f32 %v8938_v39 }
 0x83e   : > { %2543 = vmatprep.subr.mxu0 %v10613_v46 }
 0x83f   : > { %2544 = vmatpush1.msra.mxu0 %v10624_v49 }
 0x840   : > { %2545 = vmatprep.subr.mxu0 %v10633_v51 }
 0x841   : > { %2546 = vmatpush1.msra.mxu0 %v10640_v53 }
 0x842   : > { %2547 = vmatprep.subr.mxu0 %v10649_v55 }
 0x843   : > { %2548 = vmatpush1.msra.mxu0 %v10658_v57 }
 0x844   : > { %2549 = vmatprep.subr.mxu0 %v10667_v59 }
 0x845   : > { %2550 = vmatpush1.msra.mxu0 %v10676_v61 }
 0x846   : > { %2551 = vmatprep.subr.mxu0 %v10685_v63 }
 0x847   : > { %2552 = vmatpush1.msra.mxu0 %v10694_v2 }
 0x848   : > { %2553 = vmatprep.subr.mxu0 %v10703_v4 }
 0x849   : > { %2554 = vmatpush1.msra.mxu0 %v10712_v6 }
 0x84a   : > { %v9417_v41 = vpop.eup %9416 }
 0x84b   : > { %v2476_v43 = vadd.f32 1.0, %v9417_v41  ;;  %v2503_v41 = vld [vmem:[#allocation2 + $0x3] ss:$8 sm:$0x3] }
 0x84d   : > { %9418 = vrcp.f32 %v2476_v43 }
 0x85a   : > { %v9419_v51 = vpop.eup %9418 }
 0x85b   : > { %v2485_v57 = vmul.f32 %v9419_v51, %v10840_v16  ;;  %v2494_v26 = vrot.slane %v9419_v51, 1 }
 0x86b   : > { %v2481_v46 = vpop.permute.xlu0 %2480 }
 0x86c   : > { %v2482_v49 = vrot.slane %v2481_v46, 1 }
 0x86e   : > { %9420 = vtanh.f32 %v2482_v49 }
 0x87b   : > { %v9421_v53 = vpop.eup %9420 }
 0x87c   : > { %v2486_v55 = vmul.f32 %v9421_v53, %v9419_v51 }
 0x87e   : > { %2488 = vrot.lane.b32.xlu0 %v2486_v55, %s10160_s10 }
 0x8f0   : > { %v2489_v59 = vpop.permute.xlu0 %2488 }
 0x8f1   : > { %v10895_v61 = vadd.f32 %v2489_v59, %v2485_v57 }
 0x8f3   : > { %9422 = vtanh.f32 %v10895_v61 }
 0x8fa   : > { %v2309_v63 = vpop.f32.mrf.mxu0 }
 0x8fc   : > { %v2311_v2 = vpop.f32.mrf.mxu0 }
 0x8fd   : > { %v2316_v4 = vcombine.low %v2309_v63, %v2311_v2 }
 0x8ff   : > { %v2323_v6 = vrot.slane %v2316_v4, %v10779_v45 }
 0x900   : > { %v9423_v18 = vpop.eup %9422 }
 0x901   : > { %v2330_v1 = vrot.slane %v2323_v6, %v10779_v45  ;;  %2497 = vrot.lane.b32.xlu0 %v9423_v18, %s10160_s10  ;;  %v10948_v6 = vld [vmem:[%s12420_s8 + $0x78] sm:$0xff]  ;;  %v10953_v18 = vld [vmem:[%s12420_s8 + $0x70] sm:$0xff] }
 0x902   : > { %2819 = vmatprep.subr.mxu0 %v10948_v6 }
 0x903   : > { %v2332_v25 = vadd.f32 %v2330_v1, %v2223_v23  ;;  %v10958_v1 = vld [vmem:[%s12420_s8 + $0x68] sm:$0xff]  ;;  %v10964_v23 = vld [vmem:[%s12420_s8 + $0x60] sm:$0xff] }
 0x905   : > { %2340 = vrot.lane.b32.xlu1 %v2332_v25, %s10160_s10  ;;  %v8936_v16 = vmul.f32 -1.442695, %v2332_v25  ;;  %v10970_v25 = vld [vmem:[%s12420_s8 + $0x58] sm:$0xff] }
 0x907   : > { %9424 = vpow2.f32 %v8936_v16  ;;  %v10976_v16 = vld [vmem:[%s12420_s8 + $0x50] sm:$0xff] }
 0x914   : > { %v9425_v29 = vpop.eup %9424 }
 0x915   : > { %v2336_v30 = vadd.f32 1.0, %v9425_v29  ;;  %v10982_v29 = vld [vmem:[%s12420_s8 + $0x48] sm:$0xff] }
 0x917   : > { %9426 = vrcp.f32 %v2336_v30  ;;  %v11006_v30 = vld [vmem:[%s12420_s8 + $0x28] sm:$0xff] }
 0x973   : > { %v2498_v27 = vpop.permute.xlu0 %2497 }
 0x974   : > { %v2500_v28 = vmul.f32 %v2498_v27, %v2494_v26  ;;  %v10988_v26 = vld [vmem:[%s12420_s8 + $0x40] sm:$0xff]  ;;  %v10994_v27 = vld [vmem:[%s12420_s8 + $0x38] sm:$0xff] }
 0x976   : > { %2501 = vst.msk [vmem:[#allocation5 + $0xd] sm:$0x1] %vm1803_vm6, %v2500_v28  ;;  %8941 = vmatmul.mubr.msk.f32.vlgmr.msra.gmra.mxu1 %vm1140_vm5, %v2500_v28  ;;  %v11000_v28 = vld [vmem:[%s12420_s8 + $0x30] sm:$0xff] }
 0x977   : > { %v2341_v31 = vpop.permute.xlu1 %2340  ;;  %2960 = vmatpush1.msra.mxu1 %v10590_v40  ;;  %3007 = vmatprep.mubr.f32.mxu1 %v10158_v22  ;;  %v9427_v40 = vpop.eup %9426 }
 0x978   : > { %v2342_v32 = vrot.slane %v2341_v31, 1  ;;  %2961 = vmatprep.subr.mxu1 %v10597_v42  ;;  %v11012_v31 = vld [vmem:[%s12420_s8 + $0x20] sm:$0xff] }
 0x979   : > { %2962 = vmatpush1.msra.mxu1 %v10604_v44 }
 0x97a   : > { %9428 = vtanh.f32 %v2342_v32  ;;  %2963 = vmatprep.subr.mxu1 %v10615_v47  ;;  %v2345_v47 = vmul.f32 %v9427_v40, %v10868_v38  ;;  %v11018_v32 = vld [vmem:[%s12420_s8 + $0x18] sm:$0xff] }
 0x97b   : > { %2964 = vmatpush1.msra.mxu1 %v10626_v50 }
 0x97c   : > { %2965 = vmatprep.subr.mxu1 %v10635_v52 }
 0x97d   : > { %2966 = vmatpush1.msra.mxu1 %v10642_v54 }
 0x97e   : > { %2967 = vmatprep.subr.mxu1 %v10651_v56 }
 0x97f   : > { %2968 = vmatpush1.msra.mxu1 %v10660_v58 }
 0x980   : > { %2969 = vmatprep.subr.mxu1 %v10669_v60 }
 0x981   : > { %2970 = vmatpush1.msra.mxu1 %v10678_v62 }
 0x982   : > { %2971 = vmatprep.subr.mxu1 %v10687_v0 }
 0x983   : > { %2972 = vmatpush1.msra.mxu1 %v10696_v3  ;;  %v2643_v3 = vld [vmem:[#allocation3 + $0x14] ss:$8 sm:$0x3] }
 0x984   : > { %2973 = vmatprep.subr.mxu1 %v10705_v5 }
 0x985   : > { %2974 = vmatpush1.msra.mxu1 %v10716_v7  ;;  %v2354_v7 = vrot.slane %v9427_v40, 1 }
 0x987   : > { %v9429_v42 = vpop.eup %9428 }
 0x988   : > { %v2346_v44 = vmul.f32 %v9429_v42, %v9427_v40  ;;  %v11024_v40 = vld [vmem:[%s12420_s8 + $0x10] sm:$0xff] }
 0x98a   : > { %2348 = vrot.lane.b32.xlu1 %v2346_v44, %s10160_s10 }
 0x9fc   : > { %v2349_v50 = vpop.permute.xlu1 %2348 }
 0x9fd   : > { %v10922_v52 = vadd.f32 %v2349_v50, %v2345_v47  ;;  %v11036_v50 = vld [vmem:[%s12420_s8 + $0x8] sm:$0xff] }
 0x9ff   : > { %9430 = vtanh.f32 %v10922_v52 }
 0xa0c   : > { %v9431_v54 = vpop.eup %9430 }
 0xa0d   : > { %2357 = vrot.lane.b32.xlu1 %v9431_v54, %s10160_s10  ;;  %v11042_v54 = vld [vmem:[%s12420_s8] sm:$0xff] }
 0xa36   : > { %v2729_v56 = vpop.f32.mrf.mxu1 }
 0xa38   : > { %v2731_v58 = vpop.f32.mrf.mxu1 }
 0xa39   : > { %v2736_v60 = vcombine.low %v2729_v56, %v2731_v58 }
 0xa3b   : > { %v2743_v62 = vrot.slane %v2736_v60, %v10779_v45 }
 0xa3d   : > { %v2750_v0 = vrot.slane %v2743_v62, %v10779_v45 }
 0xa3f   : > { %v2752_v5 = vadd.f32 %v2750_v0, %v2643_v3  ;;  %v2923_v3 = vld [vmem:[#allocation3 + $0x13] ss:$8 sm:$0x3] }
 0xa41   : > { %2760 = vrot.lane.b32.xlu0 %v2752_v5, %s10160_s10  ;;  %v8942_v35 = vmul.f32 -1.442695, %v2752_v5 }
 0xa43   : > { %9432 = vpow2.f32 %v8942_v35 }
 0xa50   : > { %v9433_v36 = vpop.eup %9432 }
 0xa51   : > { %v2756_v24 = vadd.f32 1.0, %v9433_v36 }
 0xa53   : > { %9434 = vrcp.f32 %v2756_v24 }
 0xa60   : > { %v9435_v48 = vpop.eup %9434 }
 0xa61   : > { %v2765_v12 = vmul.f32 %v9435_v48, %v10895_v61  ;;  %v2774_v51 = vrot.slane %v9435_v48, 1 }
 0xa7f   : > { %v2358_v33 = vpop.permute.xlu1 %2357 }
 0xa80   : > { %v2360_v34 = vmul.f32 %v2358_v33, %v2354_v7 }
 0xa82   : > { %2361 = vst.msk [vmem:[#allocation4 + $0x2] sm:$0x1] %vm1803_vm6, %v2360_v34  ;;  %8939 = vmatmul.mubr.msk.f32.vlgmr.msra.gmra.mxu0 %vm1140_vm5, %v2360_v34 }
 0xa83   : > { %2867 = vmatprep.mubr.f32.mxu0 %v10158_v22  ;;  %2820 = vmatpush1.msra.mxu0 %v10953_v18 }
 0xa84   : > { %2821 = vmatprep.subr.mxu0 %v10958_v1 }
 0xa85   : > { %2822 = vmatpush1.msra.mxu0 %v10964_v23 }
 0xa86   : > { %2823 = vmatprep.subr.mxu0 %v10970_v25 }
 0xa87   : > { %2824 = vmatpush1.msra.mxu0 %v10976_v16 }
 0xa88   : > { %2825 = vmatprep.subr.mxu0 %v10982_v29 }
 0xa89   : > { %2826 = vmatpush1.msra.mxu0 %v10988_v26 }
 0xa8a   : > { %2827 = vmatprep.subr.mxu0 %v10994_v27 }
 0xa8b   : > { %2828 = vmatpush1.msra.mxu0 %v11000_v28 }
 0xa8c   : > { %2829 = vmatprep.subr.mxu0 %v11006_v30 }
 0xa8d   : > { %2830 = vmatpush1.msra.mxu0 %v11012_v31 }
 0xa8e   : > { %2831 = vmatprep.subr.mxu0 %v11018_v32 }
 0xa8f   : > { %2832 = vmatpush1.msra.mxu0 %v11024_v40 }
 0xa90   : > { %2833 = vmatprep.subr.mxu0 %v11036_v50 }
 0xa91   : > { %2834 = vmatpush1.msra.mxu0 %v11042_v54 }
 0xa92   : > { %3099 = vmatprep.subr.mxu0 %v10948_v6 }
 0xab3   : > { %v2761_v37 = vpop.permute.xlu0 %2760 }
 0xab4   : > { %v2762_v38 = vrot.slane %v2761_v37, 1 }
 0xab6   : > { %9436 = vtanh.f32 %v2762_v38 }
 0xac3   : > { %v9437_v9 = vpop.eup %9436 }
 0xac4   : > { %v2766_v10 = vmul.f32 %v9437_v9, %v9435_v48 }
 0xac6   : > { %2768 = vrot.lane.b32.xlu0 %v2766_v10, %s10160_s10 }
 0xb38   : > { %v2769_v13 = vpop.permute.xlu0 %2768 }
 0xb39   : > { %v10934_v21 = vadd.f32 %v2769_v13, %v2765_v12  ;;  %v11070_v12 = vld [vmem:[#allocation15 + $0x78] sm:$0xff]  ;;  %v11072_v13 = vld [vmem:[#allocation15 + $0x70] sm:$0xff] }
 0xb3a   : > { %3239 = vmatprep.subr.mxu1 %v11070_v12 }
 0xb3b   : > { %9438 = vtanh.f32 %v10934_v21 }
 0xb42   : > { %v2589_v20 = vpop.f32.mrf.mxu0 }
 0xb44   : > { %v2591_v14 = vpop.f32.mrf.mxu0 }
 0xb45   : > { %v2596_v19 = vcombine.low %v2589_v20, %v2591_v14  ;;  %v11074_v20 = vld [vmem:[#allocation15 + $0x68] sm:$0xff]  ;;  %v11077_v14 = vld [vmem:[#allocation15 + $0x60] sm:$0xff] }
 0xb47   : > { %v2603_v15 = vrot.slane %v2596_v19, %v10779_v45  ;;  %v11080_v19 = vld [vmem:[#allocation15 + $0x58] sm:$0xff] }
 0xb48   : > { %v9439_v17 = vpop.eup %9438 }
 0xb49   : > { %v2610_v39 = vrot.slane %v2603_v15, %v10779_v45  ;;  %2777 = vrot.lane.b32.xlu0 %v9439_v17, %s10160_s10  ;;  %v11083_v15 = vld [vmem:[#allocation15 + $0x50] sm:$0xff]  ;;  %v11086_v17 = vld [vmem:[#allocation15 + $0x48] sm:$0xff] }
 0xb4b   : > { %v2612_v43 = vadd.f32 %v2610_v39, %v2503_v41  ;;  %v11089_v39 = vld [vmem:[#allocation15 + $0x40] sm:$0xff]  ;;  %v11092_v41 = vld [vmem:[#allocation15 + $0x38] sm:$0xff] }
 0xb4d   : > { %2620 = vrot.lane.b32.xlu1 %v2612_v43, %s10160_s10  ;;  %v8940_v46 = vmul.f32 -1.442695, %v2612_v43  ;;  %v11095_v43 = vld [vmem:[#allocation15 + $0x30] sm:$0xff] }
 0xb4f   : > { %9440 = vpow2.f32 %v8940_v46  ;;  %v11098_v46 = vld [vmem:[#allocation15 + $0x28] sm:$0xff] }
 0xb5c   : > { %v9441_v49 = vpop.eup %9440 }
 0xb5d   : > { %v2616_v57 = vadd.f32 1.0, %v9441_v49  ;;  %v11101_v49 = vld [vmem:[#allocation15 + $0x20] sm:$0xff] }
 0xb5f   : > { %9442 = vrcp.f32 %v2616_v57 }
 0xb6c   : > { %v9443_v63 = vpop.eup %9442 }
 0xb6d   : > { %v2625_v42 = vmul.f32 %v9443_v63, %v10922_v52  ;;  %v2634_v7 = vrot.slane %v9443_v63, 1 }
 0xbbb   : > { %v2778_v53 = vpop.permute.xlu0 %2777 }
 0xbbc   : > { %v2780_v55 = vmul.f32 %v2778_v53, %v2774_v51  ;;  %v11104_v51 = vld [vmem:[#allocation15 + $0x18] sm:$0xff]  ;;  %v11107_v53 = vld [vmem:[#allocation15 + $0x10] sm:$0xff] }
 0xbbe   : > { %2781 = vst.msk [vmem:[#allocation5 + $0xc] sm:$0x1] %vm1803_vm6, %v2780_v55  ;;  %8945 = vmatmul.mubr.msk.f32.vlgmr.msra.gmra.mxu1 %vm1140_vm5, %v2780_v55 }
 0xbbf   : > { %v2621_v59 = vpop.permute.xlu1 %2620  ;;  %3287 = vmatprep.mubr.f32.mxu1 %v10158_v22  ;;  %3240 = vmatpush1.msra.mxu1 %v11072_v13 }
 0xbc0   : > { %v2622_v61 = vrot.slane %v2621_v59, 1  ;;  %3241 = vmatprep.subr.mxu1 %v11074_v20 }
 0xbc1   : > { %3242 = vmatpush1.msra.mxu1 %v11077_v14 }
 0xbc2   : > { %9444 = vtanh.f32 %v2622_v61  ;;  %3243 = vmatprep.subr.mxu1 %v11080_v19  ;;  %v11116_v61 = vld [vmem:[#allocation15 + $0x8] sm:$0xff] }
 0xbc3   : > { %3244 = vmatpush1.msra.mxu1 %v11083_v15 }
 0xbc4   : > { %3245 = vmatprep.subr.mxu1 %v11086_v17 }
 0xbc5   : > { %3246 = vmatpush1.msra.mxu1 %v11089_v39 }
 0xbc6   : > { %3247 = vmatprep.subr.mxu1 %v11092_v41 }
 0xbc7   : > { %3248 = vmatpush1.msra.mxu1 %v11095_v43 }
 0xbc8   : > { %3249 = vmatprep.subr.mxu1 %v11098_v46 }
 0xbc9   : > { %3250 = vmatpush1.msra.mxu1 %v11101_v49 }
 0xbca   : > { %3251 = vmatprep.subr.mxu1 %v11104_v51 }
 0xbcb   : > { %3252 = vmatpush1.msra.mxu1 %v11107_v53 }
 0xbcc   : > { %3253 = vmatprep.subr.mxu1 %v11116_v61 }
 0xbcf   : > { %v9445_v2 = vpop.eup %9444 }
 0xbd0   : > { %v2626_v4 = vmul.f32 %v9445_v2, %v9443_v63  ;;  %v11119_v63 = vld [vmem:[#allocation15] sm:$0xff] }
 0xbd1   : > { %3254 = vmatpush1.msra.mxu1 %v11119_v63 }
 0xbd2   : > { %2628 = vrot.lane.b32.xlu1 %v2626_v4, %s10160_s10  ;;  %3519 = vmatprep.subr.mxu1 %v11070_v12 }
 0xc44   : > { %v2629_v44 = vpop.permute.xlu1 %2628 }
 0xc45   : > { %v11030_v47 = vadd.f32 %v2629_v44, %v2625_v42 }
 0xc47   : > { %9446 = vtanh.f32 %v11030_v47 }
 0xc54   : > { %v9447_v52 = vpop.eup %9446 }
 0xc55   : > { %2637 = vrot.lane.b32.xlu1 %v9447_v52, %s10160_s10 }
 0xc7e   : > { %v3009_v56 = vpop.f32.mrf.mxu1 }
 0xc80   : > { %v3011_v58 = vpop.f32.mrf.mxu1 }
 0xc81   : > { %v3016_v60 = vcombine.low %v3009_v56, %v3011_v58  ;;  %v2783_v56 = vld [vmem:[#allocation2 + $0x4] ss:$8 sm:$0x3] }
 0xc83   : > { %v3023_v62 = vrot.slane %v3016_v60, %v10779_v45 }
 0xc85   : > { %v3030_v0 = vrot.slane %v3023_v62, %v10779_v45 }
 0xc87   : > { %v3032_v5 = vadd.f32 %v3030_v0, %v2923_v3 }
 0xc89   : > { %3040 = vrot.lane.b32.xlu0 %v3032_v5, %s10160_s10  ;;  %v8946_v35 = vmul.f32 -1.442695, %v3032_v5 }
 0xc8b   : > { %9448 = vpow2.f32 %v8946_v35 }
 0xc98   : > { %v9449_v36 = vpop.eup %9448 }
 0xc99   : > { %v3036_v24 = vadd.f32 1.0, %v9449_v36 }
 0xc9b   : > { %9450 = vrcp.f32 %v3036_v24 }
 0xca8   : > { %v9451_v48 = vpop.eup %9450 }
 0xca9   : > { %v3045_v55 = vmul.f32 %v9451_v48, %v10934_v21  ;;  %v3054_v0 = vrot.slane %v9451_v48, 1 }
 0xcc7   : > { %v2638_v33 = vpop.permute.xlu1 %2637 }
 0xcc8   : > { %v2640_v34 = vmul.f32 %v2638_v33, %v2634_v7 }
 0xcca   : > { %2641 = vst.msk [vmem:[#allocation4 + $0x3] sm:$0x1] %vm1803_vm6, %v2640_v34  ;;  %8943 = vmatmul.mubr.msk.f32.vlgmr.msra.gmra.mxu0 %vm1140_vm5, %v2640_v34 }
 0xccb   : > { %3100 = vmatpush1.msra.mxu0 %v10953_v18  ;;  %3147 = vmatprep.mubr.f32.mxu0 %v10158_v22 }
 0xccc   : > { %3101 = vmatprep.subr.mxu0 %v10958_v1 }
 0xccd   : > { %3102 = vmatpush1.msra.mxu0 %v10964_v23 }
 0xcce   : > { %3103 = vmatprep.subr.mxu0 %v10970_v25 }
 0xccf   : > { %3104 = vmatpush1.msra.mxu0 %v10976_v16 }
 0xcd0   : > { %3105 = vmatprep.subr.mxu0 %v10982_v29 }
 0xcd1   : > { %3106 = vmatpush1.msra.mxu0 %v10988_v26 }
 0xcd2   : > { %3107 = vmatprep.subr.mxu0 %v10994_v27 }
 0xcd3   : > { %3108 = vmatpush1.msra.mxu0 %v11000_v28 }
 0xcd4   : > { %3109 = vmatprep.subr.mxu0 %v11006_v30 }
 0xcd5   : > { %3110 = vmatpush1.msra.mxu0 %v11012_v31 }
 0xcd6   : > { %3111 = vmatprep.subr.mxu0 %v11018_v32 }
 0xcd7   : > { %3112 = vmatpush1.msra.mxu0 %v11024_v40 }
 0xcd8   : > { %3113 = vmatprep.subr.mxu0 %v11036_v50 }
 0xcd9   : > { %3114 = vmatpush1.msra.mxu0 %v11042_v54 }
 0xcda   : > { %3379 = vmatprep.subr.mxu0 %v10948_v6 }
 0xcfb   : > { %v3041_v37 = vpop.permute.xlu0 %3040 }
 0xcfc   : > { %v3042_v38 = vrot.slane %v3041_v37, 1 }
 0xcfe   : > { %9452 = vtanh.f32 %v3042_v38 }
 0xd0b   : > { %v9453_v9 = vpop.eup %9452 }
 0xd0c   : > { %v3046_v10 = vmul.f32 %v9453_v9, %v9451_v48 }
 0xd0e   : > { %3048 = vrot.lane.b32.xlu0 %v3046_v10, %s10160_s10 }
 0xd80   : > { %v3049_v57 = vpop.permute.xlu0 %3048 }
 0xd81   : > { %v11113_v59 = vadd.f32 %v3049_v57, %v3045_v55 }
 0xd83   : > { %9454 = vtanh.f32 %v11113_v59 }
 0xd8a   : > { %v2869_v2 = vpop.f32.mrf.mxu0 }
 0xd8c   : > { %v2871_v4 = vpop.f32.mrf.mxu0 }
 0xd8d   : > { %v2876_v42 = vcombine.low %v2869_v2, %v2871_v4 }
 0xd8f   : > { %v2883_v21 = vrot.slane %v2876_v42, %v10779_v45  ;;  %v3203_v42 = vld [vmem:[#allocation3 + $0x12] ss:$8 sm:$0x3] }
 0xd90   : > { %v9455_v44 = vpop.eup %9454 }
 0xd91   : > { %v2890_v52 = vrot.slane %v2883_v21, %v10779_v45  ;;  %3057 = vrot.lane.b32.xlu0 %v9455_v44, %s10160_s10 }
 0xd93   : > { %v2892_v58 = vadd.f32 %v2890_v52, %v2783_v56 }
 0xd95   : > { %2900 = vrot.lane.b32.xlu1 %v2892_v58, %s10160_s10  ;;  %v8944_v60 = vmul.f32 -1.442695, %v2892_v58 }
 0xd97   : > { %9456 = vpow2.f32 %v8944_v60 }
 0xda4   : > { %v9457_v62 = vpop.eup %9456 }
 0xda5   : > { %v2896_v7 = vadd.f32 1.0, %v9457_v62 }
 0xda7   : > { %9458 = vrcp.f32 %v2896_v7 }
 0xdb4   : > { %v9459_v35 = vpop.eup %9458 }
 0xdb5   : > { %v2905_v37 = vmul.f32 %v9459_v35, %v11030_v47  ;;  %v2914_v47 = vrot.slane %v9459_v35, 1 }
 0xe03   : > { %v3058_v3 = vpop.permute.xlu0 %3057 }
 0xe04   : > { %v3060_v5 = vmul.f32 %v3058_v3, %v3054_v0 }
 0xe06   : > { %3061 = vst.msk [vmem:[#allocation5 + $0xb] sm:$0x1] %vm1803_vm6, %v3060_v5  ;;  %8949 = vmatmul.mubr.msk.f32.vlgmr.msra.gmra.mxu1 %vm1140_vm5, %v3060_v5 }
 0xe07   : > { %v2901_v33 = vpop.permute.xlu1 %2900  ;;  %3520 = vmatpush1.msra.mxu1 %v11072_v13  ;;  %3567 = vmatprep.mubr.f32.mxu1 %v10158_v22 }
 0xe08   : > { %v2902_v34 = vrot.slane %v2901_v33, 1  ;;  %3521 = vmatprep.subr.mxu1 %v11074_v20 }
 0xe09   : > { %3522 = vmatpush1.msra.mxu1 %v11077_v14 }
 0xe0a   : > { %9460 = vtanh.f32 %v2902_v34  ;;  %3523 = vmatprep.subr.mxu1 %v11080_v19 }
 0xe0b   : > { %3524 = vmatpush1.msra.mxu1 %v11083_v15 }
 0xe0c   : > { %3525 = vmatprep.subr.mxu1 %v11086_v17 }
 0xe0d   : > { %3526 = vmatpush1.msra.mxu1 %v11089_v39 }
 0xe0e   : > { %3527 = vmatprep.subr.mxu1 %v11092_v41 }
 0xe0f   : > { %3528 = vmatpush1.msra.mxu1 %v11095_v43 }
 0xe10   : > { %3529 = vmatprep.subr.mxu1 %v11098_v46 }
 0xe11   : > { %3530 = vmatpush1.msra.mxu1 %v11101_v49 }
 0xe12   : > { %3531 = vmatprep.subr.mxu1 %v11104_v51 }
 0xe13   : > { %3532 = vmatpush1.msra.mxu1 %v11107_v53 }
 0xe14   : > { %3533 = vmatprep.subr.mxu1 %v11116_v61 }
 0xe15   : > { %3534 = vmatpush1.msra.mxu1 %v11119_v63 }
 0xe16   : > { %3799 = vmatprep.subr.mxu1 %v11070_v12 }
 0xe17   : > { %v9461_v36 = vpop.eup %9460 }
 0xe18   : > { %v2906_v24 = vmul.f32 %v9461_v36, %v9459_v35 }
 0xe1a   : > { %2908 = vrot.lane.b32.xlu1 %v2906_v24, %s10160_s10 }
 0xe8c   : > { %v2909_v38 = vpop.permute.xlu1 %2908 }
 0xe8d   : > { %v11148_v48 = vadd.f32 %v2909_v38, %v2905_v37 }
 0xe8f   : > { %9462 = vtanh.f32 %v11148_v48 }
 0xe9c   : > { %v9463_v9 = vpop.eup %9462 }
 0xe9d   : > { %2917 = vrot.lane.b32.xlu1 %v9463_v9, %s10160_s10 }
 0xec6   : > { %v3289_v10 = vpop.f32.mrf.mxu1 }
 0xec8   : > { %v3291_v55 = vpop.f32.mrf.mxu1 }
 0xec9   : > { %v3296_v57 = vcombine.low %v3289_v10, %v3291_v55  ;;  %v3063_v55 = vld [vmem:[#allocation2 + $0x5] ss:$8 sm:$0x3] }
 0xecb   : > { %v3303_v2 = vrot.slane %v3296_v57, %v10779_v45 }
 0xecd   : > { %v3310_v4 = vrot.slane %v3303_v2, %v10779_v45 }
 0xecf   : > { %v3312_v21 = vadd.f32 %v3310_v4, %v3203_v42 }
 0xed1   : > { %3320 = vrot.lane.b32.xlu0 %v3312_v21, %s10160_s10  ;;  %v8950_v56 = vmul.f32 -1.442695, %v3312_v21 }
 0xed3   : > { %9464 = vpow2.f32 %v8950_v56 }
 0xee0   : > { %v9465_v58 = vpop.eup %9464 }
 0xee1   : > { %v3316_v60 = vadd.f32 1.0, %v9465_v58 }
 0xee3   : > { %9466 = vrcp.f32 %v3316_v60 }
 0xef0   : > { %v9467_v3 = vpop.eup %9466 }
 0xef1   : > { %v3325_v33 = vmul.f32 %v9467_v3, %v11113_v59  ;;  %v3334_v4 = vrot.slane %v9467_v3, 1 }
 0xf0f   : > { %v2918_v44 = vpop.permute.xlu1 %2917 }
 0xf10   : > { %v2920_v52 = vmul.f32 %v2918_v44, %v2914_v47 }
 0xf12   : > { %2921 = vst.msk [vmem:[#allocation4 + $0x4] sm:$0x1] %vm1803_vm6, %v2920_v52  ;;  %8947 = vmatmul.mubr.msk.f32.vlgmr.msra.gmra.mxu0 %vm1140_vm5, %v2920_v52 }
 0xf13   : > { %3380 = vmatpush1.msra.mxu0 %v10953_v18  ;;  %3427 = vmatprep.mubr.f32.mxu0 %v10158_v22 }
 0xf14   : > { %3381 = vmatprep.subr.mxu0 %v10958_v1 }
 0xf15   : > { %3382 = vmatpush1.msra.mxu0 %v10964_v23 }
 0xf16   : > { %3383 = vmatprep.subr.mxu0 %v10970_v25 }
 0xf17   : > { %3384 = vmatpush1.msra.mxu0 %v10976_v16 }
 0xf18   : > { %3385 = vmatprep.subr.mxu0 %v10982_v29 }
 0xf19   : > { %3386 = vmatpush1.msra.mxu0 %v10988_v26 }
 0xf1a   : > { %3387 = vmatprep.subr.mxu0 %v10994_v27 }
 0xf1b   : > { %3388 = vmatpush1.msra.mxu0 %v11000_v28 }
 0xf1c   : > { %3389 = vmatprep.subr.mxu0 %v11006_v30 }
 0xf1d   : > { %3390 = vmatpush1.msra.mxu0 %v11012_v31 }
 0xf1e   : > { %3391 = vmatprep.subr.mxu0 %v11018_v32 }
 0xf1f   : > { %3392 = vmatpush1.msra.mxu0 %v11024_v40 }
 0xf20   : > { %3393 = vmatprep.subr.mxu0 %v11036_v50 }
 0xf21   : > { %3394 = vmatpush1.msra.mxu0 %v11042_v54 }
 0xf22   : > { %3659 = vmatprep.subr.mxu0 %v10948_v6 }
 0xf43   : > { %v3321_v62 = vpop.permute.xlu0 %3320 }
 0xf44   : > { %v3322_v0 = vrot.slane %v3321_v62, 1 }
 0xf46   : > { %9468 = vtanh.f32 %v3322_v0 }
 0xf53   : > { %v9469_v5 = vpop.eup %9468 }
 0xf54   : > { %v3326_v7 = vmul.f32 %v9469_v5, %v9467_v3 }
 0xf56   : > { %3328 = vrot.lane.b32.xlu0 %v3326_v7, %s10160_s10 }
 0xfc8   : > { %v3329_v34 = vpop.permute.xlu0 %3328 }
 0xfc9   : > { %v11176_v35 = vadd.f32 %v3329_v34, %v3325_v33 }
 0xfcb   : > { %9470 = vtanh.f32 %v11176_v35 }
 0xfd2   : > { %v3149_v36 = vpop.f32.mrf.mxu0 }
 0xfd4   : > { %v3151_v24 = vpop.f32.mrf.mxu0 }
 0xfd5   : > { %v3156_v37 = vcombine.low %v3149_v36, %v3151_v24 }
 0xfd7   : > { %v3163_v38 = vrot.slane %v3156_v37, %v10779_v45  ;;  %v3483_v37 = vld [vmem:[#allocation3 + $0x11] ss:$8 sm:$0x3] }
 0xfd8   : > { %v9471_v9 = vpop.eup %9470 }
 0xfd9   : > { %v3170_v10 = vrot.slane %v3163_v38, %v10779_v45  ;;  %3337 = vrot.lane.b32.xlu0 %v9471_v9, %s10160_s10 }
 0xfdb   : > { %v3172_v57 = vadd.f32 %v3170_v10, %v3063_v55 }
 0xfdd   : > { %3180 = vrot.lane.b32.xlu1 %v3172_v57, %s10160_s10  ;;  %v8948_v59 = vmul.f32 -1.442695, %v3172_v57 }
 0xfdf   : > { %9472 = vpow2.f32 %v8948_v59 }
 0xfec   : > { %v9473_v2 = vpop.eup %9472 }
 0xfed   : > { %v3176_v47 = vadd.f32 1.0, %v9473_v2 }
 0xfef   : > { %9474 = vrcp.f32 %v3176_v47 }
 0xffc   : > { %v9475_v56 = vpop.eup %9474 }
 0xffd   : > { %v3185_v62 = vmul.f32 %v9475_v56, %v11148_v48  ;;  %v3194_v48 = vrot.slane %v9475_v56, 1 }
0x104b   : > { %v3338_v42 = vpop.permute.xlu0 %3337 }
0x104c   : > { %v3340_v21 = vmul.f32 %v3338_v42, %v3334_v4 }
0x104e   : > { %3341 = vst.msk [vmem:[#allocation5 + $0xa] sm:$0x1] %vm1803_vm6, %v3340_v21  ;;  %8953 = vmatmul.mubr.msk.f32.vlgmr.msra.gmra.mxu1 %vm1140_vm5, %v3340_v21 }
0x104f   : > { %v3181_v44 = vpop.permute.xlu1 %3180  ;;  %3800 = vmatpush1.msra.mxu1 %v11072_v13  ;;  %3847 = vmatprep.mubr.f32.mxu1 %v10158_v22 }
0x1050   : > { %v3182_v52 = vrot.slane %v3181_v44, 1  ;;  %3801 = vmatprep.subr.mxu1 %v11074_v20 }
0x1051   : > { %3802 = vmatpush1.msra.mxu1 %v11077_v14 }
0x1052   : > { %9476 = vtanh.f32 %v3182_v52  ;;  %3803 = vmatprep.subr.mxu1 %v11080_v19 }
0x1053   : > { %3804 = vmatpush1.msra.mxu1 %v11083_v15 }
0x1054   : > { %3805 = vmatprep.subr.mxu1 %v11086_v17 }
0x1055   : > { %3806 = vmatpush1.msra.mxu1 %v11089_v39 }
0x1056   : > { %3807 = vmatprep.subr.mxu1 %v11092_v41 }
0x1057   : > { %3808 = vmatpush1.msra.mxu1 %v11095_v43 }
0x1058   : > { %3809 = vmatprep.subr.mxu1 %v11098_v46 }
0x1059   : > { %3810 = vmatpush1.msra.mxu1 %v11101_v49 }
0x105a   : > { %3811 = vmatprep.subr.mxu1 %v11104_v51 }
0x105b   : > { %3812 = vmatpush1.msra.mxu1 %v11107_v53 }
0x105c   : > { %3813 = vmatprep.subr.mxu1 %v11116_v61 }
0x105d   : > { %3814 = vmatpush1.msra.mxu1 %v11119_v63 }
0x105e   : > { %4079 = vmatprep.subr.mxu1 %v11070_v12 }
0x105f   : > { %v9477_v58 = vpop.eup %9476 }
0x1060   : > { %v3186_v60 = vmul.f32 %v9477_v58, %v9475_v56 }
0x1062   : > { %3188 = vrot.lane.b32.xlu1 %v3186_v60, %s10160_s10 }
0x10d4   : > { %v3189_v0 = vpop.permute.xlu1 %3188 }
0x10d5   : > { %v11204_v3 = vadd.f32 %v3189_v0, %v3185_v62 }
0x10d7   : > { %9478 = vtanh.f32 %v11204_v3 }
0x10e4   : > { %v9479_v5 = vpop.eup %9478 }
0x10e5   : > { %3197 = vrot.lane.b32.xlu1 %v9479_v5, %s10160_s10 }
0x110e   : > { %v3569_v7 = vpop.f32.mrf.mxu1 }
0x1110   : > { %v3571_v33 = vpop.f32.mrf.mxu1 }
0x1111   : > { %v3576_v34 = vcombine.low %v3569_v7, %v3571_v33  ;;  %v3343_v7 = vld [vmem:[#allocation2 + $0x6] ss:$8 sm:$0x3] }
0x1113   : > { %v3583_v36 = vrot.slane %v3576_v34, %v10779_v45 }
0x1115   : > { %v3590_v24 = vrot.slane %v3583_v36, %v10779_v45 }
0x1117   : > { %v3592_v38 = vadd.f32 %v3590_v24, %v3483_v37 }
0x1119   : > { %3600 = vrot.lane.b32.xlu0 %v3592_v38, %s10160_s10  ;;  %v8954_v55 = vmul.f32 -1.442695, %v3592_v38 }
0x111b   : > { %9480 = vpow2.f32 %v8954_v55 }
0x1128   : > { %v9481_v57 = vpop.eup %9480 }
0x1129   : > { %v3596_v59 = vadd.f32 1.0, %v9481_v57 }
0x112b   : > { %9482 = vrcp.f32 %v3596_v59 }
0x1138   : > { %v9483_v42 = vpop.eup %9482 }
0x1139   : > { %v3605_v44 = vmul.f32 %v9483_v42, %v11176_v35  ;;  %v3614_v36 = vrot.slane %v9483_v42, 1 }
0x1157   : > { %v3198_v9 = vpop.permute.xlu1 %3197 }
0x1158   : > { %v3200_v10 = vmul.f32 %v3198_v9, %v3194_v48 }
0x115a   : > { %3201 = vst.msk [vmem:[#allocation4 + $0x5] sm:$0x1] %vm1803_vm6, %v3200_v10  ;;  %8951 = vmatmul.mubr.msk.f32.vlgmr.msra.gmra.mxu0 %vm1140_vm5, %v3200_v10 }
0x115b   : > { %3660 = vmatpush1.msra.mxu0 %v10953_v18  ;;  %3707 = vmatprep.mubr.f32.mxu0 %v10158_v22 }
0x115c   : > { %3661 = vmatprep.subr.mxu0 %v10958_v1 }
0x115d   : > { %3662 = vmatpush1.msra.mxu0 %v10964_v23 }
0x115e   : > { %3663 = vmatprep.subr.mxu0 %v10970_v25 }
0x115f   : > { %3664 = vmatpush1.msra.mxu0 %v10976_v16 }
0x1160   : > { %3665 = vmatprep.subr.mxu0 %v10982_v29 }
0x1161   : > { %3666 = vmatpush1.msra.mxu0 %v10988_v26 }
0x1162   : > { %3667 = vmatprep.subr.mxu0 %v10994_v27 }
0x1163   : > { %3668 = vmatpush1.msra.mxu0 %v11000_v28 }
0x1164   : > { %3669 = vmatprep.subr.mxu0 %v11006_v30 }
0x1165   : > { %3670 = vmatpush1.msra.mxu0 %v11012_v31 }
0x1166   : > { %3671 = vmatprep.subr.mxu0 %v11018_v32 }
0x1167   : > { %3672 = vmatpush1.msra.mxu0 %v11024_v40 }
0x1168   : > { %3673 = vmatprep.subr.mxu0 %v11036_v50 }
0x1169   : > { %3674 = vmatpush1.msra.mxu0 %v11042_v54 }
0x116a   : > { %3939 = vmatprep.subr.mxu0 %v10948_v6 }
0x118b   : > { %v3601_v2 = vpop.permute.xlu0 %3600 }
0x118c   : > { %v3602_v4 = vrot.slane %v3601_v2, 1 }
0x118e   : > { %9484 = vtanh.f32 %v3602_v4 }
0x119b   : > { %v9485_v21 = vpop.eup %9484 }
0x119c   : > { %v3606_v47 = vmul.f32 %v9485_v21, %v9483_v42 }
0x119e   : > { %3608 = vrot.lane.b32.xlu0 %v3606_v47, %s10160_s10 }
0x1210   : > { %v3609_v52 = vpop.permute.xlu0 %3608 }
0x1211   : > { %v11232_v56 = vadd.f32 %v3609_v52, %v3605_v44 }
0x1213   : > { %9486 = vtanh.f32 %v11232_v56 }
0x121a   : > { %v3429_v6 = vpop.f32.mrf.mxu0 }
0x121c   : > { %v3431_v58 = vpop.f32.mrf.mxu0 }
0x121d   : > { %v3436_v60 = vcombine.low %v3429_v6, %v3431_v58  ;;  %v3763_v6 = vld [vmem:[#allocation3 + $0x10] ss:$8 sm:$0x3] }
0x121f   : > { %v3443_v62 = vrot.slane %v3436_v60, %v10779_v45 }
0x1220   : > { %v9487_v0 = vpop.eup %9486 }
0x1221   : > { %v3450_v5 = vrot.slane %v3443_v62, %v10779_v45  ;;  %3617 = vrot.lane.b32.xlu0 %v9487_v0, %s10160_s10 }
0x1223   : > { %v3452_v33 = vadd.f32 %v3450_v5, %v3343_v7  ;;  %v3623_v7 = vld [vmem:[#allocation2 + $0x7] ss:$8 sm:$0x3] }
0x1225   : > { %3460 = vrot.lane.b32.xlu1 %v3452_v33, %s10160_s10  ;;  %v8952_v35 = vmul.f32 -1.442695, %v3452_v33 }
0x1227   : > { %9488 = vpow2.f32 %v8952_v35 }
0x1234   : > { %v9489_v34 = vpop.eup %9488 }
0x1235   : > { %v3456_v38 = vadd.f32 1.0, %v9489_v34 }
0x1237   : > { %9490 = vrcp.f32 %v3456_v38 }
0x1244   : > { %v9491_v10 = vpop.eup %9490 }
0x1245   : > { %v3465_v59 = vmul.f32 %v9491_v10, %v11204_v3  ;;  %v3474_v3 = vrot.slane %v9491_v10, 1 }
0x1293   : > { %v3618_v24 = vpop.permute.xlu0 %3617 }
0x1294   : > { %v3620_v37 = vmul.f32 %v3618_v24, %v3614_v36 }
0x1296   : > { %3621 = vst.msk [vmem:[#allocation5 + $0x9] sm:$0x1] %vm1803_vm6, %v3620_v37  ;;  %8957 = vmatmul.mubr.msk.f32.vlgmr.msra.gmra.mxu1 %vm1140_vm5, %v3620_v37 }
0x1297   : > { %v3461_v48 = vpop.permute.xlu1 %3460  ;;  %4080 = vmatpush1.msra.mxu1 %v11072_v13  ;;  %4127 = vmatprep.mubr.f32.mxu1 %v10158_v22 }
0x1298   : > { %v3462_v9 = vrot.slane %v3461_v48, 1  ;;  %4081 = vmatprep.subr.mxu1 %v11074_v20 }
0x1299   : > { %4082 = vmatpush1.msra.mxu1 %v11077_v14 }
0x129a   : > { %9492 = vtanh.f32 %v3462_v9  ;;  %4083 = vmatprep.subr.mxu1 %v11080_v19 }
0x129b   : > { %4084 = vmatpush1.msra.mxu1 %v11083_v15 }
0x129c   : > { %4085 = vmatprep.subr.mxu1 %v11086_v17 }
0x129d   : > { %4086 = vmatpush1.msra.mxu1 %v11089_v39 }
0x129e   : > { %4087 = vmatprep.subr.mxu1 %v11092_v41 }
0x129f   : > { %4088 = vmatpush1.msra.mxu1 %v11095_v43 }
0x12a0   : > { %4089 = vmatprep.subr.mxu1 %v11098_v46 }
0x12a1   : > { %4090 = vmatpush1.msra.mxu1 %v11101_v49 }
0x12a2   : > { %4091 = vmatprep.subr.mxu1 %v11104_v51 }
0x12a3   : > { %4092 = vmatpush1.msra.mxu1 %v11107_v53 }
0x12a4   : > { %4093 = vmatprep.subr.mxu1 %v11116_v61 }
0x12a5   : > { %4094 = vmatpush1.msra.mxu1 %v11119_v63 }
0x12a6   : > { %4359 = vmatprep.subr.mxu1 %v11070_v12 }
0x12a7   : > { %v9493_v55 = vpop.eup %9492 }
0x12a8   : > { %v3466_v57 = vmul.f32 %v9493_v55, %v9491_v10 }
0x12aa   : > { %3468 = vrot.lane.b32.xlu1 %v3466_v57, %s10160_s10 }
0x131c   : > { %v3469_v2 = vpop.permute.xlu1 %3468 }
0x131d   : > { %v11260_v4 = vadd.f32 %v3469_v2, %v3465_v59 }
0x131f   : > { %9494 = vtanh.f32 %v11260_v4 }
0x132c   : > { %v9495_v42 = vpop.eup %9494 }
0x132d   : > { %3477 = vrot.lane.b32.xlu1 %v9495_v42, %s10160_s10 }
0x1356   : > { %v3849_v21 = vpop.f32.mrf.mxu1 }
0x1358   : > { %v3851_v47 = vpop.f32.mrf.mxu1 }
0x1359   : > { %v3856_v44 = vcombine.low %v3849_v21, %v3851_v47 }
0x135b   : > { %v3863_v52 = vrot.slane %v3856_v44, %v10779_v45 }
0x135d   : > { %v3870_v12 = vrot.slane %v3863_v52, %v10779_v45 }
0x135f   : > { %v3872_v58 = vadd.f32 %v3870_v12, %v3763_v6 }
0x1361   : > { %3880 = vrot.lane.b32.xlu0 %v3872_v58, %s10160_s10 }
0x139f   : > { %v3478_v60 = vpop.permute.xlu1 %3477 }
0x13a0   : > { %v3480_v62 = vmul.f32 %v3478_v60, %v3474_v3 }
0x13a2   : > { %3481 = vst.msk [vmem:[#allocation4 + $0x6] sm:$0x1] %vm1803_vm6, %v3480_v62  ;;  %8955 = vmatmul.mubr.msk.f32.vlgmr.msra.gmra.mxu0 %vm1140_vm5, %v3480_v62 }
0x13a3   : > { %3940 = vmatpush1.msra.mxu0 %v10953_v18  ;;  %3987 = vmatprep.mubr.f32.mxu0 %v10158_v22  ;;  %v8958_v18 = vmul.f32 -1.442695, %v3872_v58 }
0x13a4   : > { %3941 = vmatprep.subr.mxu0 %v10958_v1 }
0x13a5   : > { %3942 = vmatpush1.msra.mxu0 %v10964_v23  ;;  %9496 = vpow2.f32 %v8958_v18 }
0x13a6   : > { %3943 = vmatprep.subr.mxu0 %v10970_v25 }
0x13a7   : > { %3944 = vmatpush1.msra.mxu0 %v10976_v16 }
0x13a8   : > { %3945 = vmatprep.subr.mxu0 %v10982_v29 }
0x13a9   : > { %3946 = vmatpush1.msra.mxu0 %v10988_v26 }
0x13aa   : > { %3947 = vmatprep.subr.mxu0 %v10994_v27 }
0x13ab   : > { %3948 = vmatpush1.msra.mxu0 %v11000_v28 }
0x13ac   : > { %3949 = vmatprep.subr.mxu0 %v11006_v30 }
0x13ad   : > { %3950 = vmatpush1.msra.mxu0 %v11012_v31 }
0x13ae   : > { %3951 = vmatprep.subr.mxu0 %v11018_v32 }
0x13af   : > { %3952 = vmatpush1.msra.mxu0 %v11024_v40 }
0x13b0   : > { %3953 = vmatprep.subr.mxu0 %v11036_v50 }
0x13b1   : > { %3954 = vmatpush1.msra.mxu0 %v11042_v54 }
0x13b2   : > { %v9497_v1 = vpop.eup %9496 }
0x13b3   : > { %v3876_v23 = vadd.f32 1.0, %v9497_v1  ;;  %v3903_v1 = vld [vmem:[#allocation2 + $0x10] ss:$8 sm:$0x3] }
0x13b5   : > { %9498 = vrcp.f32 %v3876_v23 }
0x13c2   : > { %v9499_v29 = vpop.eup %9498 }
0x13c3   : > { %v3885_v28 = vmul.f32 %v9499_v29, %v11232_v56  ;;  %v3894_v34 = vrot.slane %v9499_v29, 1 }
0x13d3   : > { %v3881_v25 = vpop.permute.xlu0 %3880 }
0x13d4   : > { %v3882_v16 = vrot.slane %v3881_v25, 1 }
0x13d6   : > { %9500 = vtanh.f32 %v3882_v16 }
0x13e3   : > { %v9501_v26 = vpop.eup %9500 }
0x13e4   : > { %v3886_v27 = vmul.f32 %v9501_v26, %v9499_v29 }
0x13e6   : > { %3888 = vrot.lane.b32.xlu0 %v3886_v27, %s10160_s10 }
0x1458   : > { %v3889_v30 = vpop.permute.xlu0 %3888 }
0x1459   : > { %v11287_v31 = vadd.f32 %v3889_v30, %v3885_v28 }
0x145b   : > { %9502 = vtanh.f32 %v11287_v31 }
0x1462   : > { %v3709_v32 = vpop.f32.mrf.mxu0 }
0x1464   : > { %v3711_v40 = vpop.f32.mrf.mxu0 }
0x1465   : > { %v3716_v50 = vcombine.low %v3709_v32, %v3711_v40 }
0x1467   : > { %v3723_v54 = vrot.slane %v3716_v50, %v10779_v45 }
0x1468   : > { %v9503_v0 = vpop.eup %9502 }
0x1469   : > { %v3730_v5 = vrot.slane %v3723_v54, %v10779_v45  ;;  %3897 = vrot.lane.b32.xlu0 %v9503_v0, %s10160_s10  ;;  %v11340_v54 = vld [vmem:[%s12420_s8 + $0x78] sm:$0xff]  ;;  %v11345_v0 = vld [vmem:[%s12420_s8 + $0x70] sm:$0xff] }
0x146a   : > { %4219 = vmatprep.subr.mxu0 %v11340_v54 }
0x146b   : > { %v3732_v33 = vadd.f32 %v3730_v5, %v3623_v7  ;;  %v11350_v5 = vld [vmem:[%s12420_s8 + $0x68] sm:$0xff]  ;;  %v11356_v7 = vld [vmem:[%s12420_s8 + $0x60] sm:$0xff] }
0x146d   : > { %3740 = vrot.lane.b32.xlu1 %v3732_v33, %s10160_s10  ;;  %v8956_v56 = vmul.f32 -1.442695, %v3732_v33  ;;  %v11362_v33 = vld [vmem:[%s12420_s8 + $0x58] sm:$0xff] }
0x146f   : > { %9504 = vpow2.f32 %v8956_v56  ;;  %v11368_v56 = vld [vmem:[%s12420_s8 + $0x50] sm:$0xff] }
0x147c   : > { %v9505_v35 = vpop.eup %9504 }
0x147d   : > { %v3736_v37 = vadd.f32 1.0, %v9505_v35  ;;  %v11374_v35 = vld [vmem:[%s12420_s8 + $0x48] sm:$0xff] }
0x147f   : > { %9506 = vrcp.f32 %v3736_v37  ;;  %v11398_v37 = vld [vmem:[%s12420_s8 + $0x28] sm:$0xff] }
0x14db   : > { %v3898_v36 = vpop.permute.xlu0 %3897 }
0x14dc   : > { %v3900_v24 = vmul.f32 %v3898_v36, %v3894_v34  ;;  %v11380_v34 = vld [vmem:[%s12420_s8 + $0x40] sm:$0xff]  ;;  %v11386_v36 = vld [vmem:[%s12420_s8 + $0x38] sm:$0xff] }
0x14de   : > { %3901 = vst.msk [vmem:[#allocation5 + $0x8] sm:$0x1] %vm1803_vm6, %v3900_v24  ;;  %8961 = vmatmul.mubr.msk.f32.vlgmr.msra.gmra.mxu1 %vm1140_vm5, %v3900_v24  ;;  %v11392_v24 = vld [vmem:[%s12420_s8 + $0x30] sm:$0xff] }
0x14df   : > { %v3741_v38 = vpop.permute.xlu1 %3740  ;;  %4360 = vmatpush1.msra.mxu1 %v11072_v13  ;;  %4407 = vmatprep.mubr.f32.mxu1 %v10158_v22  ;;  %v9507_v13 = vpop.eup %9506 }
0x14e0   : > { %v3742_v48 = vrot.slane %v3741_v38, 1  ;;  %4361 = vmatprep.subr.mxu1 %v11074_v20  ;;  %v11404_v38 = vld [vmem:[%s12420_s8 + $0x20] sm:$0xff] }
0x14e1   : > { %4362 = vmatpush1.msra.mxu1 %v11077_v14 }
0x14e2   : > { %9508 = vtanh.f32 %v3742_v48  ;;  %4363 = vmatprep.subr.mxu1 %v11080_v19  ;;  %v3745_v19 = vmul.f32 %v9507_v13, %v11260_v4  ;;  %v11410_v48 = vld [vmem:[%s12420_s8 + $0x18] sm:$0xff] }
0x14e3   : > { %4364 = vmatpush1.msra.mxu1 %v11083_v15 }
0x14e4   : > { %4365 = vmatprep.subr.mxu1 %v11086_v17 }
0x14e5   : > { %4366 = vmatpush1.msra.mxu1 %v11089_v39 }
0x14e6   : > { %4367 = vmatprep.subr.mxu1 %v11092_v41 }
0x14e7   : > { %4368 = vmatpush1.msra.mxu1 %v11095_v43 }
0x14e8   : > { %4369 = vmatprep.subr.mxu1 %v11098_v46 }
0x14e9   : > { %4370 = vmatpush1.msra.mxu1 %v11101_v49 }
0x14ea   : > { %4371 = vmatprep.subr.mxu1 %v11104_v51 }
0x14eb   : > { %4372 = vmatpush1.msra.mxu1 %v11107_v53  ;;  %v4043_v53 = vld [vmem:[#allocation3 + $0x7] ss:$8 sm:$0x3] }
0x14ec   : > { %4373 = vmatprep.subr.mxu1 %v11116_v61 }
0x14ed   : > { %4374 = vmatpush1.msra.mxu1 %v11119_v63  ;;  %v3754_v63 = vrot.slane %v9507_v13, 1 }
0x14ef   : > { %v9509_v20 = vpop.eup %9508 }
0x14f0   : > { %v3746_v14 = vmul.f32 %v9509_v20, %v9507_v13  ;;  %v11416_v13 = vld [vmem:[%s12420_s8 + $0x10] sm:$0xff] }
0x14f2   : > { %3748 = vrot.lane.b32.xlu1 %v3746_v14, %s10160_s10 }
0x1564   : > { %v3749_v15 = vpop.permute.xlu1 %3748 }
0x1565   : > { %v11314_v17 = vadd.f32 %v3749_v15, %v3745_v19  ;;  %v11428_v15 = vld [vmem:[%s12420_s8 + $0x8] sm:$0xff] }
0x1567   : > { %9510 = vtanh.f32 %v11314_v17 }
0x1574   : > { %v9511_v39 = vpop.eup %9510 }
0x1575   : > { %3757 = vrot.lane.b32.xlu1 %v9511_v39, %s10160_s10  ;;  %v11434_v39 = vld [vmem:[%s12420_s8] sm:$0xff] }
0x159e   : > { %v4129_v41 = vpop.f32.mrf.mxu1 }
0x15a0   : > { %v4131_v43 = vpop.f32.mrf.mxu1 }
0x15a1   : > { %v4136_v46 = vcombine.low %v4129_v41, %v4131_v43 }
0x15a3   : > { %v4143_v49 = vrot.slane %v4136_v46, %v10779_v45 }
0x15a5   : > { %v4150_v51 = vrot.slane %v4143_v49, %v10779_v45 }
0x15a7   : > { %v4152_v61 = vadd.f32 %v4150_v51, %v4043_v53  ;;  %v4323_v53 = vld [vmem:[#allocation3 + $0x6] ss:$8 sm:$0x3] }
0x15a9   : > { %4160 = vrot.lane.b32.xlu0 %v4152_v61, %s10160_s10  ;;  %v8962_v55 = vmul.f32 -1.442695, %v4152_v61 }
0x15ab   : > { %9512 = vpow2.f32 %v8962_v55 }
0x15b8   : > { %v9513_v57 = vpop.eup %9512 }
0x15b9   : > { %v4156_v59 = vadd.f32 1.0, %v9513_v57 }
0x15bb   : > { %9514 = vrcp.f32 %v4156_v59 }
0x15c8   : > { %v9515_v42 = vpop.eup %9514 }
0x15c9   : > { %v4165_v44 = vmul.f32 %v9515_v42, %v11287_v31  ;;  %v4174_v29 = vrot.slane %v9515_v42, 1 }
0x15e7   : > { %v3758_v9 = vpop.permute.xlu1 %3757 }
0x15e8   : > { %v3760_v10 = vmul.f32 %v3758_v9, %v3754_v63 }
0x15ea   : > { %3761 = vst.msk [vmem:[#allocation4 + $0x7] sm:$0x1] %vm1803_vm6, %v3760_v10  ;;  %8959 = vmatmul.mubr.msk.f32.vlgmr.msra.gmra.mxu0 %vm1140_vm5, %v3760_v10 }
0x15eb   : > { %4267 = vmatprep.mubr.f32.mxu0 %v10158_v22  ;;  %4220 = vmatpush1.msra.mxu0 %v11345_v0 }
0x15ec   : > { %4221 = vmatprep.subr.mxu0 %v11350_v5 }
0x15ed   : > { %4222 = vmatpush1.msra.mxu0 %v11356_v7 }
0x15ee   : > { %4223 = vmatprep.subr.mxu0 %v11362_v33 }
0x15ef   : > { %4224 = vmatpush1.msra.mxu0 %v11368_v56 }
0x15f0   : > { %4225 = vmatprep.subr.mxu0 %v11374_v35 }
0x15f1   : > { %4226 = vmatpush1.msra.mxu0 %v11380_v34 }
0x15f2   : > { %4227 = vmatprep.subr.mxu0 %v11386_v36 }
0x15f3   : > { %4228 = vmatpush1.msra.mxu0 %v11392_v24 }
0x15f4   : > { %4229 = vmatprep.subr.mxu0 %v11398_v37 }
0x15f5   : > { %4230 = vmatpush1.msra.mxu0 %v11404_v38 }
0x15f6   : > { %4231 = vmatprep.subr.mxu0 %v11410_v48 }
0x15f7   : > { %4232 = vmatpush1.msra.mxu0 %v11416_v13 }
0x15f8   : > { %4233 = vmatprep.subr.mxu0 %v11428_v15 }
0x15f9   : > { %4234 = vmatpush1.msra.mxu0 %v11434_v39 }
0x15fa   : > { %4499 = vmatprep.subr.mxu0 %v11340_v54 }
0x161b   : > { %v4161_v2 = vpop.permute.xlu0 %4160 }
0x161c   : > { %v4162_v4 = vrot.slane %v4161_v2, 1 }
0x161e   : > { %9516 = vtanh.f32 %v4162_v4 }
0x162b   : > { %v9517_v21 = vpop.eup %9516 }
0x162c   : > { %v4166_v47 = vmul.f32 %v9517_v21, %v9515_v42 }
0x162e   : > { %4168 = vrot.lane.b32.xlu0 %v4166_v47, %s10160_s10 }
0x16a0   : > { %v4169_v52 = vpop.permute.xlu0 %4168 }
0x16a1   : > { %v11326_v12 = vadd.f32 %v4169_v52, %v4165_v44  ;;  %v11462_v44 = vld [vmem:[#allocation15 + $0x78] sm:$0xff]  ;;  %v11464_v52 = vld [vmem:[#allocation15 + $0x70] sm:$0xff] }
0x16a2   : > { %4639 = vmatprep.subr.mxu1 %v11462_v44 }
0x16a3   : > { %9518 = vtanh.f32 %v11326_v12 }
0x16aa   : > { %v3989_v6 = vpop.f32.mrf.mxu0 }
0x16ac   : > { %v3991_v58 = vpop.f32.mrf.mxu0 }
0x16ad   : > { %v3996_v3 = vcombine.low %v3989_v6, %v3991_v58  ;;  %v11466_v6 = vld [vmem:[#allocation15 + $0x68] sm:$0xff]  ;;  %v11469_v58 = vld [vmem:[#allocation15 + $0x60] sm:$0xff] }
0x16af   : > { %v4003_v60 = vrot.slane %v3996_v3, %v10779_v45  ;;  %v11472_v3 = vld [vmem:[#allocation15 + $0x58] sm:$0xff] }
0x16b0   : > { %v9519_v62 = vpop.eup %9518 }
0x16b1   : > { %v4010_v18 = vrot.slane %v4003_v60, %v10779_v45  ;;  %4177 = vrot.lane.b32.xlu0 %v9519_v62, %s10160_s10  ;;  %v11475_v60 = vld [vmem:[#allocation15 + $0x50] sm:$0xff]  ;;  %v11478_v62 = vld [vmem:[#allocation15 + $0x48] sm:$0xff] }
0x16b3   : > { %v4012_v23 = vadd.f32 %v4010_v18, %v3903_v1  ;;  %v11481_v18 = vld [vmem:[#allocation15 + $0x40] sm:$0xff]  ;;  %v11484_v1 = vld [vmem:[#allocation15 + $0x38] sm:$0xff] }
0x16b5   : > { %4020 = vrot.lane.b32.xlu1 %v4012_v23, %s10160_s10  ;;  %v8960_v25 = vmul.f32 -1.442695, %v4012_v23  ;;  %v11487_v23 = vld [vmem:[#allocation15 + $0x30] sm:$0xff] }
0x16b7   : > { %9520 = vpow2.f32 %v8960_v25  ;;  %v11490_v25 = vld [vmem:[#allocation15 + $0x28] sm:$0xff] }
0x16c4   : > { %v9521_v16 = vpop.eup %9520 }
0x16c5   : > { %v4016_v28 = vadd.f32 1.0, %v9521_v16  ;;  %v11493_v16 = vld [vmem:[#allocation15 + $0x20] sm:$0xff] }
0x16c7   : > { %9522 = vrcp.f32 %v4016_v28 }
0x16d4   : > { %v9523_v32 = vpop.eup %9522 }
0x16d5   : > { %v4025_v20 = vmul.f32 %v9523_v32, %v11314_v17  ;;  %v4034_v63 = vrot.slane %v9523_v32, 1 }
0x1723   : > { %v4178_v26 = vpop.permute.xlu0 %4177 }
0x1724   : > { %v4180_v27 = vmul.f32 %v4178_v26, %v4174_v29  ;;  %v11496_v29 = vld [vmem:[#allocation15 + $0x18] sm:$0xff]  ;;  %v11499_v26 = vld [vmem:[#allocation15 + $0x10] sm:$0xff] }
0x1726   : > { %4181 = vst.msk [vmem:[#allocation5 + $0x7] sm:$0x1] %vm1803_vm6, %v4180_v27  ;;  %8965 = vmatmul.mubr.msk.f32.vlgmr.msra.gmra.mxu1 %vm1140_vm5, %v4180_v27 }
0x1727   : > { %v4021_v30 = vpop.permute.xlu1 %4020  ;;  %4687 = vmatprep.mubr.f32.mxu1 %v10158_v22  ;;  %4640 = vmatpush1.msra.mxu1 %v11464_v52 }
0x1728   : > { %v4022_v31 = vrot.slane %v4021_v30, 1  ;;  %4641 = vmatprep.subr.mxu1 %v11466_v6 }
0x1729   : > { %4642 = vmatpush1.msra.mxu1 %v11469_v58 }
0x172a   : > { %9524 = vtanh.f32 %v4022_v31  ;;  %4643 = vmatprep.subr.mxu1 %v11472_v3  ;;  %v11508_v31 = vld [vmem:[#allocation15 + $0x8] sm:$0xff] }
0x172b   : > { %4644 = vmatpush1.msra.mxu1 %v11475_v60 }
0x172c   : > { %4645 = vmatprep.subr.mxu1 %v11478_v62 }
0x172d   : > { %4646 = vmatpush1.msra.mxu1 %v11481_v18 }
0x172e   : > { %4647 = vmatprep.subr.mxu1 %v11484_v1 }
0x172f   : > { %4648 = vmatpush1.msra.mxu1 %v11487_v23 }
0x1730   : > { %4649 = vmatprep.subr.mxu1 %v11490_v25 }
0x1731   : > { %4650 = vmatpush1.msra.mxu1 %v11493_v16 }
0x1732   : > { %4651 = vmatprep.subr.mxu1 %v11496_v29 }
0x1733   : > { %4652 = vmatpush1.msra.mxu1 %v11499_v26 }
0x1734   : > { %4653 = vmatprep.subr.mxu1 %v11508_v31 }
0x1737   : > { %v9525_v40 = vpop.eup %9524 }
0x1738   : > { %v4026_v50 = vmul.f32 %v9525_v40, %v9523_v32  ;;  %v11511_v32 = vld [vmem:[#allocation15] sm:$0xff] }
0x1739   : > { %4654 = vmatpush1.msra.mxu1 %v11511_v32 }
0x173a   : > { %4028 = vrot.lane.b32.xlu1 %v4026_v50, %s10160_s10  ;;  %4919 = vmatprep.subr.mxu1 %v11462_v44 }
0x17ac   : > { %v4029_v14 = vpop.permute.xlu1 %4028 }
0x17ad   : > { %v11422_v19 = vadd.f32 %v4029_v14, %v4025_v20 }
0x17af   : > { %9526 = vtanh.f32 %v11422_v19 }
0x17bc   : > { %v9527_v17 = vpop.eup %9526 }
0x17bd   : > { %4037 = vrot.lane.b32.xlu1 %v9527_v17, %s10160_s10 }
0x17e6   : > { %v4409_v41 = vpop.f32.mrf.mxu1 }
0x17e8   : > { %v4411_v43 = vpop.f32.mrf.mxu1 }
0x17e9   : > { %v4416_v46 = vcombine.low %v4409_v41, %v4411_v43  ;;  %v4183_v41 = vld [vmem:[#allocation2 + $0x11] ss:$8 sm:$0x3] }
0x17eb   : > { %v4423_v49 = vrot.slane %v4416_v46, %v10779_v45 }
0x17ed   : > { %v4430_v51 = vrot.slane %v4423_v49, %v10779_v45 }
0x17ef   : > { %v4432_v61 = vadd.f32 %v4430_v51, %v4323_v53 }
0x17f1   : > { %4440 = vrot.lane.b32.xlu0 %v4432_v61, %s10160_s10  ;;  %v8966_v55 = vmul.f32 -1.442695, %v4432_v61 }
0x17f3   : > { %9528 = vpow2.f32 %v8966_v55 }
0x1800   : > { %v9529_v57 = vpop.eup %9528 }
0x1801   : > { %v4436_v59 = vadd.f32 1.0, %v9529_v57 }
0x1803   : > { %9530 = vrcp.f32 %v4436_v59 }
0x1810   : > { %v9531_v42 = vpop.eup %9530 }
0x1811   : > { %v4445_v27 = vmul.f32 %v9531_v42, %v11326_v12  ;;  %v4454_v51 = vrot.slane %v9531_v42, 1 }
0x182f   : > { %v4038_v9 = vpop.permute.xlu1 %4037 }
0x1830   : > { %v4040_v10 = vmul.f32 %v4038_v9, %v4034_v63 }
0x1832   : > { %4041 = vst.msk [vmem:[#allocation4 + $0x8] sm:$0x1] %vm1803_vm6, %v4040_v10  ;;  %8963 = vmatmul.mubr.msk.f32.vlgmr.msra.gmra.mxu0 %vm1140_vm5, %v4040_v10 }
0x1833   : > { %4500 = vmatpush1.msra.mxu0 %v11345_v0  ;;  %4547 = vmatprep.mubr.f32.mxu0 %v10158_v22 }
0x1834   : > { %4501 = vmatprep.subr.mxu0 %v11350_v5 }
0x1835   : > { %4502 = vmatpush1.msra.mxu0 %v11356_v7 }
0x1836   : > { %4503 = vmatprep.subr.mxu0 %v11362_v33 }
0x1837   : > { %4504 = vmatpush1.msra.mxu0 %v11368_v56 }
0x1838   : > { %4505 = vmatprep.subr.mxu0 %v11374_v35 }
0x1839   : > { %4506 = vmatpush1.msra.mxu0 %v11380_v34 }
0x183a   : > { %4507 = vmatprep.subr.mxu0 %v11386_v36 }
0x183b   : > { %4508 = vmatpush1.msra.mxu0 %v11392_v24 }
0x183c   : > { %4509 = vmatprep.subr.mxu0 %v11398_v37 }
0x183d   : > { %4510 = vmatpush1.msra.mxu0 %v11404_v38 }
0x183e   : > { %4511 = vmatprep.subr.mxu0 %v11410_v48 }
0x183f   : > { %4512 = vmatpush1.msra.mxu0 %v11416_v13 }
0x1840   : > { %4513 = vmatprep.subr.mxu0 %v11428_v15 }
0x1841   : > { %4514 = vmatpush1.msra.mxu0 %v11434_v39 }
0x1842   : > { %4779 = vmatprep.subr.mxu0 %v11340_v54 }
0x1863   : > { %v4441_v2 = vpop.permute.xlu0 %4440 }
0x1864   : > { %v4442_v4 = vrot.slane %v4441_v2, 1 }
0x1866   : > { %9532 = vtanh.f32 %v4442_v4 }
0x1873   : > { %v9533_v21 = vpop.eup %9532 }
0x1874   : > { %v4446_v47 = vmul.f32 %v9533_v21, %v9531_v42 }
0x1876   : > { %4448 = vrot.lane.b32.xlu0 %v4446_v47, %s10160_s10 }
0x18e8   : > { %v4449_v28 = vpop.permute.xlu0 %4448 }
0x18e9   : > { %v11505_v30 = vadd.f32 %v4449_v28, %v4445_v27 }
0x18eb   : > { %9534 = vtanh.f32 %v11505_v30 }
0x18f2   : > { %v4269_v40 = vpop.f32.mrf.mxu0 }
0x18f4   : > { %v4271_v50 = vpop.f32.mrf.mxu0 }
0x18f5   : > { %v4276_v20 = vcombine.low %v4269_v40, %v4271_v50 }
0x18f7   : > { %v4283_v12 = vrot.slane %v4276_v20, %v10779_v45  ;;  %v4603_v20 = vld [vmem:[#allocation3 + $0x5] ss:$8 sm:$0x3] }
0x18f8   : > { %v9535_v14 = vpop.eup %9534 }
0x18f9   : > { %v4290_v17 = vrot.slane %v4283_v12, %v10779_v45  ;;  %4457 = vrot.lane.b32.xlu0 %v9535_v14, %s10160_s10 }
0x18fb   : > { %v4292_v43 = vadd.f32 %v4290_v17, %v4183_v41 }
0x18fd   : > { %4300 = vrot.lane.b32.xlu1 %v4292_v43, %s10160_s10  ;;  %v8964_v46 = vmul.f32 -1.442695, %v4292_v43 }
0x18ff   : > { %9536 = vpow2.f32 %v8964_v46 }
0x190c   : > { %v9537_v49 = vpop.eup %9536 }
0x190d   : > { %v4296_v63 = vadd.f32 1.0, %v9537_v49 }
0x190f   : > { %9538 = vrcp.f32 %v4296_v63 }
0x191c   : > { %v9539_v55 = vpop.eup %9538 }
0x191d   : > { %v4305_v2 = vmul.f32 %v9539_v55, %v11422_v19  ;;  %v4314_v19 = vrot.slane %v9539_v55, 1 }
0x196b   : > { %v4458_v53 = vpop.permute.xlu0 %4457 }
0x196c   : > { %v4460_v61 = vmul.f32 %v4458_v53, %v4454_v51 }
0x196e   : > { %4461 = vst.msk [vmem:[#allocation5 + $0x6] sm:$0x1] %vm1803_vm6, %v4460_v61  ;;  %8969 = vmatmul.mubr.msk.f32.vlgmr.msra.gmra.mxu1 %vm1140_vm5, %v4460_v61 }
0x196f   : > { %v4301_v9 = vpop.permute.xlu1 %4300  ;;  %4920 = vmatpush1.msra.mxu1 %v11464_v52  ;;  %4967 = vmatprep.mubr.f32.mxu1 %v10158_v22 }
0x1970   : > { %v4302_v10 = vrot.slane %v4301_v9, 1  ;;  %4921 = vmatprep.subr.mxu1 %v11466_v6 }
0x1971   : > { %4922 = vmatpush1.msra.mxu1 %v11469_v58 }
0x1972   : > { %9540 = vtanh.f32 %v4302_v10  ;;  %4923 = vmatprep.subr.mxu1 %v11472_v3 }
0x1973   : > { %4924 = vmatpush1.msra.mxu1 %v11475_v60 }
0x1974   : > { %4925 = vmatprep.subr.mxu1 %v11478_v62 }
0x1975   : > { %4926 = vmatpush1.msra.mxu1 %v11481_v18 }
0x1976   : > { %4927 = vmatprep.subr.mxu1 %v11484_v1 }
0x1977   : > { %4928 = vmatpush1.msra.mxu1 %v11487_v23 }
0x1978   : > { %4929 = vmatprep.subr.mxu1 %v11490_v25 }
0x1979   : > { %4930 = vmatpush1.msra.mxu1 %v11493_v16 }
0x197a   : > { %4931 = vmatprep.subr.mxu1 %v11496_v29 }
0x197b   : > { %4932 = vmatpush1.msra.mxu1 %v11499_v26 }
0x197c   : > { %4933 = vmatprep.subr.mxu1 %v11508_v31 }
0x197d   : > { %4934 = vmatpush1.msra.mxu1 %v11511_v32 }
0x197e   : > { %5199 = vmatprep.subr.mxu1 %v11462_v44 }
0x197f   : > { %v9541_v57 = vpop.eup %9540 }
0x1980   : > { %v4306_v59 = vmul.f32 %v9541_v57, %v9539_v55 }
0x1982   : > { %4308 = vrot.lane.b32.xlu1 %v4306_v59, %s10160_s10 }
0x19f4   : > { %v4309_v4 = vpop.permute.xlu1 %4308 }
0x19f5   : > { %v11540_v42 = vadd.f32 %v4309_v4, %v4305_v2 }
0x19f7   : > { %9542 = vtanh.f32 %v11540_v42 }
0x1a04   : > { %v9543_v21 = vpop.eup %9542 }
0x1a05   : > { %4317 = vrot.lane.b32.xlu1 %v9543_v21, %s10160_s10 }
0x1a2e   : > { %v4689_v47 = vpop.f32.mrf.mxu1 }
0x1a30   : > { %v4691_v27 = vpop.f32.mrf.mxu1 }
0x1a31   : > { %v4696_v28 = vcombine.low %v4689_v47, %v4691_v27  ;;  %v4463_v27 = vld [vmem:[#allocation2 + $0x12] ss:$8 sm:$0x3] }
0x1a33   : > { %v4703_v40 = vrot.slane %v4696_v28, %v10779_v45 }
0x1a35   : > { %v4710_v50 = vrot.slane %v4703_v40, %v10779_v45 }
0x1a37   : > { %v4712_v12 = vadd.f32 %v4710_v50, %v4603_v20 }
0x1a39   : > { %4720 = vrot.lane.b32.xlu0 %v4712_v12, %s10160_s10  ;;  %v8970_v41 = vmul.f32 -1.442695, %v4712_v12 }
0x1a3b   : > { %9544 = vpow2.f32 %v8970_v41 }
0x1a48   : > { %v9545_v43 = vpop.eup %9544 }
0x1a49   : > { %v4716_v46 = vadd.f32 1.0, %v9545_v43 }
0x1a4b   : > { %9546 = vrcp.f32 %v4716_v46 }
0x1a58   : > { %v9547_v53 = vpop.eup %9546 }
0x1a59   : > { %v4725_v9 = vmul.f32 %v9547_v53, %v11505_v30  ;;  %v4734_v50 = vrot.slane %v9547_v53, 1 }
0x1a77   : > { %v4318_v14 = vpop.permute.xlu1 %4317 }
0x1a78   : > { %v4320_v17 = vmul.f32 %v4318_v14, %v4314_v19 }
0x1a7a   : > { %4321 = vst.msk [vmem:[#allocation4 + $0x9] sm:$0x1] %vm1803_vm6, %v4320_v17  ;;  %8967 = vmatmul.mubr.msk.f32.vlgmr.msra.gmra.mxu0 %vm1140_vm5, %v4320_v17 }
0x1a7b   : > { %4780 = vmatpush1.msra.mxu0 %v11345_v0  ;;  %4827 = vmatprep.mubr.f32.mxu0 %v10158_v22 }
0x1a7c   : > { %4781 = vmatprep.subr.mxu0 %v11350_v5 }
0x1a7d   : > { %4782 = vmatpush1.msra.mxu0 %v11356_v7 }
0x1a7e   : > { %4783 = vmatprep.subr.mxu0 %v11362_v33 }
0x1a7f   : > { %4784 = vmatpush1.msra.mxu0 %v11368_v56 }
0x1a80   : > { %4785 = vmatprep.subr.mxu0 %v11374_v35 }
0x1a81   : > { %4786 = vmatpush1.msra.mxu0 %v11380_v34 }
0x1a82   : > { %4787 = vmatprep.subr.mxu0 %v11386_v36 }
0x1a83   : > { %4788 = vmatpush1.msra.mxu0 %v11392_v24 }
0x1a84   : > { %4789 = vmatprep.subr.mxu0 %v11398_v37 }
0x1a85   : > { %4790 = vmatpush1.msra.mxu0 %v11404_v38 }
0x1a86   : > { %4791 = vmatprep.subr.mxu0 %v11410_v48 }
0x1a87   : > { %4792 = vmatpush1.msra.mxu0 %v11416_v13 }
0x1a88   : > { %4793 = vmatprep.subr.mxu0 %v11428_v15 }
0x1a89   : > { %4794 = vmatpush1.msra.mxu0 %v11434_v39 }
0x1a8a   : > { %5059 = vmatprep.subr.mxu0 %v11340_v54 }
0x1aab   : > { %v4721_v49 = vpop.permute.xlu0 %4720 }
0x1aac   : > { %v4722_v51 = vrot.slane %v4721_v49, 1 }
0x1aae   : > { %9548 = vtanh.f32 %v4722_v51 }
0x1abb   : > { %v9549_v61 = vpop.eup %9548 }
0x1abc   : > { %v4726_v63 = vmul.f32 %v9549_v61, %v9547_v53 }
0x1abe   : > { %4728 = vrot.lane.b32.xlu0 %v4726_v63, %s10160_s10 }
0x1b30   : > { %v4729_v10 = vpop.permute.xlu0 %4728 }
0x1b31   : > { %v11568_v55 = vadd.f32 %v4729_v10, %v4725_v9 }
0x1b33   : > { %9550 = vtanh.f32 %v11568_v55 }
0x1b3a   : > { %v4549_v57 = vpop.f32.mrf.mxu0 }
0x1b3c   : > { %v4551_v59 = vpop.f32.mrf.mxu0 }
0x1b3d   : > { %v4556_v2 = vcombine.low %v4549_v57, %v4551_v59 }
0x1b3f   : > { %v4563_v4 = vrot.slane %v4556_v2, %v10779_v45  ;;  %v4883_v2 = vld [vmem:[#allocation3 + $0x4] ss:$8 sm:$0x3] }
0x1b40   : > { %v9551_v21 = vpop.eup %9550 }
0x1b41   : > { %v4570_v47 = vrot.slane %v4563_v4, %v10779_v45  ;;  %4737 = vrot.lane.b32.xlu0 %v9551_v21, %s10160_s10 }
0x1b43   : > { %v4572_v28 = vadd.f32 %v4570_v47, %v4463_v27 }
0x1b45   : > { %4580 = vrot.lane.b32.xlu1 %v4572_v28, %s10160_s10  ;;  %v8968_v30 = vmul.f32 -1.442695, %v4572_v28 }
0x1b47   : > { %9552 = vpow2.f32 %v8968_v30 }
0x1b54   : > { %v9553_v40 = vpop.eup %9552 }
0x1b55   : > { %v4576_v19 = vadd.f32 1.0, %v9553_v40 }
0x1b57   : > { %9554 = vrcp.f32 %v4576_v19 }
0x1b64   : > { %v9555_v41 = vpop.eup %9554 }
0x1b65   : > { %v4585_v49 = vmul.f32 %v9555_v41, %v11540_v42  ;;  %v4594_v42 = vrot.slane %v9555_v41, 1 }
0x1bb3   : > { %v4738_v20 = vpop.permute.xlu0 %4737 }
0x1bb4   : > { %v4740_v12 = vmul.f32 %v4738_v20, %v4734_v50 }
0x1bb6   : > { %4741 = vst.msk [vmem:[#allocation5 + $0x5] sm:$0x1] %vm1803_vm6, %v4740_v12  ;;  %8973 = vmatmul.mubr.msk.f32.vlgmr.msra.gmra.mxu1 %vm1140_vm5, %v4740_v12 }
0x1bb7   : > { %v4581_v14 = vpop.permute.xlu1 %4580  ;;  %5200 = vmatpush1.msra.mxu1 %v11464_v52  ;;  %5247 = vmatprep.mubr.f32.mxu1 %v10158_v22 }
0x1bb8   : > { %v4582_v17 = vrot.slane %v4581_v14, 1  ;;  %5201 = vmatprep.subr.mxu1 %v11466_v6 }
0x1bb9   : > { %5202 = vmatpush1.msra.mxu1 %v11469_v58 }
0x1bba   : > { %9556 = vtanh.f32 %v4582_v17  ;;  %5203 = vmatprep.subr.mxu1 %v11472_v3 }
0x1bbb   : > { %5204 = vmatpush1.msra.mxu1 %v11475_v60 }
0x1bbc   : > { %5205 = vmatprep.subr.mxu1 %v11478_v62 }
0x1bbd   : > { %5206 = vmatpush1.msra.mxu1 %v11481_v18 }
0x1bbe   : > { %5207 = vmatprep.subr.mxu1 %v11484_v1 }
0x1bbf   : > { %5208 = vmatpush1.msra.mxu1 %v11487_v23 }
0x1bc0   : > { %5209 = vmatprep.subr.mxu1 %v11490_v25 }
0x1bc1   : > { %5210 = vmatpush1.msra.mxu1 %v11493_v16 }
0x1bc2   : > { %5211 = vmatprep.subr.mxu1 %v11496_v29 }
0x1bc3   : > { %5212 = vmatpush1.msra.mxu1 %v11499_v26 }
0x1bc4   : > { %5213 = vmatprep.subr.mxu1 %v11508_v31 }
0x1bc5   : > { %5214 = vmatpush1.msra.mxu1 %v11511_v32 }
0x1bc6   : > { %5479 = vmatprep.subr.mxu1 %v11462_v44 }
0x1bc7   : > { %v9557_v43 = vpop.eup %9556 }
0x1bc8   : > { %v4586_v46 = vmul.f32 %v9557_v43, %v9555_v41 }
0x1bca   : > { %4588 = vrot.lane.b32.xlu1 %v4586_v46, %s10160_s10 }
0x1c3c   : > { %v4589_v51 = vpop.permute.xlu1 %4588 }
0x1c3d   : > { %v11596_v53 = vadd.f32 %v4589_v51, %v4585_v49 }
0x1c3f   : > { %9558 = vtanh.f32 %v11596_v53 }
0x1c4c   : > { %v9559_v61 = vpop.eup %9558 }
0x1c4d   : > { %4597 = vrot.lane.b32.xlu1 %v9559_v61, %s10160_s10 }
0x1c76   : > { %v4969_v63 = vpop.f32.mrf.mxu1 }
0x1c78   : > { %v4971_v9 = vpop.f32.mrf.mxu1 }
0x1c79   : > { %v4976_v10 = vcombine.low %v4969_v63, %v4971_v9  ;;  %v4743_v63 = vld [vmem:[#allocation2 + $0x13] ss:$8 sm:$0x3] }
0x1c7b   : > { %v4983_v57 = vrot.slane %v4976_v10, %v10779_v45 }
0x1c7d   : > { %v4990_v59 = vrot.slane %v4983_v57, %v10779_v45 }
0x1c7f   : > { %v4992_v4 = vadd.f32 %v4990_v59, %v4883_v2 }
0x1c81   : > { %5000 = vrot.lane.b32.xlu0 %v4992_v4, %s10160_s10  ;;  %v8974_v27 = vmul.f32 -1.442695, %v4992_v4 }
0x1c83   : > { %9560 = vpow2.f32 %v8974_v27 }
0x1c90   : > { %v9561_v28 = vpop.eup %9560 }
0x1c91   : > { %v4996_v30 = vadd.f32 1.0, %v9561_v28 }
0x1c93   : > { %9562 = vrcp.f32 %v4996_v30 }
0x1ca0   : > { %v9563_v20 = vpop.eup %9562 }
0x1ca1   : > { %v5005_v14 = vmul.f32 %v9563_v20, %v11568_v55  ;;  %v5014_v57 = vrot.slane %v9563_v20, 1 }
0x1cbf   : > { %v4598_v21 = vpop.permute.xlu1 %4597 }
0x1cc0   : > { %v4600_v47 = vmul.f32 %v4598_v21, %v4594_v42 }
0x1cc2   : > { %4601 = vst.msk [vmem:[#allocation4 + $0xa] sm:$0x1] %vm1803_vm6, %v4600_v47  ;;  %8971 = vmatmul.mubr.msk.f32.vlgmr.msra.gmra.mxu0 %vm1140_vm5, %v4600_v47 }
0x1cc3   : > { %5060 = vmatpush1.msra.mxu0 %v11345_v0  ;;  %5107 = vmatprep.mubr.f32.mxu0 %v10158_v22 }
0x1cc4   : > { %5061 = vmatprep.subr.mxu0 %v11350_v5 }
0x1cc5   : > { %5062 = vmatpush1.msra.mxu0 %v11356_v7 }
0x1cc6   : > { %5063 = vmatprep.subr.mxu0 %v11362_v33 }
0x1cc7   : > { %5064 = vmatpush1.msra.mxu0 %v11368_v56 }
0x1cc8   : > { %5065 = vmatprep.subr.mxu0 %v11374_v35 }
0x1cc9   : > { %5066 = vmatpush1.msra.mxu0 %v11380_v34 }
0x1cca   : > { %5067 = vmatprep.subr.mxu0 %v11386_v36 }
0x1ccb   : > { %5068 = vmatpush1.msra.mxu0 %v11392_v24 }
0x1ccc   : > { %5069 = vmatprep.subr.mxu0 %v11398_v37 }
0x1ccd   : > { %5070 = vmatpush1.msra.mxu0 %v11404_v38 }
0x1cce   : > { %5071 = vmatprep.subr.mxu0 %v11410_v48 }
0x1ccf   : > { %5072 = vmatpush1.msra.mxu0 %v11416_v13 }
0x1cd0   : > { %5073 = vmatprep.subr.mxu0 %v11428_v15 }
0x1cd1   : > { %5074 = vmatpush1.msra.mxu0 %v11434_v39 }
0x1cd2   : > { %5339 = vmatprep.subr.mxu0 %v11340_v54 }
0x1cf3   : > { %v5001_v40 = vpop.permute.xlu0 %5000 }
0x1cf4   : > { %v5002_v50 = vrot.slane %v5001_v40, 1 }
0x1cf6   : > { %9564 = vtanh.f32 %v5002_v50 }
0x1d03   : > { %v9565_v12 = vpop.eup %9564 }
0x1d04   : > { %v5006_v19 = vmul.f32 %v9565_v12, %v9563_v20 }
0x1d06   : > { %5008 = vrot.lane.b32.xlu0 %v5006_v19, %s10160_s10 }
0x1d78   : > { %v5009_v17 = vpop.permute.xlu0 %5008 }
0x1d79   : > { %v11624_v41 = vadd.f32 %v5009_v17, %v5005_v14 }
0x1d7b   : > { %9566 = vtanh.f32 %v11624_v41 }
0x1d82   : > { %v4829_v54 = vpop.f32.mrf.mxu0 }
0x1d84   : > { %v4831_v43 = vpop.f32.mrf.mxu0 }
0x1d85   : > { %v4836_v46 = vcombine.low %v4829_v54, %v4831_v43  ;;  %v5163_v54 = vld [vmem:[#allocation3 + $0x3] ss:$8 sm:$0x3] }
0x1d87   : > { %v4843_v49 = vrot.slane %v4836_v46, %v10779_v45 }
0x1d88   : > { %v9567_v51 = vpop.eup %9566 }
0x1d89   : > { %v4850_v61 = vrot.slane %v4843_v49, %v10779_v45  ;;  %5017 = vrot.lane.b32.xlu0 %v9567_v51, %s10160_s10 }
0x1d8b   : > { %v4852_v9 = vadd.f32 %v4850_v61, %v4743_v63  ;;  %v5023_v63 = vld [vmem:[#allocation2 + $0x14] ss:$8 sm:$0x3] }
0x1d8d   : > { %4860 = vrot.lane.b32.xlu1 %v4852_v9, %s10160_s10  ;;  %v8972_v55 = vmul.f32 -1.442695, %v4852_v9 }
0x1d8f   : > { %9568 = vpow2.f32 %v8972_v55 }
0x1d9c   : > { %v9569_v10 = vpop.eup %9568 }
0x1d9d   : > { %v4856_v4 = vadd.f32 1.0, %v9569_v10 }
0x1d9f   : > { %9570 = vrcp.f32 %v4856_v4 }
0x1dac   : > { %v9571_v47 = vpop.eup %9570 }
0x1dad   : > { %v4865_v30 = vmul.f32 %v9571_v47, %v11596_v53  ;;  %v4874_v53 = vrot.slane %v9571_v47, 1 }
0x1dfb   : > { %v5018_v59 = vpop.permute.xlu0 %5017 }
0x1dfc   : > { %v5020_v2 = vmul.f32 %v5018_v59, %v5014_v57 }
0x1dfe   : > { %5021 = vst.msk [vmem:[#allocation5 + $0x4] sm:$0x1] %vm1803_vm6, %v5020_v2  ;;  %8977 = vmatmul.mubr.msk.f32.vlgmr.msra.gmra.mxu1 %vm1140_vm5, %v5020_v2 }
0x1dff   : > { %v4861_v42 = vpop.permute.xlu1 %4860  ;;  %5480 = vmatpush1.msra.mxu1 %v11464_v52  ;;  %5527 = vmatprep.mubr.f32.mxu1 %v10158_v22 }
0x1e00   : > { %v4862_v21 = vrot.slane %v4861_v42, 1  ;;  %5481 = vmatprep.subr.mxu1 %v11466_v6 }
0x1e01   : > { %5482 = vmatpush1.msra.mxu1 %v11469_v58 }
0x1e02   : > { %9572 = vtanh.f32 %v4862_v21  ;;  %5483 = vmatprep.subr.mxu1 %v11472_v3 }
0x1e03   : > { %5484 = vmatpush1.msra.mxu1 %v11475_v60 }
0x1e04   : > { %5485 = vmatprep.subr.mxu1 %v11478_v62 }
0x1e05   : > { %5486 = vmatpush1.msra.mxu1 %v11481_v18 }
0x1e06   : > { %5487 = vmatprep.subr.mxu1 %v11484_v1 }
0x1e07   : > { %5488 = vmatpush1.msra.mxu1 %v11487_v23 }
0x1e08   : > { %5489 = vmatprep.subr.mxu1 %v11490_v25 }
0x1e09   : > { %5490 = vmatpush1.msra.mxu1 %v11493_v16 }
0x1e0a   : > { %5491 = vmatprep.subr.mxu1 %v11496_v29 }
0x1e0b   : > { %5492 = vmatpush1.msra.mxu1 %v11499_v26 }
0x1e0c   : > { %5493 = vmatprep.subr.mxu1 %v11508_v31 }
0x1e0d   : > { %5494 = vmatpush1.msra.mxu1 %v11511_v32 }
0x1e0e   : > { %5759 = vmatprep.subr.mxu1 %v11462_v44 }
0x1e0f   : > { %v9573_v27 = vpop.eup %9572 }
0x1e10   : > { %v4866_v28 = vmul.f32 %v9573_v27, %v9571_v47 }
0x1e12   : > { %4868 = vrot.lane.b32.xlu1 %v4866_v28, %s10160_s10 }
0x1e84   : > { %v4869_v40 = vpop.permute.xlu1 %4868 }
0x1e85   : > { %v11652_v50 = vadd.f32 %v4869_v40, %v4865_v30 }
0x1e87   : > { %9574 = vtanh.f32 %v11652_v50 }
0x1e94   : > { %v9575_v20 = vpop.eup %9574 }
0x1e95   : > { %4877 = vrot.lane.b32.xlu1 %v9575_v20, %s10160_s10 }
0x1ebe   : > { %v5249_v12 = vpop.f32.mrf.mxu1 }
0x1ec0   : > { %v5251_v19 = vpop.f32.mrf.mxu1 }
0x1ec1   : > { %v5256_v14 = vcombine.low %v5249_v12, %v5251_v19 }
0x1ec3   : > { %v5263_v17 = vrot.slane %v5256_v14, %v10779_v45 }
0x1ec5   : > { %v5270_v44 = vrot.slane %v5263_v17, %v10779_v45 }
0x1ec7   : > { %v5272_v43 = vadd.f32 %v5270_v44, %v5163_v54 }
0x1ec9   : > { %5280 = vrot.lane.b32.xlu0 %v5272_v43, %s10160_s10 }
0x1f07   : > { %v4878_v46 = vpop.permute.xlu1 %4877 }
0x1f08   : > { %v4880_v49 = vmul.f32 %v4878_v46, %v4874_v53 }
0x1f0a   : > { %4881 = vst.msk [vmem:[#allocation4 + $0xb] sm:$0x1] %vm1803_vm6, %v4880_v49  ;;  %8975 = vmatmul.mubr.msk.f32.vlgmr.msra.gmra.mxu0 %vm1140_vm5, %v4880_v49 }
0x1f0b   : > { %5340 = vmatpush1.msra.mxu0 %v11345_v0  ;;  %5387 = vmatprep.mubr.f32.mxu0 %v10158_v22  ;;  %v8978_v0 = vmul.f32 -1.442695, %v5272_v43 }
0x1f0c   : > { %5341 = vmatprep.subr.mxu0 %v11350_v5 }
0x1f0d   : > { %5342 = vmatpush1.msra.mxu0 %v11356_v7  ;;  %9576 = vpow2.f32 %v8978_v0 }
0x1f0e   : > { %5343 = vmatprep.subr.mxu0 %v11362_v33 }
0x1f0f   : > { %5344 = vmatpush1.msra.mxu0 %v11368_v56 }
0x1f10   : > { %5345 = vmatprep.subr.mxu0 %v11374_v35 }
0x1f11   : > { %5346 = vmatpush1.msra.mxu0 %v11380_v34 }
0x1f12   : > { %5347 = vmatprep.subr.mxu0 %v11386_v36 }
0x1f13   : > { %5348 = vmatpush1.msra.mxu0 %v11392_v24 }
0x1f14   : > { %5349 = vmatprep.subr.mxu0 %v11398_v37 }
0x1f15   : > { %5350 = vmatpush1.msra.mxu0 %v11404_v38 }
0x1f16   : > { %5351 = vmatprep.subr.mxu0 %v11410_v48 }
0x1f17   : > { %5352 = vmatpush1.msra.mxu0 %v11416_v13 }
0x1f18   : > { %5353 = vmatprep.subr.mxu0 %v11428_v15 }
0x1f19   : > { %5354 = vmatpush1.msra.mxu0 %v11434_v39 }
0x1f1a   : > { %v9577_v5 = vpop.eup %9576 }
0x1f1b   : > { %v5276_v7 = vadd.f32 1.0, %v9577_v5  ;;  %v5303_v5 = vld [vmem:[#allocation2 + $0x15] ss:$8 sm:$0x3] }
0x1f1d   : > { %9578 = vrcp.f32 %v5276_v7 }
0x1f2a   : > { %v9579_v35 = vpop.eup %9578 }
0x1f2b   : > { %v5285_v24 = vmul.f32 %v9579_v35, %v11624_v41  ;;  %v5294_v10 = vrot.slane %v9579_v35, 1 }
0x1f3b   : > { %v5281_v33 = vpop.permute.xlu0 %5280 }
0x1f3c   : > { %v5282_v56 = vrot.slane %v5281_v33, 1 }
0x1f3e   : > { %9580 = vtanh.f32 %v5282_v56 }
0x1f4b   : > { %v9581_v34 = vpop.eup %9580 }
0x1f4c   : > { %v5286_v36 = vmul.f32 %v9581_v34, %v9579_v35 }
0x1f4e   : > { %5288 = vrot.lane.b32.xlu0 %v5286_v36, %s10160_s10 }
0x1fc0   : > { %v5289_v37 = vpop.permute.xlu0 %5288 }
0x1fc1   : > { %v11679_v38 = vadd.f32 %v5289_v37, %v5285_v24 }
0x1fc3   : > { %9582 = vtanh.f32 %v11679_v38 }
0x1fca   : > { %v5109_v48 = vpop.f32.mrf.mxu0 }
0x1fcc   : > { %v5111_v13 = vpop.f32.mrf.mxu0 }
0x1fcd   : > { %v5116_v15 = vcombine.low %v5109_v48, %v5111_v13 }
0x1fcf   : > { %v5123_v39 = vrot.slane %v5116_v15, %v10779_v45 }
0x1fd0   : > { %v9583_v51 = vpop.eup %9582 }
0x1fd1   : > { %v5130_v61 = vrot.slane %v5123_v39, %v10779_v45  ;;  %5297 = vrot.lane.b32.xlu0 %v9583_v51, %s10160_s10  ;;  %v5599_v39 = vld [vmem:[%s12420_s8 + $0x78] sm:$0xff]  ;;  %v5598_v51 = vld [vmem:[%s12420_s8 + $0x70] sm:$0xff] }
0x1fd2   : > { %5619 = vmatprep.subr.mxu0 %v5599_v39 }
0x1fd3   : > { %v5132_v9 = vadd.f32 %v5130_v61, %v5023_v63  ;;  %v5597_v61 = vld [vmem:[%s12420_s8 + $0x68] sm:$0xff]  ;;  %v5596_v63 = vld [vmem:[%s12420_s8 + $0x60] sm:$0xff] }
0x1fd5   : > { %5140 = vrot.lane.b32.xlu1 %v5132_v9, %s10160_s10  ;;  %v8976_v41 = vmul.f32 -1.442695, %v5132_v9  ;;  %v5595_v9 = vld [vmem:[%s12420_s8 + $0x58] sm:$0xff] }
0x1fd7   : > { %9584 = vpow2.f32 %v8976_v41  ;;  %v5594_v41 = vld [vmem:[%s12420_s8 + $0x50] sm:$0xff] }
0x1fe4   : > { %v9585_v55 = vpop.eup %9584 }
0x1fe5   : > { %v5136_v2 = vadd.f32 1.0, %v9585_v55  ;;  %v5593_v55 = vld [vmem:[%s12420_s8 + $0x48] sm:$0xff] }
0x1fe7   : > { %9586 = vrcp.f32 %v5136_v2  ;;  %v5589_v2 = vld [vmem:[%s12420_s8 + $0x28] sm:$0xff] }
0x2043   : > { %v5298_v57 = vpop.permute.xlu0 %5297 }
0x2044   : > { %v5300_v59 = vmul.f32 %v5298_v57, %v5294_v10  ;;  %v5592_v10 = vld [vmem:[%s12420_s8 + $0x40] sm:$0xff]  ;;  %v5591_v57 = vld [vmem:[%s12420_s8 + $0x38] sm:$0xff] }
0x2046   : > { %5301 = vst.msk [vmem:[#allocation5 + $0x3] sm:$0x1] %vm1803_vm6, %v5300_v59  ;;  %8981 = vmatmul.mubr.msk.f32.vlgmr.msra.gmra.mxu1 %vm1140_vm5, %v5300_v59  ;;  %v5590_v59 = vld [vmem:[%s12420_s8 + $0x30] sm:$0xff] }
0x2047   : > { %v5141_v4 = vpop.permute.xlu1 %5140  ;;  %5760 = vmatpush1.msra.mxu1 %v11464_v52  ;;  %5807 = vmatprep.mubr.f32.mxu1 %v10158_v22  ;;  %v9587_v52 = vpop.eup %9586 }
0x2048   : > { %v5142_v42 = vrot.slane %v5141_v4, 1  ;;  %5761 = vmatprep.subr.mxu1 %v11466_v6  ;;  %v5588_v4 = vld [vmem:[%s12420_s8 + $0x20] sm:$0xff] }
0x2049   : > { %5762 = vmatpush1.msra.mxu1 %v11469_v58 }
0x204a   : > { %9588 = vtanh.f32 %v5142_v42  ;;  %5763 = vmatprep.subr.mxu1 %v11472_v3  ;;  %v5145_v3 = vmul.f32 %v9587_v52, %v11652_v50  ;;  %v5587_v42 = vld [vmem:[%s12420_s8 + $0x18] sm:$0xff] }
0x204b   : > { %5764 = vmatpush1.msra.mxu1 %v11475_v60 }
0x204c   : > { %5765 = vmatprep.subr.mxu1 %v11478_v62 }
0x204d   : > { %5766 = vmatpush1.msra.mxu1 %v11481_v18 }
0x204e   : > { %5767 = vmatprep.subr.mxu1 %v11484_v1 }
0x204f   : > { %5768 = vmatpush1.msra.mxu1 %v11487_v23 }
0x2050   : > { %5769 = vmatprep.subr.mxu1 %v11490_v25 }
0x2051   : > { %5770 = vmatpush1.msra.mxu1 %v11493_v16 }
0x2052   : > { %5771 = vmatprep.subr.mxu1 %v11496_v29 }
0x2053   : > { %5772 = vmatpush1.msra.mxu1 %v11499_v26  ;;  %v5443_v26 = vld [vmem:[#allocation3 + $0x2] ss:$8 sm:$0x3] }
0x2054   : > { %5773 = vmatprep.subr.mxu1 %v11508_v31 }
0x2055   : > { %5774 = vmatpush1.msra.mxu1 %v11511_v32  ;;  %v5154_v32 = vrot.slane %v9587_v52, 1 }
0x2057   : > { %v9589_v6 = vpop.eup %9588 }
0x2058   : > { %v5146_v58 = vmul.f32 %v9589_v6, %v9587_v52  ;;  %v5586_v52 = vld [vmem:[%s12420_s8 + $0x10] sm:$0xff] }
0x205a   : > { %5148 = vrot.lane.b32.xlu1 %v5146_v58, %s10160_s10 }
0x20cc   : > { %v5149_v60 = vpop.permute.xlu1 %5148 }
0x20cd   : > { %v11706_v62 = vadd.f32 %v5149_v60, %v5145_v3  ;;  %v5585_v60 = vld [vmem:[%s12420_s8 + $0x8] sm:$0xff] }
0x20cf   : > { %9590 = vtanh.f32 %v11706_v62 }
0x20dc   : > { %v9591_v18 = vpop.eup %9590 }
0x20dd   : > { %5157 = vrot.lane.b32.xlu1 %v9591_v18, %s10160_s10  ;;  %v5584_v18 = vld [vmem:[%s12420_s8] sm:$0xff] }
0x2106   : > { %v5529_v1 = vpop.f32.mrf.mxu1 }
0x2108   : > { %v5531_v23 = vpop.f32.mrf.mxu1 }
0x2109   : > { %v5536_v25 = vcombine.low %v5529_v1, %v5531_v23 }
0x210b   : > { %v5543_v16 = vrot.slane %v5536_v25, %v10779_v45 }
0x210d   : > { %v5550_v29 = vrot.slane %v5543_v16, %v10779_v45 }
0x210f   : > { %v5552_v31 = vadd.f32 %v5550_v29, %v5443_v26  ;;  %v5723_v26 = vld [vmem:[#allocation3 + $0x1] ss:$8 sm:$0x3] }
0x2111   : > { %5560 = vrot.lane.b32.xlu0 %v5552_v31, %s10160_s10  ;;  %v8982_v27 = vmul.f32 -1.442695, %v5552_v31 }
0x2113   : > { %9592 = vpow2.f32 %v8982_v27 }
0x2120   : > { %v9593_v28 = vpop.eup %9592 }
0x2121   : > { %v5556_v30 = vadd.f32 1.0, %v9593_v28 }
0x2123   : > { %9594 = vrcp.f32 %v5556_v30 }
0x2130   : > { %v9595_v20 = vpop.eup %9594 }
0x2131   : > { %v5565_v14 = vmul.f32 %v9595_v20, %v11679_v38  ;;  %v5574_v35 = vrot.slane %v9595_v20, 1 }
0x214f   : > { %v5158_v21 = vpop.permute.xlu1 %5157 }
0x2150   : > { %v5160_v47 = vmul.f32 %v5158_v21, %v5154_v32 }
0x2152   : > { %5161 = vst.msk [vmem:[#allocation4 + $0xc] sm:$0x1] %vm1803_vm6, %v5160_v47  ;;  %8979 = vmatmul.mubr.msk.f32.vlgmr.msra.gmra.mxu0 %vm1140_vm5, %v5160_v47 }
0x2153   : > { %5667 = vmatprep.mubr.f32.mxu0 %v10158_v22  ;;  %5620 = vmatpush1.msra.mxu0 %v5598_v51 }
0x2154   : > { %5621 = vmatprep.subr.mxu0 %v5597_v61 }
0x2155   : > { %5622 = vmatpush1.msra.mxu0 %v5596_v63 }
0x2156   : > { %5623 = vmatprep.subr.mxu0 %v5595_v9 }
0x2157   : > { %5624 = vmatpush1.msra.mxu0 %v5594_v41 }
0x2158   : > { %5625 = vmatprep.subr.mxu0 %v5593_v55 }
0x2159   : > { %5626 = vmatpush1.msra.mxu0 %v5592_v10 }
0x215a   : > { %5627 = vmatprep.subr.mxu0 %v5591_v57 }
0x215b   : > { %5628 = vmatpush1.msra.mxu0 %v5590_v59 }
0x215c   : > { %5629 = vmatprep.subr.mxu0 %v5589_v2 }
0x215d   : > { %5630 = vmatpush1.msra.mxu0 %v5588_v4 }
0x215e   : > { %5631 = vmatprep.subr.mxu0 %v5587_v42 }
0x215f   : > { %5632 = vmatpush1.msra.mxu0 %v5586_v52 }
0x2160   : > { %5633 = vmatprep.subr.mxu0 %v5585_v60 }
0x2161   : > { %5634 = vmatpush1.msra.mxu0 %v5584_v18 }
0x2162   : > { %5899 = vmatprep.subr.mxu0 %v5599_v39 }
0x2183   : > { %v5561_v40 = vpop.permute.xlu0 %5560 }
0x2184   : > { %v5562_v50 = vrot.slane %v5561_v40, 1 }
0x2186   : > { %9596 = vtanh.f32 %v5562_v50 }
0x2193   : > { %v9597_v12 = vpop.eup %9596 }
0x2194   : > { %v5566_v19 = vmul.f32 %v9597_v12, %v9595_v20 }
0x2196   : > { %5568 = vrot.lane.b32.xlu0 %v5566_v19, %s10160_s10 }
0x2208   : > { %v5569_v17 = vpop.permute.xlu0 %5568 }
0x2209   : > { %v11718_v44 = vadd.f32 %v5569_v17, %v5565_v14  ;;  %v6018_v14 = vld [vmem:[#allocation15 + $0x78] sm:$0xff]  ;;  %v6017_v17 = vld [vmem:[#allocation15 + $0x70] sm:$0xff] }
0x220a   : > { %6038 = vmatprep.subr.mxu1 %v6018_v14 }
0x220b   : > { %9598 = vtanh.f32 %v11718_v44 }
0x2212   : > { %v5389_v54 = vpop.f32.mrf.mxu0 }
0x2214   : > { %v5391_v43 = vpop.f32.mrf.mxu0 }
0x2215   : > { %v5396_v53 = vcombine.low %v5389_v54, %v5391_v43  ;;  %v6016_v54 = vld [vmem:[#allocation15 + $0x68] sm:$0xff]  ;;  %v6015_v43 = vld [vmem:[#allocation15 + $0x60] sm:$0xff] }
0x2217   : > { %v5403_v46 = vrot.slane %v5396_v53, %v10779_v45  ;;  %v6014_v53 = vld [vmem:[#allocation15 + $0x58] sm:$0xff] }
0x2218   : > { %v9599_v49 = vpop.eup %9598 }
0x2219   : > { %v5410_v0 = vrot.slane %v5403_v46, %v10779_v45  ;;  %5577 = vrot.lane.b32.xlu0 %v9599_v49, %s10160_s10  ;;  %v6013_v46 = vld [vmem:[#allocation15 + $0x50] sm:$0xff]  ;;  %v6012_v49 = vld [vmem:[#allocation15 + $0x48] sm:$0xff] }
0x221b   : > { %v5412_v7 = vadd.f32 %v5410_v0, %v5303_v5  ;;  %v6011_v0 = vld [vmem:[#allocation15 + $0x40] sm:$0xff]  ;;  %v6010_v5 = vld [vmem:[#allocation15 + $0x38] sm:$0xff] }
0x221d   : > { %5420 = vrot.lane.b32.xlu1 %v5412_v7, %s10160_s10  ;;  %v8980_v33 = vmul.f32 -1.442695, %v5412_v7  ;;  %v6009_v7 = vld [vmem:[#allocation15 + $0x30] sm:$0xff] }
0x221f   : > { %9600 = vpow2.f32 %v8980_v33  ;;  %v6008_v33 = vld [vmem:[#allocation15 + $0x28] sm:$0xff] }
0x222c   : > { %v9601_v56 = vpop.eup %9600 }
0x222d   : > { %v5416_v24 = vadd.f32 1.0, %v9601_v56  ;;  %v6007_v56 = vld [vmem:[#allocation15 + $0x20] sm:$0xff] }
0x222f   : > { %9602 = vrcp.f32 %v5416_v24 }
0x223c   : > { %v9603_v48 = vpop.eup %9602 }
0x223d   : > { %v5425_v6 = vmul.f32 %v9603_v48, %v11706_v62  ;;  %v5434_v32 = vrot.slane %v9603_v48, 1 }
0x228b   : > { %v5578_v34 = vpop.permute.xlu0 %5577 }
0x228c   : > { %v5580_v36 = vmul.f32 %v5578_v34, %v5574_v35  ;;  %v6006_v35 = vld [vmem:[#allocation15 + $0x18] sm:$0xff]  ;;  %v6005_v34 = vld [vmem:[#allocation15 + $0x10] sm:$0xff] }
0x228e   : > { %5581 = vst.msk [vmem:[#allocation5 + $0x2] sm:$0x1] %vm1803_vm6, %v5580_v36  ;;  %8985 = vmatmul.mubr.msk.f32.vlgmr.msra.gmra.mxu1 %vm1140_vm5, %v5580_v36  ;;  %v6004_v36 = vld [vmem:[#allocation15 + $0x8] sm:$0xff] }
0x228f   : > { %v5421_v37 = vpop.permute.xlu1 %5420  ;;  %6086 = vmatprep.mubr.f32.mxu1 %v10158_v22  ;;  %6039 = vmatpush1.msra.mxu1 %v6017_v17 }
0x2290   : > { %v5422_v38 = vrot.slane %v5421_v37, 1  ;;  %6040 = vmatprep.subr.mxu1 %v6016_v54 }
0x2291   : > { %6041 = vmatpush1.msra.mxu1 %v6015_v43 }
0x2292   : > { %9604 = vtanh.f32 %v5422_v38  ;;  %6042 = vmatprep.subr.mxu1 %v6014_v53 }
0x2293   : > { %6043 = vmatpush1.msra.mxu1 %v6013_v46  ;;  %v6002_v46 = vld [vmem:[#allocation3] ss:$8 sm:$0x3] }
0x2294   : > { %6044 = vmatprep.subr.mxu1 %v6012_v49 }
0x2295   : > { %6045 = vmatpush1.msra.mxu1 %v6011_v0 }
0x2296   : > { %6046 = vmatprep.subr.mxu1 %v6010_v5 }
0x2297   : > { %6047 = vmatpush1.msra.mxu1 %v6009_v7 }
0x2298   : > { %6048 = vmatprep.subr.mxu1 %v6008_v33 }
0x2299   : > { %6049 = vmatpush1.msra.mxu1 %v6007_v56 }
0x229a   : > { %6050 = vmatprep.subr.mxu1 %v6006_v35 }
0x229b   : > { %6051 = vmatpush1.msra.mxu1 %v6005_v34 }
0x229c   : > { %6052 = vmatprep.subr.mxu1 %v6004_v36 }
0x229f   : > { %v9605_v13 = vpop.eup %9604 }
0x22a0   : > { %v5426_v15 = vmul.f32 %v9605_v13, %v9603_v48  ;;  %v6003_v48 = vld [vmem:[#allocation15] sm:$0xff]  ;;  %v6160_v13 = vld [vmem:[#allocation17 + $0x78] sm:$0xff] }
0x22a1   : > { %6053 = vmatpush1.msra.mxu1 %v6003_v48  ;;  %v6176_v48 = vld [vmem:[#allocation17 + $0xf8] sm:$0xff] }
0x22a2   : > { %5428 = vrot.lane.b32.xlu1 %v5426_v15, %s10160_s10  ;;  %6282 = vmatprep.subr.mxu1 %v6160_v13  ;;  %v6175_v13 = vld [vmem:[#allocation17 + $0xf0] sm:$0xff] }
0x2314   : > { %v5429_v58 = vpop.permute.xlu1 %5428 }
0x2315   : > { %v11772_v3 = vadd.f32 %v5429_v58, %v5425_v6  ;;  %v6157_v6 = vld [vmem:[#allocation17 + $0x60] sm:$0xff] }
0x2317   : > { %9606 = vtanh.f32 %v11772_v3 }
0x2324   : > { %v9607_v1 = vpop.eup %9606 }
0x2325   : > { %5437 = vrot.lane.b32.xlu1 %v9607_v1, %s10160_s10  ;;  %v6155_v1 = vld [vmem:[#allocation17 + $0x50] sm:$0xff] }
0x234e   : > { %v5809_v62 = vpop.f32.mrf.mxu1 }
0x2350   : > { %v5811_v23 = vpop.f32.mrf.mxu1 }
0x2351   : > { %v5816_v25 = vcombine.low %v5809_v62, %v5811_v23  ;;  %v6154_v62 = vld [vmem:[#allocation17 + $0x48] sm:$0xff]  ;;  %v6153_v23 = vld [vmem:[#allocation17 + $0x40] sm:$0xff] }
0x2353   : > { %v5823_v16 = vrot.slane %v5816_v25, %v10779_v45  ;;  %v6152_v25 = vld [vmem:[#allocation17 + $0x38] sm:$0xff] }
0x2355   : > { %v5830_v29 = vrot.slane %v5823_v16, %v10779_v45  ;;  %v6151_v16 = vld [vmem:[#allocation17 + $0x30] sm:$0xff] }
0x2357   : > { %v5832_v31 = vadd.f32 %v5830_v29, %v5723_v26  ;;  %v6150_v29 = vld [vmem:[#allocation17 + $0x28] sm:$0xff]  ;;  %v6149_v26 = vld [vmem:[#allocation17 + $0x20] sm:$0xff] }
0x2359   : > { %5840 = vrot.lane.b32.xlu0 %v5832_v31, %s10160_s10  ;;  %v8986_v27 = vmul.f32 -1.442695, %v5832_v31  ;;  %v6148_v31 = vld [vmem:[#allocation17 + $0x18] sm:$0xff] }
0x235b   : > { %9608 = vpow2.f32 %v8986_v27  ;;  %v6141_v27 = vld [vmem:[#allocation4] sm:$0xff] }
0x2368   : > { %v9609_v28 = vpop.eup %9608 }
0x2369   : > { %v5836_v30 = vadd.f32 1.0, %v9609_v28 }
0x236b   : > { %9610 = vrcp.f32 %v5836_v30 }
0x2378   : > { %v9611_v20 = vpop.eup %9610 }
0x2379   : > { %v5845_v24 = vmul.f32 %v9611_v20, %v11718_v44  ;;  %v5583_v44 = vld [vmem:[#allocation2 + $0x16] ss:$8 sm:$0x3] }
0x2397   : > { %v5438_v21 = vpop.permute.xlu1 %5437 }
0x2398   : > { %v5440_v47 = vmul.f32 %v5438_v21, %v5434_v32  ;;  %v6147_v32 = vld [vmem:[#allocation17 + $0x10] sm:$0xff]  ;;  %v6146_v21 = vld [vmem:[#allocation17 + $0x8] sm:$0xff] }
0x239a   : > { %5441 = vst.msk [vmem:[#allocation4 + $0xd] sm:$0x1] %vm1803_vm6, %v5440_v47  ;;  %8983 = vmatmul.mubr.msk.f32.vlgmr.msra.gmra.mxu0 %vm1140_vm5, %v5440_v47  ;;  %v6145_v47 = vld [vmem:[#allocation17] sm:$0xff] }
0x239b   : > { %5900 = vmatpush1.msra.mxu0 %v5598_v51  ;;  %5947 = vmatprep.mubr.f32.mxu0 %v10158_v22 }
0x239c   : > { %5901 = vmatprep.subr.mxu0 %v5597_v61 }
0x239d   : > { %5902 = vmatpush1.msra.mxu0 %v5596_v63 }
0x239e   : > { %5903 = vmatprep.subr.mxu0 %v5595_v9 }
0x239f   : > { %5904 = vmatpush1.msra.mxu0 %v5594_v41 }
0x23a0   : > { %5905 = vmatprep.subr.mxu0 %v5593_v55 }
0x23a1   : > { %5906 = vmatpush1.msra.mxu0 %v5592_v10 }
0x23a2   : > { %5907 = vmatprep.subr.mxu0 %v5591_v57  ;;  %v5854_v57 = vrot.slane %v9611_v20, 1 }
0x23a3   : > { %5908 = vmatpush1.msra.mxu0 %v5590_v59 }
0x23a4   : > { %5909 = vmatprep.subr.mxu0 %v5589_v2 }
0x23a5   : > { %5910 = vmatpush1.msra.mxu0 %v5588_v4  ;;  %v6159_v4 = vld [vmem:[#allocation17 + $0x70] sm:$0xff] }
0x23a6   : > { %5911 = vmatprep.subr.mxu0 %v5587_v42 }
0x23a7   : > { %5912 = vmatpush1.msra.mxu0 %v5586_v52  ;;  %v6158_v52 = vld [vmem:[#allocation17 + $0x68] sm:$0xff] }
0x23a8   : > { %5913 = vmatprep.subr.mxu0 %v5585_v60  ;;  %v6156_v60 = vld [vmem:[#allocation17 + $0x58] sm:$0xff] }
0x23a9   : > { %5914 = vmatpush1.msra.mxu0 %v5584_v18 }
0x23aa   : > { %6199 = vmatprep.subr.mxu0 %v6176_v48 }
0x23cb   : > { %v5841_v40 = vpop.permute.xlu0 %5840 }
0x23cc   : > { %v5842_v50 = vrot.slane %v5841_v40, 1 }
0x23ce   : > { %9612 = vtanh.f32 %v5842_v50 }
0x23db   : > { %v9613_v12 = vpop.eup %9612 }
0x23dc   : > { %v5846_v19 = vmul.f32 %v9613_v12, %v9611_v20 }
0x23de   : > { %5848 = vrot.lane.b32.xlu0 %v5846_v19, %s10160_s10 }
0x2450   : > { %v5849_v37 = vpop.permute.xlu0 %5848 }
0x2451   : > { %v11790_v38 = vadd.f32 %v5849_v37, %v5845_v24 }
0x2453   : > { %9614 = vtanh.f32 %v11790_v38 }
0x245a   : > { %v5669_v15 = vpop.f32.mrf.mxu0 }
0x245c   : > { %v5671_v39 = vpop.f32.mrf.mxu0 }
0x245d   : > { %v5676_v51 = vcombine.low %v5669_v15, %v5671_v39  ;;  %v6174_v15 = vld [vmem:[#allocation17 + $0xe8] sm:$0xff]  ;;  %v6173_v39 = vld [vmem:[#allocation17 + $0xe0] sm:$0xff] }
0x245f   : > { %v5683_v61 = vrot.slane %v5676_v51, %v10779_v45  ;;  %v6172_v51 = vld [vmem:[#allocation17 + $0xd8] sm:$0xff] }
0x2460   : > { %v9615_v63 = vpop.eup %9614 }
0x2461   : > { %v5690_v9 = vrot.slane %v5683_v61, %v10779_v45  ;;  %5857 = vrot.lane.b32.xlu0 %v9615_v63, %s10160_s10  ;;  %v6171_v61 = vld [vmem:[#allocation17 + $0xd0] sm:$0xff] }
0x2463   : > { %v5692_v41 = vadd.f32 %v5690_v9, %v5583_v44 }
0x2465   : > { %5700 = vrot.lane.b32.xlu1 %v5692_v41, %s10160_s10  ;;  %v8984_v55 = vmul.f32 -1.442695, %v5692_v41  ;;  %v6170_v41 = vld [vmem:[#allocation17 + $0xc8] sm:$0xff] }
0x2467   : > { %9616 = vpow2.f32 %v8984_v55  ;;  %v6169_v55 = vld [vmem:[#allocation17 + $0xc0] sm:$0xff] }
0x2474   : > { %v9617_v10 = vpop.eup %9616 }
0x2475   : > { %v5696_v42 = vadd.f32 1.0, %v9617_v10  ;;  %v6168_v10 = vld [vmem:[#allocation17 + $0xb8] sm:$0xff] }
0x2477   : > { %9618 = vrcp.f32 %v5696_v42  ;;  %v6164_v42 = vld [vmem:[#allocation17 + $0x98] sm:$0xff] }
0x2484   : > { %v9619_v28 = vpop.eup %9618 }
0x2485   : > { %v5705_v50 = vmul.f32 %v9619_v28, %v11772_v3  ;;  %v5714_v3 = vrot.slane %v9619_v28, 1 }
0x24d3   : > { %v5858_v59 = vpop.permute.xlu0 %5857 }
0x24d4   : > { %v5860_v2 = vmul.f32 %v5858_v59, %v5854_v57  ;;  %v6167_v57 = vld [vmem:[#allocation17 + $0xb0] sm:$0xff]  ;;  %v6166_v59 = vld [vmem:[#allocation17 + $0xa8] sm:$0xff] }
0x24d6   : > { %5861 = vst.msk [vmem:[#allocation5 + $0x1] sm:$0x1] %vm1803_vm6, %v5860_v2  ;;  %8989 = vmatmul.mubr.msk.f32.vlgmr.msra.gmra.mxu1 %vm1140_vm5, %v5860_v2 }
0x24d7   : > { %6283 = vmatpush1.msra.mxu1 %v6159_v4  ;;  %v5701_v58 = vpop.permute.xlu1 %5700  ;;  %6330 = vmatprep.mubr.f32.mxu1 %v10158_v22  ;;  %v6165_v4 = vld [vmem:[#allocation17 + $0xa0] sm:$0xff] }
0x24d8   : > { %6284 = vmatprep.subr.mxu1 %v6158_v52  ;;  %v5702_v18 = vrot.slane %v5701_v58, 1  ;;  %v6163_v52 = vld [vmem:[#allocation17 + $0x90] sm:$0xff]  ;;  %v6162_v58 = vld [vmem:[#allocation17 + $0x88] sm:$0xff] }
0x24d9   : > { %6285 = vmatpush1.msra.mxu1 %v6157_v6  ;;  %v11820_v6 = vld [vmem:[#allocation18 + $0x78] sm:$0xff] }
0x24da   : > { %9620 = vtanh.f32 %v5702_v18  ;;  %6286 = vmatprep.subr.mxu1 %v6156_v60  ;;  %v6161_v18 = vld [vmem:[#allocation17 + $0x80] sm:$0xff] }
0x24db   : > { %6287 = vmatpush1.msra.mxu1 %v6155_v1  ;;  %v11823_v1 = vld [vmem:[#allocation18 + $0x70] sm:$0xff] }
0x24dc   : > { %6288 = vmatprep.subr.mxu1 %v6154_v62 }
0x24dd   : > { %6289 = vmatpush1.msra.mxu1 %v6153_v23  ;;  %v11826_v23 = vld [vmem:[#allocation18 + $0x68] sm:$0xff] }
0x24de   : > { %6290 = vmatprep.subr.mxu1 %v6152_v25 }
0x24df   : > { %6291 = vmatpush1.msra.mxu1 %v6151_v16 }
0x24e0   : > { %6292 = vmatprep.subr.mxu1 %v6150_v29  ;;  %v11833_v29 = vld [vmem:[#allocation18 + $0x60] sm:$0xff] }
0x24e1   : > { %6293 = vmatpush1.msra.mxu1 %v6149_v26  ;;  %v5863_v26 = vld [vmem:[#allocation2 + $0x17] ss:$8 sm:$0x3] }
0x24e2   : > { %6294 = vmatprep.subr.mxu1 %v6148_v31  ;;  %v11835_v31 = vld [vmem:[#allocation18 + $0x58] sm:$0xff] }
0x24e3   : > { %6295 = vmatpush1.msra.mxu1 %v6147_v32 }
0x24e4   : > { %6296 = vmatprep.subr.mxu1 %v6146_v21  ;;  %v11838_v21 = vld [vmem:[#allocation18 + $0x50] sm:$0xff] }
0x24e5   : > { %6297 = vmatpush1.msra.mxu1 %v6145_v47  ;;  %v11841_v47 = vld [vmem:[#allocation18 + $0x48] sm:$0xff] }
0x24e6   : > { %8993 = vmatmul.mubr.msk.f32.vlgmr.msra.gmra.mxu1 %vm1140_vm5, %v6141_v27  ;;  %6518 = vmatprep.subr.mxu1 %v11820_v6  ;;  %v11845_v27 = vld [vmem:[#allocation18 + $0x40] sm:$0xff] }
0x24e7   : > { %v9621_v30 = vpop.eup %9620  ;;  %6336 = vmatprep.mubr.f32.mxu1 %v10158_v22  ;;  %6519 = vmatpush1.msra.mxu1 %v11823_v1 }
0x24e8   : > { %v5706_v40 = vmul.f32 %v9621_v30, %v9619_v28  ;;  %6520 = vmatprep.subr.mxu1 %v11826_v23  ;;  %v11848_v28 = vld [vmem:[#allocation18 + $0x38] sm:$0xff]  ;;  %v11851_v30 = vld [vmem:[#allocation18 + $0x30] sm:$0xff] }
0x24e9   : > { %6521 = vmatpush1.msra.mxu1 %v11833_v29 }
0x24ea   : > { %5708 = vrot.lane.b32.xlu1 %v5706_v40, %s10160_s10  ;;  %6522 = vmatprep.subr.mxu1 %v11835_v31  ;;  %v11854_v40 = vld [vmem:[#allocation18 + $0x28] sm:$0xff] }
0x24eb   : > { %6523 = vmatpush1.msra.mxu1 %v11838_v21 }
0x24ec   : > { %6524 = vmatprep.subr.mxu1 %v11841_v47 }
0x24ed   : > { %6525 = vmatpush1.msra.mxu1 %v11845_v27 }
0x24ee   : > { %6526 = vmatprep.subr.mxu1 %v11848_v28 }
0x24ef   : > { %6527 = vmatpush1.msra.mxu1 %v11851_v30 }
0x24f0   : > { %6528 = vmatprep.subr.mxu1 %v11854_v40 }
0x255c   : > { %v5709_v20 = vpop.permute.xlu1 %5708 }
0x255d   : > { %v11804_v12 = vadd.f32 %v5709_v20, %v5705_v50  ;;  %v11857_v50 = vld [vmem:[#allocation18 + $0x20] sm:$0xff]  ;;  %v11860_v20 = vld [vmem:[#allocation18 + $0x18] sm:$0xff] }
0x255e   : > { %6529 = vmatpush1.msra.mxu1 %v11857_v50 }
0x255f   : > { %9622 = vtanh.f32 %v11804_v12  ;;  %6530 = vmatprep.subr.mxu1 %v11860_v20 }
0x256c   : > { %v9623_v19 = vpop.eup %9622 }
0x256d   : > { %5717 = vrot.lane.b32.xlu1 %v9623_v19, %s10160_s10  ;;  %v11863_v19 = vld [vmem:[#allocation18 + $0x10] sm:$0xff] }
0x256e   : > { %6531 = vmatpush1.msra.mxu1 %v11863_v19 }
0x2596   : > { %v6088_v14 = vpop.f32.mrf.mxu1 }
0x2598   : > { %v6090_v17 = vpop.f32.mrf.mxu1 }
0x2599   : > { %v6095_v54 = vcombine.low %v6088_v14, %v6090_v17  ;;  %v11866_v14 = vld [vmem:[#allocation18 + $0x8] sm:$0xff]  ;;  %v11869_v17 = vld [vmem:[#allocation18] sm:$0xff] }
0x259a   : > { %6532 = vmatprep.subr.mxu1 %v11866_v14 }
0x259b   : > { %v6102_v43 = vrot.slane %v6095_v54, %v10779_v45  ;;  %6533 = vmatpush1.msra.mxu1 %v11869_v17 }
0x259c   : > { %6762 = vmatprep.subr.mxu1 %v11820_v6 }
0x259d   : > { %v6109_v53 = vrot.slane %v6102_v43, %v10779_v45 }
0x259f   : > { %v6111_v49 = vadd.f32 %v6109_v53, %v6002_v46 }
0x25a1   : > { %6119 = vrot.lane.b32.xlu0 %v6111_v49, %s10160_s10  ;;  %v8990_v7 = vmul.f32 -1.442695, %v6111_v49 }
0x25a3   : > { %9624 = vpow2.f32 %v8990_v7 }
0x25b0   : > { %v9625_v33 = vpop.eup %9624 }
0x25b1   : > { %v6115_v56 = vadd.f32 1.0, %v9625_v33  ;;  %v6144_v33 = vld [vmem:[#allocation5 + $0x8] sm:$0xff] }
0x25b3   : > { %9626 = vrcp.f32 %v6115_v56 }
0x25c0   : > { %v11814_v36 = vpop.eup %9626 }
0x25c1   : > { %v6124_v63 = vmul.f32 %v11814_v36, %v11790_v38  ;;  %v6133_v53 = vrot.slane %v11814_v36, 1 }
0x25df   : > { %v5718_v0 = vpop.permute.xlu1 %5717 }
0x25e0   : > { %v5720_v5 = vmul.f32 %v5718_v0, %v5714_v3 }
0x25e2   : > { %5721 = vst.msk [vmem:[#allocation4 + $0xe] sm:$0x1] %vm1803_vm6, %v5720_v5  ;;  %8987 = vmatmul.mubr.msk.f32.vlgmr.msra.gmra.mxu0 %vm1140_vm5, %v5720_v5 }
0x25e3   : > { %6247 = vmatprep.mubr.f32.mxu0 %v10158_v22  ;;  %6200 = vmatpush1.msra.mxu0 %v6175_v13  ;;  %v6343_v13 = vld [vmem:[%s12427_s15] sm:$0x3] }
0x25e4   : > { %6201 = vmatprep.subr.mxu0 %v6174_v15  ;;  %v6332_v15 = vpop.f32.mrf.mxu1 }
0x25e5   : > { %6202 = vmatpush1.msra.mxu0 %v6173_v39  ;;  %v6348_v39 = vrot.slane %v6343_v13, %v10763_v8 }
0x25e6   : > { %6203 = vmatprep.subr.mxu0 %v6172_v51 }
0x25e7   : > { %6204 = vmatpush1.msra.mxu0 %v6171_v61 }
0x25e8   : > { %6205 = vmatprep.subr.mxu0 %v6170_v41 }
0x25e9   : > { %6206 = vmatpush1.msra.mxu0 %v6169_v55 }
0x25ea   : > { %6207 = vmatprep.subr.mxu0 %v6168_v10 }
0x25eb   : > { %6208 = vmatpush1.msra.mxu0 %v6167_v57 }
0x25ec   : > { %6209 = vmatprep.subr.mxu0 %v6166_v59 }
0x25ed   : > { %6210 = vmatpush1.msra.mxu0 %v6165_v4 }
0x25ee   : > { %6211 = vmatprep.subr.mxu0 %v6164_v42 }
0x25ef   : > { %6212 = vmatpush1.msra.mxu0 %v6163_v52 }
0x25f0   : > { %6213 = vmatprep.subr.mxu0 %v6162_v58 }
0x25f1   : > { %6214 = vmatpush1.msra.mxu0 %v6161_v18 }
0x25f2   : > { %6396 = vmatprep.subr.mxu0 %v11820_v6 }
0x2613   : > { %v6120_v35 = vpop.permute.xlu0 %6119 }
0x2614   : > { %v6121_v34 = vrot.slane %v6120_v35, 1 }
0x2616   : > { %9628 = vtanh.f32 %v6121_v34 }
0x2623   : > { %v9629_v24 = vpop.eup %9628 }
0x2624   : > { %v6125_v37 = vmul.f32 %v9629_v24, %v11814_v36 }
0x2626   : > { %6127 = vrot.lane.b32.xlu0 %v6125_v37, %s10160_s10 }
0x2698   : > { %v6128_v9 = vpop.permute.xlu0 %6127 }
0x2699   : > { %v6130_v44 = vadd.f32 %v6128_v9, %v6124_v63  ;;  %v6352_v63 = vrot.slane %v6343_v13, %v10772_v11  ;;  %v6334_v9 = vpop.f32.mrf.mxu1 }
0x269b   : > { %9630 = vtanh.f32 %v6130_v44 }
0x26a2   : > { %v5949_v2 = vpop.f32.mrf.mxu0 }
0x26a4   : > { %v5951_v38 = vpop.f32.mrf.mxu0 }
0x26a5   : > { %v5956_v60 = vcombine.low %v5949_v2, %v5951_v38 }
0x26a7   : > { %v5963_v62 = vrot.slane %v5956_v60, %v10779_v45 }
0x26a8   : > { %v9631_v25 = vpop.eup %9630 }
0x26a9   : > { %v5970_v16 = vrot.slane %v5963_v62, %v10779_v45  ;;  %6136 = vrot.lane.b32.xlu0 %v9631_v25, %s10160_s10 }
0x26ab   : > { %v5972_v32 = vadd.f32 %v5970_v16, %v5863_v26 }
0x26ad   : > { %5980 = vrot.lane.b32.xlu1 %v5972_v32, %s10160_s10  ;;  %v8988_v54 = vmul.f32 -1.442695, %v5972_v32 }
0x26af   : > { %9632 = vpow2.f32 %v8988_v54 }
0x26bc   : > { %v9633_v43 = vpop.eup %9632 }
0x26bd   : > { %v5976_v3 = vadd.f32 1.0, %v9633_v43 }
0x26bf   : > { %9634 = vrcp.f32 %v5976_v3 }
0x26cc   : > { %v11887_v56 = vpop.eup %9634 }
0x26cd   : > { %v5985_v36 = vmul.f32 %v11887_v56, %v11804_v12  ;;  %v5994_v60 = vrot.slane %v11887_v56, 1 }
0x271b   : > { %v6137_v46 = vpop.permute.xlu0 %6136 }
0x271c   : > { %v6139_v49 = vmul.f32 %v6137_v46, %v6133_v53 }
0x271e   : > { %6140 = vst.msk [vmem:[#allocation5] sm:$0x1] %vm1803_vm6, %v6139_v49 }
0x271f   : > { %v5981_v0 = vpop.permute.xlu1 %5980 }
0x2720   : > { %v5982_v5 = vrot.slane %v5981_v0, 1 }
0x2722   : > { %9636 = vtanh.f32 %v5982_v5 }
0x2725   : > { %v6143_v7 = vld [vmem:[#allocation5] sm:$0xff] }
0x2726   : > { %8991 = vmatmul.mubr.msk.f32.vlgmr.msra.gmra.mxu0 %vm1140_vm5, %v6143_v7 }
0x2727   : > { %6397 = vmatpush1.msra.mxu0 %v11823_v1  ;;  %6253 = vmatprep.mubr.f32.mxu0 %v10158_v22 }
0x2728   : > { %6398 = vmatprep.subr.mxu0 %v11826_v23 }
0x2729   : > { %6399 = vmatpush1.msra.mxu0 %v11833_v29 }
0x272a   : > { %6400 = vmatprep.subr.mxu0 %v11835_v31  ;;  %8992 = vmatmul.mubr.msk.f32.gmra.mxu0 %vm1140_vm5, %v6144_v33 }
0x272b   : > { %6401 = vmatpush1.msra.mxu0 %v11838_v21  ;;  %6444 = vmatprep.mubr.f32.mxu0 %v10158_v22 }
0x272c   : > { %6402 = vmatprep.subr.mxu0 %v11841_v47 }
0x272d   : > { %6403 = vmatpush1.msra.mxu0 %v11845_v27 }
0x272e   : > { %6404 = vmatprep.subr.mxu0 %v11848_v28 }
0x272f   : > { %v9637_v35 = vpop.eup %9636  ;;  %6405 = vmatpush1.msra.mxu0 %v11851_v30 }
0x2730   : > { %6406 = vmatprep.subr.mxu0 %v11854_v40  ;;  %v5986_v34 = vmul.f32 %v9637_v35, %v11887_v56 }
0x2731   : > { %6407 = vmatpush1.msra.mxu0 %v11857_v50 }
0x2732   : > { %6408 = vmatprep.subr.mxu0 %v11860_v20  ;;  %5988 = vrot.lane.b32.xlu1 %v5986_v34, %s10160_s10 }
0x2733   : > { %6409 = vmatpush1.msra.mxu0 %v11863_v19 }
0x2734   : > { %6410 = vmatprep.subr.mxu0 %v11866_v14 }
0x2735   : > { %6411 = vmatpush1.msra.mxu0 %v11869_v17 }
0x2736   : > { %6445 = vmatmul.mubr.f32.vlgmr.msra.gmra.mxu0 %v10158_v22  ;;  %6640 = vmatprep.subr.mxu0 %v11820_v6 }
0x2737   : > { %6641 = vmatpush1.msra.mxu0 %v11823_v1  ;;  %6688 = vmatprep.mubr.f32.mxu0 %v10158_v22 }
0x2738   : > { %6642 = vmatprep.subr.mxu0 %v11826_v23 }
0x2739   : > { %6643 = vmatpush1.msra.mxu0 %v11833_v29 }
0x273a   : > { %6644 = vmatprep.subr.mxu0 %v11835_v31 }
0x273b   : > { %6645 = vmatpush1.msra.mxu0 %v11838_v21 }
0x273c   : > { %6646 = vmatprep.subr.mxu0 %v11841_v47 }
0x273d   : > { %6647 = vmatpush1.msra.mxu0 %v11845_v27 }
0x273e   : > { %6648 = vmatprep.subr.mxu0 %v11848_v28 }
0x273f   : > { %6649 = vmatpush1.msra.mxu0 %v11851_v30 }
0x2740   : > { %6650 = vmatprep.subr.mxu0 %v11854_v40 }
0x2741   : > { %6651 = vmatpush1.msra.mxu0 %v11857_v50 }
0x2742   : > { %6652 = vmatprep.subr.mxu0 %v11860_v20 }
0x2743   : > { %6653 = vmatpush1.msra.mxu0 %v11863_v19 }
0x2744   : > { %6654 = vmatprep.subr.mxu0 %v11866_v14 }
0x2745   : > { %6655 = vmatpush1.msra.mxu0 %v11869_v17 }
0x2746   : > { %6884 = vmatprep.subr.mxu0 %v11820_v6 }
0x27a4   : > { %v5989_v24 = vpop.permute.xlu1 %5988 }
0x27a5   : > { %v5991_v37 = vadd.f32 %v5989_v24, %v5985_v36 }
0x27a7   : > { %9638 = vtanh.f32 %v5991_v37 }
0x27b4   : > { %v9639_v48 = vpop.eup %9638 }
0x27b5   : > { %5997 = vrot.lane.b32.xlu1 %v9639_v48, %s10160_s10 }
0x27e6   : > { %v6249_v51 = vpop.f32.mrf.mxu0 }
0x27e7   : > { %v6333_v61 = vadd.f32 %v6332_v15, %v6249_v51 }
0x27e8   : > { %v6251_v44 = vpop.f32.mrf.mxu0 }
0x27e9   : > { %v6355_v12 = vadd.f32 %v6348_v39, %v6333_v61  ;;  %v6335_v41 = vadd.f32 %v6334_v9, %v6251_v44 }
0x27ea   : > { %v6255_v10 = vpop.f32.mrf.mxu0 }
0x27eb   : > { %6359 = vst [vmem:[#allocation2] sm:$0xff] %v6355_v12  ;;  %v6356_v55 = vadd.f32 %v6352_v63, %v6335_v41 }
0x27ec   : > { %v6257_v57 = vpop.f32.mrf.mxu0 }
0x27ed   : > { %6360 = vst [vmem:[#allocation2 + $0x8] sm:$0xff] %v6356_v55 }
0x27f4   : > { %v6363_v38 = vld [vmem:[#allocation2] ss:$8 sm:$0x3]  ;;  %v6498_v9 = vld [vmem:[#allocation2 + $0x1] ss:$8 sm:$0x3] }
0x27f6   : > { %v6446_v59 = vpop.f32.mrf.mxu0 }
0x27f8   : > { %v6448_v2 = vpop.f32.mrf.mxu0 }
0x27f9   : > { %v6453_v4 = vcombine.low %v6446_v59, %v6448_v2 }
0x27fb   : > { %v6460_v42 = vrot.slane %v6453_v4, %v10779_v45 }
0x27fd   : > { %v6467_v52 = vrot.slane %v6460_v42, %v10779_v45 }
0x27ff   : > { %v6469_v58 = vadd.f32 %v6467_v52, %v6363_v38 }
0x2801   : > { %6477 = vrot.lane.b32.xlu0 %v6469_v58, %s10160_s10  ;;  %v8995_v16 = vmul.f32 -1.442695, %v6469_v58 }
0x2803   : > { %9640 = vpow2.f32 %v8995_v16 }
0x2810   : > { %v9641_v26 = vpop.eup %9640 }
0x2811   : > { %v6473_v32 = vadd.f32 1.0, %v9641_v26 }
0x2813   : > { %9642 = vrcp.f32 %v6473_v32 }
0x2820   : > { %v9643_v53 = vpop.eup %9642 }
0x2821   : > { %v6482_v35 = vmul.f32 0.0, %v9643_v53  ;;  %v6491_v37 = vrot.slane %v9643_v53, 1 }
0x2827   : > { %v5998_v18 = vpop.permute.xlu1 %5997 }
0x2828   : > { %v6000_v62 = vmul.f32 %v5998_v18, %v5994_v60 }
0x282a   : > { %6001 = vst.msk [vmem:[#allocation4 + $0xf] sm:$0x1] %vm1803_vm6, %v6000_v62 }
0x2831   : > { %v6142_v25 = vld [vmem:[#allocation4 + $0x8] sm:$0xff] }
0x2832   : > { %8994 = vmatmul.mubr.msk.f32.gmra.mxu1 %vm1140_vm5, %v6142_v25 }
0x2833   : > { %6566 = vmatprep.mubr.f32.mxu1 %v10158_v22 }
0x2873   : > { %v6478_v54 = vpop.permute.xlu0 %6477 }
0x2874   : > { %v6479_v43 = vrot.slane %v6478_v54, 1 }
0x2876   : > { %9644 = vtanh.f32 %v6479_v43  ;;  %v6620_v43 = vld [vmem:[#allocation2 + $0x2] ss:$8 sm:$0x3] }
0x2883   : > { %v9645_v46 = vpop.eup %9644 }
0x2884   : > { %v6483_v49 = vmul.f32 %v9645_v46, %v9643_v53 }
0x2886   : > { %6485 = vrot.lane.b32.xlu0 %v6483_v49, %s10160_s10 }
0x28f2   : > { %v6338_v3 = vpop.f32.mrf.mxu1 }
0x28f3   : > { %v6339_v0 = vadd.f32 %v6338_v3, %v6255_v10 }
0x28f4   : > { %v6340_v5 = vpop.f32.mrf.mxu1 }
0x28f5   : > { %v6357_v7 = vadd.f32 %v6348_v39, %v6339_v0  ;;  %v6341_v33 = vadd.f32 %v6340_v5, %v6257_v57 }
0x28f7   : > { %6361 = vst [vmem:[#allocation2 + $0x10] sm:$0xff] %v6357_v7  ;;  %v6358_v56 = vadd.f32 %v6352_v63, %v6341_v33 }
0x28f8   : > { %v6486_v34 = vpop.permute.xlu0 %6485 }
0x28f9   : > { %6362 = vst [vmem:[#allocation2 + $0x18] sm:$0xff] %v6358_v56  ;;  %v6488_v36 = vadd.f32 %v6486_v34, %v6482_v35 }
0x28fb   : > { %9646 = vtanh.f32 %v6488_v36 }
0x2908   : > { %v9647_v24 = vpop.eup %9646 }
0x2909   : > { %6494 = vrot.lane.b32.xlu0 %v9647_v24, %s10160_s10 }
0x297b   : > { %v6495_v48 = vpop.permute.xlu0 %6494 }
0x297c   : > { %v6497_v13 = vmul.f32 %v6495_v48, %v6491_v37 }
0x297e   : > { %8996 = vmatmul.mubr.msk.f32.vlgmr.msra.gmra.mxu1 %vm1140_vm5, %v6497_v13 }
0x297f   : > { %6763 = vmatpush1.msra.mxu1 %v11823_v1  ;;  %6810 = vmatprep.mubr.f32.mxu1 %v10158_v22 }
0x2980   : > { %6764 = vmatprep.subr.mxu1 %v11826_v23 }
0x2981   : > { %6765 = vmatpush1.msra.mxu1 %v11833_v29 }
0x2982   : > { %6766 = vmatprep.subr.mxu1 %v11835_v31 }
0x2983   : > { %6767 = vmatpush1.msra.mxu1 %v11838_v21 }
0x2984   : > { %6768 = vmatprep.subr.mxu1 %v11841_v47 }
0x2985   : > { %6769 = vmatpush1.msra.mxu1 %v11845_v27 }
0x2986   : > { %6770 = vmatprep.subr.mxu1 %v11848_v28 }
0x2987   : > { %6771 = vmatpush1.msra.mxu1 %v11851_v30 }
0x2988   : > { %6772 = vmatprep.subr.mxu1 %v11854_v40 }
0x2989   : > { %6773 = vmatpush1.msra.mxu1 %v11857_v50 }
0x298a   : > { %6774 = vmatprep.subr.mxu1 %v11860_v20 }
0x298b   : > { %6775 = vmatpush1.msra.mxu1 %v11863_v19 }
0x298c   : > { %6776 = vmatprep.subr.mxu1 %v11866_v14 }
0x298d   : > { %6777 = vmatpush1.msra.mxu1 %v11869_v17 }
0x298e   : > { %7006 = vmatprep.subr.mxu1 %v11820_v6 }
0x2a3e   : > { %v6568_v15 = vpop.f32.mrf.mxu1 }
0x2a40   : > { %v6570_v39 = vpop.f32.mrf.mxu1 }
0x2a41   : > { %v6575_v51 = vcombine.low %v6568_v15, %v6570_v39 }
0x2a43   : > { %v6582_v61 = vrot.slane %v6575_v51, %v10779_v45 }
0x2a45   : > { %v6589_v63 = vrot.slane %v6582_v61, %v10779_v45 }
0x2a47   : > { %v6591_v44 = vadd.f32 %v6589_v63, %v6498_v9  ;;  %v6742_v9 = vld [vmem:[#allocation2 + $0x3] ss:$8 sm:$0x3] }
0x2a49   : > { %6599 = vrot.lane.b32.xlu1 %v6591_v44, %s10160_s10  ;;  %v8997_v12 = vmul.f32 -1.442695, %v6591_v44 }
0x2a4b   : > { %9648 = vpow2.f32 %v8997_v12 }
0x2a58   : > { %v9649_v41 = vpop.eup %9648 }
0x2a59   : > { %v6595_v55 = vadd.f32 1.0, %v9649_v41 }
0x2a5b   : > { %9650 = vrcp.f32 %v6595_v55 }
0x2a68   : > { %v9651_v59 = vpop.eup %9650 }
0x2a69   : > { %v6604_v42 = vmul.f32 %v9651_v59, %v6488_v36  ;;  %v6613_v60 = vrot.slane %v9651_v59, 1 }
0x2abb   : > { %v6600_v10 = vpop.permute.xlu1 %6599 }
0x2abc   : > { %v6601_v57 = vrot.slane %v6600_v10, 1 }
0x2abe   : > { %9652 = vtanh.f32 %v6601_v57 }
0x2acb   : > { %v9653_v2 = vpop.eup %9652 }
0x2acc   : > { %v6605_v4 = vmul.f32 %v9653_v2, %v9651_v59 }
0x2ace   : > { %6607 = vrot.lane.b32.xlu0 %v6605_v4, %s10160_s10 }
0x2b40   : > { %v6608_v52 = vpop.permute.xlu0 %6607 }
0x2b41   : > { %v6610_v38 = vadd.f32 %v6608_v52, %v6604_v42 }
0x2b43   : > { %9654 = vtanh.f32 %v6610_v38 }
0x2b50   : > { %v9655_v58 = vpop.eup %9654 }
0x2b51   : > { %6616 = vrot.lane.b32.xlu1 %v9655_v58, %s10160_s10 }
0x2bc3   : > { %v6617_v18 = vpop.permute.xlu1 %6616 }
0x2bc4   : > { %v6619_v62 = vmul.f32 %v6617_v18, %v6613_v60 }
0x2bc6   : > { %8998 = vmatmul.mubr.msk.f32.vlgmr.msra.gmra.mxu0 %vm1140_vm5, %v6619_v62 }
0x2bc7   : > { %6885 = vmatpush1.msra.mxu0 %v11823_v1  ;;  %6932 = vmatprep.mubr.f32.mxu0 %v10158_v22 }
0x2bc8   : > { %6886 = vmatprep.subr.mxu0 %v11826_v23 }
0x2bc9   : > { %6887 = vmatpush1.msra.mxu0 %v11833_v29 }
0x2bca   : > { %6888 = vmatprep.subr.mxu0 %v11835_v31 }
0x2bcb   : > { %6889 = vmatpush1.msra.mxu0 %v11838_v21 }
0x2bcc   : > { %6890 = vmatprep.subr.mxu0 %v11841_v47 }
0x2bcd   : > { %6891 = vmatpush1.msra.mxu0 %v11845_v27 }
0x2bce   : > { %6892 = vmatprep.subr.mxu0 %v11848_v28 }
0x2bcf   : > { %6893 = vmatpush1.msra.mxu0 %v11851_v30 }
0x2bd0   : > { %6894 = vmatprep.subr.mxu0 %v11854_v40 }
0x2bd1   : > { %6895 = vmatpush1.msra.mxu0 %v11857_v50 }
0x2bd2   : > { %6896 = vmatprep.subr.mxu0 %v11860_v20 }
0x2bd3   : > { %6897 = vmatpush1.msra.mxu0 %v11863_v19 }
0x2bd4   : > { %6898 = vmatprep.subr.mxu0 %v11866_v14 }
0x2bd5   : > { %6899 = vmatpush1.msra.mxu0 %v11869_v17 }
0x2bd6   : > { %7128 = vmatprep.subr.mxu0 %v11820_v6 }
0x2c86   : > { %v6690_v25 = vpop.f32.mrf.mxu0 }
0x2c88   : > { %v6692_v16 = vpop.f32.mrf.mxu0 }
0x2c89   : > { %v6697_v26 = vcombine.low %v6690_v25, %v6692_v16 }
0x2c8b   : > { %v6704_v32 = vrot.slane %v6697_v26, %v10779_v45 }
0x2c8d   : > { %v6711_v54 = vrot.slane %v6704_v32, %v10779_v45 }
0x2c8f   : > { %v6713_v53 = vadd.f32 %v6711_v54, %v6620_v43  ;;  %v6864_v43 = vld [vmem:[#allocation2 + $0x4] ss:$8 sm:$0x3] }
0x2c91   : > { %6721 = vrot.lane.b32.xlu0 %v6713_v53, %s10160_s10  ;;  %v8999_v46 = vmul.f32 -1.442695, %v6713_v53 }
0x2c93   : > { %9656 = vpow2.f32 %v8999_v46 }
0x2ca0   : > { %v9657_v49 = vpop.eup %9656 }
0x2ca1   : > { %v6717_v3 = vadd.f32 1.0, %v9657_v49 }
0x2ca3   : > { %9658 = vrcp.f32 %v6717_v3 }
0x2cb0   : > { %v9659_v7 = vpop.eup %9658 }
0x2cb1   : > { %v6726_v35 = vmul.f32 %v9659_v7, %v6610_v38  ;;  %v6735_v37 = vrot.slane %v9659_v7, 1 }
0x2d03   : > { %v6722_v0 = vpop.permute.xlu0 %6721 }
0x2d04   : > { %v6723_v5 = vrot.slane %v6722_v0, 1 }
0x2d06   : > { %9660 = vtanh.f32 %v6723_v5 }
0x2d13   : > { %v9661_v33 = vpop.eup %9660 }
0x2d14   : > { %v6727_v56 = vmul.f32 %v9661_v33, %v9659_v7 }
0x2d16   : > { %6729 = vrot.lane.b32.xlu1 %v6727_v56, %s10160_s10 }
0x2d88   : > { %v6730_v34 = vpop.permute.xlu1 %6729 }
0x2d89   : > { %v6732_v36 = vadd.f32 %v6730_v34, %v6726_v35 }
0x2d8b   : > { %9662 = vtanh.f32 %v6732_v36 }
0x2d98   : > { %v9663_v24 = vpop.eup %9662 }
0x2d99   : > { %6738 = vrot.lane.b32.xlu0 %v9663_v24, %s10160_s10 }
0x2e0b   : > { %v6739_v48 = vpop.permute.xlu0 %6738 }
0x2e0c   : > { %v6741_v13 = vmul.f32 %v6739_v48, %v6735_v37 }
0x2e0e   : > { %9000 = vmatmul.mubr.msk.f32.vlgmr.msra.gmra.mxu1 %vm1140_vm5, %v6741_v13 }
0x2e0f   : > { %7007 = vmatpush1.msra.mxu1 %v11823_v1  ;;  %7054 = vmatprep.mubr.f32.mxu1 %v10158_v22 }
0x2e10   : > { %7008 = vmatprep.subr.mxu1 %v11826_v23 }
0x2e11   : > { %7009 = vmatpush1.msra.mxu1 %v11833_v29 }
0x2e12   : > { %7010 = vmatprep.subr.mxu1 %v11835_v31 }
0x2e13   : > { %7011 = vmatpush1.msra.mxu1 %v11838_v21 }
0x2e14   : > { %7012 = vmatprep.subr.mxu1 %v11841_v47 }
0x2e15   : > { %7013 = vmatpush1.msra.mxu1 %v11845_v27 }
0x2e16   : > { %7014 = vmatprep.subr.mxu1 %v11848_v28 }
0x2e17   : > { %7015 = vmatpush1.msra.mxu1 %v11851_v30 }
0x2e18   : > { %7016 = vmatprep.subr.mxu1 %v11854_v40 }
0x2e19   : > { %7017 = vmatpush1.msra.mxu1 %v11857_v50 }
0x2e1a   : > { %7018 = vmatprep.subr.mxu1 %v11860_v20 }
0x2e1b   : > { %7019 = vmatpush1.msra.mxu1 %v11863_v19 }
0x2e1c   : > { %7020 = vmatprep.subr.mxu1 %v11866_v14 }
0x2e1d   : > { %7021 = vmatpush1.msra.mxu1 %v11869_v17 }
0x2e1e   : > { %7250 = vmatprep.subr.mxu1 %v11820_v6 }
0x2ece   : > { %v6812_v15 = vpop.f32.mrf.mxu1 }
0x2ed0   : > { %v6814_v39 = vpop.f32.mrf.mxu1 }
0x2ed1   : > { %v6819_v51 = vcombine.low %v6812_v15, %v6814_v39 }
0x2ed3   : > { %v6826_v61 = vrot.slane %v6819_v51, %v10779_v45 }
0x2ed5   : > { %v6833_v63 = vrot.slane %v6826_v61, %v10779_v45 }
0x2ed7   : > { %v6835_v44 = vadd.f32 %v6833_v63, %v6742_v9  ;;  %v6986_v9 = vld [vmem:[#allocation2 + $0x5] ss:$8 sm:$0x3] }
0x2ed9   : > { %6843 = vrot.lane.b32.xlu1 %v6835_v44, %s10160_s10  ;;  %v9001_v12 = vmul.f32 -1.442695, %v6835_v44 }
0x2edb   : > { %9664 = vpow2.f32 %v9001_v12 }
0x2ee8   : > { %v9665_v41 = vpop.eup %9664 }
0x2ee9   : > { %v6839_v55 = vadd.f32 1.0, %v9665_v41 }
0x2eeb   : > { %9666 = vrcp.f32 %v6839_v55 }
0x2ef8   : > { %v9667_v59 = vpop.eup %9666 }
0x2ef9   : > { %v6848_v42 = vmul.f32 %v9667_v59, %v6732_v36  ;;  %v6857_v60 = vrot.slane %v9667_v59, 1 }
0x2f4b   : > { %v6844_v10 = vpop.permute.xlu1 %6843 }
0x2f4c   : > { %v6845_v57 = vrot.slane %v6844_v10, 1 }
0x2f4e   : > { %9668 = vtanh.f32 %v6845_v57 }
0x2f5b   : > { %v9669_v2 = vpop.eup %9668 }
0x2f5c   : > { %v6849_v4 = vmul.f32 %v9669_v2, %v9667_v59 }
0x2f5e   : > { %6851 = vrot.lane.b32.xlu0 %v6849_v4, %s10160_s10 }
0x2fd0   : > { %v6852_v52 = vpop.permute.xlu0 %6851 }
0x2fd1   : > { %v6854_v38 = vadd.f32 %v6852_v52, %v6848_v42 }
0x2fd3   : > { %9670 = vtanh.f32 %v6854_v38 }
0x2fe0   : > { %v9671_v58 = vpop.eup %9670 }
0x2fe1   : > { %6860 = vrot.lane.b32.xlu1 %v9671_v58, %s10160_s10 }
0x3053   : > { %v6861_v18 = vpop.permute.xlu1 %6860 }
0x3054   : > { %v6863_v62 = vmul.f32 %v6861_v18, %v6857_v60 }
0x3056   : > { %9002 = vmatmul.mubr.msk.f32.vlgmr.msra.gmra.mxu0 %vm1140_vm5, %v6863_v62 }
0x3057   : > { %7129 = vmatpush1.msra.mxu0 %v11823_v1  ;;  %7176 = vmatprep.mubr.f32.mxu0 %v10158_v22 }
0x3058   : > { %7130 = vmatprep.subr.mxu0 %v11826_v23 }
0x3059   : > { %7131 = vmatpush1.msra.mxu0 %v11833_v29 }
0x305a   : > { %7132 = vmatprep.subr.mxu0 %v11835_v31 }
0x305b   : > { %7133 = vmatpush1.msra.mxu0 %v11838_v21 }
0x305c   : > { %7134 = vmatprep.subr.mxu0 %v11841_v47 }
0x305d   : > { %7135 = vmatpush1.msra.mxu0 %v11845_v27 }
0x305e   : > { %7136 = vmatprep.subr.mxu0 %v11848_v28 }
0x305f   : > { %7137 = vmatpush1.msra.mxu0 %v11851_v30 }
0x3060   : > { %7138 = vmatprep.subr.mxu0 %v11854_v40 }
0x3061   : > { %7139 = vmatpush1.msra.mxu0 %v11857_v50 }
0x3062   : > { %7140 = vmatprep.subr.mxu0 %v11860_v20 }
0x3063   : > { %7141 = vmatpush1.msra.mxu0 %v11863_v19 }
0x3064   : > { %7142 = vmatprep.subr.mxu0 %v11866_v14 }
0x3065   : > { %7143 = vmatpush1.msra.mxu0 %v11869_v17 }
0x3066   : > { %7372 = vmatprep.subr.mxu0 %v11820_v6 }
0x3116   : > { %v6934_v25 = vpop.f32.mrf.mxu0 }
0x3118   : > { %v6936_v16 = vpop.f32.mrf.mxu0 }
0x3119   : > { %v6941_v26 = vcombine.low %v6934_v25, %v6936_v16 }
0x311b   : > { %v6948_v32 = vrot.slane %v6941_v26, %v10779_v45 }
0x311d   : > { %v6955_v54 = vrot.slane %v6948_v32, %v10779_v45 }
0x311f   : > { %v6957_v53 = vadd.f32 %v6955_v54, %v6864_v43  ;;  %v7108_v43 = vld [vmem:[#allocation2 + $0x6] ss:$8 sm:$0x3] }
0x3121   : > { %6965 = vrot.lane.b32.xlu0 %v6957_v53, %s10160_s10  ;;  %v9003_v46 = vmul.f32 -1.442695, %v6957_v53 }
0x3123   : > { %9672 = vpow2.f32 %v9003_v46 }
0x3130   : > { %v9673_v49 = vpop.eup %9672 }
0x3131   : > { %v6961_v3 = vadd.f32 1.0, %v9673_v49 }
0x3133   : > { %9674 = vrcp.f32 %v6961_v3 }
0x3140   : > { %v9675_v7 = vpop.eup %9674 }
0x3141   : > { %v6970_v35 = vmul.f32 %v9675_v7, %v6854_v38  ;;  %v6979_v37 = vrot.slane %v9675_v7, 1 }
0x3193   : > { %v6966_v0 = vpop.permute.xlu0 %6965 }
0x3194   : > { %v6967_v5 = vrot.slane %v6966_v0, 1 }
0x3196   : > { %9676 = vtanh.f32 %v6967_v5 }
0x31a3   : > { %v9677_v33 = vpop.eup %9676 }
0x31a4   : > { %v6971_v56 = vmul.f32 %v9677_v33, %v9675_v7 }
0x31a6   : > { %6973 = vrot.lane.b32.xlu1 %v6971_v56, %s10160_s10 }
0x3218   : > { %v6974_v34 = vpop.permute.xlu1 %6973 }
0x3219   : > { %v6976_v36 = vadd.f32 %v6974_v34, %v6970_v35 }
0x321b   : > { %9678 = vtanh.f32 %v6976_v36 }
0x3228   : > { %v9679_v24 = vpop.eup %9678 }
0x3229   : > { %6982 = vrot.lane.b32.xlu0 %v9679_v24, %s10160_s10 }
0x329b   : > { %v6983_v48 = vpop.permute.xlu0 %6982 }
0x329c   : > { %v6985_v13 = vmul.f32 %v6983_v48, %v6979_v37 }
0x329e   : > { %9004 = vmatmul.mubr.msk.f32.vlgmr.msra.gmra.mxu1 %vm1140_vm5, %v6985_v13 }
0x329f   : > { %7251 = vmatpush1.msra.mxu1 %v11823_v1  ;;  %7298 = vmatprep.mubr.f32.mxu1 %v10158_v22 }
0x32a0   : > { %7252 = vmatprep.subr.mxu1 %v11826_v23 }
0x32a1   : > { %7253 = vmatpush1.msra.mxu1 %v11833_v29 }
0x32a2   : > { %7254 = vmatprep.subr.mxu1 %v11835_v31 }
0x32a3   : > { %7255 = vmatpush1.msra.mxu1 %v11838_v21 }
0x32a4   : > { %7256 = vmatprep.subr.mxu1 %v11841_v47 }
0x32a5   : > { %7257 = vmatpush1.msra.mxu1 %v11845_v27 }
0x32a6   : > { %7258 = vmatprep.subr.mxu1 %v11848_v28 }
0x32a7   : > { %7259 = vmatpush1.msra.mxu1 %v11851_v30 }
0x32a8   : > { %7260 = vmatprep.subr.mxu1 %v11854_v40 }
0x32a9   : > { %7261 = vmatpush1.msra.mxu1 %v11857_v50 }
0x32aa   : > { %7262 = vmatprep.subr.mxu1 %v11860_v20 }
0x32ab   : > { %7263 = vmatpush1.msra.mxu1 %v11863_v19 }
0x32ac   : > { %7264 = vmatprep.subr.mxu1 %v11866_v14 }
0x32ad   : > { %7265 = vmatpush1.msra.mxu1 %v11869_v17 }
0x32ae   : > { %7494 = vmatprep.subr.mxu1 %v11820_v6 }
0x335e   : > { %v7056_v15 = vpop.f32.mrf.mxu1 }
0x3360   : > { %v7058_v39 = vpop.f32.mrf.mxu1 }
0x3361   : > { %v7063_v51 = vcombine.low %v7056_v15, %v7058_v39 }
0x3363   : > { %v7070_v61 = vrot.slane %v7063_v51, %v10779_v45 }
0x3365   : > { %v7077_v63 = vrot.slane %v7070_v61, %v10779_v45 }
0x3367   : > { %v7079_v44 = vadd.f32 %v7077_v63, %v6986_v9  ;;  %v7230_v9 = vld [vmem:[#allocation2 + $0x7] ss:$8 sm:$0x3] }
0x3369   : > { %7087 = vrot.lane.b32.xlu1 %v7079_v44, %s10160_s10  ;;  %v9005_v12 = vmul.f32 -1.442695, %v7079_v44 }
0x336b   : > { %9680 = vpow2.f32 %v9005_v12 }
0x3378   : > { %v9681_v41 = vpop.eup %9680 }
0x3379   : > { %v7083_v55 = vadd.f32 1.0, %v9681_v41 }
0x337b   : > { %9682 = vrcp.f32 %v7083_v55 }
0x3388   : > { %v9683_v59 = vpop.eup %9682 }
0x3389   : > { %v7092_v42 = vmul.f32 %v9683_v59, %v6976_v36  ;;  %v7101_v60 = vrot.slane %v9683_v59, 1 }
0x33db   : > { %v7088_v10 = vpop.permute.xlu1 %7087 }
0x33dc   : > { %v7089_v57 = vrot.slane %v7088_v10, 1 }
0x33de   : > { %9684 = vtanh.f32 %v7089_v57 }
0x33eb   : > { %v9685_v2 = vpop.eup %9684 }
0x33ec   : > { %v7093_v4 = vmul.f32 %v9685_v2, %v9683_v59 }
0x33ee   : > { %7095 = vrot.lane.b32.xlu0 %v7093_v4, %s10160_s10 }
0x3460   : > { %v7096_v52 = vpop.permute.xlu0 %7095 }
0x3461   : > { %v7098_v38 = vadd.f32 %v7096_v52, %v7092_v42 }
0x3463   : > { %9686 = vtanh.f32 %v7098_v38 }
0x3470   : > { %v9687_v58 = vpop.eup %9686 }
0x3471   : > { %7104 = vrot.lane.b32.xlu1 %v9687_v58, %s10160_s10 }
0x34e3   : > { %v7105_v18 = vpop.permute.xlu1 %7104 }
0x34e4   : > { %v7107_v62 = vmul.f32 %v7105_v18, %v7101_v60 }
0x34e6   : > { %9006 = vmatmul.mubr.msk.f32.vlgmr.msra.gmra.mxu0 %vm1140_vm5, %v7107_v62 }
0x34e7   : > { %7373 = vmatpush1.msra.mxu0 %v11823_v1  ;;  %7420 = vmatprep.mubr.f32.mxu0 %v10158_v22 }
0x34e8   : > { %7374 = vmatprep.subr.mxu0 %v11826_v23 }
0x34e9   : > { %7375 = vmatpush1.msra.mxu0 %v11833_v29 }
0x34ea   : > { %7376 = vmatprep.subr.mxu0 %v11835_v31 }
0x34eb   : > { %7377 = vmatpush1.msra.mxu0 %v11838_v21 }
0x34ec   : > { %7378 = vmatprep.subr.mxu0 %v11841_v47 }
0x34ed   : > { %7379 = vmatpush1.msra.mxu0 %v11845_v27 }
0x34ee   : > { %7380 = vmatprep.subr.mxu0 %v11848_v28 }
0x34ef   : > { %7381 = vmatpush1.msra.mxu0 %v11851_v30 }
0x34f0   : > { %7382 = vmatprep.subr.mxu0 %v11854_v40 }
0x34f1   : > { %7383 = vmatpush1.msra.mxu0 %v11857_v50 }
0x34f2   : > { %7384 = vmatprep.subr.mxu0 %v11860_v20 }
0x34f3   : > { %7385 = vmatpush1.msra.mxu0 %v11863_v19 }
0x34f4   : > { %7386 = vmatprep.subr.mxu0 %v11866_v14 }
0x34f5   : > { %7387 = vmatpush1.msra.mxu0 %v11869_v17 }
0x34f6   : > { %7616 = vmatprep.subr.mxu0 %v11820_v6 }
0x35a6   : > { %v7178_v25 = vpop.f32.mrf.mxu0 }
0x35a8   : > { %v7180_v16 = vpop.f32.mrf.mxu0 }
0x35a9   : > { %v7185_v26 = vcombine.low %v7178_v25, %v7180_v16 }
0x35ab   : > { %v7192_v32 = vrot.slane %v7185_v26, %v10779_v45 }
0x35ad   : > { %v7199_v54 = vrot.slane %v7192_v32, %v10779_v45 }
0x35af   : > { %v7201_v53 = vadd.f32 %v7199_v54, %v7108_v43 }
0x35b1   : > { %7209 = vrot.lane.b32.xlu0 %v7201_v53, %s10160_s10  ;;  %v9007_v46 = vmul.f32 -1.442695, %v7201_v53 }
0x35b3   : > { %9688 = vpow2.f32 %v9007_v46  ;;  %v12122_v46 = vld [vmem:[#allocation18 + $0x70] sm:$0xff] }
0x35c0   : > { %v9689_v49 = vpop.eup %9688 }
0x35c1   : > { %v7205_v3 = vadd.f32 1.0, %v9689_v49  ;;  %v12126_v49 = vld [vmem:[#allocation18 + $0x68] sm:$0xff] }
0x35c3   : > { %9690 = vrcp.f32 %v7205_v3  ;;  %v12129_v3 = vld [vmem:[#allocation18 + $0x60] sm:$0xff] }
0x35d0   : > { %v9691_v7 = vpop.eup %9690 }
0x35d1   : > { %v7214_v35 = vmul.f32 %v9691_v7, %v7098_v38  ;;  %v7223_v37 = vrot.slane %v9691_v7, 1 }
0x3623   : > { %v7210_v0 = vpop.permute.xlu0 %7209 }
0x3624   : > { %v7211_v5 = vrot.slane %v7210_v0, 1  ;;  %v12132_v0 = vld [vmem:[#allocation18 + $0x58] sm:$0xff] }
0x3626   : > { %9692 = vtanh.f32 %v7211_v5  ;;  %v12135_v5 = vld [vmem:[#allocation18 + $0x50] sm:$0xff] }
0x3633   : > { %v9693_v33 = vpop.eup %9692 }
0x3634   : > { %v7215_v56 = vmul.f32 %v9693_v33, %v9691_v7  ;;  %v12138_v7 = vld [vmem:[#allocation18 + $0x48] sm:$0xff]  ;;  %v12141_v33 = vld [vmem:[#allocation18 + $0x40] sm:$0xff] }
0x3636   : > { %7217 = vrot.lane.b32.xlu1 %v7215_v56, %s10160_s10  ;;  %v12144_v56 = vld [vmem:[#allocation18 + $0x38] sm:$0xff] }
0x36a8   : > { %v7218_v34 = vpop.permute.xlu1 %7217 }
0x36a9   : > { %v7220_v36 = vadd.f32 %v7218_v34, %v7214_v35  ;;  %v12147_v35 = vld [vmem:[#allocation18 + $0x30] sm:$0xff]  ;;  %v12150_v34 = vld [vmem:[#allocation18 + $0x28] sm:$0xff] }
0x36ab   : > { %9694 = vtanh.f32 %v7220_v36 }
0x36b8   : > { %v9695_v24 = vpop.eup %9694 }
0x36b9   : > { %7226 = vrot.lane.b32.xlu0 %v9695_v24, %s10160_s10  ;;  %v12156_v24 = vld [vmem:[#allocation18 + $0x18] sm:$0xff] }
0x372b   : > { %v7227_v48 = vpop.permute.xlu0 %7226 }
0x372c   : > { %v7229_v13 = vmul.f32 %v7227_v48, %v7223_v37  ;;  %v12159_v37 = vld [vmem:[#allocation18 + $0x10] sm:$0xff]  ;;  %v12162_v48 = vld [vmem:[#allocation18 + $0x8] sm:$0xff] }
0x372e   : > { %9008 = vmatmul.mubr.msk.f32.vlgmr.msra.gmra.mxu1 %vm1140_vm5, %v7229_v13  ;;  %v12165_v13 = vld [vmem:[#allocation18] sm:$0xff] }
0x372f   : > { %7495 = vmatpush1.msra.mxu1 %v11823_v1  ;;  %7542 = vmatprep.mubr.f32.mxu1 %v10158_v22 }
0x3730   : > { %7496 = vmatprep.subr.mxu1 %v11826_v23 }
0x3731   : > { %7497 = vmatpush1.msra.mxu1 %v11833_v29 }
0x3732   : > { %7498 = vmatprep.subr.mxu1 %v11835_v31 }
0x3733   : > { %7499 = vmatpush1.msra.mxu1 %v11838_v21 }
0x3734   : > { %7500 = vmatprep.subr.mxu1 %v11841_v47 }
0x3735   : > { %7501 = vmatpush1.msra.mxu1 %v11845_v27 }
0x3736   : > { %7502 = vmatprep.subr.mxu1 %v11848_v28 }
0x3737   : > { %7503 = vmatpush1.msra.mxu1 %v11851_v30 }
0x3738   : > { %7504 = vmatprep.subr.mxu1 %v11854_v40 }
0x3739   : > { %7505 = vmatpush1.msra.mxu1 %v11857_v50 }
0x373a   : > { %7506 = vmatprep.subr.mxu1 %v11860_v20 }
0x373b   : > { %7507 = vmatpush1.msra.mxu1 %v11863_v19 }
0x373c   : > { %7508 = vmatprep.subr.mxu1 %v11866_v14 }
0x373d   : > { %7509 = vmatpush1.msra.mxu1 %v11869_v17 }
0x373e   : > { %7738 = vmatprep.subr.mxu1 %v11820_v6 }
0x37ee   : > { %v7300_v15 = vpop.f32.mrf.mxu1 }
0x37f0   : > { %v7302_v39 = vpop.f32.mrf.mxu1 }
0x37f1   : > { %v7307_v51 = vcombine.low %v7300_v15, %v7302_v39 }
0x37f3   : > { %v7314_v61 = vrot.slane %v7307_v51, %v10779_v45 }
0x37f5   : > { %v7321_v63 = vrot.slane %v7314_v61, %v10779_v45 }
0x37f7   : > { %v7323_v44 = vadd.f32 %v7321_v63, %v7230_v9  ;;  %v7474_v9 = vld [vmem:[#allocation2 + $0x11] ss:$8 sm:$0x3] }
0x37f9   : > { %7331 = vrot.lane.b32.xlu1 %v7323_v44, %s10160_s10  ;;  %v9009_v12 = vmul.f32 -1.442695, %v7323_v44 }
0x37fb   : > { %9696 = vpow2.f32 %v9009_v12 }
0x3808   : > { %v9697_v41 = vpop.eup %9696 }
0x3809   : > { %v7327_v55 = vadd.f32 1.0, %v9697_v41 }
0x380b   : > { %9698 = vrcp.f32 %v7327_v55 }
0x3818   : > { %v9699_v6 = vpop.eup %9698 }
0x3819   : > { %v7336_v4 = vmul.f32 %v9699_v6, %v7220_v36  ;;  %v7345_v58 = vrot.slane %v9699_v6, 1  ;;  %v12153_v36 = vld [vmem:[#allocation18 + $0x20] sm:$0xff] }
0x386b   : > { %v7332_v10 = vpop.permute.xlu1 %7331 }
0x386c   : > { %v7333_v57 = vrot.slane %v7332_v10, 1 }
0x386e   : > { %9700 = vtanh.f32 %v7333_v57 }
0x387b   : > { %v9701_v59 = vpop.eup %9700 }
0x387c   : > { %v7337_v2 = vmul.f32 %v9701_v59, %v9699_v6 }
0x387e   : > { %7339 = vrot.lane.b32.xlu0 %v7337_v2, %s10160_s10 }
0x38f0   : > { %v7340_v42 = vpop.permute.xlu0 %7339 }
0x38f1   : > { %v7342_v52 = vadd.f32 %v7340_v42, %v7336_v4 }
0x38f3   : > { %9702 = vtanh.f32 %v7342_v52 }
0x3900   : > { %v9703_v38 = vpop.eup %9702 }
0x3901   : > { %7348 = vrot.lane.b32.xlu1 %v9703_v38, %s10160_s10 }
0x3973   : > { %v7349_v60 = vpop.permute.xlu1 %7348 }
0x3974   : > { %v7351_v18 = vmul.f32 %v7349_v60, %v7345_v58 }
0x3976   : > { %9010 = vmatmul.mubr.msk.f32.vlgmr.msra.gmra.mxu0 %vm1140_vm5, %v7351_v18 }
0x3977   : > { %7617 = vmatpush1.msra.mxu0 %v11823_v1  ;;  %7664 = vmatprep.mubr.f32.mxu0 %v10158_v22  ;;  %v12113_v1 = vld [vmem:[#allocation18 + $0x78] sm:$0xff] }
0x3978   : > { %7618 = vmatprep.subr.mxu0 %v11826_v23 }
0x3979   : > { %7619 = vmatpush1.msra.mxu0 %v11833_v29 }
0x397a   : > { %7620 = vmatprep.subr.mxu0 %v11835_v31 }
0x397b   : > { %7621 = vmatpush1.msra.mxu0 %v11838_v21 }
0x397c   : > { %7622 = vmatprep.subr.mxu0 %v11841_v47 }
0x397d   : > { %7623 = vmatpush1.msra.mxu0 %v11845_v27  ;;  %v7352_v27 = vld [vmem:[#allocation2 + $0x10] ss:$8 sm:$0x3] }
0x397e   : > { %7624 = vmatprep.subr.mxu0 %v11848_v28 }
0x397f   : > { %7625 = vmatpush1.msra.mxu0 %v11851_v30 }
0x3980   : > { %7626 = vmatprep.subr.mxu0 %v11854_v40 }
0x3981   : > { %7627 = vmatpush1.msra.mxu0 %v11857_v50 }
0x3982   : > { %7628 = vmatprep.subr.mxu0 %v11860_v20 }
0x3983   : > { %7629 = vmatpush1.msra.mxu0 %v11863_v19 }
0x3984   : > { %7630 = vmatprep.subr.mxu0 %v11866_v14 }
0x3985   : > { %7631 = vmatpush1.msra.mxu0 %v11869_v17 }
0x3986   : > { %7860 = vmatprep.subr.mxu0 %v12113_v1 }
0x3a36   : > { %v7422_v23 = vpop.f32.mrf.mxu0 }
0x3a38   : > { %v7424_v29 = vpop.f32.mrf.mxu0 }
0x3a39   : > { %v7429_v31 = vcombine.low %v7422_v23, %v7424_v29 }
0x3a3b   : > { %v7436_v21 = vrot.slane %v7429_v31, %v10779_v45 }
0x3a3d   : > { %v7443_v47 = vrot.slane %v7436_v21, %v10779_v45 }
0x3a3f   : > { %v7445_v28 = vadd.f32 %v7443_v47, %v7352_v27  ;;  %v7596_v27 = vld [vmem:[#allocation2 + $0x12] ss:$8 sm:$0x3] }
0x3a41   : > { %7453 = vrot.lane.b32.xlu0 %v7445_v28, %s10160_s10  ;;  %v9011_v30 = vmul.f32 -1.442695, %v7445_v28 }
0x3a43   : > { %9704 = vpow2.f32 %v9011_v30 }
0x3a50   : > { %v9705_v40 = vpop.eup %9704 }
0x3a51   : > { %v7449_v50 = vadd.f32 1.0, %v9705_v40 }
0x3a53   : > { %9706 = vrcp.f32 %v7449_v50 }
0x3a60   : > { %v9707_v14 = vpop.eup %9706 }
0x3a61   : > { %v7458_v25 = vmul.f32 %v9707_v14, %v7342_v52  ;;  %v7467_v54 = vrot.slane %v9707_v14, 1 }
0x3ab3   : > { %v7454_v20 = vpop.permute.xlu0 %7453 }
0x3ab4   : > { %v7455_v19 = vrot.slane %v7454_v20, 1 }
0x3ab6   : > { %9708 = vtanh.f32 %v7455_v19 }
0x3ac3   : > { %v9709_v17 = vpop.eup %9708 }
0x3ac4   : > { %v7459_v62 = vmul.f32 %v9709_v17, %v9707_v14 }
0x3ac6   : > { %7461 = vrot.lane.b32.xlu1 %v7459_v62, %s10160_s10 }
0x3b38   : > { %v7462_v16 = vpop.permute.xlu1 %7461 }
0x3b39   : > { %v7464_v26 = vadd.f32 %v7462_v16, %v7458_v25 }
0x3b3b   : > { %9710 = vtanh.f32 %v7464_v26 }
0x3b48   : > { %v9711_v32 = vpop.eup %9710 }
0x3b49   : > { %7470 = vrot.lane.b32.xlu0 %v9711_v32, %s10160_s10 }
0x3bbb   : > { %v7471_v43 = vpop.permute.xlu0 %7470 }
0x3bbc   : > { %v7473_v53 = vmul.f32 %v7471_v43, %v7467_v54 }
0x3bbe   : > { %9012 = vmatmul.mubr.msk.f32.vlgmr.msra.gmra.mxu1 %vm1140_vm5, %v7473_v53 }
0x3bbf   : > { %7739 = vmatpush1.msra.mxu1 %v12122_v46  ;;  %7786 = vmatprep.mubr.f32.mxu1 %v10158_v22 }
0x3bc0   : > { %7740 = vmatprep.subr.mxu1 %v12126_v49 }
0x3bc1   : > { %7741 = vmatpush1.msra.mxu1 %v12129_v3 }
0x3bc2   : > { %7742 = vmatprep.subr.mxu1 %v12132_v0 }
0x3bc3   : > { %7743 = vmatpush1.msra.mxu1 %v12135_v5 }
0x3bc4   : > { %7744 = vmatprep.subr.mxu1 %v12138_v7 }
0x3bc5   : > { %7745 = vmatpush1.msra.mxu1 %v12141_v33 }
0x3bc6   : > { %7746 = vmatprep.subr.mxu1 %v12144_v56 }
0x3bc7   : > { %7747 = vmatpush1.msra.mxu1 %v12147_v35 }
0x3bc8   : > { %7748 = vmatprep.subr.mxu1 %v12150_v34 }
0x3bc9   : > { %7749 = vmatpush1.msra.mxu1 %v12153_v36 }
0x3bca   : > { %7750 = vmatprep.subr.mxu1 %v12156_v24 }
0x3bcb   : > { %7751 = vmatpush1.msra.mxu1 %v12159_v37 }
0x3bcc   : > { %7752 = vmatprep.subr.mxu1 %v12162_v48 }
0x3bcd   : > { %7753 = vmatpush1.msra.mxu1 %v12165_v13 }
0x3bce   : > { %7982 = vmatprep.subr.mxu1 %v12113_v1 }
0x3c7e   : > { %v7544_v15 = vpop.f32.mrf.mxu1 }
0x3c80   : > { %v7546_v39 = vpop.f32.mrf.mxu1 }
0x3c81   : > { %v7551_v51 = vcombine.low %v7544_v15, %v7546_v39 }
0x3c83   : > { %v7558_v61 = vrot.slane %v7551_v51, %v10779_v45 }
0x3c85   : > { %v7565_v63 = vrot.slane %v7558_v61, %v10779_v45 }
0x3c87   : > { %v7567_v44 = vadd.f32 %v7565_v63, %v7474_v9  ;;  %v7718_v9 = vld [vmem:[#allocation2 + $0x13] ss:$8 sm:$0x3] }
0x3c89   : > { %7575 = vrot.lane.b32.xlu1 %v7567_v44, %s10160_s10  ;;  %v9013_v12 = vmul.f32 -1.442695, %v7567_v44 }
0x3c8b   : > { %9712 = vpow2.f32 %v9013_v12 }
0x3c98   : > { %v9713_v41 = vpop.eup %9712 }
0x3c99   : > { %v7571_v55 = vadd.f32 1.0, %v9713_v41 }
0x3c9b   : > { %9714 = vrcp.f32 %v7571_v55 }
0x3ca8   : > { %v9715_v6 = vpop.eup %9714 }
0x3ca9   : > { %v7580_v4 = vmul.f32 %v9715_v6, %v7464_v26  ;;  %v7589_v58 = vrot.slane %v9715_v6, 1 }
0x3cfb   : > { %v7576_v10 = vpop.permute.xlu1 %7575 }
0x3cfc   : > { %v7577_v57 = vrot.slane %v7576_v10, 1 }
0x3cfe   : > { %9716 = vtanh.f32 %v7577_v57 }
0x3d0b   : > { %v9717_v59 = vpop.eup %9716 }
0x3d0c   : > { %v7581_v2 = vmul.f32 %v9717_v59, %v9715_v6 }
0x3d0e   : > { %7583 = vrot.lane.b32.xlu0 %v7581_v2, %s10160_s10 }
0x3d80   : > { %v7584_v42 = vpop.permute.xlu0 %7583 }
0x3d81   : > { %v7586_v52 = vadd.f32 %v7584_v42, %v7580_v4 }
0x3d83   : > { %9718 = vtanh.f32 %v7586_v52 }
0x3d90   : > { %v9719_v38 = vpop.eup %9718 }
0x3d91   : > { %7592 = vrot.lane.b32.xlu1 %v9719_v38, %s10160_s10 }
0x3e03   : > { %v7593_v60 = vpop.permute.xlu1 %7592 }
0x3e04   : > { %v7595_v18 = vmul.f32 %v7593_v60, %v7589_v58 }
0x3e06   : > { %9014 = vmatmul.mubr.msk.f32.vlgmr.msra.gmra.mxu0 %vm1140_vm5, %v7595_v18 }
0x3e07   : > { %7861 = vmatpush1.msra.mxu0 %v12122_v46  ;;  %7908 = vmatprep.mubr.f32.mxu0 %v10158_v22 }
0x3e08   : > { %7862 = vmatprep.subr.mxu0 %v12126_v49 }
0x3e09   : > { %7863 = vmatpush1.msra.mxu0 %v12129_v3 }
0x3e0a   : > { %7864 = vmatprep.subr.mxu0 %v12132_v0 }
0x3e0b   : > { %7865 = vmatpush1.msra.mxu0 %v12135_v5 }
0x3e0c   : > { %7866 = vmatprep.subr.mxu0 %v12138_v7 }
0x3e0d   : > { %7867 = vmatpush1.msra.mxu0 %v12141_v33 }
0x3e0e   : > { %7868 = vmatprep.subr.mxu0 %v12144_v56 }
0x3e0f   : > { %7869 = vmatpush1.msra.mxu0 %v12147_v35 }
0x3e10   : > { %7870 = vmatprep.subr.mxu0 %v12150_v34 }
0x3e11   : > { %7871 = vmatpush1.msra.mxu0 %v12153_v36 }
0x3e12   : > { %7872 = vmatprep.subr.mxu0 %v12156_v24 }
0x3e13   : > { %7873 = vmatpush1.msra.mxu0 %v12159_v37 }
0x3e14   : > { %7874 = vmatprep.subr.mxu0 %v12162_v48 }
0x3e15   : > { %7875 = vmatpush1.msra.mxu0 %v12165_v13 }
0x3e16   : > { %8104 = vmatprep.subr.mxu0 %v12113_v1 }
0x3ec6   : > { %v7666_v23 = vpop.f32.mrf.mxu0 }
0x3ec8   : > { %v7668_v29 = vpop.f32.mrf.mxu0 }
0x3ec9   : > { %v7673_v31 = vcombine.low %v7666_v23, %v7668_v29 }
0x3ecb   : > { %v7680_v21 = vrot.slane %v7673_v31, %v10779_v45 }
0x3ecd   : > { %v7687_v47 = vrot.slane %v7680_v21, %v10779_v45 }
0x3ecf   : > { %v7689_v28 = vadd.f32 %v7687_v47, %v7596_v27  ;;  %v7840_v47 = vld [vmem:[#allocation2 + $0x14] ss:$8 sm:$0x3] }
0x3ed1   : > { %7697 = vrot.lane.b32.xlu0 %v7689_v28, %s10160_s10  ;;  %v9015_v30 = vmul.f32 -1.442695, %v7689_v28 }
0x3ed3   : > { %9720 = vpow2.f32 %v9015_v30 }
0x3ee0   : > { %v9721_v40 = vpop.eup %9720 }
0x3ee1   : > { %v7693_v50 = vadd.f32 1.0, %v9721_v40 }
0x3ee3   : > { %9722 = vrcp.f32 %v7693_v50 }
0x3ef0   : > { %v9723_v14 = vpop.eup %9722 }
0x3ef1   : > { %v7702_v25 = vmul.f32 %v9723_v14, %v7586_v52  ;;  %v7711_v54 = vrot.slane %v9723_v14, 1 }
0x3f43   : > { %v7698_v20 = vpop.permute.xlu0 %7697 }
0x3f44   : > { %v7699_v19 = vrot.slane %v7698_v20, 1 }
0x3f46   : > { %9724 = vtanh.f32 %v7699_v19 }
0x3f53   : > { %v9725_v17 = vpop.eup %9724 }
0x3f54   : > { %v7703_v62 = vmul.f32 %v9725_v17, %v9723_v14 }
0x3f56   : > { %7705 = vrot.lane.b32.xlu1 %v7703_v62, %s10160_s10 }
0x3fc8   : > { %v7706_v16 = vpop.permute.xlu1 %7705 }
0x3fc9   : > { %v7708_v26 = vadd.f32 %v7706_v16, %v7702_v25 }
0x3fcb   : > { %9726 = vtanh.f32 %v7708_v26 }
0x3fd8   : > { %v9727_v32 = vpop.eup %9726 }
0x3fd9   : > { %7714 = vrot.lane.b32.xlu0 %v9727_v32, %s10160_s10 }
0x404b   : > { %v7715_v43 = vpop.permute.xlu0 %7714 }
0x404c   : > { %v7717_v53 = vmul.f32 %v7715_v43, %v7711_v54 }
0x404e   : > { %9016 = vmatmul.mubr.msk.f32.vlgmr.msra.gmra.mxu1 %vm1140_vm5, %v7717_v53 }
0x404f   : > { %7983 = vmatpush1.msra.mxu1 %v12122_v46  ;;  %8030 = vmatprep.mubr.f32.mxu1 %v10158_v22 }
0x4050   : > { %7984 = vmatprep.subr.mxu1 %v12126_v49 }
0x4051   : > { %7985 = vmatpush1.msra.mxu1 %v12129_v3 }
0x4052   : > { %7986 = vmatprep.subr.mxu1 %v12132_v0 }
0x4053   : > { %7987 = vmatpush1.msra.mxu1 %v12135_v5 }
0x4054   : > { %7988 = vmatprep.subr.mxu1 %v12138_v7 }
0x4055   : > { %7989 = vmatpush1.msra.mxu1 %v12141_v33 }
0x4056   : > { %7990 = vmatprep.subr.mxu1 %v12144_v56 }
0x4057   : > { %7991 = vmatpush1.msra.mxu1 %v12147_v35 }
0x4058   : > { %7992 = vmatprep.subr.mxu1 %v12150_v34 }
0x4059   : > { %7993 = vmatpush1.msra.mxu1 %v12153_v36 }
0x405a   : > { %7994 = vmatprep.subr.mxu1 %v12156_v24 }
0x405b   : > { %7995 = vmatpush1.msra.mxu1 %v12159_v37 }
0x405c   : > { %7996 = vmatprep.subr.mxu1 %v12162_v48 }
0x405d   : > { %7997 = vmatpush1.msra.mxu1 %v12165_v13 }
0x405e   : > { %8226 = vmatprep.subr.mxu1 %v12113_v1 }
0x410e   : > { %v7788_v15 = vpop.f32.mrf.mxu1 }
0x4110   : > { %v7790_v39 = vpop.f32.mrf.mxu1 }
0x4111   : > { %v7795_v51 = vcombine.low %v7788_v15, %v7790_v39 }
0x4113   : > { %v7802_v61 = vrot.slane %v7795_v51, %v10779_v45  ;;  %v8361_v51 = vld [vmem:[#allocation20 + $0xf8] sm:$0xff] }
0x4115   : > { %v7809_v63 = vrot.slane %v7802_v61, %v10779_v45 }
0x4117   : > { %v7811_v44 = vadd.f32 %v7809_v63, %v7718_v9 }
0x4119   : > { %7819 = vrot.lane.b32.xlu1 %v7811_v44, %s10160_s10  ;;  %v9017_v12 = vmul.f32 -1.442695, %v7811_v44 }
0x411b   : > { %9728 = vpow2.f32 %v9017_v12  ;;  %v8360_v12 = vld [vmem:[#allocation20 + $0xf0] sm:$0xff] }
0x4128   : > { %v9729_v41 = vpop.eup %9728 }
0x4129   : > { %v7815_v55 = vadd.f32 1.0, %v9729_v41  ;;  %v8359_v41 = vld [vmem:[#allocation20 + $0xe8] sm:$0xff] }
0x412b   : > { %9730 = vrcp.f32 %v7815_v55  ;;  %v8358_v55 = vld [vmem:[#allocation20 + $0xe0] sm:$0xff] }
0x4138   : > { %v9731_v1 = vpop.eup %9730 }
0x4139   : > { %v7824_v2 = vmul.f32 %v9731_v1, %v7708_v26  ;;  %v7833_v38 = vrot.slane %v9731_v1, 1 }
0x418b   : > { %v7820_v10 = vpop.permute.xlu1 %7819 }
0x418c   : > { %v7821_v57 = vrot.slane %v7820_v10, 1  ;;  %v8357_v10 = vld [vmem:[#allocation20 + $0xd8] sm:$0xff] }
0x418e   : > { %9732 = vtanh.f32 %v7821_v57  ;;  %v8356_v57 = vld [vmem:[#allocation20 + $0xd0] sm:$0xff] }
0x419b   : > { %v9733_v6 = vpop.eup %9732 }
0x419c   : > { %v7825_v59 = vmul.f32 %v9733_v6, %v9731_v1  ;;  %v8355_v1 = vld [vmem:[#allocation20 + $0xc8] sm:$0xff]  ;;  %v8354_v6 = vld [vmem:[#allocation20 + $0xc0] sm:$0xff] }
0x419e   : > { %7827 = vrot.lane.b32.xlu0 %v7825_v59, %s10160_s10  ;;  %v8353_v59 = vld [vmem:[#allocation20 + $0xb8] sm:$0xff] }
0x4210   : > { %v7828_v4 = vpop.permute.xlu0 %7827 }
0x4211   : > { %v7830_v42 = vadd.f32 %v7828_v4, %v7824_v2  ;;  %v8352_v2 = vld [vmem:[#allocation20 + $0xb0] sm:$0xff]  ;;  %v8351_v4 = vld [vmem:[#allocation20 + $0xa8] sm:$0xff] }
0x4213   : > { %9734 = vtanh.f32 %v7830_v42 }
0x4220   : > { %v9735_v52 = vpop.eup %9734 }
0x4221   : > { %7836 = vrot.lane.b32.xlu1 %v9735_v52, %s10160_s10  ;;  %v8349_v52 = vld [vmem:[#allocation20 + $0x98] sm:$0xff] }
0x4293   : > { %v7837_v58 = vpop.permute.xlu1 %7836 }
0x4294   : > { %v7839_v60 = vmul.f32 %v7837_v58, %v7833_v38  ;;  %v8348_v38 = vld [vmem:[#allocation20 + $0x90] sm:$0xff]  ;;  %v8347_v58 = vld [vmem:[#allocation20 + $0x88] sm:$0xff] }
0x4296   : > { %9018 = vmatmul.mubr.msk.f32.vlgmr.msra.gmra.mxu0 %vm1140_vm5, %v7839_v60  ;;  %v8346_v60 = vld [vmem:[#allocation20 + $0x80] sm:$0xff] }
0x4297   : > { %8105 = vmatpush1.msra.mxu0 %v12122_v46  ;;  %8152 = vmatprep.mubr.f32.mxu0 %v10158_v22 }
0x4298   : > { %8106 = vmatprep.subr.mxu0 %v12126_v49 }
0x4299   : > { %8107 = vmatpush1.msra.mxu0 %v12129_v3 }
0x429a   : > { %8108 = vmatprep.subr.mxu0 %v12132_v0 }
0x429b   : > { %8109 = vmatpush1.msra.mxu0 %v12135_v5 }
0x429c   : > { %8110 = vmatprep.subr.mxu0 %v12138_v7 }
0x429d   : > { %8111 = vmatpush1.msra.mxu0 %v12141_v33 }
0x429e   : > { %8112 = vmatprep.subr.mxu0 %v12144_v56 }
0x429f   : > { %8113 = vmatpush1.msra.mxu0 %v12147_v35 }
0x42a0   : > { %8114 = vmatprep.subr.mxu0 %v12150_v34 }
0x42a1   : > { %8115 = vmatpush1.msra.mxu0 %v12153_v36 }
0x42a2   : > { %8116 = vmatprep.subr.mxu0 %v12156_v24 }
0x42a3   : > { %8117 = vmatpush1.msra.mxu0 %v12159_v37 }
0x42a4   : > { %8118 = vmatprep.subr.mxu0 %v12162_v48 }
0x42a5   : > { %8119 = vmatpush1.msra.mxu0 %v12165_v13 }
0x42a6   : > { %8381 = vmatprep.subr.mxu0 %v8361_v51 }
0x4356   : > { %v7910_v18 = vpop.f32.mrf.mxu0 }
0x4358   : > { %v7912_v23 = vpop.f32.mrf.mxu0 }
0x4359   : > { %v7917_v29 = vcombine.low %v7910_v18, %v7912_v23  ;;  %v8345_v18 = vld [vmem:[#allocation5 + $0xf] sm:$0x1] }
0x435b   : > { %v7924_v31 = vrot.slane %v7917_v29, %v10779_v45 }
0x435d   : > { %v7931_v21 = vrot.slane %v7924_v31, %v10779_v45 }
0x435f   : > { %v7933_v27 = vadd.f32 %v7931_v21, %v7840_v47 }
0x4361   : > { %7941 = vrot.lane.b32.xlu0 %v7933_v27, %s10160_s10  ;;  %v9019_v28 = vmul.f32 -1.442695, %v7933_v27  ;;  %v8084_v27 = vld [vmem:[#allocation2 + $0x16] ss:$8 sm:$0x3] }
0x4363   : > { %9736 = vpow2.f32 %v9019_v28 }
0x4370   : > { %v9737_v30 = vpop.eup %9736 }
0x4371   : > { %v7937_v40 = vadd.f32 1.0, %v9737_v30 }
0x4373   : > { %9738 = vrcp.f32 %v7937_v40 }
0x4380   : > { %v9739_v19 = vpop.eup %9738 }
0x4381   : > { %v7946_v62 = vmul.f32 %v9739_v19, %v7830_v42  ;;  %v7955_v32 = vrot.slane %v9739_v19, 1  ;;  %v8350_v42 = vld [vmem:[#allocation20 + $0xa0] sm:$0xff] }
0x43d3   : > { %v7942_v50 = vpop.permute.xlu0 %7941 }
0x43d4   : > { %v7943_v20 = vrot.slane %v7942_v50, 1 }
0x43d6   : > { %9740 = vtanh.f32 %v7943_v20 }
0x43e3   : > { %v9741_v14 = vpop.eup %9740 }
0x43e4   : > { %v7947_v17 = vmul.f32 %v9741_v14, %v9739_v19 }
0x43e6   : > { %7949 = vrot.lane.b32.xlu1 %v7947_v17, %s10160_s10 }
0x4458   : > { %v7950_v25 = vpop.permute.xlu1 %7949 }
0x4459   : > { %v7952_v16 = vadd.f32 %v7950_v25, %v7946_v62 }
0x445b   : > { %9742 = vtanh.f32 %v7952_v16 }
0x4468   : > { %v9743_v26 = vpop.eup %9742 }
0x4469   : > { %7958 = vrot.lane.b32.xlu0 %v9743_v26, %s10160_s10 }
0x44db   : > { %v7959_v54 = vpop.permute.xlu0 %7958 }
0x44dc   : > { %v7961_v43 = vmul.f32 %v7959_v54, %v7955_v32  ;;  %v8344_v32 = vld [vmem:[#allocation20 + $0x78] sm:$0xff] }
0x44de   : > { %9020 = vmatmul.mubr.msk.f32.vlgmr.msra.gmra.mxu1 %vm1140_vm5, %v7961_v43 }
0x44df   : > { %8227 = vmatpush1.msra.mxu1 %v12122_v46  ;;  %8274 = vmatprep.mubr.f32.mxu1 %v10158_v22 }
0x44e0   : > { %8228 = vmatprep.subr.mxu1 %v12126_v49 }
0x44e1   : > { %8229 = vmatpush1.msra.mxu1 %v12129_v3 }
0x44e2   : > { %8230 = vmatprep.subr.mxu1 %v12132_v0 }
0x44e3   : > { %8231 = vmatpush1.msra.mxu1 %v12135_v5 }
0x44e4   : > { %8232 = vmatprep.subr.mxu1 %v12138_v7  ;;  %v7962_v7 = vld [vmem:[#allocation2 + $0x15] ss:$8 sm:$0x3] }
0x44e5   : > { %8233 = vmatpush1.msra.mxu1 %v12141_v33 }
0x44e6   : > { %8234 = vmatprep.subr.mxu1 %v12144_v56 }
0x44e7   : > { %8235 = vmatpush1.msra.mxu1 %v12147_v35 }
0x44e8   : > { %8236 = vmatprep.subr.mxu1 %v12150_v34 }
0x44e9   : > { %8237 = vmatpush1.msra.mxu1 %v12153_v36 }
0x44ea   : > { %8238 = vmatprep.subr.mxu1 %v12156_v24 }
0x44eb   : > { %8239 = vmatpush1.msra.mxu1 %v12159_v37 }
0x44ec   : > { %8240 = vmatprep.subr.mxu1 %v12162_v48 }
0x44ed   : > { %8241 = vmatpush1.msra.mxu1 %v12165_v13 }
0x44ee   : > { %8455 = vmatprep.subr.mxu1 %v8344_v32 }
0x459e   : > { %v8032_v46 = vpop.f32.mrf.mxu1 }
0x45a0   : > { %v8034_v49 = vpop.f32.mrf.mxu1 }
0x45a1   : > { %v8039_v3 = vcombine.low %v8032_v46, %v8034_v49 }
0x45a3   : > { %v8046_v0 = vrot.slane %v8039_v3, %v10779_v45  ;;  %v8343_v3 = vld [vmem:[#allocation20 + $0x70] sm:$0xff] }
0x45a5   : > { %v8053_v5 = vrot.slane %v8046_v0, %v10779_v45  ;;  %v8342_v0 = vld [vmem:[#allocation20 + $0x68] sm:$0xff] }
0x45a7   : > { %v8055_v33 = vadd.f32 %v8053_v5, %v7962_v7  ;;  %v8341_v5 = vld [vmem:[#allocation20 + $0x60] sm:$0xff]  ;;  %v8340_v7 = vld [vmem:[#allocation20 + $0x58] sm:$0xff] }
0x45a9   : > { %8063 = vrot.lane.b32.xlu1 %v8055_v33, %s10160_s10  ;;  %v9021_v56 = vmul.f32 -1.442695, %v8055_v33  ;;  %v8339_v33 = vld [vmem:[#allocation20 + $0x50] sm:$0xff] }
0x45ab   : > { %9744 = vpow2.f32 %v9021_v56  ;;  %v8338_v56 = vld [vmem:[#allocation20 + $0x48] sm:$0xff] }
0x45b8   : > { %v9745_v35 = vpop.eup %9744 }
0x45b9   : > { %v8059_v34 = vadd.f32 1.0, %v9745_v35  ;;  %v8337_v35 = vld [vmem:[#allocation20 + $0x40] sm:$0xff] }
0x45bb   : > { %9746 = vrcp.f32 %v8059_v34  ;;  %v8336_v34 = vld [vmem:[#allocation20 + $0x38] sm:$0xff] }
0x45c8   : > { %v9747_v37 = vpop.eup %9746 }
0x45c9   : > { %v8068_v53 = vmul.f32 %v9747_v37, %v7952_v16  ;;  %v8077_v63 = vrot.slane %v9747_v37, 1 }
0x461b   : > { %v8064_v36 = vpop.permute.xlu1 %8063 }
0x461c   : > { %v8065_v24 = vrot.slane %v8064_v36, 1  ;;  %v8335_v36 = vld [vmem:[#allocation20 + $0x30] sm:$0xff] }
0x461e   : > { %9748 = vtanh.f32 %v8065_v24  ;;  %v8334_v24 = vld [vmem:[#allocation20 + $0x28] sm:$0xff] }
0x462b   : > { %v9749_v48 = vpop.eup %9748 }
0x462c   : > { %v8069_v13 = vmul.f32 %v9749_v48, %v9747_v37  ;;  %v8333_v37 = vld [vmem:[#allocation20 + $0x20] sm:$0xff]  ;;  %v8332_v48 = vld [vmem:[#allocation20 + $0x18] sm:$0xff] }
0x462e   : > { %8071 = vrot.lane.b32.xlu0 %v8069_v13, %s10160_s10  ;;  %v8331_v13 = vld [vmem:[#allocation20 + $0x10] sm:$0xff] }
0x46a0   : > { %v8072_v15 = vpop.permute.xlu0 %8071 }
0x46a1   : > { %v12263_v39 = vadd.f32 %v8072_v15, %v8068_v53  ;;  %v8330_v53 = vld [vmem:[#allocation20 + $0x8] sm:$0xff]  ;;  %v8329_v15 = vld [vmem:[#allocation20] sm:$0xff] }
0x46a3   : > { %9750 = vtanh.f32 %v12263_v39 }
0x46b0   : > { %v9751_v61 = vpop.eup %9750 }
0x46b1   : > { %8080 = vrot.lane.b32.xlu1 %v9751_v61, %s10160_s10 }
0x4723   : > { %v8081_v9 = vpop.permute.xlu1 %8080 }
0x4724   : > { %v8083_v44 = vmul.f32 %v8081_v9, %v8077_v63 }
0x4726   : > { %9022 = vmatmul.mubr.msk.f32.vlgmr.msra.gmra.mxu0 %vm1140_vm5, %v8083_v44 }
0x4727   : > { %8382 = vmatpush1.msra.mxu0 %v8360_v12  ;;  %8429 = vmatprep.mubr.f32.mxu0 %v10158_v22  ;;  %v8206_v12 = vld [vmem:[#allocation2 + $0x17] ss:$8 sm:$0x3] }
0x4728   : > { %8383 = vmatprep.subr.mxu0 %v8359_v41 }
0x4729   : > { %8384 = vmatpush1.msra.mxu0 %v8358_v55  ;;  %v8510_v55 = vld [vmem:[%s12503_s23] sm:$0x3]  ;;  %s8723_s23 = scalar_lea.sflag [#allocation8], %s10489_s16 }
0x472a   : > { %8385 = vmatprep.subr.mxu0 %v8357_v10 }
0x472b   : > { %8386 = vmatpush1.msra.mxu0 %v8356_v57  ;;  %v8515_v57 = vrot.slane %v8510_v55, %v10763_v8 }
0x472c   : > { %8387 = vmatprep.subr.mxu0 %v8355_v1 }
0x472d   : > { %8388 = vmatpush1.msra.mxu0 %v8354_v6 }
0x472e   : > { %8389 = vmatprep.subr.mxu0 %v8353_v59  ;;  %v8519_v59 = vrot.slane %v8510_v55, %v10772_v11  ;;  %v8718_v55 = vld [vmem:[%s12505_s0] sm:$0x1] }
0x472f   : > { %8390 = vmatpush1.msra.mxu0 %v8352_v2 }
0x4730   : > { %8391 = vmatprep.subr.mxu0 %v8351_v4 }
0x4731   : > { %8392 = vmatpush1.msra.mxu0 %v8350_v42 }
0x4732   : > { %8393 = vmatprep.subr.mxu0 %v8349_v52 }
0x4733   : > { %8394 = vmatpush1.msra.mxu0 %v8348_v38 }
0x4734   : > { %8395 = vmatprep.subr.mxu0 %v8347_v58 }
0x4735   : > { %8396 = vmatpush1.msra.mxu0 %v8346_v60 }
0x4736   : > { %9026 = vmatmul.mubr.msk.f32.vlgmr.msra.gmra.mxu0 %vm1140_vm5, %v8345_v18  ;;  %9201 = vmatprep.subr.mxu0 %v10158_v22 }
0x4737   : > { %9217 = vmatprep.mubr.msk.f32.mxu0 %vm10161_vm7, %v10158_v22 }
0x47e6   : > { %v8154_v23 = vpop.f32.mrf.mxu0 }
0x47e8   : > { %v8156_v29 = vpop.f32.mrf.mxu0 }
0x47e9   : > { %v8161_v31 = vcombine.low %v8154_v23, %v8156_v29 }
0x47eb   : > { %v8168_v21 = vrot.slane %v8161_v31, %v10779_v45 }
0x47ed   : > { %v8175_v47 = vrot.slane %v8168_v21, %v10779_v45 }
0x47ef   : > { %v8177_v28 = vadd.f32 %v8175_v47, %v8084_v27 }
0x47f1   : > { %8185 = vrot.lane.b32.xlu0 %v8177_v28, %s10160_s10  ;;  %v9023_v30 = vmul.f32 -1.442695, %v8177_v28 }
0x47f3   : > { %9752 = vpow2.f32 %v9023_v30 }
0x47f6   : > { %v8431_v10 = vpop.f32.mrf.mxu0 }
0x47f8   : > { %v8433_v2 = vpop.f32.mrf.mxu0 }
0x4800   : > { %v9753_v40 = vpop.eup %9752 }
0x4801   : > { %v8181_v50 = vadd.f32 1.0, %v9753_v40 }
0x4803   : > { %9754 = vrcp.f32 %v8181_v50  ;;  %v8562_v50 = vld [vmem:[%s12504_s17 + $0x38] sm:$0xff] }
0x4810   : > { %v9755_v14 = vpop.eup %9754 }
0x4811   : > { %v8190_v25 = vmul.f32 %v9755_v14, %v12263_v39  ;;  %v8199_v43 = vrot.slane %v9755_v14, 1  ;;  %v8328_v39 = vld [vmem:[#allocation4 + $0xf] sm:$0x1] }
0x4863   : > { %v8186_v20 = vpop.permute.xlu0 %8185 }
0x4864   : > { %v8187_v19 = vrot.slane %v8186_v20, 1  ;;  %v8561_v20 = vld [vmem:[%s12504_s17 + $0x30] sm:$0xff] }
0x4866   : > { %9756 = vtanh.f32 %v8187_v19  ;;  %v8571_v19 = vld [vmem:[%s12504_s17 + $0x78] sm:$0xff] }
0x4867   : > { %9202 = vmatpush3.msra.mxu0 %v8571_v19 }
0x4868   : > { %9203 = vmatprep.subr.mxu0 %v10158_v22 }
0x4873   : > { %v9757_v17 = vpop.eup %9756 }
0x4874   : > { %v8191_v62 = vmul.f32 %v9757_v17, %v9755_v14  ;;  %v8560_v14 = vld [vmem:[%s12504_s17 + $0x28] sm:$0xff]  ;;  %v8559_v17 = vld [vmem:[%s12504_s17 + $0x20] sm:$0xff] }
0x4876   : > { %8193 = vrot.lane.b32.xlu1 %v8191_v62, %s10160_s10  ;;  %v8558_v62 = vld [vmem:[%s12504_s17 + $0x18] sm:$0xff] }
0x48e8   : > { %v8194_v16 = vpop.permute.xlu1 %8193 }
0x48e9   : > { %v12276_v26 = vadd.f32 %v8194_v16, %v8190_v25  ;;  %v8557_v25 = vld [vmem:[%s12504_s17 + $0x10] sm:$0xff] }
0x48eb   : > { %9758 = vtanh.f32 %v12276_v26 }
0x48f8   : > { %v9759_v54 = vpop.eup %9758 }
0x48f9   : > { %8202 = vrot.lane.b32.xlu0 %v9759_v54, %s10160_s10 }
0x496b   : > { %v8203_v46 = vpop.permute.xlu0 %8202 }
0x496c   : > { %v8205_v49 = vmul.f32 %v8203_v46, %v8199_v43  ;;  %v8570_v43 = vld [vmem:[%s12504_s17 + $0x70] sm:$0xff]  ;;  %v8556_v46 = vld [vmem:[%s12504_s17 + $0x8] sm:$0xff] }
0x496d   : > { %9204 = vmatpush3.msra.mxu0 %v8570_v43 }
0x496e   : > { %9024 = vmatmul.mubr.msk.f32.vlgmr.msra.gmra.mxu1 %vm1140_vm5, %v8205_v49  ;;  %v8569_v49 = vld [vmem:[%s12504_s17 + $0x68] sm:$0xff]  ;;  %9205 = vmatprep.subr.mxu0 %v10158_v22 }
0x496f   : > { %8456 = vmatpush1.msra.mxu1 %v8343_v3  ;;  %8503 = vmatprep.mubr.f32.mxu1 %v10158_v22  ;;  %v8568_v3 = vld [vmem:[%s12504_s17 + $0x60] sm:$0xff] }
0x4970   : > { %8457 = vmatprep.subr.mxu1 %v8342_v0  ;;  %9206 = vmatpush3.msra.mxu0 %v8569_v49 }
0x4971   : > { %8458 = vmatpush1.msra.mxu1 %v8341_v5  ;;  %9207 = vmatprep.subr.mxu0 %v10158_v22  ;;  %v8567_v5 = vld [vmem:[%s12504_s17 + $0x58] sm:$0xff] }
0x4972   : > { %8459 = vmatprep.subr.mxu1 %v8340_v7  ;;  %9208 = vmatpush3.msra.mxu0 %v8568_v3 }
0x4973   : > { %8460 = vmatpush1.msra.mxu1 %v8339_v33  ;;  %9209 = vmatprep.subr.mxu0 %v10158_v22 }
0x4974   : > { %8461 = vmatprep.subr.mxu1 %v8338_v56  ;;  %v8566_v56 = vld [vmem:[%s12504_s17 + $0x50] sm:$0xff]  ;;  %9210 = vmatpush3.msra.mxu0 %v8567_v5 }
0x4975   : > { %8462 = vmatpush1.msra.mxu1 %v8337_v35  ;;  %9211 = vmatprep.subr.mxu0 %v10158_v22 }
0x4976   : > { %8463 = vmatprep.subr.mxu1 %v8336_v34  ;;  %9212 = vmatpush3.msra.mxu0 %v8566_v56  ;;  %v8565_v34 = vld [vmem:[%s12504_s17 + $0x48] sm:$0xff] }
0x4977   : > { %8464 = vmatpush1.msra.mxu1 %v8335_v36  ;;  %9213 = vmatprep.subr.mxu0 %v10158_v22  ;;  %v8564_v36 = vld [vmem:[%s12504_s17 + $0x40] sm:$0xff] }
0x4978   : > { %8465 = vmatprep.subr.mxu1 %v8334_v24  ;;  %9214 = vmatpush3.msra.mxu0 %v8565_v34 }
0x4979   : > { %8466 = vmatpush1.msra.mxu1 %v8333_v37  ;;  %9215 = vmatprep.subr.mxu0 %v10158_v22 }
0x497a   : > { %8467 = vmatprep.subr.mxu1 %v8332_v48  ;;  %9216 = vmatpush3.msra.mxu0 %v8564_v36 }
0x497b   : > { %8468 = vmatpush1.msra.mxu1 %v8331_v13 }
0x497c   : > { %8469 = vmatprep.subr.mxu1 %v8330_v53 }
0x497d   : > { %8470 = vmatpush1.msra.mxu1 %v8329_v15 }
0x497e   : > { %9027 = vmatmul.mubr.msk.f32.vlgmr.msra.gmra.mxu1 %vm1140_vm5, %v8328_v39  ;;  %9220 = vmatprep.subr.mxu1 %v10158_v22 }
0x497f   : > { %9221 = vmatpush3.msra.mxu1 %v8562_v50  ;;  %9236 = vmatprep.mubr.msk.f32.mxu1 %vm10161_vm7, %v10158_v22 }
0x4980   : > { %9222 = vmatprep.subr.mxu1 %v10158_v22 }
0x4981   : > { %9223 = vmatpush3.msra.mxu1 %v8561_v20 }
0x4982   : > { %9224 = vmatprep.subr.mxu1 %v10158_v22 }
0x4983   : > { %9225 = vmatpush3.msra.mxu1 %v8560_v14 }
0x4984   : > { %9226 = vmatprep.subr.mxu1 %v10158_v22 }
0x4985   : > { %9227 = vmatpush3.msra.mxu1 %v8559_v17 }
0x4986   : > { %9228 = vmatprep.subr.mxu1 %v10158_v22 }
0x4987   : > { %9229 = vmatpush3.msra.mxu1 %v8558_v62 }
0x4988   : > { %9230 = vmatprep.subr.mxu1 %v10158_v22 }
0x4989   : > { %9231 = vmatpush3.msra.mxu1 %v8557_v25 }
0x498a   : > { %9232 = vmatprep.subr.mxu1 %v10158_v22 }
0x498b   : > { %9233 = vmatpush3.msra.mxu1 %v8556_v46 }
0x498c   : > { %9234 = vmatprep.subr.mxu1 %v10158_v22 }
0x4a2e   : > { %v8276_v51 = vpop.f32.mrf.mxu1 }
0x4a30   : > { %v8278_v61 = vpop.f32.mrf.mxu1 }
0x4a31   : > { %v8283_v63 = vcombine.low %v8276_v51, %v8278_v61 }
0x4a33   : > { %v8290_v9 = vrot.slane %v8283_v63, %v10779_v45 }
0x4a35   : > { %v8297_v44 = vrot.slane %v8290_v9, %v10779_v45 }
0x4a37   : > { %v8299_v41 = vadd.f32 %v8297_v44, %v8206_v12 }
0x4a39   : > { %8307 = vrot.lane.b32.xlu1 %v8299_v41, %s10160_s10  ;;  %v9025_v58 = vmul.f32 -1.442695, %v8299_v41 }
0x4a3e   : > { %v8505_v1 = vpop.f32.mrf.mxu1 }
0x4a3f   : > { %v8506_v6 = vadd.f32 %v8505_v1, %v8431_v10 }
0x4a40   : > { %v8507_v4 = vpop.f32.mrf.mxu1 }
0x4a41   : > { %v8522_v42 = vadd.f32 %v8515_v57, %v8506_v6  ;;  %v8508_v52 = vadd.f32 %v8507_v4, %v8433_v2 }
0x4a43   : > { %v12292_v45 = vadd.f32 %v8519_v59, %v8508_v52  ;;  %v9028_v60 = vmul.f32 -1.442695, %v8522_v42 }
0x4a45   : > { %9760 = vtanh.f32 %v12292_v45  ;;  %v9029_v37 = vmul.f32 -1.442695, %v12292_v45 }
0x4a46   : > { %9762 = vpow2.f32 %v9025_v58 }
0x4a47   : > { %9764 = vpow2.f32 %v9028_v60 }
0x4a52   : > { %v9761_v38 = vpop.eup %9760 }
0x4a53   : > { %8539 = vrot.lane.b32.xlu0 %v9761_v38, %s10160_s10  ;;  %v9763_v8 = vpop.eup %9762 }
0x4a54   : > { %v8303_v18 = vadd.f32 1.0, %v9763_v8  ;;  %v9765_v11 = vpop.eup %9764 }
0x4a55   : > { %v8530_v31 = vadd.f32 1.0, %v9765_v11 }
0x4a56   : > { %9766 = vrcp.f32 %v8303_v18 }
0x4a63   : > { %v12296_v21 = vpop.eup %9766 }
0x4a64   : > { %v8312_v16 = vmul.f32 %v12296_v21, %v12276_v26  ;;  %v8555_v26 = vld [vmem:[%s12504_s17] sm:$0xff]  ;;  %v8321_v53 = vrot.slane %v12296_v21, 1 }
0x4a65   : > { %9235 = vmatpush3.msra.mxu1 %v8555_v26 }
0x4aab   : > { %v8308_v23 = vpop.permute.xlu1 %8307 }
0x4aac   : > { %v8309_v29 = vrot.slane %v8308_v23, 1 }
0x4aae   : > { %9768 = vtanh.f32 %v8309_v29 }
0x4aaf   : > { %9770 = vrcp.f32 %v8530_v31 }
0x4abb   : > { %v9769_v47 = vpop.eup %9768 }
0x4abc   : > { %v8313_v27 = vmul.f32 %v9769_v47, %v12296_v21  ;;  %v9771_v28 = vpop.eup %9770 }
0x4abd   : > { %v8537_v0 = vmul.f32 0.0, %v9771_v28 }
0x4abe   : > { %8315 = vrot.lane.b32.xlu1 %v8313_v27, %s10160_s10 }
0x4ac5   : > { %v8540_v30 = vpop.permute.xlu0 %8539 }
0x4ac6   : > { %v8542_v40 = vmul.f32 %v9771_v28, %v8540_v30 }
0x4ac8   : > { %8544 = vrot.lane.b32.xlu0 %v8542_v40, %s10160_s10 }
0x4b30   : > { %v8316_v32 = vpop.permute.xlu1 %8315 }
0x4b31   : > { %v8318_v54 = vadd.f32 %v8316_v32, %v8312_v16 }
0x4b33   : > { %9772 = vtanh.f32 %v8318_v54 }
0x4b3a   : > { %v8545_v7 = vpop.permute.xlu0 %8544 }
0x4b3b   : > { %v8547_v33 = vadd.f32 %v8545_v7, %v8537_v0 }
0x4b3d   : > { %9774 = vtanh.f32 %v8547_v33 }
0x4b3e   : > { %9776 = vpow2.f32 %v9029_v37 }
0x4b40   : > { %v9773_v35 = vpop.eup %9772 }
0x4b41   : > { %8324 = vrot.lane.b32.xlu1 %v9773_v35, %s10160_s10 }
0x4b4a   : > { %v9775_v24 = vpop.eup %9774 }
0x4b4b   : > { %8550 = vrot.lane.b32.xlu0 %v9775_v24, %s10160_s10  ;;  %v9777_v48 = vpop.eup %9776 }
0x4b4c   : > { %v8531_v13 = vadd.f32 1.0, %v9777_v48 }
0x4b4e   : > { %9778 = vrcp.f32 %v8531_v13 }
0x4b5b   : > { %v9779_v22 = vpop.eup %9778 }
0x4bb3   : > { %v8325_v15 = vpop.permute.xlu1 %8324 }
0x4bb4   : > { %v8327_v39 = vmul.f32 %v8325_v15, %v8321_v53 }
0x4bb6   : > { %v8554_v51 = vmax.f32 %v8327_v39, 0.0 }
0x4bb8   : > { %9237 = vmatmul.mubr.msk.f32.vlgmr.msra.gmra.mxu1 %vm1140_vm5, %v8554_v51 }
0x4bbd   : > { %v8551_v61 = vpop.permute.xlu0 %8550 }
0x4bbe   : > { %v8553_v63 = vmul.f32 %v9779_v22, %v8551_v61 }
0x4bc0   : > { %v8563_v9 = vmax.f32 %v8553_v63, 0.0 }
0x4bc2   : > { %9218 = vmatmul.mubr.msk.f32.vlgmr.msra.gmra.mxu0 %vm1140_vm5, %v8563_v9 }
0x4c78   : > { %v8714_v44 = vpop.f32.mrf.mxu1 }
0x4c7a   : > { %v9238_v12 = vpop.f32.mrf.mxu1 }
0x4c82   : > { %v8641_v41 = vpop.f32.mrf.mxu0 }
0x4c83   : > { %v8715_v10 = vadd.f32 %v8714_v44, %v8641_v41 }
0x4c84   : > { %v9219_v57 = vpop.f32.mrf.mxu0 }
0x4c85   : > { %v8719_v1 = vadd.f32 %v8718_v55, %v8715_v10 }
0x4c87   : > { %8721 = vst.msk [vmem:[%s804_s22] sm:$0x1] %vm8720_vm8, %v8719_v1 }
0x4c88   : > { %10071 = shalt.err (!%p10068_p5)
}
0x4c89   : > { %s10072_s13 = scalar_lea.hbm %s8733_s11, 16  ;;  %s10076_s14 = scalar_lea.hbm %s12506_s24, 32 }
0x4c8a   : > { %p10073_p7 = scmp.ne.s32.totalorder %s8733_s11, %s10072_s13  ;;  %p10077_p12 = scmp.lt.s32.totalorder %s8733_s11, %s12506_s24 }
0x4c8b   : > { %p10078_p2 = scmp.lt.s32.totalorder %s10076_s14, %s10072_s13 }
0x4c8c   : > { %p10074_p10 = pnand %p10073_p7, %p12507_p9 }
0x4c8d   : > { %p10079_p13 = por %p10078_p2, %p10077_p12 }
0x4c8e   : > { %p10075_p11 = pneg %p10074_p10 }
0x4c90   : > { %p10080_p8 = pnand %p10079_p13, %p10075_p11 }
0x4c92   : > { %10083 = shalt.err (!%p10080_p8)
}
0x4c93   : > { %9277 = dma.vmem_to_hbm [thread:$0]  (%p12507_p9), %s8736_s18, 16, %s8733_s11, %s8723_s23  }
0x4c94 PF: > { %s8747_s22 = sand.u32 1, %s10130_s2   ;;  %p12508_p1 = scmp.ne.s32.totalorder %s12485_s21, 0 }
0x4c95   : > { %p12509_p3 = scmp.ge.s32.totalorder %s10142_s27, 2  ;;  %s8748_s28 = scalar_lea.sflag [#allocation8], %s8747_s22 }
0x4c97   : > { %p9312_p4 = pnand %p12509_p3, %p12508_p1 }
0x4c99   : > { %p9313_p0 = pneg %p9312_p4 }
0x4c9b   : > { %10125 = dma.done.wait (%p9313_p0), %s8748_s28, 16  }
0x4c9c   : > { %10127 = vsyncadd (%p9313_p0), %s8748_s28, 4294967280  ;;  %s12510_s5 = sld [smem:[#allocation31_spill]]  ;;  %p39_p6 = scmp.ge.s32.totalorder %s10420_s1, 4  }
0x4c9d   : > { %s12511_s2 = smov %s10134_s25  ;;  %s12512_s25 = smov %s10138_s26 }
0x4c9e   : > { %s12514_s27 = smov %s10420_s1  ;;  %41 = sbr.rel (!%p39_p6) target bundleno = 28 (0x1c), region = 219 }
0x4ca2   : > { %s12513_s26 = smov %s12510_s5 }
0x4ca3   :  { %8752 = vsyncpa [#allocation7], 1 }
0x4ca4   :  { %8754 = vsyncpa [#allocation7 + $0x1], 1 }
0x4ca5   :  { %8755 = vsyncpa [#allocation10], 1 }
0x4ca6   :  { %8756 = vsyncpa [#allocation13], 1 }
0x4ca7   :  { %8757 = vsyncpa [#allocation16], 1 }
0x4ca8   :  { %8758 = vsyncpa [#allocation19], 1 }
0x4ca9   :  { %8759 = vsyncpa [#allocation22], 1 }
0x4caa   :  { %8760 = vsyncpa [#allocation8], 1 }
0x4cab   :  { %8762 = vsyncpa [#allocation8 + $0x1], 1 }

</bundles_post_ra>
